<compile_context>
chip_gen: v5e
topology: v5e:2x2
jax: 0.10.0
libtpu: 0.0.40
codegen_flags: <defaults>
</compile_context>

<pallas_src>
import jax
import jax.numpy as jnp
from jax import lax
from jax.experimental import pallas as pl
from jax.experimental.pallas import tpu as pltpu


def _round_up(x, m):
    return ((x + m - 1) // m) * m


# ----------------------------------------------------------------------------
# Kernel 1: tiled matmul + bias (used for the fused ConvTranspose2d k=2, s=2)
# ----------------------------------------------------------------------------
def _matmul_bias_kernel(x_ref, w_ref, b_ref, o_ref):
    acc = jnp.dot(x_ref[...], w_ref[...], preferred_element_type=jnp.float32)
    acc = acc + b_ref[...]                      # bias in f32
    o_ref[...] = acc.astype(o_ref.dtype)        # single store per tile


def matmul_bias(x, w, b, *, out_dtype):
    """y = x @ w + b.   x:(M,K) bf16, w:(K,N) bf16, b:(1,N) f32 -> (M,N)."""
    M, K = x.shape
    K2, Nout = w.shape
    assert K == K2 and b.shape == (1, Nout)

    # M tiling: pad the row count instead of falling back to one giant block.
    tm = min(256, _round_up(M, 8))
    Mpad = _round_up(M, tm)
    if Mpad != M:
        x = jnp.pad(x, ((0, Mpad - M), (0, 0)))

    # Cout tiling (lane-dense): only tile when Nout is a clean 128/256 multiple.
    if Nout > 256 and Nout % 256 == 0:
        tn = 256
    elif Nout > 128 and Nout % 128 == 0:
        tn = 128
    else:
        tn = Nout

    grid = (Mpad // tm, Nout // tn)
    bytes_acc = (Mpad * K + K * Nout) * x.dtype.itemsize \
        + Nout * 4 + Mpad * Nout * jnp.dtype(out_dtype).itemsize

    y = pl.pallas_call(
        _matmul_bias_kernel,
        out_shape=jax.ShapeDtypeStruct((Mpad, Nout), out_dtype),
        grid_spec=pltpu.PrefetchScalarGridSpec(
            num_scalar_prefetch=0,
            grid=grid,
            in_specs=[
                pl.BlockSpec((tm, K), lambda i, j: (i, 0)),
                pl.BlockSpec((K, tn), lambda i, j: (0, j)),
                pl.BlockSpec((1, tn), lambda i, j: (0, j)),
            ],
            out_specs=pl.BlockSpec((tm, tn), lambda i, j: (i, j)),
        ),
        compiler_params=pltpu.CompilerParams(
            dimension_semantics=("parallel", "parallel")),
        cost_estimate=pl.CostEstimate(flops=int(2 * Mpad * K * Nout),
                                      transcendentals=0,
                                      bytes_accessed=int(bytes_acc)),
    )(x, w, b)
    return y[:M] if Mpad != M else y


# ----------------------------------------------------------------------------
# Kernel 2: fused 3x3 (pad=1) conv with in-kernel im2col and in-kernel concat.
#   - takes a LIST of already-padded NHWC inputs + matching weight slices and
#     sums their contributions (== conv over the channel concatenation).
#   - 9 shifted-window bf16 matmuls accumulate into an f32 value; bias + ReLU
#     applied once; output written exactly once per tile.
# ----------------------------------------------------------------------------
def _make_conv3x3_kernel(n_in, H, W, relu):
    def kernel(*refs):
        x_refs = refs[:n_in]
        w_refs = refs[n_in:2 * n_in]
        b_ref = refs[2 * n_in]
        o_ref = refs[2 * n_in + 1]
        cout = o_ref.shape[-1]

        acc = jnp.zeros((H * W, cout), jnp.float32)
        for x_ref, w_ref in zip(x_refs, w_refs):
            cin = x_ref.shape[-1]
            for dh in range(3):
                for dw in range(3):
                    win = x_ref[dh:dh + H, dw:dw + W, :]        # (H, W, cin)
                    win = win.reshape(H * W, cin)               # layout no-op (W % 8 == 0)
                    acc = acc + jnp.dot(win, w_ref[dh, dw],
                                        preferred_element_type=jnp.float32)
        acc = acc + b_ref[...]
        if relu:
            acc = jnp.maximum(acc, 0.0)
        o_ref[...] = acc.astype(o_ref.dtype)
    return kernel


def conv3x3_fused(xs_padded, ws, b, *, relu, out_dtype):
    """3x3 / pad=1 conv over the (virtual) channel concat of `xs_padded`.

    xs_padded: list of (N, H+2, W+2, Ci) bf16 tensors (spatially pre-padded).
    ws:        list of (3, 3, Ci, Cout) bf16 weights (matching channel split).
    b:         (Cout,) bias.
    Returns (N, H, W, Cout). No im2col tensor and no concatenated activation
    is ever written to HBM.
    """
    n_in = len(xs_padded)
    N, Hp, Wp, _ = xs_padded[0].shape
    H, W = Hp - 2, Wp - 2
    Cout = ws[0].shape[-1]
    b2 = b.reshape(1, Cout).astype(jnp.float32)

    in_specs = []
    for xp in xs_padded:
        ci = xp.shape[-1]
        in_specs.append(pl.BlockSpec((None, Hp, Wp, ci), lambda n: (n, 0, 0, 0)))
    for w in ws:
        in_specs.append(pl.BlockSpec(tuple(w.shape), lambda n: (0, 0, 0, 0)))
    in_specs.append(pl.BlockSpec((1, Cout), lambda n: (0, 0)))

    flops = 2 * N * H * W * 9 * sum(int(xp.shape[-1]) for xp in xs_padded) * Cout
    bytes_acc = sum(int(t.size) * t.dtype.itemsize for t in list(xs_padded) + list(ws)) \
        + int(b2.size) * 4 + N * H * W * Cout * jnp.dtype(out_dtype).itemsize

    y = pl.pallas_call(
        _make_conv3x3_kernel(n_in, H, W, relu),
        out_shape=jax.ShapeDtypeStruct((N, H * W, Cout), out_dtype),
        grid_spec=pltpu.PrefetchScalarGridSpec(
            num_scalar_prefetch=0,
            grid=(N,),
            in_specs=in_specs,
            out_specs=pl.BlockSpec((None, H * W, Cout), lambda n: (n, 0, 0)),
        ),
        compiler_params=pltpu.CompilerParams(
            dimension_semantics=("parallel",)),
        cost_estimate=pl.CostEstimate(flops=int(flops), transcendentals=0,
                                      bytes_accessed=int(bytes_acc)),
    )(*xs_padded, *ws, b2)
    return y.reshape(N, H, W, Cout)     # free reshape (contiguous)


# ----------------------------------------------------------------------------
# upStep forward (NCHW in / NCHW out, matching the PyTorch module)
# ----------------------------------------------------------------------------
def upstep_forward(params, x_nchw, x_down_nchw, *, compute_dtype=jnp.bfloat16):
    N, inC, H0, W0 = x_nchw.shape
    outC = params["up_w"].shape[1]

    # NCHW -> NHWC; cast once to bf16 (XLA fuses the cast with the transpose).
    x = jnp.transpose(x_nchw, (0, 2, 3, 1)).astype(compute_dtype)
    x_down = jnp.transpose(x_down_nchw, (0, 2, 3, 1)).astype(compute_dtype)

    # ---- ConvTranspose2d(k=2, s=2) as ONE lane-dense matmul -----------------
    # out[n,2i+di,2j+dj,co] = sum_ci x[n,i,j,ci] * W[ci,co,di,dj] + b[co]
    w_up = jnp.transpose(params["up_w"], (0, 2, 3, 1)).reshape(inC, 4 * outC)
    w_up = w_up.astype(compute_dtype)                    # cols ordered (di, dj, co)
    b_up = jnp.tile(params["up_b"].astype(jnp.float32), 4).reshape(1, 4 * outC)
    xf = x.reshape(N * H0 * W0, inC)
    up = matmul_bias(xf, w_up, b_up, out_dtype=compute_dtype)      # (M, 4*outC)
    up = up.reshape(N, H0, W0, 2, 2, outC)
    # TODO(synk): the stride-2 pixel shuffle below is XLA glue; it cannot be
    #             expressed as a rectangular out-BlockSpec scatter.
    up = jnp.transpose(up, (0, 1, 3, 2, 4, 5)).reshape(N, 2 * H0, 2 * W0, outC)

    # ---- conv1 (3x3, p=1) + ReLU, fused with cat((x_down, up), channels) ----
    Cd = x_down.shape[-1]
    pad = ((0, 0), (1, 1), (1, 1), (0, 0))
    xd_p = jnp.pad(x_down, pad)
    xu_p = jnp.pad(up, pad)
    w1 = jnp.transpose(params["conv1_w"], (2, 3, 1, 0)).astype(compute_dtype)  # (3,3,inC,outC)
    h1 = conv3x3_fused([xd_p, xu_p],
                       [w1[:, :, :Cd, :], w1[:, :, Cd:, :]],
                       params["conv1_b"], relu=True, out_dtype=compute_dtype)

    # ---- conv2 (3x3, p=1) ----------------------------------------------------
    w2 = jnp.transpose(params["conv2_w"], (2, 3, 1, 0)).astype(compute_dtype)
    h1_p = jnp.pad(h1, pad)
    out = conv3x3_fused([h1_p], [w2], params["conv2_b"],
                        relu=False, out_dtype=jnp.float32)

    return jnp.transpose(out, (0, 3, 1, 2))              # NHWC -> NCHW


def init_params(key, inC, outC, dtype=jnp.float32):
    ks = jax.random.split(key, 6)
    scale = 0.1
    return {
        # ConvTranspose2d weight: (inC, outC, 2, 2)
        "up_w": scale * jax.random.normal(ks[0], (inC, outC, 2, 2), dtype),
        "up_b": scale * jax.random.normal(ks[1], (outC,), dtype),
        # Conv2d weights: (Cout, Cin, 3, 3)
        "conv1_w": scale * jax.random.normal(ks[2], (outC, inC, 3, 3), dtype),
        "conv1_b": scale * jax.random.normal(ks[3], (outC,), dtype),
        "conv2_w": scale * jax.random.normal(ks[4], (outC, outC, 3, 3), dtype),
        "conv2_b": scale * jax.random.normal(ks[5], (outC,), dtype),
    }


# ----------------------------------------------------------------------------
# Pure-JAX f32 reference (for a loose correctness check of the bf16 kernels)
# ----------------------------------------------------------------------------
def _ref_upstep(params, x_nchw, x_down_nchw):
    x = jnp.transpose(x_nchw, (0, 2, 3, 1)).astype(jnp.float32)
    xd = jnp.transpose(x_down_nchw, (0, 2, 3, 1)).astype(jnp.float32)
    N, H0, W0, _ = x.shape
    outC = params["up_w"].shape[1]

    y = jnp.einsum("nhwc,cdij->nhwijd", x, params["up_w"]) + params["up_b"]
    y = jnp.transpose(y, (0, 1, 3, 2, 4, 5)).reshape(N, 2 * H0, 2 * W0, outC)
    z = jnp.concatenate([xd, y], axis=-1)

    def conv3(t, w, b, relu):
        w_hwio = jnp.transpose(w, (2, 3, 1, 0))
        r = lax.conv_general_dilated(t, w_hwio, (1, 1), ((1, 1), (1, 1)),
                                     dimension_numbers=("NHWC", "HWIO", "NHWC"))
        r = r + b
        return jnp.maximum(r, 0.0) if relu else r

    z = conv3(z, params["conv1_w"], params["conv1_b"], True)
    z = conv3(z, params["conv2_w"], params["conv2_b"], False)
    return jnp.transpose(z, (0, 3, 1, 2))


if __name__ == "__main__":
    # UNet convention: inC = 2 * outC so that cat(x_down, up(x)) has inC channels.
    N, inC, outC = 2, 8, 4
    H = W = 8                                   # x spatial; x_down is 2H x 2W

    key = jax.random.PRNGKey(0)
    k1, k2, k3 = jax.random.split(key, 3)
    params = init_params(k1, inC, outC)

    x = jax.random.normal(k2, (N, inC, H, W), jnp.float32)
    x_down = jax.random.normal(k3, (N, outC, 2 * H, 2 * W), jnp.float32)

    out = jax.jit(upstep_forward)(params, x, x_down)
    jax.block_until_ready(out)
    assert out.shape == (N, outC, 2 * H, 2 * W), out.shape

    ref = _ref_upstep(params, x, x_down)
    err = float(jnp.max(jnp.abs(out - ref)))
    assert err < 1e-1, f"max |err| = {err}"     # loose: kernel runs in bf16

    print("KERNEL_OK")
</pallas_src>

<mosaic_0001>
module attributes {stable_mosaic.version = 11 : i64} {
  func.func @_matmul_bias_kernel(%arg0: i32, %arg1: i32, %arg2: memref<128x8xbf16, #tpu.memory_space<vmem>>, %arg3: memref<8x16xbf16, #tpu.memory_space<vmem>>, %arg4: memref<1x16xf32, #tpu.memory_space<vmem>>, %arg5: memref<128x16xbf16, #tpu.memory_space<vmem>>) attributes {dimension_semantics = [#tpu.dimension_semantics<parallel>, #tpu.dimension_semantics<parallel>], iteration_bounds = array<i64: 1, 1>, scalar_prefetch = 0 : i64, scratch_operands = 0 : i64, tpu.core_type = #tpu.core_type<tc>, window_params = [{transform_indices = @transform_0, window_bounds = array<i64: 128, 8>}, {transform_indices = @transform_1, window_bounds = array<i64: 8, 16>}, {transform_indices = @transform_2, window_bounds = array<i64: 1, 16>}, {transform_indices = @transform_3, window_bounds = array<i64: 128, 16>}]} {
    %c0 = arith.constant 0 : index
    %c0_0 = arith.constant 0 : index
    %0 = vector.load %arg2[%c0, %c0_0] : memref<128x8xbf16, #tpu.memory_space<vmem>>, vector<128x8xbf16>
    %c0_1 = arith.constant 0 : index
    %c0_2 = arith.constant 0 : index
    %1 = vector.load %arg3[%c0_1, %c0_2] : memref<8x16xbf16, #tpu.memory_space<vmem>>, vector<8x16xbf16>
    %cst = arith.constant dense<0.000000e+00> : vector<128x16xf32>
    %2 = tpu.matmul %0, %1, %cst {dimension_numbers = #tpu.dot_dimension_numbers<[1], [0], [0], [1], [0, 0, 1, 1], [], []>} : vector<128x8xbf16>, vector<8x16xbf16>, vector<128x16xf32> -> vector<128x16xf32>
    %c0_3 = arith.constant 0 : index
    %c0_4 = arith.constant 0 : index
    %3 = vector.load %arg4[%c0_3, %c0_4] : memref<1x16xf32, #tpu.memory_space<vmem>>, vector<1x16xf32>
    %4 = vector.broadcast %3 : vector<1x16xf32> to vector<128x16xf32>
    %5 = arith.addf %2, %4 : vector<128x16xf32>
    %6 = arith.truncf %5 : vector<128x16xf32> to vector<128x16xbf16>
    %c0_5 = arith.constant 0 : index
    %c0_6 = arith.constant 0 : index
    %7 = vector.load %arg5[%c0_5, %c0_6] : memref<128x16xbf16, #tpu.memory_space<vmem>>, vector<128x16xbf16>
    tpu.vector_store %arg5[%c0_5, %c0_6], %6 {strides = array<i32>} : memref<128x16xbf16, #tpu.memory_space<vmem>>, vector<128x16xbf16>,
    return
  }
  func.func @transform_0(%arg0: i32, %arg1: i32) -> (i32, i32) {
    %c0_i32 = arith.constant 0 : i32
    %c0_i32_0 = arith.constant 0 : i32
    return %arg0, %c0_i32 : i32, i32
  }
  func.func @transform_1(%arg0: i32, %arg1: i32) -> (i32, i32) {
    %c0_i32 = arith.constant 0 : i32
    %c0_i32_0 = arith.constant 0 : i32
    return %c0_i32, %arg1 : i32, i32
  }
  func.func @transform_2(%arg0: i32, %arg1: i32) -> (i32, i32) {
    %c0_i32 = arith.constant 0 : i32
    %c0_i32_0 = arith.constant 0 : i32
    return %c0_i32, %arg1 : i32, i32
  }
  func.func @transform_3(%arg0: i32, %arg1: i32) -> (i32, i32) {
    %c0_i32 = arith.constant 0 : i32
    return %arg0, %arg1 : i32, i32
  }
}

module attributes {stable_mosaic.version = 11 : i64} {
  func.func @kernel(%arg0: i32, %arg1: memref<1x18x18x4xbf16, #tpu.memory_space<vmem>>, %arg2: memref<1x18x18x4xbf16, #tpu.memory_space<vmem>>, %arg3: memref<3x3x4x4xbf16, #tpu.memory_space<vmem>>, %arg4: memref<3x3x4x4xbf16, #tpu.memory_space<vmem>>, %arg5: memref<1x4xf32, #tpu.memory_space<vmem>>, %arg6: memref<1x256x4xbf16, #tpu.memory_space<vmem>>) attributes {dimension_semantics = [#tpu.dimension_semantics<parallel>], iteration_bounds = array<i64: 2>, scalar_prefetch = 0 : i64, scratch_operands = 0 : i64, tpu.core_type = #tpu.core_type<tc>, window_params = [{transform_indices = @transform_0, window_bounds = array<i64: 1, 18, 18, 4>}, {transform_indices = @transform_1, window_bounds = array<i64: 1, 18, 18, 4>}, {pipeline_mode = #tpu.pipeline_mode<synchronous>, transform_indices = @transform_2, window_bounds = array<i64: 3, 3, 4, 4>}, {pipeline_mode = #tpu.pipeline_mode<synchronous>, transform_indices = @transform_3, window_bounds = array<i64: 3, 3, 4, 4>}, {pipeline_mode = #tpu.pipeline_mode<synchronous>, transform_indices = @transform_4, window_bounds = array<i64: 1, 4>}, {transform_indices = @transform_5, window_bounds = array<i64: 1, 256, 4>}]} {
    %cst = arith.constant 0.000000e+00 : f32
    %0 = vector.broadcast %cst : f32 to vector<256x4xf32>
    %c0 = arith.constant 0 : index
    %c0_0 = arith.constant 0 : index
    %c0_1 = arith.constant 0 : index
    %c0_2 = arith.constant 0 : index
    %1 = vector.load %arg1[%c0, %c0_0, %c0_1, %c0_2] : memref<1x18x18x4xbf16, #tpu.memory_space<vmem>>, vector<1x16x16x4xbf16>
    %2 = vector.shape_cast %1 : vector<1x16x16x4xbf16> to vector<16x16x4xbf16>
    %3 = vector.shape_cast %2 : vector<16x16x4xbf16> to vector<256x4xbf16>
    %c0_3 = arith.constant 0 : index
    %c0_4 = arith.constant 0 : index
    %c0_5 = arith.constant 0 : index
    %c0_6 = arith.constant 0 : index
    %4 = vector.load %arg3[%c0_3, %c0_4, %c0_5, %c0_6] : memref<3x3x4x4xbf16, #tpu.memory_space<vmem>>, vector<1x1x4x4xbf16>
    %5 = vector.shape_cast %4 : vector<1x1x4x4xbf16> to vector<4x4xbf16>
    %cst_7 = arith.constant dense<0.000000e+00> : vector<256x4xf32>
    %6 = tpu.matmul %3, %5, %cst_7 {dimension_numbers = #tpu.dot_dimension_numbers<[1], [0], [0], [1], [0, 0, 1, 1], [], []>} : vector<256x4xbf16>, vector<4x4xbf16>, vector<256x4xf32> -> vector<256x4xf32>
    %7 = arith.addf %0, %6 : vector<256x4xf32>
    %c0_8 = arith.constant 0 : index
    %c0_9 = arith.constant 0 : index
    %c1 = arith.constant 1 : index
    %c0_10 = arith.constant 0 : index
    %8 = vector.load %arg1[%c0_8, %c0_9, %c1, %c0_10] : memref<1x18x18x4xbf16, #tpu.memory_space<vmem>>, vector<1x16x16x4xbf16>
    %9 = vector.shape_cast %8 : vector<1x16x16x4xbf16> to vector<16x16x4xbf16>
    %10 = vector.shape_cast %9 : vector<16x16x4xbf16> to vector<256x4xbf16>
    %c0_11 = arith.constant 0 : index
    %c1_12 = arith.constant 1 : index
    %c0_13 = arith.constant 0 : index
    %c0_14 = arith.constant 0 : index
    %11 = vector.load %arg3[%c0_11, %c1_12, %c0_13, %c0_14] : memref<3x3x4x4xbf16, #tpu.memory_space<vmem>>, vector<1x1x4x4xbf16>
    %12 = vector.shape_cast %11 : vector<1x1x4x4xbf16> to vector<4x4xbf16>
    %cst_15 = arith.constant dense<0.000000e+00> : vector<256x4xf32>
    %13 = tpu.matmul %10, %12, %cst_15 {dimension_numbers = #tpu.dot_dimension_numbers<[1], [0], [0], [1], [0, 0, 1, 1], [], []>} : vector<256x4xbf16>, vector<4x4xbf16>, vector<256x4xf32> -> vector<256x4xf32>
    %14 = arith.addf %7, %13 : vector<256x4xf32>
    %c0_16 = arith.constant 0 : index
    %c0_17 = arith.constant 0 : index
    %c2 = arith.constant 2 : index
    %c0_18 = arith.constant 0 : index
    %15 = vector.load %arg1[%c0_16, %c0_17, %c2, %c0_18] : memref<1x18x18x4xbf16, #tpu.memory_space<vmem>>, vector<1x16x16x4xbf16>
    %16 = vector.shape_cast %15 : vector<1x16x16x4xbf16> to vector<16x16x4xbf16>
    %17 = vector.shape_cast %16 : vector<16x16x4xbf16> to vector<256x4xbf16>
    %c0_19 = arith.constant 0 : index
    %c2_20 = arith.constant 2 : index
    %c0_21 = arith.constant 0 : index
    %c0_22 = arith.constant 0 : index
    %18 = vector.load %arg3[%c0_19, %c2_20, %c0_21, %c0_22] : memref<3x3x4x4xbf16, #tpu.memory_space<vmem>>, vector<1x1x4x4xbf16>
    %19 = vector.shape_cast %18 : vector<1x1x4x4xbf16> to vector<4x4xbf16>
    %cst_23 = arith.constant dense<0.000000e+00> : vector<256x4xf32>
    %20 = tpu.matmul %17, %19, %cst_23 {dimension_numbers = #tpu.dot_dimension_numbers<[1], [0], [0], [1], [0, 0, 1, 1], [], []>} : vector<256x4xbf16>, vector<4x4xbf16>, vector<256x4xf32> -> vector<256x4xf32>
    %21 = arith.addf %14, %20 : vector<256x4xf32>
    %c0_24 = arith.constant 0 : index
    %c1_25 = arith.constant 1 : index
    %c0_26 = arith.constant 0 : index
    %c0_27 = arith.constant 0 : index
    %22 = vector.load %arg1[%c0_24, %c1_25, %c0_26, %c0_27] : memref<1x18x18x4xbf16, #tpu.memory_space<vmem>>, vector<1x16x16x4xbf16>
    %23 = vector.shape_cast %22 : vector<1x16x16x4xbf16> to vector<16x16x4xbf16>
    %24 = vector.shape_cast %23 : vector<16x16x4xbf16> to vector<256x4xbf16>
    %c1_28 = arith.constant 1 : index
    %c0_29 = arith.constant 0 : index
    %c0_30 = arith.constant 0 : index
    %c0_31 = arith.constant 0 : index
    %25 = vector.load %arg3[%c1_28, %c0_29, %c0_30, %c0_31] : memref<3x3x4x4xbf16, #tpu.memory_space<vmem>>, vector<1x1x4x4xbf16>
    %26 = vector.shape_cast %25 : vector<1x1x4x4xbf16> to vector<4x4xbf16>
    %cst_32 = arith.constant dense<0.000000e+00> : vector<256x4xf32>
    %27 = tpu.matmul %24, %26, %cst_32 {dimension_numbers = #tpu.dot_dimension_numbers<[1], [0], [0], [1], [0, 0, 1, 1], [], []>} : vector<256x4xbf16>, vector<4x4xbf16>, vector<256x4xf32> -> vector<256x4xf32>
    %28 = arith.addf %21, %27 : vector<256x4xf32>
    %c0_33 = arith.constant 0 : index
    %c1_34 = arith.constant 1 : index
    %c1_35 = arith.constant 1 : index
    %c0_36 = arith.constant 0 : index
    %29 = vector.load %arg1[%c0_33, %c1_34, %c1_35, %c0_36] : memref<1x18x18x4xbf16, #tpu.memory_space<vmem>>, vector<1x16x16x4xbf16>
    %30 = vector.shape_cast %29 : vector<1x16x16x4xbf16> to vector<16x16x4xbf16>
    %31 = vector.shape_cast %30 : vector<16x16x4xbf16> to vector<256x4xbf16>
    %c1_37 = arith.constant 1 : index
    %c1_38 = arith.constant 1 : index
    %c0_39 = arith.constant 0 : index
    %c0_40 = arith.constant 0 : index
    %32 = vector.load %arg3[%c1_37, %c1_38, %c0_39, %c0_40] : memref<3x3x4x4xbf16, #tpu.memory_space<vmem>>, vector<1x1x4x4xbf16>
    %33 = vector.shape_cast %32 : vector<1x1x4x4xbf16> to vector<4x4xbf16>
    %cst_41 = arith.constant dense<0.000000e+00> : vector<256x4xf32>
    %34 = tpu.matmul %31, %33, %cst_41 {dimension_numbers = #tpu.dot_dimension_numbers<[1], [0], [0], [1], [0, 0, 1, 1], [], []>} : vector<256x4xbf16>, vector<4x4xbf16>, vector<256x4xf32> -> vector<256x4xf32>
    %35 = arith.addf %28, %34 : vector<256x4xf32>
    %c0_42 = arith.constant 0 : index
    %c1_43 = arith.constant 1 : index
    %c2_44 = arith.constant 2 : index
    %c0_45 = arith.constant 0 : index
    %36 = vector.load %arg1[%c0_42, %c1_43, %c2_44, %c0_45] : memref<1x18x18x4xbf16, #tpu.memory_space<vmem>>, vector<1x16x16x4xbf16>
    %37 = vector.shape_cast %36 : vector<1x16x16x4xbf16> to vector<16x16x4xbf16>
    %38 = vector.shape_cast %37 : vector<16x16x4xbf16> to vector<256x4xbf16>
    %c1_46 = arith.constant 1 : index
    %c2_47 = arith.constant 2 : index
    %c0_48 = arith.constant 0 : index
    %c0_49 = arith.constant 0 : index
    %39 = vector.load %arg3[%c1_46, %c2_47, %c0_48, %c0_49] : memref<3x3x4x4xbf16, #tpu.memory_space<vmem>>, vector<1x1x4x4xbf16>
    %40 = vector.shape_cast %39 : vector<1x1x4x4xbf16> to vector<4x4xbf16>
    %cst_50 = arith.constant dense<0.000000e+00> : vector<256x4xf32>
    %41 = tpu.matmul %38, %40, %cst_50 {dimension_numbers = #tpu.dot_dimension_numbers<[1], [0], [0], [1], [0, 0, 1, 1], [], []>} : vector<256x4xbf16>, vector<4x4xbf16>, vector<256x4xf32> -> vector<256x4xf32>
    %42 = arith.addf %35, %41 : vector<256x4xf32>
    %c0_51 = arith.constant 0 : index
    %c2_52 = arith.constant 2 : index
    %c0_53 = arith.constant 0 : index
    %c0_54 = arith.constant 0 : index
    %43 = vector.load %arg1[%c0_51, %c2_52, %c0_53, %c0_54] : memref<1x18x18x4xbf16, #tpu.memory_space<vmem>>, vector<1x16x16x4xbf16>
    %44 = vector.shape_cast %43 : vector<1x16x16x4xbf16> to vector<16x16x4xbf16>
    %45 = vector.shape_cast %44 : vector<16x16x4xbf16> to vector<256x4xbf16>
    %c2_55 = arith.constant 2 : index
    %c0_56 = arith.constant 0 : index
    %c0_57 = arith.constant 0 : index
    %c0_58 = arith.constant 0 : index
    %46 = vector.load %arg3[%c2_55, %c0_56, %c0_57, %c0_58] : memref<3x3x4x4xbf16, #tpu.memory_space<vmem>>, vector<1x1x4x4xbf16>
    %47 = vector.shape_cast %46 : vector<1x1x4x4xbf16> to vector<4x4xbf16>
    %cst_59 = arith.constant dense<0.000000e+00> : vector<256x4xf32>
    %48 = tpu.matmul %45, %47, %cst_59 {dimension_numbers = #tpu.dot_dimension_numbers<[1], [0], [0], [1], [0, 0, 1, 1], [], []>} : vector<256x4xbf16>, vector<4x4xbf16>, vector<256x4xf32> -> vector<256x4xf32>
    %49 = arith.addf %42, %48 : vector<256x4xf32>
    %c0_60 = arith.constant 0 : index
    %c2_61 = arith.constant 2 : index
    %c1_62 = arith.constant 1 : index
    %c0_63 = arith.constant 0 : index
    %50 = vector.load %arg1[%c0_60, %c2_61, %c1_62, %c0_63] : memref<1x18x18x4xbf16, #tpu.memory_space<vmem>>, vector<1x16x16x4xbf16>
    %51 = vector.shape_cast %50 : vector<1x16x16x4xbf16> to vector<16x16x4xbf16>
    %52 = vector.shape_cast %51 : vector<16x16x4xbf16> to vector<256x4xbf16>
    %c2_64 = arith.constant 2 : index
    %c1_65 = arith.constant 1 : index
    %c0_66 = arith.constant 0 : index
    %c0_67 = arith.constant 0 : index
    %53 = vector.load %arg3[%c2_64, %c1_65, %c0_66, %c0_67] : memref<3x3x4x4xbf16, #tpu.memory_space<vmem>>, vector<1x1x4x4xbf16>
    %54 = vector.shape_cast %53 : vector<1x1x4x4xbf16> to vector<4x4xbf16>
    %cst_68 = arith.constant dense<0.000000e+00> : vector<256x4xf32>
    %55 = tpu.matmul %52, %54, %cst_68 {dimension_numbers = #tpu.dot_dimension_numbers<[1], [0], [0], [1], [0, 0, 1, 1], [], []>} : vector<256x4xbf16>, vector<4x4xbf16>, vector<256x4xf32> -> vector<256x4xf32>
    %56 = arith.addf %49, %55 : vector<256x4xf32>
    %c0_69 = arith.constant 0 : index
    %c2_70 = arith.constant 2 : index
    %c2_71 = arith.constant 2 : index
    %c0_72 = arith.constant 0 : index
    %57 = vector.load %arg1[%c0_69, %c2_70, %c2_71, %c0_72] : memref<1x18x18x4xbf16, #tpu.memory_space<vmem>>, vector<1x16x16x4xbf16>
    %58 = vector.shape_cast %57 : vector<1x16x16x4xbf16> to vector<16x16x4xbf16>
    %59 = vector.shape_cast %58 : vector<16x16x4xbf16> to vector<256x4xbf16>
    %c2_73 = arith.constant 2 : index
    %c2_74 = arith.constant 2 : index
    %c0_75 = arith.constant 0 : index
    %c0_76 = arith.constant 0 : index
    %60 = vector.load %arg3[%c2_73, %c2_74, %c0_75, %c0_76] : memref<3x3x4x4xbf16, #tpu.memory_space<vmem>>, vector<1x1x4x4xbf16>
    %61 = vector.shape_cast %60 : vector<1x1x4x4xbf16> to vector<4x4xbf16>
    %cst_77 = arith.constant dense<0.000000e+00> : vector<256x4xf32>
    %62 = tpu.matmul %59, %61, %cst_77 {dimension_numbers = #tpu.dot_dimension_numbers<[1], [0], [0], [1], [0, 0, 1, 1], [], []>} : vector<256x4xbf16>, vector<4x4xbf16>, vector<256x4xf32> -> vector<256x4xf32>
    %63 = arith.addf %56, %62 : vector<256x4xf32>
    %c0_78 = arith.constant 0 : index
    %c0_79 = arith.constant 0 : index
    %c0_80 = arith.constant 0 : index
    %c0_81 = arith.constant 0 : index
    %64 = vector.load %arg2[%c0_78, %c0_79, %c0_80, %c0_81] : memref<1x18x18x4xbf16, #tpu.memory_space<vmem>>, vector<1x16x16x4xbf16>
    %65 = vector.shape_cast %64 : vector<1x16x16x4xbf16> to vector<16x16x4xbf16>
    %66 = vector.shape_cast %65 : vector<16x16x4xbf16> to vector<256x4xbf16>
    %c0_82 = arith.constant 0 : index
    %c0_83 = arith.constant 0 : index
    %c0_84 = arith.constant 0 : index
    %c0_85 = arith.constant 0 : index
    %67 = vector.load %arg4[%c0_82, %c0_83, %c0_84, %c0_85] : memref<3x3x4x4xbf16, #tpu.memory_space<vmem>>, vector<1x1x4x4xbf16>
    %68 = vector.shape_cast %67 : vector<1x1x4x4xbf16> to vector<4x4xbf16>
    %cst_86 = arith.constant dense<0.000000e+00> : vector<256x4xf32>
    %69 = tpu.matmul %66, %68, %cst_86 {dimension_numbers = #tpu.dot_dimension_numbers<[1], [0], [0], [1], [0, 0, 1, 1], [], []>} : vector<256x4xbf16>, vector<4x4xbf16>, vector<256x4xf32> -> vector<256x4xf32>
    %70 = arith.addf %63, %69 : vector<256x4xf32>
    %c0_87 = arith.constant 0 : index
    %c0_88 = arith.constant 0 : index
    %c1_89 = arith.constant 1 : index
    %c0_90 = arith.constant 0 : index
    %71 = vector.load %arg2[%c0_87, %c0_88, %c1_89, %c0_90] : memref<1x18x18x4xbf16, #tpu.memory_space<vmem>>, vector<1x16x16x4xbf16>
    %72 = vector.shape_cast %71 : vector<1x16x16x4xbf16> to vector<16x16x4xbf16>
    %73 = vector.shape_cast %72 : vector<16x16x4xbf16> to vector<256x4xbf16>
    %c0_91 = arith.constant 0 : index
    %c1_92 = arith.constant 1 : index
    %c0_93 = arith.constant 0 : index
    %c0_94 = arith.constant 0 : index
    %74 = vector.load %arg4[%c0_91, %c1_92, %c0_93, %c0_94] : memref<3x3x4x4xbf16, #tpu.memory_space<vmem>>, vector<1x1x4x4xbf16>
    %75 = vector.shape_cast %74 : vector<1x1x4x4xbf16> to vector<4x4xbf16>
    %cst_95 = arith.constant dense<0.000000e+00> : vector<256x4xf32>
    %76 = tpu.matmul %73, %75, %cst_95 {dimension_numbers = #tpu.dot_dimension_numbers<[1], [0], [0], [1], [0, 0, 1, 1], [], []>} : vector<256x4xbf16>, vector<4x4xbf16>, vector<256x4xf32> -> vector<256x4xf32>
    %77 = arith.addf %70, %76 : vector<256x4xf32>
    %c0_96 = arith.constant 0 : index
    %c0_97 = arith.constant 0 : index
    %c2_98 = arith.constant 2 : index
    %c0_99 = arith.constant 0 : index
    %78 = vector.load %arg2[%c0_96, %c0_97, %c2_98, %c0_99] : memref<1x18x18x4xbf16, #tpu.memory_space<vmem>>, vector<1x16x16x4xbf16>
    %79 = vector.shape_cast %78 : vector<1x16x16x4xbf16> to vector<16x16x4xbf16>
    %80 = vector.shape_cast %79 : vector<16x16x4xbf16> to vector<256x4xbf16>
    %c0_100 = arith.constant 0 : index
    %c2_101 = arith.constant 2 : index
    %c0_102 = arith.constant 0 : index
    %c0_103 = arith.constant 0 : index
    %81 = vector.load %arg4[%c0_100, %c2_101, %c0_102, %c0_103] : memref<3x3x4x4xbf16, #tpu.memory_space<vmem>>, vector<1x1x4x4xbf16>
    %82 = vector.shape_cast %81 : vector<1x1x4x4xbf16> to vector<4x4xbf16>
    %cst_104 = arith.constant dense<0.000000e+00> : vector<256x4xf32>
    %83 = tpu.matmul %80, %82, %cst_104 {dimension_numbers = #tpu.dot_dimension_numbers<[1], [0], [0], [1], [0, 0, 1, 1], [], []>} : vector<256x4xbf16>, vector<4x4xbf16>, vector<256x4xf32> -> vector<256x4xf32>
    %84 = arith.addf %77, %83 : vector<256x4xf32>
    %c0_105 = arith.constant 0 : index
    %c1_106 = arith.constant 1 : index
    %c0_107 = arith.constant 0 : index
    %c0_108 = arith.constant 0 : index
    %85 = vector.load %arg2[%c0_105, %c1_106, %c0_107, %c0_108] : memref<1x18x18x4xbf16, #tpu.memory_space<vmem>>, vector<1x16x16x4xbf16>
    %86 = vector.shape_cast %85 : vector<1x16x16x4xbf16> to vector<16x16x4xbf16>
    %87 = vector.shape_cast %86 : vector<16x16x4xbf16> to vector<256x4xbf16>
    %c1_109 = arith.constant 1 : index
    %c0_110 = arith.constant 0 : index
    %c0_111 = arith.constant 0 : index
    %c0_112 = arith.constant 0 : index
    %88 = vector.load %arg4[%c1_109, %c0_110, %c0_111, %c0_112] : memref<3x3x4x4xbf16, #tpu.memory_space<vmem>>, vector<1x1x4x4xbf16>
    %89 = vector.shape_cast %88 : vector<1x1x4x4xbf16> to vector<4x4xbf16>
    %cst_113 = arith.constant dense<0.000000e+00> : vector<256x4xf32>
    %90 = tpu.matmul %87, %89, %cst_113 {dimension_numbers = #tpu.dot_dimension_numbers<[1], [0], [0], [1], [0, 0, 1, 1], [], []>} : vector<256x4xbf16>, vector<4x4xbf16>, vector<256x4xf32> -> vector<256x4xf32>
    %91 = arith.addf %84, %90 : vector<256x4xf32>
    %c0_114 = arith.constant 0 : index
    %c1_115 = arith.constant 1 : index
    %c1_116 = arith.constant 1 : index
    %c0_117 = arith.constant 0 : index
    %92 = vector.load %arg2[%c0_114, %c1_115, %c1_116, %c0_117] : memref<1x18x18x4xbf16, #tpu.memory_space<vmem>>, vector<1x16x16x4xbf16>
    %93 = vector.shape_cast %92 : vector<1x16x16x4xbf16> to vector<16x16x4xbf16>
    %94 = vector.shape_cast %93 : vector<16x16x4xbf16> to vector<256x4xbf16>
    %c1_118 = arith.constant 1 : index
    %c1_119 = arith.constant 1 : index
    %c0_120 = arith.constant 0 : index
    %c0_121 = arith.constant 0 : index
    %95 = vector.load %arg4[%c1_118, %c1_119, %c0_120, %c0_121] : memref<3x3x4x4xbf16, #tpu.memory_space<vmem>>, vector<1x1x4x4xbf16>
    %96 = vector.shape_cast %95 : vector<1x1x4x4xbf16> to vector<4x4xbf16>
    %cst_122 = arith.constant dense<0.000000e+00> : vector<256x4xf32>
    %97 = tpu.matmul %94, %96, %cst_122 {dimension_numbers = #tpu.dot_dimension_numbers<[1], [0], [0], [1], [0, 0, 1, 1], [], []>} : vector<256x4xbf16>, vector<4x4xbf16>, vector<256x4xf32> -> vector<256x4xf32>
    %98 = arith.addf %91, %97 : vector<256x4xf32>
    %c0_123 = arith.constant 0 : index
    %c1_124 = arith.constant 1 : index
    %c2_125 = arith.constant 2 : index
    %c0_126 = arith.constant 0 : index
    %99 = vector.load %arg2[%c0_123, %c1_124, %c2_125, %c0_126] : memref<1x18x18x4xbf16, #tpu.memory_space<vmem>>, vector<1x16x16x4xbf16>
    %100 = vector.shape_cast %99 : vector<1x16x16x4xbf16> to vector<16x16x4xbf16>
    %101 = vector.shape_cast %100 : vector<16x16x4xbf16> to vector<256x4xbf16>
    %c1_127 = arith.constant 1 : index
    %c2_128 = arith.constant 2 : index
    %c0_129 = arith.constant 0 : index
    %c0_130 = arith.constant 0 : index
    %102 = vector.load %arg4[%c1_127, %c2_128, %c0_129, %c0_130] : memref<3x3x4x4xbf16, #tpu.memory_space<vmem>>, vector<1x1x4x4xbf16>
    %103 = vector.shape_cast %102 : vector<1x1x4x4xbf16> to vector<4x4xbf16>
    %cst_131 = arith.constant dense<0.000000e+00> : vector<256x4xf32>
    %104 = tpu.matmul %101, %103, %cst_131 {dimension_numbers = #tpu.dot_dimension_numbers<[1], [0], [0], [1], [0, 0, 1, 1], [], []>} : vector<256x4xbf16>, vector<4x4xbf16>, vector<256x4xf32> -> vector<256x4xf32>
    %105 = arith.addf %98, %104 : vector<256x4xf32>
    %c0_132 = arith.constant 0 : index
    %c2_133 = arith.constant 2 : index
    %c0_134 = arith.constant 0 : index
    %c0_135 = arith.constant 0 : index
    %106 = vector.load %arg2[%c0_132, %c2_133, %c0_134, %c0_135] : memref<1x18x18x4xbf16, #tpu.memory_space<vmem>>, vector<1x16x16x4xbf16>
    %107 = vector.shape_cast %106 : vector<1x16x16x4xbf16> to vector<16x16x4xbf16>
    %108 = vector.shape_cast %107 : vector<16x16x4xbf16> to vector<256x4xbf16>
    %c2_136 = arith.constant 2 : index
    %c0_137 = arith.constant 0 : index
    %c0_138 = arith.constant 0 : index
    %c0_139 = arith.constant 0 : index
    %109 = vector.load %arg4[%c2_136, %c0_137, %c0_138, %c0_139] : memref<3x3x4x4xbf16, #tpu.memory_space<vmem>>, vector<1x1x4x4xbf16>
    %110 = vector.shape_cast %109 : vector<1x1x4x4xbf16> to vector<4x4xbf16>
    %cst_140 = arith.constant dense<0.000000e+00> : vector<256x4xf32>
    %111 = tpu.matmul %108, %110, %cst_140 {dimension_numbers = #tpu.dot_dimension_numbers<[1], [0], [0], [1], [0, 0, 1, 1], [], []>} : vector<256x4xbf16>, vector<4x4xbf16>, vector<256x4xf32> -> vector<256x4xf32>
    %112 = arith.addf %105, %111 : vector<256x4xf32>
    %c0_141 = arith.constant 0 : index
    %c2_142 = arith.constant 2 : index
    %c1_143 = arith.constant 1 : index
    %c0_144 = arith.constant 0 : index
    %113 = vector.load %arg2[%c0_141, %c2_142, %c1_143, %c0_144] : memref<1x18x18x4xbf16, #tpu.memory_space<vmem>>, vector<1x16x16x4xbf16>
    %114 = vector.shape_cast %113 : vector<1x16x16x4xbf16> to vector<16x16x4xbf16>
    %115 = vector.shape_cast %114 : vector<16x16x4xbf16> to vector<256x4xbf16>
    %c2_145 = arith.constant 2 : index
    %c1_146 = arith.constant 1 : index
    %c0_147 = arith.constant 0 : index
    %c0_148 = arith.constant 0 : index
    %116 = vector.load %arg4[%c2_145, %c1_146, %c0_147, %c0_148] : memref<3x3x4x4xbf16, #tpu.memory_space<vmem>>, vector<1x1x4x4xbf16>
    %117 = vector.shape_cast %116 : vector<1x1x4x4xbf16> to vector<4x4xbf16>
    %cst_149 = arith.constant dense<0.000000e+00> : vector<256x4xf32>
    %118 = tpu.matmul %115, %117, %cst_149 {dimension_numbers = #tpu.dot_dimension_numbers<[1], [0], [0], [1], [0, 0, 1, 1], [], []>} : vector<256x4xbf16>, vector<4x4xbf16>, vector<256x4xf32> -> vector<256x4xf32>
    %119 = arith.addf %112, %118 : vector<256x4xf32>
    %c0_150 = arith.constant 0 : index
    %c2_151 = arith.constant 2 : index
    %c2_152 = arith.constant 2 : index
    %c0_153 = arith.constant 0 : index
    %120 = vector.load %arg2[%c0_150, %c2_151, %c2_152, %c0_153] : memref<1x18x18x4xbf16, #tpu.memory_space<vmem>>, vector<1x16x16x4xbf16>
    %121 = vector.shape_cast %120 : vector<1x16x16x4xbf16> to vector<16x16x4xbf16>
    %122 = vector.shape_cast %121 : vector<16x16x4xbf16> to vector<256x4xbf16>
    %c2_154 = arith.constant 2 : index
    %c2_155 = arith.constant 2 : index
    %c0_156 = arith.constant 0 : index
    %c0_157 = arith.constant 0 : index
    %123 = vector.load %arg4[%c2_154, %c2_155, %c0_156, %c0_157] : memref<3x3x4x4xbf16, #tpu.memory_space<vmem>>, vector<1x1x4x4xbf16>
    %124 = vector.shape_cast %123 : vector<1x1x4x4xbf16> to vector<4x4xbf16>
    %cst_158 = arith.constant dense<0.000000e+00> : vector<256x4xf32>
    %125 = tpu.matmul %122, %124, %cst_158 {dimension_numbers = #tpu.dot_dimension_numbers<[1], [0], [0], [1], [0, 0, 1, 1], [], []>} : vector<256x4xbf16>, vector<4x4xbf16>, vector<256x4xf32> -> vector<256x4xf32>
    %126 = arith.addf %119, %125 : vector<256x4xf32>
    %c0_159 = arith.constant 0 : index
    %c0_160 = arith.constant 0 : index
    %127 = vector.load %arg5[%c0_159, %c0_160] : memref<1x4xf32, #tpu.memory_space<vmem>>, vector<1x4xf32>
    %128 = vector.broadcast %127 : vector<1x4xf32> to vector<256x4xf32>
    %129 = arith.addf %126, %128 : vector<256x4xf32>
    %cst_161 = arith.constant 0.000000e+00 : f32
    %130 = vector.broadcast %cst_161 : f32 to vector<256x4xf32>
    %131 = arith.maximumf %129, %130 : vector<256x4xf32>
    %132 = arith.truncf %131 : vector<256x4xf32> to vector<256x4xbf16>
    %c0_162 = arith.constant 0 : index
    %c0_163 = arith.constant 0 : index
    %c0_164 = arith.constant 0 : index
    %133 = vector.load %arg6[%c0_162, %c0_163, %c0_164] : memref<1x256x4xbf16, #tpu.memory_space<vmem>>, vector<1x256x4xbf16>
    %134 = vector.shape_cast %133 : vector<1x256x4xbf16> to vector<256x4xbf16>
    %135 = vector.shape_cast %132 : vector<256x4xbf16> to vector<1x256x4xbf16>
    tpu.vector_store %arg6[%c0_162, %c0_163, %c0_164], %135 {strides = array<i32>} : memref<1x256x4xbf16, #tpu.memory_space<vmem>>, vector<1x256x4xbf16>,
    return
  }
  func.func @transform_0(%arg0: i32) -> (i32, i32, i32, i32) {
    %c0_i32 = arith.constant 0 : i32
    %c0_i32_0 = arith.constant 0 : i32
    %c0_i32_1 = arith.constant 0 : i32
    %c0_i32_2 = arith.constant 0 : i32
    return %arg0, %c0_i32, %c0_i32_0, %c0_i32_1 : i32, i32, i32, i32
  }
  func.func @transform_1(%arg0: i32) -> (i32, i32, i32, i32) {
    %c0_i32 = arith.constant 0 : i32
    %c0_i32_0 = arith.constant 0 : i32
    %c0_i32_1 = arith.constant 0 : i32
    %c0_i32_2 = arith.constant 0 : i32
    return %arg0, %c0_i32, %c0_i32_0, %c0_i32_1 : i32, i32, i32, i32
  }
  func.func @transform_2(%arg0: i32) -> (i32, i32, i32, i32) {
    %c0_i32 = arith.constant 0 : i32
    %c0_i32_0 = arith.constant 0 : i32
    %c0_i32_1 = arith.constant 0 : i32
    %c0_i32_2 = arith.constant 0 : i32
    %c0_i32_3 = arith.constant 0 : i32
    return %c0_i32, %c0_i32_0, %c0_i32_1, %c0_i32_2 : i32, i32, i32, i32
  }
  func.func @transform_3(%arg0: i32) -> (i32, i32, i32, i32) {
    %c0_i32 = arith.constant 0 : i32
    %c0_i32_0 = arith.constant 0 : i32
    %c0_i32_1 = arith.constant 0 : i32
    %c0_i32_2 = arith.constant 0 : i32
    %c0_i32_3 = arith.constant 0 : i32
    return %c0_i32, %c0_i32_0, %c0_i32_1, %c0_i32_2 : i32, i32, i32, i32
  }
  func.func @transform_4(%arg0: i32) -> (i32, i32) {
    %c0_i32 = arith.constant 0 : i32
    %c0_i32_0 = arith.constant 0 : i32
    %c0_i32_1 = arith.constant 0 : i32
    return %c0_i32, %c0_i32_0 : i32, i32
  }
  func.func @transform_5(%arg0: i32) -> (i32, i32, i32) {
    %c0_i32 = arith.constant 0 : i32
    %c0_i32_0 = arith.constant 0 : i32
    %c0_i32_1 = arith.constant 0 : i32
    return %arg0, %c0_i32, %c0_i32_0 : i32, i32, i32
  }
}

module attributes {stable_mosaic.version = 11 : i64} {
  func.func @kernel(%arg0: i32, %arg1: memref<1x18x18x4xbf16, #tpu.memory_space<vmem>>, %arg2: memref<3x3x4x4xbf16, #tpu.memory_space<vmem>>, %arg3: memref<1x4xf32, #tpu.memory_space<vmem>>, %arg4: memref<1x256x4xf32, #tpu.memory_space<vmem>>) attributes {dimension_semantics = [#tpu.dimension_semantics<parallel>], iteration_bounds = array<i64: 2>, scalar_prefetch = 0 : i64, scratch_operands = 0 : i64, tpu.core_type = #tpu.core_type<tc>, window_params = [{transform_indices = @transform_0, window_bounds = array<i64: 1, 18, 18, 4>}, {pipeline_mode = #tpu.pipeline_mode<synchronous>, transform_indices = @transform_1, window_bounds = array<i64: 3, 3, 4, 4>}, {pipeline_mode = #tpu.pipeline_mode<synchronous>, transform_indices = @transform_2, window_bounds = array<i64: 1, 4>}, {transform_indices = @transform_3, window_bounds = array<i64: 1, 256, 4>}]} {
    %cst = arith.constant 0.000000e+00 : f32
    %0 = vector.broadcast %cst : f32 to vector<256x4xf32>
    %c0 = arith.constant 0 : index
    %c0_0 = arith.constant 0 : index
    %c0_1 = arith.constant 0 : index
    %c0_2 = arith.constant 0 : index
    %1 = vector.load %arg1[%c0, %c0_0, %c0_1, %c0_2] : memref<1x18x18x4xbf16, #tpu.memory_space<vmem>>, vector<1x16x16x4xbf16>
    %2 = vector.shape_cast %1 : vector<1x16x16x4xbf16> to vector<16x16x4xbf16>
    %3 = vector.shape_cast %2 : vector<16x16x4xbf16> to vector<256x4xbf16>
    %c0_3 = arith.constant 0 : index
    %c0_4 = arith.constant 0 : index
    %c0_5 = arith.constant 0 : index
    %c0_6 = arith.constant 0 : index
    %4 = vector.load %arg2[%c0_3, %c0_4, %c0_5, %c0_6] : memref<3x3x4x4xbf16, #tpu.memory_space<vmem>>, vector<1x1x4x4xbf16>
    %5 = vector.shape_cast %4 : vector<1x1x4x4xbf16> to vector<4x4xbf16>
    %cst_7 = arith.constant dense<0.000000e+00> : vector<256x4xf32>
    %6 = tpu.matmul %3, %5, %cst_7 {dimension_numbers = #tpu.dot_dimension_numbers<[1], [0], [0], [1], [0, 0, 1, 1], [], []>} : vector<256x4xbf16>, vector<4x4xbf16>, vector<256x4xf32> -> vector<256x4xf32>
    %7 = arith.addf %0, %6 : vector<256x4xf32>
    %c0_8 = arith.constant 0 : index
    %c0_9 = arith.constant 0 : index
    %c1 = arith.constant 1 : index
    %c0_10 = arith.constant 0 : index
    %8 = vector.load %arg1[%c0_8, %c0_9, %c1, %c0_10] : memref<1x18x18x4xbf16, #tpu.memory_space<vmem>>, vector<1x16x16x4xbf16>
    %9 = vector.shape_cast %8 : vector<1x16x16x4xbf16> to vector<16x16x4xbf16>
    %10 = vector.shape_cast %9 : vector<16x16x4xbf16> to vector<256x4xbf16>
    %c0_11 = arith.constant 0 : index
    %c1_12 = arith.constant 1 : index
    %c0_13 = arith.constant 0 : index
    %c0_14 = arith.constant 0 : index
    %11 = vector.load %arg2[%c0_11, %c1_12, %c0_13, %c0_14] : memref<3x3x4x4xbf16, #tpu.memory_space<vmem>>, vector<1x1x4x4xbf16>
    %12 = vector.shape_cast %11 : vector<1x1x4x4xbf16> to vector<4x4xbf16>
    %cst_15 = arith.constant dense<0.000000e+00> : vector<256x4xf32>
    %13 = tpu.matmul %10, %12, %cst_15 {dimension_numbers = #tpu.dot_dimension_numbers<[1], [0], [0], [1], [0, 0, 1, 1], [], []>} : vector<256x4xbf16>, vector<4x4xbf16>, vector<256x4xf32> -> vector<256x4xf32>
    %14 = arith.addf %7, %13 : vector<256x4xf32>
    %c0_16 = arith.constant 0 : index
    %c0_17 = arith.constant 0 : index
    %c2 = arith.constant 2 : index
    %c0_18 = arith.constant 0 : index
    %15 = vector.load %arg1[%c0_16, %c0_17, %c2, %c0_18] : memref<1x18x18x4xbf16, #tpu.memory_space<vmem>>, vector<1x16x16x4xbf16>
    %16 = vector.shape_cast %15 : vector<1x16x16x4xbf16> to vector<16x16x4xbf16>
    %17 = vector.shape_cast %16 : vector<16x16x4xbf16> to vector<256x4xbf16>
    %c0_19 = arith.constant 0 : index
    %c2_20 = arith.constant 2 : index
    %c0_21 = arith.constant 0 : index
    %c0_22 = arith.constant 0 : index
    %18 = vector.load %arg2[%c0_19, %c2_20, %c0_21, %c0_22] : memref<3x3x4x4xbf16, #tpu.memory_space<vmem>>, vector<1x1x4x4xbf16>
    %19 = vector.shape_cast %18 : vector<1x1x4x4xbf16> to vector<4x4xbf16>
    %cst_23 = arith.constant dense<0.000000e+00> : vector<256x4xf32>
    %20 = tpu.matmul %17, %19, %cst_23 {dimension_numbers = #tpu.dot_dimension_numbers<[1], [0], [0], [1], [0, 0, 1, 1], [], []>} : vector<256x4xbf16>, vector<4x4xbf16>, vector<256x4xf32> -> vector<256x4xf32>
    %21 = arith.addf %14, %20 : vector<256x4xf32>
    %c0_24 = arith.constant 0 : index
    %c1_25 = arith.constant 1 : index
    %c0_26 = arith.constant 0 : index
    %c0_27 = arith.constant 0 : index
    %22 = vector.load %arg1[%c0_24, %c1_25, %c0_26, %c0_27] : memref<1x18x18x4xbf16, #tpu.memory_space<vmem>>, vector<1x16x16x4xbf16>
    %23 = vector.shape_cast %22 : vector<1x16x16x4xbf16> to vector<16x16x4xbf16>
    %24 = vector.shape_cast %23 : vector<16x16x4xbf16> to vector<256x4xbf16>
    %c1_28 = arith.constant 1 : index
    %c0_29 = arith.constant 0 : index
    %c0_30 = arith.constant 0 : index
    %c0_31 = arith.constant 0 : index
    %25 = vector.load %arg2[%c1_28, %c0_29, %c0_30, %c0_31] : memref<3x3x4x4xbf16, #tpu.memory_space<vmem>>, vector<1x1x4x4xbf16>
    %26 = vector.shape_cast %25 : vector<1x1x4x4xbf16> to vector<4x4xbf16>
    %cst_32 = arith.constant dense<0.000000e+00> : vector<256x4xf32>
    %27 = tpu.matmul %24, %26, %cst_32 {dimension_numbers = #tpu.dot_dimension_numbers<[1], [0], [0], [1], [0, 0, 1, 1], [], []>} : vector<256x4xbf16>, vector<4x4xbf16>, vector<256x4xf32> -> vector<256x4xf32>
    %28 = arith.addf %21, %27 : vector<256x4xf32>
    %c0_33 = arith.constant 0 : index
    %c1_34 = arith.constant 1 : index
    %c1_35 = arith.constant 1 : index
    %c0_36 = arith.constant 0 : index
    %29 = vector.load %arg1[%c0_33, %c1_34, %c1_35, %c0_36] : memref<1x18x18x4xbf16, #tpu.memory_space<vmem>>, vector<1x16x16x4xbf16>
    %30 = vector.shape_cast %29 : vector<1x16x16x4xbf16> to vector<16x16x4xbf16>
    %31 = vector.shape_cast %30 : vector<16x16x4xbf16> to vector<256x4xbf16>
    %c1_37 = arith.constant 1 : index
    %c1_38 = arith.constant 1 : index
    %c0_39 = arith.constant 0 : index
    %c0_40 = arith.constant 0 : index
    %32 = vector.load %arg2[%c1_37, %c1_38, %c0_39, %c0_40] : memref<3x3x4x4xbf16, #tpu.memory_space<vmem>>, vector<1x1x4x4xbf16>
    %33 = vector.shape_cast %32 : vector<1x1x4x4xbf16> to vector<4x4xbf16>
    %cst_41 = arith.constant dense<0.000000e+00> : vector<256x4xf32>
    %34 = tpu.matmul %31, %33, %cst_41 {dimension_numbers = #tpu.dot_dimension_numbers<[1], [0], [0], [1], [0, 0, 1, 1], [], []>} : vector<256x4xbf16>, vector<4x4xbf16>, vector<256x4xf32> -> vector<256x4xf32>
    %35 = arith.addf %28, %34 : vector<256x4xf32>
    %c0_42 = arith.constant 0 : index
    %c1_43 = arith.constant 1 : index
    %c2_44 = arith.constant 2 : index
    %c0_45 = arith.constant 0 : index
    %36 = vector.load %arg1[%c0_42, %c1_43, %c2_44, %c0_45] : memref<1x18x18x4xbf16, #tpu.memory_space<vmem>>, vector<1x16x16x4xbf16>
    %37 = vector.shape_cast %36 : vector<1x16x16x4xbf16> to vector<16x16x4xbf16>
    %38 = vector.shape_cast %37 : vector<16x16x4xbf16> to vector<256x4xbf16>
    %c1_46 = arith.constant 1 : index
    %c2_47 = arith.constant 2 : index
    %c0_48 = arith.constant 0 : index
    %c0_49 = arith.constant 0 : index
    %39 = vector.load %arg2[%c1_46, %c2_47, %c0_48, %c0_49] : memref<3x3x4x4xbf16, #tpu.memory_space<vmem>>, vector<1x1x4x4xbf16>
    %40 = vector.shape_cast %39 : vector<1x1x4x4xbf16> to vector<4x4xbf16>
    %cst_50 = arith.constant dense<0.000000e+00> : vector<256x4xf32>
    %41 = tpu.matmul %38, %40, %cst_50 {dimension_numbers = #tpu.dot_dimension_numbers<[1], [0], [0], [1], [0, 0, 1, 1], [], []>} : vector<256x4xbf16>, vector<4x4xbf16>, vector<256x4xf32> -> vector<256x4xf32>
    %42 = arith.addf %35, %41 : vector<256x4xf32>
    %c0_51 = arith.constant 0 : index
    %c2_52 = arith.constant 2 : index
    %c0_53 = arith.constant 0 : index
    %c0_54 = arith.constant 0 : index
    %43 = vector.load %arg1[%c0_51, %c2_52, %c0_53, %c0_54] : memref<1x18x18x4xbf16, #tpu.memory_space<vmem>>, vector<1x16x16x4xbf16>
    %44 = vector.shape_cast %43 : vector<1x16x16x4xbf16> to vector<16x16x4xbf16>
    %45 = vector.shape_cast %44 : vector<16x16x4xbf16> to vector<256x4xbf16>
    %c2_55 = arith.constant 2 : index
    %c0_56 = arith.constant 0 : index
    %c0_57 = arith.constant 0 : index
    %c0_58 = arith.constant 0 : index
    %46 = vector.load %arg2[%c2_55, %c0_56, %c0_57, %c0_58] : memref<3x3x4x4xbf16, #tpu.memory_space<vmem>>, vector<1x1x4x4xbf16>
    %47 = vector.shape_cast %46 : vector<1x1x4x4xbf16> to vector<4x4xbf16>
    %cst_59 = arith.constant dense<0.000000e+00> : vector<256x4xf32>
    %48 = tpu.matmul %45, %47, %cst_59 {dimension_numbers = #tpu.dot_dimension_numbers<[1], [0], [0], [1], [0, 0, 1, 1], [], []>} : vector<256x4xbf16>, vector<4x4xbf16>, vector<256x4xf32> -> vector<256x4xf32>
    %49 = arith.addf %42, %48 : vector<256x4xf32>
    %c0_60 = arith.constant 0 : index
    %c2_61 = arith.constant 2 : index
    %c1_62 = arith.constant 1 : index
    %c0_63 = arith.constant 0 : index
    %50 = vector.load %arg1[%c0_60, %c2_61, %c1_62, %c0_63] : memref<1x18x18x4xbf16, #tpu.memory_space<vmem>>, vector<1x16x16x4xbf16>
    %51 = vector.shape_cast %50 : vector<1x16x16x4xbf16> to vector<16x16x4xbf16>
    %52 = vector.shape_cast %51 : vector<16x16x4xbf16> to vector<256x4xbf16>
    %c2_64 = arith.constant 2 : index
    %c1_65 = arith.constant 1 : index
    %c0_66 = arith.constant 0 : index
    %c0_67 = arith.constant 0 : index
    %53 = vector.load %arg2[%c2_64, %c1_65, %c0_66, %c0_67] : memref<3x3x4x4xbf16, #tpu.memory_space<vmem>>, vector<1x1x4x4xbf16>
    %54 = vector.shape_cast %53 : vector<1x1x4x4xbf16> to vector<4x4xbf16>
    %cst_68 = arith.constant dense<0.000000e+00> : vector<256x4xf32>
    %55 = tpu.matmul %52, %54, %cst_68 {dimension_numbers = #tpu.dot_dimension_numbers<[1], [0], [0], [1], [0, 0, 1, 1], [], []>} : vector<256x4xbf16>, vector<4x4xbf16>, vector<256x4xf32> -> vector<256x4xf32>
    %56 = arith.addf %49, %55 : vector<256x4xf32>
    %c0_69 = arith.constant 0 : index
    %c2_70 = arith.constant 2 : index
    %c2_71 = arith.constant 2 : index
    %c0_72 = arith.constant 0 : index
    %57 = vector.load %arg1[%c0_69, %c2_70, %c2_71, %c0_72] : memref<1x18x18x4xbf16, #tpu.memory_space<vmem>>, vector<1x16x16x4xbf16>
    %58 = vector.shape_cast %57 : vector<1x16x16x4xbf16> to vector<16x16x4xbf16>
    %59 = vector.shape_cast %58 : vector<16x16x4xbf16> to vector<256x4xbf16>
    %c2_73 = arith.constant 2 : index
    %c2_74 = arith.constant 2 : index
    %c0_75 = arith.constant 0 : index
    %c0_76 = arith.constant 0 : index
    %60 = vector.load %arg2[%c2_73, %c2_74, %c0_75, %c0_76] : memref<3x3x4x4xbf16, #tpu.memory_space<vmem>>, vector<1x1x4x4xbf16>
    %61 = vector.shape_cast %60 : vector<1x1x4x4xbf16> to vector<4x4xbf16>
    %cst_77 = arith.constant dense<0.000000e+00> : vector<256x4xf32>
    %62 = tpu.matmul %59, %61, %cst_77 {dimension_numbers = #tpu.dot_dimension_numbers<[1], [0], [0], [1], [0, 0, 1, 1], [], []>} : vector<256x4xbf16>, vector<4x4xbf16>, vector<256x4xf32> -> vector<256x4xf32>
    %63 = arith.addf %56, %62 : vector<256x4xf32>
    %c0_78 = arith.constant 0 : index
    %c0_79 = arith.constant 0 : index
    %64 = vector.load %arg3[%c0_78, %c0_79] : memref<1x4xf32, #tpu.memory_space<vmem>>, vector<1x4xf32>
    %65 = vector.broadcast %64 : vector<1x4xf32> to vector<256x4xf32>
    %66 = arith.addf %63, %65 : vector<256x4xf32>
    %c0_80 = arith.constant 0 : index
    %c0_81 = arith.constant 0 : index
    %c0_82 = arith.constant 0 : index
    %67 = vector.load %arg4[%c0_80, %c0_81, %c0_82] : memref<1x256x4xf32, #tpu.memory_space<vmem>>, vector<1x256x4xf32>
    %68 = vector.shape_cast %67 : vector<1x256x4xf32> to vector<256x4xf32>
    %69 = vector.shape_cast %66 : vector<256x4xf32> to vector<1x256x4xf32>
    tpu.vector_store %arg4[%c0_80, %c0_81, %c0_82], %69 {strides = array<i32>} : memref<1x256x4xf32, #tpu.memory_space<vmem>>, vector<1x256x4xf32>,
    return
  }
  func.func @transform_0(%arg0: i32) -> (i32, i32, i32, i32) {
    %c0_i32 = arith.constant 0 : i32
    %c0_i32_0 = arith.constant 0 : i32
    %c0_i32_1 = arith.constant 0 : i32
    %c0_i32_2 = arith.constant 0 : i32
    return %arg0, %c0_i32, %c0_i32_0, %c0_i32_1 : i32, i32, i32, i32
  }
  func.func @transform_1(%arg0: i32) -> (i32, i32, i32, i32) {
    %c0_i32 = arith.constant 0 : i32
    %c0_i32_0 = arith.constant 0 : i32
    %c0_i32_1 = arith.constant 0 : i32
    %c0_i32_2 = arith.constant 0 : i32
    %c0_i32_3 = arith.constant 0 : i32
    return %c0_i32, %c0_i32_0, %c0_i32_1, %c0_i32_2 : i32, i32, i32, i32
  }
  func.func @transform_2(%arg0: i32) -> (i32, i32) {
    %c0_i32 = arith.constant 0 : i32
    %c0_i32_0 = arith.constant 0 : i32
    %c0_i32_1 = arith.constant 0 : i32
    return %c0_i32, %c0_i32_0 : i32, i32
  }
  func.func @transform_3(%arg0: i32) -> (i32, i32, i32) {
    %c0_i32 = arith.constant 0 : i32
    %c0_i32_0 = arith.constant 0 : i32
    %c0_i32_1 = arith.constant 0 : i32
    return %arg0, %c0_i32, %c0_i32_0 : i32, i32, i32
  }
}

</mosaic_0001>

<bundles_post_ra>
// kernel: tile.8
= control target key start
LH: loop header
LB: loop body
LE: loop exit
PB: predicated region body
PF: predicated region fallthrough
CT: control target
= control target key end

     0   :  { %s22_s0 = inlined_call_operand.vmem [shape: f32[4], index: 0, kind: input, shape index: {}]   ;;  %s23_s1 = inlined_call_operand.vmem [shape: f32[4,4], index: 1, kind: output, shape index: {}]  }
   0x1   :  { %v4_v0 = vld [vmem:[%s22_s0] ss:$0 sm:$0xff] }
   0x2   :  { %5 = vst [vmem:[%s23_s1] sm:$0xf] %v4_v0 }

// kernel: tile.9
= control target key start
LH: loop header
LB: loop body
LE: loop exit
PB: predicated region body
PF: predicated region fallthrough
CT: control target
= control target key end

     0   :  { %s37_s8 = smov 4   ;;  %s38_s9 = smov 8   ;;  %vm7_vm0 = vcmask 31744   ;;  %vm13_vm1 = vcmask 130144   ;;  %vm19_vm2 = vcmask 97344   ;;  %vm25_vm3 = vcmask 64544   ;;  %s55_s0 = inlined_call_operand.vmem [shape: f32[4,4], index: 0, kind: input, shape index: {}]   ;;  %s56_s1 = inlined_call_operand.vmem [shape: f32[1,16], index: 1, kind: output, shape index: {}]  }
   0x1   :  { %v4_v0 = vld [vmem:[%s55_s0] sm:$0xf]  ;;  %s36_s0 = smov 12  }
   0x2   :  { %5 = vst [vmem:[#allocation1] sm:$0xf] %v4_v0 }
   0x9   :  { %v10_v1 = vld [vmem:[#allocation1 + $0x3] sm:$0x1]   ;;  %v22_v2 = vld [vmem:[#allocation1 + $0x1] sm:$0x1]   ;;  %v16_v3 = vld [vmem:[#allocation1 + $0x2] sm:$0x1]  }
   0xa   :  { %11 = vrot.lane.b32.xlu0 %v10_v1, %s36_s0  ;;  %23 = vrot.lane.b32.xlu1 %v22_v2, %s37_s8  ;;  %v6_v4 = vld [vmem:[#allocation1] sm:$0x1]  }
   0xb   :  { %8 = vst.msk [vmem:[#allocation0] sm:$0x1] %vm7_vm0, %v6_v4  }
  0x12   :  { %17 = vrot.lane.b32.xlu0 %v16_v3, %s38_s9 }
  0x7c   :  { %v12_v5 = vpop.permute.xlu0 %11   ;;  %v24_v6 = vpop.permute.xlu1 %23  }
  0x7d   :  { %14 = vst.msk [vmem:[#allocation0] sm:$0x1] %vm13_vm1, %v12_v5  }
  0x84   :  { %v18_v7 = vpop.permute.xlu0 %17  }
  0x85   :  { %20 = vst.msk [vmem:[#allocation0] sm:$0x1] %vm19_vm2, %v18_v7  }
  0x86   :  { %26 = vst.msk [vmem:[#allocation0] sm:$0x1] %vm25_vm3, %v24_v6  }
  0x8d   :  { %v29_v8 = vld [vmem:[#allocation0] sm:$0x1] }
  0x8e   :  { %32 = vst [vmem:[%s56_s1] sm:$0x1] %v29_v8 }

// kernel: upstep_forward.3
= control target key start
LH: loop header
LB: loop body
LE: loop exit
PB: predicated region body
PF: predicated region fallthrough
CT: control target
= control target key end

     0   :  { %vm101_vm0 = vcmask 1043456   ;;  %vm76_vm1 = vcmask 64512   ;;  %vm170_vm2 = vcmask 125952   ;;  %s365_s1 = inlined_call_operand.vmem [shape: bf16[8,16], index: 1, kind: input, shape index: {}]   ;;  %s366_s0 = inlined_call_operand.vmem [shape: bf16[128,8], index: 0, kind: input, shape index: {}]   ;;  %s367_s2 = inlined_call_operand.vmem [shape: f32[1,16], index: 2, kind: input, shape index: {}]   ;;  %s368_s3 = inlined_call_operand.vmem [shape: bf16[128,16], index: 3, kind: output, shape index: {}]  }
   0x1   :  { %v31_v0 = vld [vmem:[%s365_s1] sm:$0xf]  ;;  %v233_v3 = vld [vmem:[%s366_s0 + $0x10] sm:$0xff]  ;;  %v232_v6 = vld [vmem:[%s366_s0 + $0x8] sm:$0xff] }
   0x2   :  { %v103_v1 = vsel %vm101_vm0, %v31_v0, 0  ;;  %v231_v2 = vld [vmem:[%s366_s0] sm:$0xff]  ;;  %v237_v5 = vld [vmem:[%s366_s0 + $0x30] sm:$0xff]  ;;  %v234_v7 = vld [vmem:[%s366_s0 + $0x18] sm:$0xff] }
   0x3   :  { %112 = vmatpush.bf16.msra.mxu0 %v103_v1  ;;  %239 = vmatpush.bf16.msra.mxu1 %v103_v1  ;;  %v235_v4 = vld [vmem:[%s366_s0 + $0x20] sm:$0xff]  ;;  %v236_v8 = vld [vmem:[%s366_s0 + $0x28] sm:$0xff]  ;;  %v238_v9 = vld [vmem:[%s366_s0 + $0x38] sm:$0xff] }
   0x4   :  { %240 = vmatpush.bf16.msra.mxu2 %v103_v1  ;;  %241 = vmatpush.bf16.msra.mxu3 %v103_v1  ;;  %v242_v10 = vld [vmem:[%s367_s2] ss:$0 sm:$0xff] }
   0x6   :  { %223 = vmatmul.msk.bf16.vlgmr.msra.gmra.mxu0 %vm76_vm1, %v231_v2  ;;  %225 = vmatmul.msk.bf16.vlgmr.msra.gmra.mxu1 %vm76_vm1, %v233_v3 }
   0x7   :  { %227 = vmatmul.msk.bf16.vlgmr.msra.gmra.mxu2 %vm76_vm1, %v235_v4  ;;  %229 = vmatmul.msk.bf16.vlgmr.msra.gmra.mxu3 %vm76_vm1, %v237_v5 }
  0x16   :  { %224 = vmatmul.msk.bf16.gmra.mxu0 %vm76_vm1, %v232_v6  ;;  %226 = vmatmul.msk.bf16.gmra.mxu1 %vm76_vm1, %v234_v7 }
  0x17   :  { %228 = vmatmul.msk.bf16.gmra.mxu2 %vm76_vm1, %v236_v8  ;;  %230 = vmatmul.msk.bf16.gmra.mxu3 %vm76_vm1, %v238_v9 }
  0x83   :  { %v114_v11 = vpop.f32.mrf.mxu0  ;;  %v124_v12 = vpop.f32.mrf.mxu1 }
  0x84   :  { %v115_v13 = vadd.f32 %v242_v10, %v114_v11  ;;  %v125_v14 = vadd.f32 %v242_v10, %v124_v12 }
  0x86   :  { %v154_v15 = vpack.c.bf16 %v115_v13, %v115_v13  ;;  %v158_v16 = vpack.c.bf16 %v125_v14, %v125_v14 }
  0x88   :  { %171 = vst.msk [vmem:[%s368_s3] sm:$0xf] %vm170_vm2, %v154_v15 }
  0x89   :  { %175 = vst.msk [vmem:[%s368_s3 + $0x10] sm:$0xf] %vm170_vm2, %v158_v16 }
  0x8a   :  { %v134_v17 = vpop.f32.mrf.mxu2  ;;  %v144_v18 = vpop.f32.mrf.mxu3 }
  0x8b   :  { %v135_v19 = vadd.f32 %v242_v10, %v134_v17  ;;  %v145_v20 = vadd.f32 %v242_v10, %v144_v18  ;;  %v116_v21 = vpop.f32.mrf.mxu0  ;;  %v126_v22 = vpop.f32.mrf.mxu1 }
  0x8c   :  { %v117_v23 = vadd.f32 %v242_v10, %v116_v21  ;;  %v127_v24 = vadd.f32 %v242_v10, %v126_v22 }
  0x8d   :  { %v162_v25 = vpack.c.bf16 %v135_v19, %v135_v19  ;;  %v166_v26 = vpack.c.bf16 %v145_v20, %v145_v20 }
  0x8e   :  { %v155_v27 = vpack.c.bf16 %v117_v23, %v117_v23  ;;  %v159_v28 = vpack.c.bf16 %v127_v24, %v127_v24 }
  0x8f   :  { %179 = vst.msk [vmem:[%s368_s3 + $0x20] sm:$0xf] %vm170_vm2, %v162_v25 }
  0x90   :  { %183 = vst.msk [vmem:[%s368_s3 + $0x30] sm:$0xf] %vm170_vm2, %v166_v26 }
  0x91   :  { %172 = vst.msk [vmem:[%s368_s3 + $0x4] sm:$0xf] %vm170_vm2, %v155_v27 }
  0x92   :  { %176 = vst.msk [vmem:[%s368_s3 + $0x14] sm:$0xf] %vm170_vm2, %v159_v28  ;;  %v136_v29 = vpop.f32.mrf.mxu2  ;;  %v146_v30 = vpop.f32.mrf.mxu3 }
  0x93   :  { %v137_v31 = vadd.f32 %v242_v10, %v136_v29  ;;  %v147_v32 = vadd.f32 %v242_v10, %v146_v30  ;;  %v119_v33 = vpop.f32.mrf.mxu0  ;;  %v129_v34 = vpop.f32.mrf.mxu1 }
  0x94   :  { %v120_v35 = vadd.f32 %v242_v10, %v119_v33  ;;  %v130_v36 = vadd.f32 %v242_v10, %v129_v34 }
  0x95   :  { %v163_v37 = vpack.c.bf16 %v137_v31, %v137_v31  ;;  %v167_v38 = vpack.c.bf16 %v147_v32, %v147_v32 }
  0x96   :  { %v156_v39 = vpack.c.bf16 %v120_v35, %v120_v35  ;;  %v160_v40 = vpack.c.bf16 %v130_v36, %v130_v36 }
  0x97   :  { %180 = vst.msk [vmem:[%s368_s3 + $0x24] sm:$0xf] %vm170_vm2, %v163_v37 }
  0x98   :  { %184 = vst.msk [vmem:[%s368_s3 + $0x34] sm:$0xf] %vm170_vm2, %v167_v38 }
  0x99   :  { %173 = vst.msk [vmem:[%s368_s3 + $0x8] sm:$0xf] %vm170_vm2, %v156_v39 }
  0x9a   :  { %177 = vst.msk [vmem:[%s368_s3 + $0x18] sm:$0xf] %vm170_vm2, %v160_v40  ;;  %v139_v41 = vpop.f32.mrf.mxu2  ;;  %v149_v42 = vpop.f32.mrf.mxu3 }
  0x9b   :  { %v140_v43 = vadd.f32 %v242_v10, %v139_v41  ;;  %v150_v44 = vadd.f32 %v242_v10, %v149_v42  ;;  %v121_v45 = vpop.f32.mrf.mxu0  ;;  %v131_v46 = vpop.f32.mrf.mxu1 }
  0x9c   :  { %v122_v47 = vadd.f32 %v242_v10, %v121_v45  ;;  %v132_v48 = vadd.f32 %v242_v10, %v131_v46 }
  0x9d   :  { %v164_v49 = vpack.c.bf16 %v140_v43, %v140_v43  ;;  %v168_v50 = vpack.c.bf16 %v150_v44, %v150_v44 }
  0x9e   :  { %v157_v51 = vpack.c.bf16 %v122_v47, %v122_v47  ;;  %v161_v52 = vpack.c.bf16 %v132_v48, %v132_v48 }
  0x9f   :  { %181 = vst.msk [vmem:[%s368_s3 + $0x28] sm:$0xf] %vm170_vm2, %v164_v49 }
  0xa0   :  { %185 = vst.msk [vmem:[%s368_s3 + $0x38] sm:$0xf] %vm170_vm2, %v168_v50 }
  0xa1   :  { %174 = vst.msk [vmem:[%s368_s3 + $0xc] sm:$0xf] %vm170_vm2, %v157_v51 }
  0xa2   :  { %178 = vst.msk [vmem:[%s368_s3 + $0x1c] sm:$0xf] %vm170_vm2, %v161_v52  ;;  %v141_v53 = vpop.f32.mrf.mxu2  ;;  %v151_v54 = vpop.f32.mrf.mxu3 }
  0xa3   :  { %v142_v55 = vadd.f32 %v242_v10, %v141_v53  ;;  %v152_v56 = vadd.f32 %v242_v10, %v151_v54 }
  0xa5   :  { %v165_v57 = vpack.c.bf16 %v142_v55, %v142_v55  ;;  %v169_v58 = vpack.c.bf16 %v152_v56, %v152_v56 }
  0xa7   :  { %182 = vst.msk [vmem:[%s368_s3 + $0x2c] sm:$0xf] %vm170_vm2, %v165_v57 }
  0xa8   :  { %186 = vst.msk [vmem:[%s368_s3 + $0x3c] sm:$0xf] %vm170_vm2, %v169_v58 }

// kernel: upstep_forward.5
= control target key start
LH: loop header
LB: loop body
LE: loop exit
PB: predicated region body
PF: predicated region fallthrough
CT: control target
= control target key end

     0   :  { %s4941_s12 = smov 0   ;;  %s6374_s0 = inlined_call_operand.vmem [shape: bf16[2,18,18,4], index: 0, kind: input, shape index: {}]   ;;  %s6375_s1 = inlined_call_operand.vmem [shape: bf16[3,3,4,4], index: 1, kind: input, shape index: {}]   ;;  %s6376_s2 = inlined_call_operand.vmem [shape: f32[1,4], index: 2, kind: input, shape index: {}]   ;;  %s6377_s3 = inlined_call_operand.vmem [shape: f32[2,256,4], index: 3, kind: output, shape index: {}]  }
   0x1 LB: > { %s4206_s13 = sadd.s32 4294967295, %s4919_s12   ;;  %p4210_p0 = scmp.ge.s32.totalorder %s4919_s12, 1  ;;  %s4919_s12 = sphi %s4941_s12, %s13_s12  }
   0x2   : > { %p137_p1 = scmp.lt.s32.totalorder %s4919_s12, 3 }
   0x4   : > { %p138_p2 = pnand %p4210_p0, %p137_p1 }
   0x6   : > { %141 = sbr.rel (%p138_p2) target bundleno = 756 (0x2f4), region = 32 }
   0xb   : > { %v4214_v0 = vld [vmem:[%s6375_s1 + $0x2] sm:$0x3]  ;;  %vm707_vm0 = vcmask 1041408   ;;  %p161_p3 = scmp.lt.s32.totalorder %s4206_s13, 1  ;;  %v4327_v2 = vld [vmem:[%s6375_s1 + $0x4] sm:$0x3] }
   0xc   : > { %v709_v1 = vsel %vm707_vm0, %v4214_v0, 0  ;;  %v1282_v3 = vsel %vm707_vm0, %v4327_v2, 0  ;;  %v4376_v4 = vld [vmem:[%s6375_s1 + $0x6] sm:$0x3]  ;;  %v204_v5 = vld [vmem:[%s6375_s1] sm:$0x3] }
   0xd   : > { %4849 = vmatpush.bf16.msra.mxu1 %v709_v1  ;;  %4850 = vmatpush.bf16.msra.mxu2 %v709_v1  ;;  %s6389_s13 = smov (!%p161_p3, %s4206_s13), 1  ;;  %v4505_v6 = vld [vmem:[%s6375_s1 + $0x8] sm:$0x3]  ;;  %v1569_v7 = vsel %vm707_vm0, %v4376_v4, 0  ;;  %v929_v8 = vsel %vm707_vm0, %v204_v5, 0  ;;  %vm658_vm4 = vcmask 31744  }
   0xe   : > { %4851 = vmatpush.bf16.msra.mxu3 %v709_v1  ;;  %718 = vmatpush.bf16.msra.mxu0 %v709_v1  ;;  %s4852_s24 = smul.u32 216, %s6389_s13  ;;  %v2223_v9 = vsel %vm707_vm0, %v4505_v6, 0  ;;  %vm221_vm1 = vsmask.f32 3328  ;;  %vm222_vm2 = vsmask.f32 7440 }
   0xf   : > { %vm4987_vm3 = vmor %vm221_vm1, %vm222_vm2  ;;  %vm1068_vm5 = vcmask 1042432   ;;  %vm1069_vm6 = vcmask 1046532   ;;  %s4800_s9 = sshll.u32 %s6389_s13, 8 }
  0x10   : > { %s4975_s27 = scalar_lea.vmem %s6374_s0, %s4852_s24  ;;  %vm5161_vm7 = vmor %vm1068_vm5, %vm1069_vm6  ;;  %s6034_s15 = scalar_lea.vmem %s6377_s3, %s4800_s9 }
  0x11   : > { %1291 = vmatpush.bf16.msrb.mxu2 %v1282_v3  ;;  %938 = vmatpush.bf16.msrb.mxu1 %v929_v8  ;;  %v180_v10 = vld [vmem:[%s4975_s27 + $0x30] sm:$0xf]  ;;  %v181_v11 = vld [vmem:[%s4975_s27 + $0x34] sm:$0xf]  ;;  %v209_v12 = vld [vmem:[%s4975_s27 + $0x38] sm:$0x1] }
  0x12   : > { %1578 = vmatpush.bf16.msrb.mxu3 %v1569_v7  ;;  %2232 = vmatpush.bf16.msrb.mxu0 %v2223_v9  ;;  %v321_v13 = vshrl.u32 %v180_v10, 16  ;;  %v324_v14 = vshll.u32 %v180_v10, 16  ;;  %v330_v15 = vshll.u32 %v181_v11, 16  ;;  %v334_v16 = vshrl.u32 %v181_v11, 16  ;;  %v188_v17 = vld [vmem:[%s4975_s27 + $0x60] sm:$0xf] }
  0x13   : > { %v340_v18 = vshll.u32 %v209_v12, 16  ;;  %v189_v19 = vld [vmem:[%s4975_s27 + $0x64] sm:$0xf]  ;;  %v213_v20 = vld [vmem:[%s4975_s27 + $0x68] sm:$0x1]  ;;  %v417_v21 = vshrl.u32 %v188_v17, 16 }
  0x14   : > { %v323_v22 = vrot.slane %v321_v13, 4  ;;  %v326_v23 = vrot.slane %v324_v14, 5  ;;  %v332_v24 = vrot.slane %v330_v15, 5  ;;  %v336_v25 = vrot.slane %v334_v16, 4  ;;  %v196_v26 = vld [vmem:[%s4975_s27 + $0x90] sm:$0xf] }
  0x15   : > { %v342_v27 = vrot.slane %v340_v18, 5  ;;  %v419_v28 = vrot.slane %v417_v21, 4  ;;  %v420_v29 = vshll.u32 %v188_v17, 16  ;;  %v426_v30 = vshll.u32 %v189_v19, 16  ;;  %v197_v35 = vld [vmem:[%s4975_s27 + $0x94] sm:$0xf] }
  0x16   : > { %v327_v31 = vor.u32 %v326_v23, %v323_v22  ;;  %v337_v32 = vor.u32 %v336_v25, %v332_v24  ;;  %v430_v33 = vshrl.u32 %v189_v19, 16  ;;  %v436_v34 = vshll.u32 %v213_v20, 16  ;;  %v217_v45 = vld [vmem:[%s4975_s27 + $0x98] sm:$0x1]  ;;  %v172_v61 = vld [vmem:[%s4975_s27] sm:$0xf] }
  0x17   : > { %v422_v37 = vrot.slane %v420_v29, 5  ;;  %v428_v38 = vrot.slane %v426_v30, 5  ;;  %v513_v39 = vshrl.u32 %v196_v26, 16  ;;  %v516_v47 = vshll.u32 %v196_v26, 16  ;;  %v5000_v1 = vld [vmem:[%s4975_s27 + $0x4] sm:$0xf] }
  0x18   : > { %v328_v40 = vrot.slane %v327_v31, 4  ;;  %v338_v41 = vrot.slane %v337_v32, 4  ;;  %v432_v42 = vrot.slane %v430_v33, 4  ;;  %v438_v43 = vrot.slane %v436_v34, 5  ;;  %v5003_v2 = vld [vmem:[%s4975_s27 + $0x8] sm:$0x1] }
  0x19   : > { %v423_v44 = vor.u32 %v422_v37, %v419_v28  ;;  %v515_v46 = vrot.slane %v513_v39, 4  ;;  %v522_v48 = vshll.u32 %v197_v35, 16  ;;  %v526_v52 = vshrl.u32 %v197_v35, 16  ;;  %v182_v19 = vld [vmem:[%s4975_s27 + $0x3c] sm:$0xf] }
  0x1a   : > { %v333_v49 = vsel %vm4987_vm3, %v328_v40, %v332_v24  ;;  %v343_v50 = vsel %vm4987_vm3, %v338_v41, %v342_v27  ;;  %v433_v51 = vor.u32 %v432_v42, %v428_v38  ;;  %v518_v56 = vrot.slane %v516_v47, 5  ;;  %v5015_v20 = vld [vmem:[%s4975_s27 + $0x40] sm:$0xf]  ;;  %v5020_v25 = vld [vmem:[%s4975_s27 + $0x44] sm:$0x1] }
  0x1b   : > { %v618_v53 = vunpack.c.l.b16 %v333_v49  ;;  %v619_v54 = vunpack.c.l.b16 %v343_v50  ;;  %v424_v55 = vrot.slane %v423_v44, 4  ;;  %v524_v58 = vrot.slane %v522_v48, 5  ;;  %v190_v33 = vld [vmem:[%s4975_s27 + $0x6c] sm:$0xf]  ;;  %v214_v47 = vld [vmem:[%s4975_s27 + $0x74] sm:$0x1] }
  0x1c   : > { %v434_v57 = vrot.slane %v433_v51, 4  ;;  %v528_v59 = vrot.slane %v526_v52, 4  ;;  %v532_v60 = vshll.u32 %v217_v45, 16  ;;  %v519_v0 = vor.u32 %v518_v56, %v515_v46 }
  0x1d   : > { %v646_v62 = vpack.c.b16 %v619_v54, %v618_v53  ;;  %v429_v63 = vsel %vm4987_vm3, %v424_v55, %v428_v38  ;;  %v225_v9 = vshrl.u32 %v172_v61, 16  ;;  %v228_v10 = vshll.u32 %v172_v61, 16  ;;  %v198_v61 = vld [vmem:[%s4975_s27 + $0x9c] sm:$0xf] }
  0x1e   : > { %v439_v3 = vsel %vm4987_vm3, %v434_v57, %v438_v43  ;;  %v626_v4 = vunpack.c.l.b16 %v429_v63  ;;  %v529_v5 = vor.u32 %v528_v59, %v524_v58  ;;  %v534_v6 = vrot.slane %v532_v60, 5  ;;  %v191_v43 = vld [vmem:[%s4975_s27 + $0x70] sm:$0xf] }
  0x1f   : > { %4219 = vmatmul.msk.bf16.vlgmr.msra.gmra.mxu1 %vm658_vm4, %v646_v62  ;;  %v627_v7 = vunpack.c.l.b16 %v439_v3  ;;  %v520_v8 = vrot.slane %v519_v0, 4  ;;  %v234_v12 = vshll.u32 %v5000_v1, 16  ;;  %v238_v13 = vshrl.u32 %v5000_v1, 16  ;;  %v199_v3 = vld [vmem:[%s4975_s27 + $0xa0] sm:$0xf] }
  0x20   : > { %v530_v11 = vrot.slane %v529_v5, 4  ;;  %v244_v14 = vshll.u32 %v5003_v2, 16  ;;  %v227_v17 = vrot.slane %v225_v9, 4  ;;  %v230_v18 = vrot.slane %v228_v10, 5 }
  0x21   : > { %v650_v15 = vpack.c.b16 %v627_v7, %v626_v4  ;;  %v525_v16 = vsel %vm4987_vm3, %v520_v8, %v524_v58  ;;  %v236_v23 = vrot.slane %v234_v12, 5  ;;  %v240_v24 = vrot.slane %v238_v13, 4  ;;  %v218_v8 = vld [vmem:[%s4975_s27 + $0xa4] sm:$0x1] }
  0x22   : > { %v535_v21 = vsel %vm4987_vm3, %v530_v11, %v534_v6  ;;  %v634_v22 = vunpack.c.l.b16 %v525_v16  ;;  %v231_v27 = vor.u32 %v230_v18, %v227_v17  ;;  %v246_v28 = vrot.slane %v244_v14, 5 }
  0x23   : > { %4223 = vmatmul.msk.bf16.vlgmr.msra.gmra.mxu2 %vm658_vm4, %v650_v15  ;;  %v635_v26 = vunpack.c.l.b16 %v535_v21  ;;  %v241_v29 = vor.u32 %v240_v24, %v236_v23  ;;  %v345_v30 = vshrl.u32 %v182_v19, 16  ;;  %v348_v31 = vshll.u32 %v182_v19, 16 }
  0x24   : > { %v354_v32 = vshll.u32 %v5015_v20, 16  ;;  %v232_v35 = vrot.slane %v231_v27, 4  ;;  %v358_v37 = vshrl.u32 %v5015_v20, 16  ;;  %v364_v38 = vshll.u32 %v5020_v25, 16 }
  0x25   : > { %v654_v34 = vpack.c.b16 %v635_v26, %v634_v22  ;;  %v242_v39 = vrot.slane %v241_v29, 4  ;;  %v347_v40 = vrot.slane %v345_v30, 4  ;;  %v350_v41 = vrot.slane %v348_v31, 5  ;;  %v174_v22 = vld [vmem:[%s4975_s27 + $0xc] sm:$0xf] }
  0x26   : > { %v356_v42 = vrot.slane %v354_v32, 5  ;;  %v237_v44 = vsel %vm4987_vm3, %v232_v35, %v236_v23  ;;  %v360_v45 = vrot.slane %v358_v37, 4  ;;  %v366_v46 = vrot.slane %v364_v38, 5  ;;  %v5049_v32 = vld [vmem:[%s4975_s27 + $0x14] sm:$0x1] }
  0x27   : > { %4227 = vmatmul.msk.bf16.vlgmr.msra.gmra.mxu3 %vm658_vm4, %v654_v34  ;;  %v441_v48 = vshrl.u32 %v190_v33, 16  ;;  %v247_v49 = vsel %vm4987_vm3, %v242_v39, %v246_v28  ;;  %v610_v50 = vunpack.c.l.b16 %v237_v44  ;;  %v351_v51 = vor.u32 %v350_v41, %v347_v40  ;;  %v5046_v28 = vld [vmem:[%s4975_s27 + $0x10] sm:$0xf] }
  0x28   : > { %v444_v52 = vshll.u32 %v190_v33, 16  ;;  %v611_v53 = vunpack.c.l.b16 %v247_v49  ;;  %v361_v54 = vor.u32 %v360_v45, %v356_v42  ;;  %v450_v56 = vshll.u32 %v191_v43, 16 }
  0x29   : > { %v443_v55 = vrot.slane %v441_v48, 4  ;;  %v352_v57 = vrot.slane %v351_v51, 4  ;;  %v454_v59 = vshrl.u32 %v191_v43, 16  ;;  %v460_v60 = vshll.u32 %v214_v47, 16  ;;  %v5059_v47 = vld [vmem:[%s4975_s27 + $0x4c] sm:$0xf] }
  0x2a   : > { %v446_v58 = vrot.slane %v444_v52, 5  ;;  %v642_v62 = vpack.c.b16 %v611_v53, %v610_v50  ;;  %v362_v63 = vrot.slane %v361_v54, 4  ;;  %v452_v0 = vrot.slane %v450_v56, 5  ;;  %v5064_v56 = vld [vmem:[%s4975_s27 + $0x50] sm:$0x1] }
  0x2b   : > { %v357_v4 = vsel %vm4987_vm3, %v352_v57, %v356_v42  ;;  %v456_v6 = vrot.slane %v454_v59, 4  ;;  %v462_v7 = vrot.slane %v460_v60, 5  ;;  %v537_v11 = vshrl.u32 %v198_v61, 16  ;;  %v184_v42 = vld [vmem:[%s4975_s27 + $0x48] sm:$0xf] }
  0x2c   : > { %v447_v5 = vor.u32 %v446_v58, %v443_v55  ;;  %4215 = vmatmul.msk.bf16.vlgmr.msra.gmra.mxu0 %vm658_vm4, %v642_v62  ;;  %v367_v9 = vsel %vm4987_vm3, %v362_v63, %v366_v46  ;;  %v620_v10 = vunpack.c.l.b16 %v357_v4  ;;  %v540_v12 = vshll.u32 %v198_v61, 16 }
  0x2d   : > { %v621_v13 = vunpack.c.l.b16 %v367_v9  ;;  %v457_v15 = vor.u32 %v456_v6, %v452_v0  ;;  %v546_v16 = vshll.u32 %v199_v3, 16  ;;  %v539_v17 = vrot.slane %v537_v11, 4 }
  0x2e   : > { %v448_v14 = vrot.slane %v447_v5, 4  ;;  %v542_v18 = vrot.slane %v540_v12, 5  ;;  %v550_v19 = vshrl.u32 %v199_v3, 16  ;;  %v556_v21 = vshll.u32 %v218_v8, 16  ;;  %v192_v3 = vld [vmem:[%s4975_s27 + $0x78] sm:$0xf] }
  0x2f   : > { %v647_v23 = vpack.c.b16 %v621_v13, %v620_v10  ;;  %v458_v26 = vrot.slane %v457_v15, 4  ;;  %v548_v27 = vrot.slane %v546_v16, 5  ;;  %v249_v35 = vshrl.u32 %v174_v22, 16  ;;  %v193_v8 = vld [vmem:[%s4975_s27 + $0x7c] sm:$0xf] }
  0x30   : > { %v453_v24 = vsel %vm4987_vm3, %v448_v14, %v452_v0  ;;  %v543_v30 = vor.u32 %v542_v18, %v539_v17  ;;  %v552_v31 = vrot.slane %v550_v19, 4  ;;  %v558_v34 = vrot.slane %v556_v21, 5  ;;  %v215_v16 = vld [vmem:[%s4975_s27 + $0x80] sm:$0x1] }
  0x31   : > { %v628_v29 = vunpack.c.l.b16 %v453_v24  ;;  %4220 = vmatmul.msk.bf16.gmra.mxu1 %vm658_vm4, %v647_v23  ;;  %v463_v33 = vsel %vm4987_vm3, %v458_v26, %v462_v7  ;;  %v252_v37 = vshll.u32 %v174_v22, 16  ;;  %v258_v41 = vshll.u32 %v5046_v28, 16 }
  0x32   : > { %v629_v38 = vunpack.c.l.b16 %v463_v33  ;;  %v544_v39 = vrot.slane %v543_v30, 4  ;;  %v553_v40 = vor.u32 %v552_v31, %v548_v27  ;;  %v251_v43 = vrot.slane %v249_v35, 4 }
  0x33   : > { %v254_v44 = vrot.slane %v252_v37, 5  ;;  %v262_v45 = vshrl.u32 %v5046_v28, 16  ;;  %v268_v46 = vshll.u32 %v5049_v32, 16  ;;  %v260_v51 = vrot.slane %v258_v41, 5 }
  0x34   : > { %v651_v48 = vpack.c.b16 %v629_v38, %v628_v29  ;;  %v549_v49 = vsel %vm4987_vm3, %v544_v39, %v548_v27  ;;  %v554_v50 = vrot.slane %v553_v40, 4  ;;  %v369_v58 = vshrl.u32 %v184_v42, 16  ;;  %v201_v39 = vld [vmem:[%s4975_s27 + $0xac] sm:$0xf]  ;;  %v219_v40 = vld [vmem:[%s4975_s27 + $0xb0] sm:$0x1] }
  0x35   : > { %v636_v52 = vunpack.c.l.b16 %v549_v49  ;;  %v255_v53 = vor.u32 %v254_v44, %v251_v43  ;;  %v264_v54 = vrot.slane %v262_v45, 4  ;;  %v270_v55 = vrot.slane %v268_v46, 5 }
  0x36   : > { %4224 = vmatmul.msk.bf16.gmra.mxu2 %vm658_vm4, %v651_v48  ;;  %v559_v57 = vsel %vm4987_vm3, %v554_v50, %v558_v34  ;;  %v372_v59 = vshll.u32 %v184_v42, 16  ;;  %v378_v60 = vshll.u32 %v5059_v47, 16  ;;  %v382_v0 = vshrl.u32 %v5059_v47, 16  ;;  %v200_v34 = vld [vmem:[%s4975_s27 + $0xa8] sm:$0xf] }
  0x37   : > { %v637_v61 = vunpack.c.l.b16 %v559_v57  ;;  %v256_v62 = vrot.slane %v255_v53, 4  ;;  %v265_v63 = vor.u32 %v264_v54, %v260_v51  ;;  %v371_v4 = vrot.slane %v369_v58, 4 }
  0x38   : > { %v374_v5 = vrot.slane %v372_v59, 5  ;;  %v380_v6 = vrot.slane %v378_v60, 5  ;;  %v388_v7 = vshll.u32 %v5064_v56, 16  ;;  %v384_v12 = vrot.slane %v382_v0, 4  ;;  %v176_v59 = vld [vmem:[%s4975_s27 + $0x18] sm:$0xf] }
  0x39   : > { %v655_v9 = vpack.c.b16 %v637_v61, %v636_v52  ;;  %v261_v10 = vsel %vm4987_vm3, %v256_v62, %v260_v51  ;;  %v266_v11 = vrot.slane %v265_v63, 4  ;;  %v465_v17 = vshrl.u32 %v192_v3, 16  ;;  %v5092_v63 = vld [vmem:[%s4975_s27 + $0x1c] sm:$0xf]  ;;  %v5095_v0 = vld [vmem:[%s4975_s27 + $0x20] sm:$0x1] }
  0x3a   : > { %v612_v13 = vunpack.c.l.b16 %v261_v10  ;;  %v375_v14 = vor.u32 %v374_v5, %v371_v4  ;;  %v390_v15 = vrot.slane %v388_v7, 5  ;;  %v385_v19 = vor.u32 %v384_v12, %v380_v6 }
  0x3b   : > { %4228 = vmatmul.msk.bf16.gmra.mxu3 %vm658_vm4, %v655_v9  ;;  %v271_v18 = vsel %vm4987_vm3, %v266_v11, %v270_v55  ;;  %v468_v21 = vshll.u32 %v192_v3, 16  ;;  %v474_v22 = vshll.u32 %v193_v8, 16  ;;  %v467_v26 = vrot.slane %v465_v17, 4 }
  0x3c   : > { %v613_v23 = vunpack.c.l.b16 %v271_v18  ;;  %v376_v24 = vrot.slane %v375_v14, 4  ;;  %v478_v27 = vshrl.u32 %v193_v8, 16  ;;  %v386_v29 = vrot.slane %v385_v19, 4 }
  0x3d   : > { %v470_v30 = vrot.slane %v468_v21, 5  ;;  %v476_v31 = vrot.slane %v474_v22, 5  ;;  %v484_v33 = vshll.u32 %v215_v16, 16  ;;  %v561_v48 = vshrl.u32 %v200_v34, 16  ;;  %v5105_v21 = vld [vmem:[%s4975_s27 + $0x58] sm:$0xf] }
  0x3e   : > { %v643_v35 = vpack.c.b16 %v613_v23, %v612_v13  ;;  %v381_v37 = vsel %vm4987_vm3, %v376_v24, %v380_v6  ;;  %v480_v38 = vrot.slane %v478_v27, 4  ;;  %v391_v41 = vsel %vm4987_vm3, %v386_v29, %v390_v15  ;;  %v186_v15 = vld [vmem:[%s4975_s27 + $0x54] sm:$0xf]  ;;  %v5110_v27 = vld [vmem:[%s4975_s27 + $0x5c] sm:$0x1] }
  0x3f   : > { %v622_v42 = vunpack.c.l.b16 %v381_v37  ;;  %v471_v43 = vor.u32 %v470_v30, %v467_v26  ;;  %v486_v44 = vrot.slane %v484_v33, 5  ;;  %v623_v45 = vunpack.c.l.b16 %v391_v41 }
  0x40   : > { %4216 = vmatmul.msk.bf16.gmra.mxu0 %vm658_vm4, %v643_v35  ;;  %v481_v46 = vor.u32 %v480_v38, %v476_v31  ;;  %v564_v49 = vshll.u32 %v200_v34, 16  ;;  %v570_v51 = vshll.u32 %v201_v39, 16  ;;  %v574_v52 = vshrl.u32 %v201_v39, 16  ;;  %v194_v39 = vld [vmem:[%s4975_s27 + $0x84] sm:$0xf] }
  0x41   : > { %v472_v50 = vrot.slane %v471_v43, 4  ;;  %v580_v53 = vshll.u32 %v219_v40, 16  ;;  %v648_v54 = vpack.c.b16 %v623_v45, %v622_v42  ;;  %v563_v57 = vrot.slane %v561_v48, 4 }
  0x42   : > { %v482_v55 = vrot.slane %v481_v46, 4  ;;  %v566_v58 = vrot.slane %v564_v49, 5  ;;  %v572_v61 = vrot.slane %v570_v51, 5  ;;  %v576_v62 = vrot.slane %v574_v52, 4  ;;  %v195_v49 = vld [vmem:[%s4975_s27 + $0x88] sm:$0xf] }
  0x43   : > { %v477_v60 = vsel %vm4987_vm3, %v472_v50, %v476_v31  ;;  %4221 = vmatmul.msk.bf16.gmra.mxu1 %vm658_vm4, %v648_v54  ;;  %v582_v6 = vrot.slane %v580_v53, 5  ;;  %v273_v9 = vshrl.u32 %v176_v59, 16  ;;  %v276_v10 = vshll.u32 %v176_v59, 16  ;;  %v216_v53 = vld [vmem:[%s4975_s27 + $0x8c] sm:$0x1] }
  0x44   : > { %v487_v3 = vsel %vm4987_vm3, %v482_v55, %v486_v44  ;;  %v630_v4 = vunpack.c.l.b16 %v477_v60  ;;  %v567_v5 = vor.u32 %v566_v58, %v563_v57  ;;  %v577_v8 = vor.u32 %v576_v62, %v572_v61 }
  0x45   : > { %v631_v7 = vunpack.c.l.b16 %v487_v3  ;;  %v282_v12 = vshll.u32 %v5092_v63, 16  ;;  %v286_v13 = vshrl.u32 %v5092_v63, 16  ;;  %v292_v14 = vshll.u32 %v5095_v0, 16 }
  0x46   : > { %v568_v11 = vrot.slane %v567_v5, 4  ;;  %v578_v17 = vrot.slane %v577_v8, 4  ;;  %v275_v18 = vrot.slane %v273_v9, 4  ;;  %v278_v19 = vrot.slane %v276_v10, 5  ;;  %v202_v8 = vld [vmem:[%s4975_s27 + $0xb4] sm:$0xf] }
  0x47   : > { %v652_v16 = vpack.c.b16 %v631_v7, %v630_v4  ;;  %v284_v23 = vrot.slane %v282_v12, 5  ;;  %v288_v24 = vrot.slane %v286_v13, 4  ;;  %v294_v26 = vrot.slane %v292_v14, 5  ;;  %v203_v12 = vld [vmem:[%s4975_s27 + $0xb8] sm:$0xf] }
  0x48   : > { %v573_v22 = vsel %vm4987_vm3, %v568_v11, %v572_v61  ;;  %v583_v29 = vsel %vm4987_vm3, %v578_v17, %v582_v6  ;;  %v279_v31 = vor.u32 %v278_v19, %v275_v18  ;;  %v393_v33 = vshrl.u32 %v186_v15, 16  ;;  %v220_v17 = vld [vmem:[%s4975_s27 + $0xbc] sm:$0x1] }
  0x49   : > { %4225 = vmatmul.msk.bf16.gmra.mxu2 %vm658_vm4, %v652_v16  ;;  %v638_v30 = vunpack.c.l.b16 %v573_v22  ;;  %v639_v34 = vunpack.c.l.b16 %v583_v29  ;;  %v289_v35 = vor.u32 %v288_v24, %v284_v23  ;;  %v396_v37 = vshll.u32 %v186_v15, 16 }
  0x4a   : > { %v402_v38 = vshll.u32 %v5105_v21, 16  ;;  %v280_v40 = vrot.slane %v279_v31, 4  ;;  %v395_v41 = vrot.slane %v393_v33, 4  ;;  %v406_v42 = vshrl.u32 %v5105_v21, 16 }
  0x4b   : > { %v412_v43 = vshll.u32 %v5110_v27, 16  ;;  %v656_v44 = vpack.c.b16 %v639_v34, %v638_v30  ;;  %v290_v45 = vrot.slane %v289_v35, 4  ;;  %v398_v46 = vrot.slane %v396_v37, 5  ;;  %v178_v37 = vld [vmem:[%s4975_s27 + $0x24] sm:$0xf] }
  0x4c   : > { %v404_v48 = vrot.slane %v402_v38, 5  ;;  %v285_v50 = vsel %vm4987_vm3, %v280_v40, %v284_v23  ;;  %v408_v51 = vrot.slane %v406_v42, 4  ;;  %v489_v54 = vshrl.u32 %v194_v39, 16  ;;  %v5138_v42 = vld [vmem:[%s4975_s27 + $0x28] sm:$0xf] }
  0x4d   : > { %v414_v52 = vrot.slane %v412_v43, 5  ;;  %4229 = vmatmul.msk.bf16.gmra.mxu3 %vm658_vm4, %v656_v44  ;;  %v295_v55 = vsel %vm4987_vm3, %v290_v45, %v294_v26  ;;  %v614_v57 = vunpack.c.l.b16 %v285_v50  ;;  %v399_v58 = vor.u32 %v398_v46, %v395_v41 }
  0x4e   : > { %v492_v59 = vshll.u32 %v194_v39, 16  ;;  %v615_v60 = vunpack.c.l.b16 %v295_v55  ;;  %v409_v61 = vor.u32 %v408_v51, %v404_v48  ;;  %v491_v62 = vrot.slane %v489_v54, 4 }
  0x4f   : > { %v498_v3 = vshll.u32 %v195_v49, 16  ;;  %v400_v4 = vrot.slane %v399_v58, 4  ;;  %v502_v6 = vshrl.u32 %v195_v49, 16  ;;  %v508_v7 = vshll.u32 %v216_v53, 16 }
  0x50   : > { %v494_v5 = vrot.slane %v492_v59, 5  ;;  %v644_v9 = vpack.c.b16 %v615_v60, %v614_v57  ;;  %v410_v10 = vrot.slane %v409_v61, 4  ;;  %v585_v22 = vshrl.u32 %v202_v8, 16  ;;  %v1020_v61 = vld [vmem:[%s4975_s27] sm:$0xe] }
  0x51   : > { %v500_v11 = vrot.slane %v498_v3, 5  ;;  %v405_v13 = vsel %vm4987_vm3, %v400_v4, %v404_v48  ;;  %v504_v15 = vrot.slane %v502_v6, 4  ;;  %v510_v16 = vrot.slane %v508_v7, 5  ;;  %v5142_v48 = vld [vmem:[%s4975_s27 + $0x2c] sm:$0x1] }
  0x52   : > { %v495_v14 = vor.u32 %v494_v5, %v491_v62  ;;  %4217 = vmatmul.msk.bf16.gmra.mxu0 %vm658_vm4, %v644_v9  ;;  %v415_v18 = vsel %vm4987_vm3, %v410_v10, %v414_v52  ;;  %v624_v19 = vunpack.c.l.b16 %v405_v13  ;;  %v588_v23 = vshll.u32 %v202_v8, 16  ;;  %v4457_v6 = vld [vmem:[%s4975_s27 + $0xc] sm:$0xf] }
  0x53   : > { %v625_v24 = vunpack.c.l.b16 %v415_v18  ;;  %v505_v29 = vor.u32 %v504_v15, %v500_v11  ;;  %v594_v30 = vshll.u32 %v203_v12, 16  ;;  %v587_v31 = vrot.slane %v585_v22, 4 }
  0x54   : > { %v496_v26 = vrot.slane %v495_v14, 4  ;;  %v590_v33 = vrot.slane %v588_v23, 5  ;;  %v598_v34 = vshrl.u32 %v203_v12, 16  ;;  %v604_v35 = vshll.u32 %v220_v17, 16  ;;  %v4458_v12 = vld [vmem:[%s4975_s27 + $0x10] sm:$0xf] }
  0x55   : > { %v649_v38 = vpack.c.b16 %v625_v24, %v624_v19  ;;  %v506_v40 = vrot.slane %v505_v29, 4  ;;  %v596_v41 = vrot.slane %v594_v30, 5  ;;  %v1076_v43 = vrot.slane %v5003_v2, 5 }
  0x56   : > { %v501_v39 = vsel %vm4987_vm3, %v496_v26, %v500_v11  ;;  %v591_v45 = vor.u32 %v590_v33, %v587_v31  ;;  %v600_v46 = vrot.slane %v598_v34, 4  ;;  %v606_v50 = vrot.slane %v604_v35, 5  ;;  %v4603_v11 = vld [vmem:[%s6375_s1 + $0xc] sm:$0x3] }
  0x57   : > { %v632_v44 = vunpack.c.l.b16 %v501_v39  ;;  %4222 = vmatmul.msk.bf16.gmra.mxu1 %vm658_vm4, %v649_v38  ;;  %v511_v49 = vsel %vm4987_vm3, %v506_v40, %v510_v16  ;;  %v297_v51 = vshrl.u32 %v178_v37, 16  ;;  %v300_v52 = vshll.u32 %v178_v37, 16  ;;  %v4459_v38 = vld [vmem:[%s4975_s27 + $0x14] sm:$0x1] }
  0x58   : > { %v633_v53 = vunpack.c.l.b16 %v511_v49  ;;  %v592_v54 = vrot.slane %v591_v45, 4  ;;  %v601_v55 = vor.u32 %v600_v46, %v596_v41  ;;  %v306_v2 = vshll.u32 %v5138_v42, 16  ;;  %v4732_v45 = vld [vmem:[%s6375_s1 + $0xe] sm:$0x3] }
  0x59   : > { %v299_v57 = vrot.slane %v297_v51, 4  ;;  %v302_v58 = vrot.slane %v300_v52, 5  ;;  %v310_v59 = vshrl.u32 %v5138_v42, 16  ;;  %v316_v60 = vshll.u32 %v5142_v48, 16  ;;  %v4801_v51 = vld [vmem:[%s4975_s27] sm:$0xff] }
  0x5a   : > { %v653_v62 = vpack.c.b16 %v633_v53, %v632_v44  ;;  %v597_v3 = vsel %vm4987_vm3, %v592_v54, %v596_v41  ;;  %v602_v4 = vrot.slane %v601_v55, 4  ;;  %v308_v5 = vrot.slane %v306_v2, 5  ;;  %v4781_v2 = vld [vmem:[%s6375_s1 + $0x10] sm:$0x3] }
  0x5b   : > { %v640_v7 = vunpack.c.l.b16 %v597_v3  ;;  %v303_v8 = vor.u32 %v302_v58, %v299_v57  ;;  %v312_v9 = vrot.slane %v310_v59, 4  ;;  %v318_v10 = vrot.slane %v316_v60, 5 }
  0x5c   : > { %4226 = vmatmul.msk.bf16.gmra.mxu2 %vm658_vm4, %v653_v62  ;;  %v607_v13 = vsel %vm4987_vm3, %v602_v4, %v606_v50  ;;  %v4311_v14 = vrot.slane %v1020_v61, 9  ;;  %v1073_v19 = vrot.slane %v5000_v1, 5  ;;  %v2908_v22 = vsel %vm707_vm0, %v4603_v11, 0  ;;  %v4554_v50 = vld [vmem:[%s6375_s1 + $0xa] sm:$0x3] }
  0x5d   : > { %v641_v15 = vunpack.c.l.b16 %v607_v13  ;;  %v304_v16 = vrot.slane %v303_v8, 4  ;;  %v313_v17 = vor.u32 %v312_v9, %v308_v5  ;;  %v1741_v23 = vshrl.u32 %v4457_v6, 16  ;;  %2917 = vmatpush.bf16.msra.mxu2 %v2908_v22  ;;  %v1021_v8 = vld [vmem:[%s4975_s27 + $0xc] sm:$0xe] }
  0x5e   : > { %v1744_v24 = vshll.u32 %v4457_v6, 16  ;;  %v1750_v26 = vshll.u32 %v4458_v12, 16  ;;  %v1074_v33 = vsel %vm5161_vm7, %v4311_v14, %v1073_v19  ;;  %v1075_v35 = vrot.slane %v1073_v19, 4  ;;  %v4461_v6 = vld [vmem:[%s4975_s27 + $0x1c] sm:$0xf] }
  0x5f   : > { %v657_v29 = vpack.c.b16 %v641_v15, %v640_v7  ;;  %v309_v30 = vsel %vm4987_vm3, %v304_v16, %v308_v5  ;;  %v314_v31 = vrot.slane %v313_v17, 4  ;;  %v1185_v37 = vunpack.c.l.b16 %v1074_v33  ;;  %v4460_v5 = vld [vmem:[%s4975_s27 + $0x18] sm:$0xf]  ;;  %v4817_v15 = vld [vmem:[%s4975_s27 + $0xc] sm:$0xff] }
  0x60   : > { %v616_v34 = vunpack.c.l.b16 %v309_v30  ;;  %v1743_v1 = vrot.slane %v1741_v23, 4  ;;  %v1746_v40 = vrot.slane %v1744_v24, 5  ;;  %v1752_v41 = vrot.slane %v1750_v26, 5  ;;  %v4462_v30 = vld [vmem:[%s4975_s27 + $0x20] sm:$0x1] }
  0x61   : > { %4230 = vmatmul.msk.bf16.gmra.mxu3 %vm658_vm4, %v657_v29  ;;  %v319_v39 = vsel %vm4987_vm3, %v314_v31, %v318_v10  ;;  %v1754_v44 = vshrl.u32 %v4458_v12, 16  ;;  %v1077_v49 = vsel %vm5161_vm7, %v1075_v35, %v1076_v43  ;;  %v1760_v55 = vshll.u32 %v4459_v38, 16  ;;  %v4802_v35 = vld [vmem:[%s4975_s27 + $0xc] sm:$0xff] }
  0x62   : > { %v617_v46 = vunpack.c.l.b16 %v319_v39  ;;  %v1186_v52 = vunpack.c.l.b16 %v1077_v49  ;;  %v1747_v53 = vor.u32 %v1746_v40, %v1743_v1  ;;  %v3562_v58 = vsel %vm707_vm0, %v4732_v45, 0 }
  0x63   : > { %v1756_v54 = vrot.slane %v1754_v44, 4  ;;  %3571 = vmatpush.bf16.msra.mxu3 %v3562_v58  ;;  %v2621_v60 = vsel %vm707_vm0, %v4554_v50, 0  ;;  %v3960_v61 = vsel %vm707_vm0, %v4781_v2, 0  ;;  %v1762_v4 = vrot.slane %v1760_v55, 5  ;;  %v1022_v50 = vld [vmem:[%s4975_s27 + $0x18] sm:$0xe] }
  0x64   : > { %v645_v57 = vpack.c.b16 %v617_v46, %v616_v34  ;;  %v1217_v43 = vpack.c.b16 %v1186_v52, %v1185_v37  ;;  %2630 = vmatpush.bf16.msra.mxu1 %v2621_v60  ;;  %v1748_v62 = vrot.slane %v1747_v53, 4  ;;  %3969 = vmatpush.bf16.msra.mxu0 %v3960_v61  ;;  %v1080_v7 = vrot.slane %v5046_v28, 5  ;;  %v4464_v46 = vld [vmem:[%s4975_s27 + $0x28] sm:$0xf] }
  0x65   : > { %v1757_v59 = vor.u32 %v1756_v54, %v1752_v41  ;;  %v1765_v9 = vshrl.u32 %v4460_v5, 16  ;;  %v1768_v10 = vshll.u32 %v4460_v5, 16  ;;  %v1774_v13 = vshll.u32 %v4461_v6, 16 }
  0x66   : > { %4218 = vmatmul.msk.bf16.gmra.mxu0 %vm658_vm4, %v645_v57  ;;  %v1753_v11 = vsel %vm4987_vm3, %v1748_v62, %v1752_v41  ;;  %v1778_v14 = vshrl.u32 %v4461_v6, 16  ;;  %v4312_v16 = vrot.slane %v1021_v8, 9  ;;  %v1082_v17 = vrot.slane %v1080_v7, 4  ;;  %v4463_v41 = vld [vmem:[%s4975_s27 + $0x24] sm:$0xf] }
  0x67   : > { %4295 = vmatmul.msk.bf16.vlgmr.msrb.gmra.mxu1 %vm658_vm4, %v4801_v51  ;;  %v1758_v3 = vrot.slane %v1757_v59, 4  ;;  %v1083_v28 = vrot.slane %v5049_v32, 5  ;;  %v2126_v19 = vunpack.c.l.b16 %v1753_v11  ;;  %v1767_v23 = vrot.slane %v1765_v9, 4  ;;  %v4465_v6 = vld [vmem:[%s4975_s27 + $0x2c] sm:$0x1] }
  0x68   : > { %v1770_v24 = vrot.slane %v1768_v10, 5  ;;  %v1776_v26 = vrot.slane %v1774_v13, 5  ;;  %v1780_v29 = vrot.slane %v1778_v14, 4  ;;  %v1081_v31 = vsel %vm5161_vm7, %v4312_v16, %v1080_v7 }
  0x69   : > { %v1763_v12 = vsel %vm4987_vm3, %v1758_v3, %v1762_v4  ;;  %v1084_v33 = vsel %vm5161_vm7, %v1082_v17, %v1083_v28  ;;  %v1784_v38 = vshll.u32 %v4462_v30, 16  ;;  %v1187_v1 = vunpack.c.l.b16 %v1081_v31 }
  0x6a   : > { %v2127_v22 = vunpack.c.l.b16 %v1763_v12  ;;  %v1771_v32 = vor.u32 %v1770_v24, %v1767_v23  ;;  %v1781_v37 = vor.u32 %v1780_v29, %v1776_v26  ;;  %v1188_v39 = vunpack.c.l.b16 %v1084_v33  ;;  %v4803_v12 = vld [vmem:[%s4975_s27 + $0x18] sm:$0xff]  ;;  %v1023_v29 = vld [vmem:[%s4975_s27 + $0x24] sm:$0xe] }
  0x6b   : > { %v1786_v45 = vrot.slane %v1784_v38, 5  ;;  %v1087_v51 = vrot.slane %v5092_v63, 5  ;;  %v1789_v52 = vshrl.u32 %v4463_v41, 16  ;;  %v1792_v54 = vshll.u32 %v4463_v41, 16 }
  0x6c   : > { %4328 = vmatmul.msk.bf16.vlgmr.msrb.gmra.mxu2 %vm658_vm4, %v1217_v43  ;;  %v2158_v34 = vpack.c.b16 %v2127_v22, %v2126_v19  ;;  %v1772_v40 = vrot.slane %v1771_v32, 4  ;;  %v1782_v44 = vrot.slane %v1781_v37, 4  ;;  %v1218_v49 = vpack.c.b16 %v1188_v39, %v1187_v1  ;;  %v4818_v43 = vld [vmem:[%s4975_s27 + $0x18] sm:$0xff]  ;;  %v4466_v19 = vld [vmem:[%s4975_s27 + $0x30] sm:$0xf]  ;;  %v4819_v32 = vld [vmem:[%s4975_s27 + $0x24] sm:$0xff] }
  0x6d   : > { %v1798_v55 = vshll.u32 %v4464_v46, 16  ;;  %v1802_v2 = vshrl.u32 %v4464_v46, 16  ;;  %v4313_v58 = vrot.slane %v1022_v50, 9  ;;  %v1089_v60 = vrot.slane %v1087_v51, 4  ;;  %v4467_v22 = vld [vmem:[%s4975_s27 + $0x34] sm:$0xf] }
  0x6e   : > { %v1777_v53 = vsel %vm4987_vm3, %v1772_v40, %v1776_v26  ;;  %v1787_v57 = vsel %vm4987_vm3, %v1782_v44, %v1786_v45  ;;  %v1090_v63 = vrot.slane %v5095_v0, 5  ;;  %v1791_v61 = vrot.slane %v1789_v52, 4  ;;  %v4468_v45 = vld [vmem:[%s4975_s27 + $0x38] sm:$0x1] }
  0x6f   : > { %v2128_v59 = vunpack.c.l.b16 %v1777_v53  ;;  %v2129_v62 = vunpack.c.l.b16 %v1787_v57  ;;  %v1794_v3 = vrot.slane %v1792_v54, 5  ;;  %v1800_v4 = vrot.slane %v1798_v55, 5  ;;  %v4470_v57 = vld [vmem:[%s4975_s27 + $0x40] sm:$0xf] }
  0x70   : > { %v1804_v5 = vrot.slane %v1802_v2, 4  ;;  %v1088_v7 = vsel %vm5161_vm7, %v4313_v58, %v1087_v51  ;;  %v1091_v8 = vsel %vm5161_vm7, %v1089_v60, %v1090_v63  ;;  %v1808_v0 = vshll.u32 %v4465_v6, 16  ;;  %v4469_v2 = vld [vmem:[%s4975_s27 + $0x3c] sm:$0xf]  ;;  %v4862_v63 = vld [vmem:[%s4975_s27 + $0x34] sm:$0xf] }
  0x71   : > { %4441 = vmatmul.msk.bf16.vlgmr.msrb.gmra.mxu3 %vm658_vm4, %v4817_v15  ;;  %v2159_v9 = vpack.c.b16 %v2129_v62, %v2128_v59  ;;  %v1795_v10 = vor.u32 %v1794_v3, %v1791_v61  ;;  %v1189_v13 = vunpack.c.l.b16 %v1088_v7  ;;  %v1190_v14 = vunpack.c.l.b16 %v1091_v8  ;;  %v1024_v62 = vld [vmem:[%s4975_s27 + $0x30] sm:$0xe] }
  0x72   : > { %v1805_v11 = vor.u32 %v1804_v5, %v1800_v4  ;;  %v1810_v17 = vrot.slane %v1808_v0, 5  ;;  %v1094_v23 = vrot.slane %v5138_v42, 5  ;;  %v1813_v30 = vshrl.u32 %v4466_v19, 16  ;;  %v4863_v0 = vld [vmem:[%s4975_s27 + $0x38] sm:$0x1] }
  0x73   : > { %v1796_v15 = vrot.slane %v1795_v10, 4  ;;  %v1219_v28 = vpack.c.b16 %v1190_v14, %v1189_v13  ;;  %v1816_v31 = vshll.u32 %v4466_v19, 16  ;;  %v1822_v33 = vshll.u32 %v4467_v22, 16  ;;  %v4820_v13 = vld [vmem:[%s4975_s27 + $0x30] sm:$0xff] }
  0x74   : > { %v1806_v16 = vrot.slane %v1805_v11, 4  ;;  %v1096_v37 = vrot.slane %v1094_v23, 4  ;;  %v1097_v42 = vrot.slane %v5142_v48, 5  ;;  %v1815_v39 = vrot.slane %v1813_v30, 4  ;;  %v4804_v48 = vld [vmem:[%s4975_s27 + $0x24] sm:$0xff] }
  0x75   : > { %v1801_v24 = vsel %vm4987_vm3, %v1796_v15, %v1800_v4  ;;  %v1818_v40 = vrot.slane %v1816_v31, 5  ;;  %v1824_v41 = vrot.slane %v1822_v33, 5  ;;  %v1832_v53 = vshll.u32 %v4468_v45, 16  ;;  %v4805_v33 = vld [vmem:[%s4975_s27 + $0x30] sm:$0xff] }
  0x76   : > { %4506 = vmatmul.msk.bf16.vlgmr.msrb.gmra.mxu0 %vm658_vm4, %v2158_v34  ;;  %v1811_v26 = vsel %vm4987_vm3, %v1806_v16, %v1810_v17  ;;  %v1826_v34 = vshrl.u32 %v4467_v22, 16  ;;  %v2130_v38 = vunpack.c.l.b16 %v1801_v24  ;;  %v1101_v61 = vrot.slane %v4862_v63, 5  ;;  %v4471_v22 = vld [vmem:[%s4975_s27 + $0x44] sm:$0x1] }
  0x77   : > { %4296 = vmatmul.msk.bf16.gmra.mxu1 %vm658_vm4, %v4802_v35  ;;  %v4314_v35 = vrot.slane %v1023_v29, 9  ;;  %v2131_v1 = vunpack.c.l.b16 %v1811_v26  ;;  %v1819_v51 = vor.u32 %v1818_v40, %v1815_v39  ;;  %v1834_v59 = vrot.slane %v1832_v53, 5  ;;  %v4472_v39 = vld [vmem:[%s4975_s27 + $0x48] sm:$0xf]  ;;  %v4473_v40 = vld [vmem:[%s4975_s27 + $0x4c] sm:$0xf] }
  0x78   : > { %v1828_v44 = vrot.slane %v1826_v34, 4  ;;  %v1837_v3 = vshrl.u32 %v4469_v2, 16  ;;  %v1840_v4 = vshll.u32 %v4469_v2, 16  ;;  %v1846_v5 = vshll.u32 %v4470_v57, 16  ;;  %v4821_v2 = vld [vmem:[%s4975_s27 + $0x3c] sm:$0xff] }
  0x79   : > { %v1095_v46 = vsel %vm5161_vm7, %v4314_v35, %v1094_v23  ;;  %v2160_v50 = vpack.c.b16 %v2131_v1, %v2130_v38  ;;  %v1820_v58 = vrot.slane %v1819_v51, 4  ;;  %v1850_v6 = vshrl.u32 %v4470_v57, 16 }
  0x7a   : > { %v1829_v52 = vor.u32 %v1828_v44, %v1824_v41  ;;  %v1191_v54 = vunpack.c.l.b16 %v1095_v46  ;;  %v4315_v10 = vrot.slane %v1024_v62, 9  ;;  %v1103_v11 = vrot.slane %v1101_v61, 4 }
  0x7b   : > { %v1825_v8 = vsel %vm4987_vm3, %v1820_v58, %v1824_v41  ;;  %v1839_v14 = vrot.slane %v1837_v3, 4  ;;  %v1842_v15 = vrot.slane %v1840_v4, 5  ;;  %v1848_v16 = vrot.slane %v1846_v5, 5  ;;  %v4474_v4 = vld [vmem:[%s4975_s27 + $0x50] sm:$0x1] }
  0x7c   : > { %4329 = vmatmul.msk.bf16.gmra.mxu2 %vm658_vm4, %v1218_v49  ;;  %v1098_v49 = vsel %vm5161_vm7, %v1096_v37, %v1097_v42  ;;  %v1852_v17 = vrot.slane %v1850_v6, 4  ;;  %v1102_v23 = vsel %vm5161_vm7, %v4315_v10, %v1101_v61  ;;  %v1856_v30 = vshll.u32 %v4471_v22, 16 }
  0x7d   : > { %v1192_v55 = vunpack.c.l.b16 %v1098_v49  ;;  %v1843_v26 = vor.u32 %v1842_v15, %v1839_v14  ;;  %v1861_v51 = vshrl.u32 %v4472_v39, 16  ;;  %v1870_v53 = vshll.u32 %v4473_v40, 16 }
  0x7e   : > { %v1853_v29 = vor.u32 %v1852_v17, %v1848_v16  ;;  %v1858_v1 = vrot.slane %v1856_v30, 5 }
  0x7f   : > { %v1220_v60 = vpack.c.b16 %v1192_v55, %v1191_v54  ;;  %v1844_v42 = vrot.slane %v1843_v26, 4  ;;  %v1874_v54 = vshrl.u32 %v4473_v40, 16  ;;  %v1872_v62 = vrot.slane %v1870_v53, 5 }
  0x80   : > { %v1854_v38 = vrot.slane %v1853_v29, 4  ;;  %v1115_v26 = vrot.slane %v5059_v47, 5 }
  0x81   : > { %4442 = vmatmul.msk.bf16.gmra.mxu3 %vm658_vm4, %v4818_v43  ;;  %v1830_v43 = vrot.slane %v1829_v52, 4  ;;  %v1849_v45 = vsel %vm4987_vm3, %v1844_v42, %v1848_v16  ;;  %v1864_v52 = vshll.u32 %v4472_v39, 16  ;;  %v1876_v3 = vrot.slane %v1874_v54, 4  ;;  %v4477_v54 = vld [vmem:[%s4975_s27 + $0x5c] sm:$0x1] }
  0x82   : > { %v1859_v46 = vsel %vm4987_vm3, %v1854_v38, %v1858_v1  ;;  %v2134_v55 = vunpack.c.l.b16 %v1849_v45  ;;  %v4822_v1 = vld [vmem:[%s4975_s27 + $0x48] sm:$0xff]  ;;  %v1117_v40 = vrot.slane %v1115_v26, 4 }
  0x83   : > { %v2135_v57 = vunpack.c.l.b16 %v1859_v46  ;;  %v1866_v61 = vrot.slane %v1864_v52, 5  ;;  %v1877_v10 = vor.u32 %v1876_v3, %v1872_v62 }
  0x85   : > { %v1878_v16 = vrot.slane %v1877_v10, 4 }
  0x86   : > { %4507 = vmatmul.msk.bf16.gmra.mxu0 %vm658_vm4, %v2159_v9  ;;  %v1835_v9 = vsel %vm4987_vm3, %v1830_v43, %v1834_v59 }
  0x87   : > { %4297 = vmatmul.msk.bf16.gmra.mxu1 %vm658_vm4, %v4803_v12  ;;  %v1104_v12 = vrot.slane %v4863_v0, 5  ;;  %v2133_v19 = vunpack.c.l.b16 %v1835_v9 }
  0x89   : > { %v1105_v24 = vsel %vm5161_vm7, %v1103_v11, %v1104_v12  ;;  %v1880_v11 = vshll.u32 %v4474_v4, 16  ;;  %v4806_v12 = vld [vmem:[%s4975_s27 + $0x3c] sm:$0xff] }
  0x8a   : > { %v1194_v35 = vunpack.c.l.b16 %v1105_v24  ;;  %v4476_v24 = vld [vmem:[%s4975_s27 + $0x58] sm:$0xf]  ;;  %v4478_v4 = vld [vmem:[%s4975_s27 + $0x60] sm:$0xf] }
  0x8b   : > { %v1882_v17 = vrot.slane %v1880_v11, 5  ;;  %v1898_v42 = vshrl.u32 %v4476_v24, 16 }
  0x8c   : > { %4330 = vmatmul.msk.bf16.gmra.mxu2 %vm658_vm4, %v1219_v28  ;;  %v2132_v28 = vunpack.c.l.b16 %v1825_v8  ;;  %v2162_v8 = vpack.c.b16 %v2135_v57, %v2134_v55 }
  0x8d   : > { %v1883_v30 = vsel %vm4987_vm3, %v1878_v16, %v1882_v17  ;;  %v1900_v52 = vrot.slane %v1898_v42, 4 }
  0x8e   : > { %v2161_v31 = vpack.c.b16 %v2133_v19, %v2132_v28  ;;  %v2137_v46 = vunpack.c.l.b16 %v1883_v30 }
  0x91   : > { %4443 = vmatmul.msk.bf16.gmra.mxu3 %vm658_vm4, %v4819_v32  ;;  %v1193_v32 = vunpack.c.l.b16 %v1102_v23  ;;  %v4475_v23 = vld [vmem:[%s4975_s27 + $0x54] sm:$0xf] }
  0x93   : > { %v1221_v44 = vpack.c.b16 %v1194_v35, %v1193_v32  ;;  %v1888_v32 = vshll.u32 %v4475_v23, 16  ;;  %v1894_v35 = vshll.u32 %v4476_v24, 16 }
  0x96   : > { %4508 = vmatmul.msk.bf16.gmra.mxu0 %vm658_vm4, %v2160_v50  ;;  %v1108_v50 = vrot.slane %v5015_v20, 5  ;;  %v1863_v20 = vrot.slane %v1861_v51, 4  ;;  %v1896_v51 = vrot.slane %v1894_v35, 5  ;;  %v1125_v35 = vrot.slane %v5110_v27, 5 }
  0x97   : > { %4298 = vmatmul.msk.bf16.gmra.mxu1 %vm658_vm4, %v4804_v48  ;;  %v1025_v48 = vld [vmem:[%s4975_s27 + $0x3c] sm:$0xe] }
  0x98   : > { %v4316_v43 = vrot.slane %v1025_v48, 9  ;;  %v1110_v59 = vrot.slane %v1108_v50, 4  ;;  %v1890_v48 = vrot.slane %v1888_v32, 5 }
  0x9a   : > { %v1109_v5 = vsel %vm5161_vm7, %v4316_v43, %v1108_v50  ;;  %v4807_v43 = vld [vmem:[%s4975_s27 + $0x48] sm:$0xff] }
  0x9c   : > { %v5256_v7 = vpop.f32.mrf.mxu1  ;;  %4331 = vmatmul.msk.bf16.gmra.mxu2 %vm658_vm4, %v1220_v60  ;;  %v1111_v60 = vrot.slane %v5020_v25, 5  ;;  %v1867_v25 = vor.u32 %v1866_v61, %v1863_v20  ;;  %v1904_v20 = vshll.u32 %v4477_v54, 16  ;;  %v4808_v54 = vld [vmem:[%s4975_s27 + $0x54] sm:$0xff] }
  0x9e   : > { %v1112_v6 = vsel %vm5161_vm7, %v1110_v59, %v1111_v60  ;;  %v1868_v15 = vrot.slane %v1867_v25, 4  ;;  %v1901_v60 = vor.u32 %v1900_v52, %v1896_v51  ;;  %v1906_v10 = vrot.slane %v1904_v20, 5 }
  0x9f   : > { %v1196_v14 = vunpack.c.l.b16 %v1112_v6 }
  0xa0   : > { %v1873_v29 = vsel %vm4987_vm3, %v1868_v15, %v1872_v62  ;;  %v1902_v25 = vrot.slane %v1901_v60, 4  ;;  %v1122_v15 = vrot.slane %v5105_v21, 5 }
  0xa1   : > { %4444 = vmatmul.msk.bf16.gmra.mxu3 %vm658_vm4, %v4820_v13  ;;  %v1195_v13 = vunpack.c.l.b16 %v1109_v5  ;;  %v2136_v45 = vunpack.c.l.b16 %v1873_v29  ;;  %v4479_v5 = vld [vmem:[%s4975_s27 + $0x64] sm:$0xf] }
  0xa2   : > { %v1922_v16 = vshrl.u32 %v4479_v5, 16  ;;  %v1907_v24 = vsel %vm4987_vm3, %v1902_v25, %v1906_v10  ;;  %v1124_v32 = vrot.slane %v1122_v15, 4  ;;  %v4864_v10 = vld [vmem:[%s4975_s27 + $0x64] sm:$0xf] }
  0xa3   : > { %v1222_v19 = vpack.c.b16 %v1196_v14, %v1195_v13  ;;  %v2163_v57 = vpack.c.b16 %v2137_v46, %v2136_v45  ;;  %v1912_v13 = vshll.u32 %v4478_v4, 16  ;;  %v1918_v14 = vshll.u32 %v4479_v5, 16 }
  0xa4   : > { %v5272_v34 = vpop.f32.mrf.mxu1  ;;  %v1924_v42 = vrot.slane %v1922_v16, 4 }
  0xa5   : > { %v1914_v30 = vrot.slane %v1912_v13, 5  ;;  %v1028_v13 = vld [vmem:[%s4975_s27 + $0x60] sm:$0xe] }
  0xa6   : > { %v5274_v37 = vpop.f32.mrf.mxu2  ;;  %4509 = vmatmul.msk.bf16.gmra.mxu0 %vm658_vm4, %v2161_v31  ;;  %v1026_v31 = vld [vmem:[%s4975_s27 + $0x48] sm:$0xe] }
  0xa7   : > { %4299 = vmatmul.msk.bf16.gmra.mxu1 %vm658_vm4, %v4805_v33  ;;  %v1885_v33 = vshrl.u32 %v4475_v23, 16  ;;  %v4317_v47 = vrot.slane %v1026_v31, 9  ;;  %v1920_v31 = vrot.slane %v1918_v14, 5 }
  0xa9   : > { %v5280_v41 = vpop.f32.mrf.mxu0  ;;  %v1887_v50 = vrot.slane %v1885_v33, 4  ;;  %v4823_v33 = vld [vmem:[%s4975_s27 + $0x54] sm:$0xff]  ;;  %v1925_v27 = vor.u32 %v1924_v42, %v1920_v31 }
  0xaa   : > { %v5286_v49 = vpop.f32.mrf.mxu3 }
  0xab   : > { %v1891_v59 = vor.u32 %v1890_v48, %v1887_v50  ;;  %v1126_v48 = vsel %vm5161_vm7, %v1124_v32, %v1125_v35  ;;  %v1926_v60 = vrot.slane %v1925_v27, 4 }
  0xac   : > { %4332 = vmatmul.msk.bf16.gmra.mxu2 %vm658_vm4, %v1221_v44  ;;  %v1118_v44 = vrot.slane %v5064_v56, 5 }
  0xae   : > { %v5292_v58 = vpop.f32.mrf.mxu1  ;;  %v5295_v63 = vpop.f32.mrf.mxu2  ;;  %v1119_v56 = vsel %vm5161_vm7, %v1117_v40, %v1118_v44  ;;  %v4480_v40 = vld [vmem:[%s4975_s27 + $0x68] sm:$0x1] }
  0xaf   : > { %v1198_v62 = vunpack.c.l.b16 %v1119_v56 }
  0xb1   : > { %4445 = vmatmul.msk.bf16.gmra.mxu3 %vm658_vm4, %v4821_v2  ;;  %v5303_v9 = vpop.f32.mrf.mxu0  ;;  %v1116_v2 = vsel %vm5161_vm7, %v4317_v47, %v1115_v26  ;;  %v2139_v47 = vunpack.c.l.b16 %v1907_v24 }
  0xb2   : > { %v5305_v0 = vpop.f32.mrf.mxu3  ;;  %v1197_v61 = vunpack.c.l.b16 %v1116_v2 }
  0xb4   : > { %v1223_v11 = vpack.c.b16 %v1198_v62, %v1197_v61  ;;  %v4481_v61 = vld [vmem:[%s4975_s27 + $0x6c] sm:$0xf]  ;;  %v4482_v62 = vld [vmem:[%s4975_s27 + $0x70] sm:$0xf] }
  0xb5   : > { %v1933_v14 = vshrl.u32 %v4481_v61, 16  ;;  %v1942_v16 = vshll.u32 %v4482_v62, 16 }
  0xb6   : > { %4510 = vmatmul.msk.bf16.gmra.mxu0 %vm658_vm4, %v2162_v8  ;;  %v5309_v28 = vpop.f32.mrf.mxu1  ;;  %v1892_v8 = vrot.slane %v1891_v59, 4 }
  0xb7   : > { %4300 = vmatmul.msk.bf16.gmra.mxu1 %vm658_vm4, %v4806_v12  ;;  %v1909_v12 = vshrl.u32 %v4478_v4, 16  ;;  %v1935_v35 = vrot.slane %v1933_v14, 4  ;;  %v4485_v14 = vld [vmem:[%s4975_s27 + $0x7c] sm:$0xf] }
  0xb8   : > { %v1897_v23 = vsel %vm4987_vm3, %v1892_v8, %v1896_v51  ;;  %v1928_v51 = vshll.u32 %v4480_v40, 16 }
  0xb9   : > { %v5312_v22 = vpop.f32.mrf.mxu2  ;;  %v1911_v29 = vrot.slane %v1909_v12, 4 }
  0xba   : > { %v1930_v20 = vrot.slane %v1928_v51, 5 }
  0xbb   : > { %v1915_v46 = vor.u32 %v1914_v30, %v1911_v29  ;;  %v4824_v30 = vld [vmem:[%s4975_s27 + $0x60] sm:$0xff] }
  0xbc   : > { %4333 = vmatmul.msk.bf16.gmra.mxu2 %vm658_vm4, %v1222_v19  ;;  %v1027_v19 = vld [vmem:[%s4975_s27 + $0x54] sm:$0xe]  ;;  %v1931_v25 = vsel %vm4987_vm3, %v1926_v60, %v1930_v20 }
  0xbd   : > { %v5322_v38 = vpop.f32.mrf.mxu0  ;;  %v4318_v21 = vrot.slane %v1027_v19, 9  ;;  %v1916_v59 = vrot.slane %v1915_v46, 4  ;;  %v1946_v19 = vshrl.u32 %v4482_v62, 16  ;;  %v4483_v46 = vld [vmem:[%s4975_s27 + $0x74] sm:$0x1] }
  0xbe   : > { %v5326_v39 = vpop.f32.mrf.mxu3 }
  0xbf   : > { %v1123_v50 = vsel %vm5161_vm7, %v4318_v21, %v1122_v15  ;;  %v1921_v8 = vsel %vm4987_vm3, %v1916_v59, %v1920_v31  ;;  %v1936_v15 = vshll.u32 %v4481_v61, 16  ;;  %v4319_v21 = vrot.slane %v1028_v13, 9  ;;  %v4484_v13 = vld [vmem:[%s4975_s27 + $0x78] sm:$0xf] }
  0xc0   : > { %v5329_v53 = vpop.f32.mrf.mxu1  ;;  %v1199_v56 = vunpack.c.l.b16 %v1123_v50  ;;  %v2140_v31 = vunpack.c.l.b16 %v1921_v8 }
  0xc1   : > { %4446 = vmatmul.msk.bf16.gmra.mxu3 %vm658_vm4, %v4822_v1  ;;  %v5333_v55 = vpop.f32.mrf.mxu2  ;;  %v2138_v1 = vunpack.c.l.b16 %v1897_v23  ;;  %v4865_v23 = vld [vmem:[%s4975_s27 + $0x68] sm:$0x1]  ;;  %v1938_v42 = vrot.slane %v1936_v15, 5  ;;  %v4866_v15 = vld [vmem:[%s4975_s27 + $0x70] sm:$0xf] }
  0xc2   : > { %v1132_v24 = vrot.slane %v4865_v23, 5  ;;  %v1029_v23 = vld [vmem:[%s4975_s27 + $0x6c] sm:$0xe] }
  0xc3   : > { %v2164_v52 = vpack.c.b16 %v2139_v47, %v2138_v1  ;;  %v1944_v1 = vrot.slane %v1942_v16, 5  ;;  %v1948_v47 = vrot.slane %v1946_v19, 4  ;;  %v1939_v51 = vor.u32 %v1938_v42, %v1935_v35  ;;  %v4867_v42 = vld [vmem:[%s4975_s27 + $0x74] sm:$0x1] }
  0xc4   : > { %v1136_v16 = vrot.slane %v4866_v15, 5 }
  0xc5   : > { %v5340_v3 = vpop.f32.mrf.mxu0 }
  0xc6   : > { %4511 = vmatmul.msk.bf16.gmra.mxu0 %vm658_vm4, %v2163_v57  ;;  %v5345_v6 = vpop.f32.mrf.mxu3  ;;  %v1200_v57 = vunpack.c.l.b16 %v1126_v48 }
  0xc7   : > { %4301 = vmatmul.msk.bf16.gmra.mxu1 %vm658_vm4, %v4807_v43 }
  0xc8   : > { %v5349_v17 = vpop.f32.mrf.mxu1  ;;  %v1224_v4 = vpack.c.b16 %v1200_v57, %v1199_v56  ;;  %v4809_v57 = vld [vmem:[%s4975_s27 + $0x60] sm:$0xff] }
  0xcc   : > { %v5356_v26 = vpop.f32.mrf.mxu2  ;;  %4334 = vmatmul.msk.bf16.gmra.mxu2 %vm658_vm4, %v1223_v11  ;;  %v1129_v11 = vrot.slane %v4864_v10, 5 }
  0xce   : > { %v1131_v32 = vrot.slane %v1129_v11, 4  ;;  %v1130_v50 = vsel %vm5161_vm7, %v4319_v21, %v1129_v11  ;;  %v1970_v21 = vshrl.u32 %v4485_v14, 16 }
  0xcf   : > { %v5362_v44 = vpop.f32.mrf.mxu0  ;;  %v1201_v20 = vunpack.c.l.b16 %v1130_v50  ;;  %v4320_v50 = vrot.slane %v1029_v23, 9 }
  0xd0   : > { %v5364_v45 = vpop.f32.mrf.mxu3  ;;  %v1133_v48 = vsel %vm5161_vm7, %v1131_v32, %v1132_v24 }
  0xd1   : > { %4447 = vmatmul.msk.bf16.gmra.mxu3 %vm658_vm4, %v4823_v33  ;;  %v2141_v33 = vunpack.c.l.b16 %v1931_v25  ;;  %v1202_v61 = vunpack.c.l.b16 %v1133_v48  ;;  %v1138_v48 = vrot.slane %v1136_v16, 4 }
  0xd3   : > { %v2165_v27 = vpack.c.b16 %v2141_v33, %v2140_v31  ;;  %v1225_v11 = vpack.c.b16 %v1202_v61, %v1201_v20  ;;  %v1960_v31 = vshll.u32 %v4484_v13, 16  ;;  %v1966_v33 = vshll.u32 %v4485_v14, 16 }
  0xd4   : > { %v5372_v2 = vpop.f32.mrf.mxu1  ;;  %v5374_v43 = vpop.f32.mrf.mxu2  ;;  %v1972_v20 = vrot.slane %v1970_v21, 4 }
  0xd6   : > { %4512 = vmatmul.msk.bf16.gmra.mxu0 %vm658_vm4, %v2164_v52  ;;  %v1949_v52 = vor.u32 %v1948_v47, %v1944_v1  ;;  %v1139_v47 = vrot.slane %v4867_v42, 5 }
  0xd7   : > { %4302 = vmatmul.msk.bf16.gmra.mxu1 %vm658_vm4, %v4808_v54  ;;  %v5380_v5 = vpop.f32.mrf.mxu0  ;;  %v1952_v54 = vshll.u32 %v4483_v46, 16  ;;  %v4825_v46 = vld [vmem:[%s4975_s27 + $0x6c] sm:$0xff] }
  0xd8   : > { %v5387_v12 = vpop.f32.mrf.mxu3  ;;  %v1950_v8 = vrot.slane %v1949_v52, 4 }
  0xd9   : > { %v1954_v25 = vrot.slane %v1952_v54, 5 }
  0xdc   : > { %4335 = vmatmul.msk.bf16.gmra.mxu2 %vm658_vm4, %v1224_v4  ;;  %v5392_v29 = vpop.f32.mrf.mxu1  ;;  %v1940_v4 = vrot.slane %v1939_v51, 4 }
  0xde   : > { %v1945_v19 = vsel %vm4987_vm3, %v1940_v4, %v1944_v1  ;;  %v4486_v4 = vld [vmem:[%s4975_s27 + $0x80] sm:$0x1] }
  0xdf   : > { %v5395_v40 = vpop.f32.mrf.mxu2 }
  0xe1   : > { %4448 = vmatmul.msk.bf16.gmra.mxu3 %vm658_vm4, %v4824_v30  ;;  %v1957_v30 = vshrl.u32 %v4484_v13, 16  ;;  %v4810_v13 = vld [vmem:[%s4975_s27 + $0x6c] sm:$0xff] }
  0xe3   : > { %v5403_v56 = vpop.f32.mrf.mxu0  ;;  %v1959_v54 = vrot.slane %v1957_v30, 4 }
  0xe4   : > { %v5406_v59 = vpop.f32.mrf.mxu3  ;;  %v940_v60 = vpop.f32.mrf.mxu1 }
  0xe5   : > { %v941_v62 = vadd.f32 %v940_v60, %v5280_v41  ;;  %v1955_v41 = vsel %vm4987_vm3, %v1950_v8, %v1954_v25  ;;  %v1968_v60 = vrot.slane %v1966_v33, 5  ;;  %v1137_v8 = vsel %vm5161_vm7, %v4320_v50, %v1136_v16 }
  0xe6   : > { %4513 = vmatmul.msk.bf16.gmra.mxu0 %vm658_vm4, %v2165_v27  ;;  %v2142_v27 = vunpack.c.l.b16 %v1945_v19  ;;  %v2143_v51 = vunpack.c.l.b16 %v1955_v41  ;;  %v1976_v19 = vshll.u32 %v4486_v4, 16 }
  0xe7   : > { %v5410_v10 = vpop.f32.mrf.mxu2  ;;  %4303 = vmatmul.msk.bf16.gmra.mxu1 %vm658_vm4, %v4809_v57  ;;  %v1962_v57 = vrot.slane %v1960_v31, 5  ;;  %v1973_v15 = vor.u32 %v1972_v20, %v1968_v60 }
  0xe8   : > { %v2166_v25 = vpack.c.b16 %v2143_v51, %v2142_v27  ;;  %v1978_v42 = vrot.slane %v1976_v19, 5  ;;  %v4488_v27 = vld [vmem:[%s4975_s27 + $0x88] sm:$0xf]  ;;  %v4868_v51 = vld [vmem:[%s4975_s27 + $0x7c] sm:$0xf] }
  0xe9   : > { %v1963_v14 = vor.u32 %v1962_v57, %v1959_v54  ;;  %v1030_v54 = vld [vmem:[%s4975_s27 + $0x78] sm:$0xe] }
  0xeb   : > { %v5421_v24 = vpop.f32.mrf.mxu0  ;;  %v1964_v21 = vrot.slane %v1963_v14, 4 }
  0xec   : > { %v5423_v32 = vpop.f32.mrf.mxu3  ;;  %4336 = vmatmul.msk.bf16.gmra.mxu2 %vm658_vm4, %v1225_v11  ;;  %v942_v35 = vpop.f32.mrf.mxu1 }
  0xed   : > { %v943_v1 = vadd.f32 %v942_v35, %v5303_v9  ;;  %v1140_v9 = vsel %vm5161_vm7, %v1138_v48, %v1139_v47  ;;  %v1974_v35 = vrot.slane %v1973_v15, 4  ;;  %v4487_v47 = vld [vmem:[%s4975_s27 + $0x84] sm:$0xf]  ;;  %v4826_v15 = vld [vmem:[%s4975_s27 + $0x78] sm:$0xff] }
  0xee   : > { %v1204_v30 = vunpack.c.l.b16 %v1140_v9  ;;  %v1984_v57 = vshll.u32 %v4487_v47, 16  ;;  %v1994_v9 = vshrl.u32 %v4488_v27, 16 }
  0xef   : > { %v1293_v52 = vpop.f32.mrf.mxu2  ;;  %v1979_v4 = vsel %vm4987_vm3, %v1974_v35, %v1978_v42 }
  0xf0   : > { %v1373_v61 = vadd.f32 %v1293_v52, %v941_v62  ;;  %v1203_v62 = vunpack.c.l.b16 %v1137_v8  ;;  %v1143_v52 = vrot.slane %v4868_v51, 5  ;;  %v1990_v8 = vshll.u32 %v4488_v27, 16 }
  0xf1   : > { %4449 = vmatmul.msk.bf16.gmra.mxu3 %vm658_vm4, %v4825_v46  ;;  %v1996_v35 = vrot.slane %v1994_v9, 4 }
  0xf2   : > { %v1226_v48 = vpack.c.b16 %v1204_v30, %v1203_v62 }
  0xf3   : > { %v2234_v11 = vpop.f32.mrf.mxu0 }
  0xf4   : > { %v1580_v41 = vpop.f32.mrf.mxu3  ;;  %v945_v23 = vpop.f32.mrf.mxu1 }
  0xf5   : > { %v1660_v31 = vadd.f32 %v1580_v41, %v1373_v61  ;;  %v946_v16 = vadd.f32 %v945_v23, %v5322_v38  ;;  %v1981_v38 = vshrl.u32 %v4487_v47, 16  ;;  %v1969_v61 = vsel %vm4987_vm3, %v1964_v21, %v1968_v60 }
  0xf6   : > { %4514 = vmatmul.msk.bf16.gmra.mxu0 %vm658_vm4, %v2166_v25  ;;  %v4869_v25 = vld [vmem:[%s4975_s27 + $0x80] sm:$0x1]  ;;  %v4321_v41 = vrot.slane %v1030_v54, 9  ;;  %v1145_v23 = vrot.slane %v1143_v52, 4  ;;  %v2144_v62 = vunpack.c.l.b16 %v1969_v61  ;;  %v2145_v60 = vunpack.c.l.b16 %v1979_v4 }
  0xf7   : > { %v1295_v33 = vpop.f32.mrf.mxu2  ;;  %4304 = vmatmul.msk.bf16.gmra.mxu1 %vm658_vm4, %v4810_v13  ;;  %v5440_v46 = vadd.f32 %v2234_v11, %v1660_v31  ;;  %v1146_v11 = vrot.slane %v4869_v25, 5  ;;  %v1983_v30 = vrot.slane %v1981_v38, 4  ;;  %v1986_v31 = vrot.slane %v1984_v57, 5  ;;  %v4811_v38 = vld [vmem:[%s4975_s27 + $0x78] sm:$0xff] }
  0xf8   : > { %v1374_v50 = vadd.f32 %v1295_v33, %v943_v1  ;;  %v1992_v21 = vrot.slane %v1990_v8, 5  ;;  %v2167_v27 = vpack.c.b16 %v2145_v60, %v2144_v62  ;;  %v4491_v62 = vld [vmem:[%s4975_s27 + $0x94] sm:$0xf]  ;;  %v4870_v60 = vld [vmem:[%s4975_s27 + $0x88] sm:$0xf] }
  0xf9   : > { %v1987_v51 = vor.u32 %v1986_v31, %v1983_v30  ;;  %v1150_v30 = vrot.slane %v4870_v60, 5  ;;  %v1031_v31 = vld [vmem:[%s4975_s27 + $0x84] sm:$0xe] }
  0xfa   : > { %v1997_v57 = vor.u32 %v1996_v35, %v1992_v21 }
  0xfb   : > { %v2236_v20 = vpop.f32.mrf.mxu0  ;;  %v1988_v25 = vrot.slane %v1987_v51, 4 }
  0xfc   : > { %v1582_v1 = vpop.f32.mrf.mxu3  ;;  %4337 = vmatmul.msk.bf16.gmra.mxu2 %vm658_vm4, %v1226_v48  ;;  %v947_v13 = vpop.f32.mrf.mxu1  ;;  %v4489_v48 = vld [vmem:[%s4975_s27 + $0x8c] sm:$0x1] }
  0xfd   : > { %v1661_v14 = vadd.f32 %v1582_v1, %v1374_v50  ;;  %v948_v19 = vadd.f32 %v947_v13, %v5340_v3  ;;  %v1144_v50 = vsel %vm5161_vm7, %v4321_v41, %v1143_v52  ;;  %v1147_v3 = vsel %vm5161_vm7, %v1145_v23, %v1146_v11 }
  0xfe   : > { %v2000_v61 = vshll.u32 %v4489_v48, 16  ;;  %v1206_v8 = vunpack.c.l.b16 %v1147_v3  ;;  %v1998_v1 = vrot.slane %v1997_v57, 4  ;;  %v2018_v3 = vshrl.u32 %v4491_v62, 16  ;;  %v4827_v57 = vld [vmem:[%s4975_s27 + $0x84] sm:$0xff] }
  0xff   : > { %v1298_v33 = vpop.f32.mrf.mxu2  ;;  %v5453_v42 = vadd.f32 %v2236_v20, %v1661_v14  ;;  %v4490_v14 = vld [vmem:[%s4975_s27 + $0x90] sm:$0xf] }
 0x100   : > { %v1375_v47 = vadd.f32 %v1298_v33, %v946_v16  ;;  %v1205_v16 = vunpack.c.l.b16 %v1144_v50  ;;  %v2002_v13 = vrot.slane %v2000_v61, 5  ;;  %v2005_v33 = vshrl.u32 %v4490_v14, 16 }
 0x101   : > { %4450 = vmatmul.msk.bf16.gmra.mxu3 %vm658_vm4, %v4826_v15  ;;  %v2008_v48 = vshll.u32 %v4490_v14, 16  ;;  %v2014_v50 = vshll.u32 %v4491_v62, 16  ;;  %v4322_v61 = vrot.slane %v1031_v31, 9 }
 0x102   : > { %v1227_v23 = vpack.c.b16 %v1206_v8, %v1205_v16  ;;  %v2007_v8 = vrot.slane %v2005_v33, 4 }
 0x103   : > { %v2239_v54 = vpop.f32.mrf.mxu0 }
 0x104   : > { %v1585_v4 = vpop.f32.mrf.mxu3  ;;  %v950_v20 = vpop.f32.mrf.mxu1 }
 0x105   : > { %v1662_v9 = vadd.f32 %v1585_v4, %v1375_v47  ;;  %v951_v52 = vadd.f32 %v950_v20, %v5362_v44  ;;  %v1993_v44 = vsel %vm4987_vm3, %v1988_v25, %v1992_v21  ;;  %v2003_v47 = vsel %vm4987_vm3, %v1998_v1, %v2002_v13 }
 0x106   : > { %4515 = vmatmul.msk.bf16.gmra.mxu0 %vm658_vm4, %v2167_v27  ;;  %v4871_v27 = vld [vmem:[%s4975_s27 + $0x8c] sm:$0x1]  ;;  %v1152_v4 = vrot.slane %v1150_v30, 4  ;;  %v2146_v20 = vunpack.c.l.b16 %v1993_v44  ;;  %v2147_v16 = vunpack.c.l.b16 %v2003_v47  ;;  %v2010_v25 = vrot.slane %v2008_v48, 5  ;;  %v4812_v44 = vld [vmem:[%s4975_s27 + $0x84] sm:$0xff] }
 0x107   : > { %v1300_v11 = vpop.f32.mrf.mxu2  ;;  %4305 = vmatmul.msk.bf16.gmra.mxu1 %vm658_vm4, %v4811_v38  ;;  %v5466_v15 = vadd.f32 %v2239_v54, %v1662_v9  ;;  %v1153_v51 = vrot.slane %v4871_v27, 5  ;;  %v2020_v1 = vrot.slane %v2018_v3, 4 }
 0x108   : > { %v1376_v41 = vadd.f32 %v1300_v11, %v948_v19  ;;  %v2016_v11 = vrot.slane %v2014_v50, 5  ;;  %v2168_v62 = vpack.c.b16 %v2147_v16, %v2146_v20  ;;  %v2011_v31 = vor.u32 %v2010_v25, %v2007_v8  ;;  %v4494_v20 = vld [vmem:[%s4975_s27 + $0xa0] sm:$0xf]  ;;  %v4872_v16 = vld [vmem:[%s4975_s27 + $0x94] sm:$0xf] }
 0x109   : > { %v1157_v8 = vrot.slane %v4872_v16, 5 }
 0x10a   : > { %v2021_v33 = vor.u32 %v2020_v1, %v2016_v11 }
 0x10b   : > { %v2241_v35 = vpop.f32.mrf.mxu0 }
 0x10c   : > { %v1587_v19 = vpop.f32.mrf.mxu3  ;;  %4338 = vmatmul.msk.bf16.gmra.mxu2 %vm658_vm4, %v1227_v23  ;;  %v952_v54 = vpop.f32.mrf.mxu1  ;;  %v4492_v23 = vld [vmem:[%s4975_s27 + $0x98] sm:$0x1] }
 0x10d   : > { %v1663_v38 = vadd.f32 %v1587_v19, %v1376_v41  ;;  %v953_v21 = vadd.f32 %v952_v54, %v5380_v5  ;;  %v1151_v41 = vsel %vm5161_vm7, %v4322_v61, %v1150_v30  ;;  %v1154_v5 = vsel %vm5161_vm7, %v1152_v4, %v1153_v51 }
 0x10e   : > { %v2024_v47 = vshll.u32 %v4492_v23, 16  ;;  %v1208_v50 = vunpack.c.l.b16 %v1154_v5  ;;  %v2012_v51 = vrot.slane %v2011_v31, 4  ;;  %v2022_v19 = vrot.slane %v2021_v33, 4  ;;  %v4828_v33 = vld [vmem:[%s4975_s27 + $0x90] sm:$0xff] }
 0x10f   : > { %v1303_v9 = vpop.f32.mrf.mxu2  ;;  %v5479_v13 = vadd.f32 %v2241_v35, %v1663_v38  ;;  %v4493_v38 = vld [vmem:[%s4975_s27 + $0x9c] sm:$0xf]  ;;  %v2042_v5 = vshrl.u32 %v4494_v20, 16 }
 0x110   : > { %v1377_v14 = vadd.f32 %v1303_v9, %v951_v52  ;;  %v1207_v52 = vunpack.c.l.b16 %v1151_v41  ;;  %v2026_v54 = vrot.slane %v2024_v47, 5  ;;  %v1032_v9 = vld [vmem:[%s4975_s27 + $0x90] sm:$0xe]  ;;  %v2032_v25 = vshll.u32 %v4493_v38, 16 }
 0x111   : > { %4451 = vmatmul.msk.bf16.gmra.mxu3 %vm658_vm4, %v4827_v57  ;;  %v2038_v41 = vshll.u32 %v4494_v20, 16 }
 0x112   : > { %v1228_v4 = vpack.c.b16 %v1208_v50, %v1207_v52  ;;  %v2027_v23 = vsel %vm4987_vm3, %v2022_v19, %v2026_v54  ;;  %v2044_v19 = vrot.slane %v2042_v5, 4 }
 0x113   : > { %v2244_v60 = vpop.f32.mrf.mxu0 }
 0x114   : > { %v1590_v48 = vpop.f32.mrf.mxu3  ;;  %v955_v35 = vpop.f32.mrf.mxu1 }
 0x115   : > { %v1664_v3 = vadd.f32 %v1590_v48, %v1377_v14  ;;  %v956_v30 = vadd.f32 %v955_v35, %v5403_v56  ;;  %v2029_v56 = vshrl.u32 %v4493_v38, 16  ;;  %v2017_v14 = vsel %vm4987_vm3, %v2012_v51, %v2016_v11 }
 0x116   : > { %4516 = vmatmul.msk.bf16.gmra.mxu0 %vm658_vm4, %v2168_v62  ;;  %v4873_v62 = vld [vmem:[%s4975_s27 + $0x98] sm:$0x1]  ;;  %v4323_v48 = vrot.slane %v1032_v9, 9  ;;  %v1159_v35 = vrot.slane %v1157_v8, 4  ;;  %v2148_v52 = vunpack.c.l.b16 %v2017_v14  ;;  %v2149_v11 = vunpack.c.l.b16 %v2027_v23 }
 0x117   : > { %v1305_v27 = vpop.f32.mrf.mxu2  ;;  %4306 = vmatmul.msk.bf16.gmra.mxu1 %vm658_vm4, %v4812_v44  ;;  %v5492_v57 = vadd.f32 %v2244_v60, %v1664_v3  ;;  %v1160_v60 = vrot.slane %v4873_v62, 5  ;;  %v2031_v50 = vrot.slane %v2029_v56, 4  ;;  %v2034_v3 = vrot.slane %v2032_v25, 5  ;;  %v4813_v56 = vld [vmem:[%s4975_s27 + $0x90] sm:$0xff] }
 0x118   : > { %v1378_v61 = vadd.f32 %v1305_v27, %v953_v21  ;;  %v2040_v51 = vrot.slane %v2038_v41, 5  ;;  %v2169_v20 = vpack.c.b16 %v2149_v11, %v2148_v52  ;;  %v4497_v11 = vld [vmem:[%s4975_s27 + $0xac] sm:$0xf] }
 0x119   : > { %v2035_v16 = vor.u32 %v2034_v3, %v2031_v50  ;;  %v1033_v50 = vld [vmem:[%s4975_s27 + $0x9c] sm:$0xe] }
 0x11a   : > { %v2045_v25 = vor.u32 %v2044_v19, %v2040_v51 }
 0x11b   : > { %v2246_v1 = vpop.f32.mrf.mxu0 }
 0x11c   : > { %v1592_v21 = vpop.f32.mrf.mxu3  ;;  %4339 = vmatmul.msk.bf16.gmra.mxu2 %vm658_vm4, %v1228_v4  ;;  %v957_v44 = vpop.f32.mrf.mxu1  ;;  %v4495_v4 = vld [vmem:[%s4975_s27 + $0xa4] sm:$0x1] }
 0x11d   : > { %v1665_v31 = vadd.f32 %v1592_v21, %v1378_v61  ;;  %v958_v47 = vadd.f32 %v957_v44, %v5421_v24  ;;  %v1158_v61 = vsel %vm5161_vm7, %v4323_v48, %v1157_v8  ;;  %v1161_v24 = vsel %vm5161_vm7, %v1159_v35, %v1160_v60  ;;  %v4496_v44 = vld [vmem:[%s4975_s27 + $0xa8] sm:$0xf]  ;;  %v4874_v35 = vld [vmem:[%s4975_s27 + $0xa0] sm:$0xf] }
 0x11e   : > { %v2048_v14 = vshll.u32 %v4495_v4, 16  ;;  %v1210_v41 = vunpack.c.l.b16 %v1161_v24  ;;  %v2036_v8 = vrot.slane %v2035_v16, 4  ;;  %v2046_v60 = vrot.slane %v2045_v25, 4 }
 0x11f   : > { %v1308_v27 = vpop.f32.mrf.mxu2  ;;  %v5505_v54 = vadd.f32 %v2246_v1, %v1665_v31  ;;  %v1164_v52 = vrot.slane %v4874_v35, 5  ;;  %v2056_v19 = vshll.u32 %v4496_v44, 16  ;;  %v2066_v24 = vshrl.u32 %v4497_v11, 16 }
 0x120   : > { %v1379_v38 = vadd.f32 %v1308_v27, %v956_v30  ;;  %v1209_v30 = vunpack.c.l.b16 %v1158_v61  ;;  %v2050_v21 = vrot.slane %v2048_v14, 5  ;;  %v2041_v3 = vsel %vm4987_vm3, %v2036_v8, %v2040_v51 }
 0x121   : > { %4452 = vmatmul.msk.bf16.gmra.mxu3 %vm658_vm4, %v4828_v33  ;;  %v2053_v27 = vshrl.u32 %v4496_v44, 16  ;;  %v2062_v61 = vshll.u32 %v4497_v11, 16  ;;  %v1166_v25 = vrot.slane %v1164_v52, 4  ;;  %v2150_v51 = vunpack.c.l.b16 %v2041_v3  ;;  %v4498_v11 = vld [vmem:[%s4975_s27 + $0xb0] sm:$0x1]  ;;  %v4814_v3 = vld [vmem:[%s4975_s27 + $0x9c] sm:$0xff] }
 0x122   : > { %v1229_v48 = vpack.c.b16 %v1210_v41, %v1209_v30  ;;  %v2051_v4 = vsel %vm4987_vm3, %v2046_v60, %v2050_v21  ;;  %v2058_v8 = vrot.slane %v2056_v19, 5  ;;  %v2068_v21 = vrot.slane %v2066_v24, 4 }
 0x123   : > { %v2249_v9 = vpop.f32.mrf.mxu0  ;;  %v2151_v41 = vunpack.c.l.b16 %v2051_v4  ;;  %v2064_v60 = vrot.slane %v2062_v61, 5  ;;  %v2072_v4 = vshll.u32 %v4498_v11, 16 }
 0x124   : > { %v1595_v1 = vpop.f32.mrf.mxu3  ;;  %v960_v23 = vpop.f32.mrf.mxu1 }
 0x125   : > { %v1666_v5 = vadd.f32 %v1595_v1, %v1379_v38  ;;  %v4829_v1 = vld [vmem:[%s4975_s27 + $0x9c] sm:$0xff]  ;;  %v961_v30 = vadd.f32 %v960_v23, %v5256_v7  ;;  %v2170_v7 = vpack.c.b16 %v2151_v41, %v2150_v51  ;;  %v2074_v51 = vrot.slane %v2072_v4, 5 }
 0x126   : > { %4517 = vmatmul.msk.bf16.gmra.mxu0 %vm658_vm4, %v2169_v20  ;;  %v4875_v20 = vld [vmem:[%s4975_s27 + $0xa4] sm:$0x1] }
 0x127   : > { %v1310_v62 = vpop.f32.mrf.mxu2  ;;  %4307 = vmatmul.msk.bf16.gmra.mxu1 %vm658_vm4, %v4813_v56  ;;  %v5517_v31 = vadd.f32 %v2249_v9, %v1666_v5  ;;  %v1167_v16 = vrot.slane %v4875_v20, 5  ;;  %v4324_v56 = vrot.slane %v1033_v50, 9  ;;  %v2055_v5 = vrot.slane %v2053_v27, 4 }
 0x128   : > { %v1380_v33 = vadd.f32 %v1310_v62, %v958_v47 }
 0x129   : > { %v2059_v23 = vor.u32 %v2058_v8, %v2055_v5 }
 0x12b   : > { %v2251_v38 = vpop.f32.mrf.mxu0 }
 0x12c   : > { %v1597_v47 = vpop.f32.mrf.mxu3  ;;  %4340 = vmatmul.msk.bf16.gmra.mxu2 %vm658_vm4, %v1229_v48  ;;  %v962_v9 = vpop.f32.mrf.mxu1  ;;  %v1165_v48 = vsel %vm5161_vm7, %v4324_v56, %v1164_v52  ;;  %v4499_v52 = vld [vmem:[%s4975_s27 + $0xb4] sm:$0xf]  ;;  %v2060_v56 = vrot.slane %v2059_v23, 4 }
 0x12d   : > { %v1667_v14 = vadd.f32 %v1597_v47, %v1380_v33  ;;  %v1168_v33 = vsel %vm5161_vm7, %v1166_v25, %v1167_v16  ;;  %v1211_v27 = vunpack.c.l.b16 %v1165_v48  ;;  %v4500_v47 = vld [vmem:[%s4975_s27 + $0xb8] sm:$0xf]  ;;  %v963_v16 = vadd.f32 %v962_v9, %v5272_v34 }
 0x12e   : > { %v1212_v19 = vunpack.c.l.b16 %v1168_v33  ;;  %v2077_v5 = vshrl.u32 %v4499_v52, 16  ;;  %v2080_v8 = vshll.u32 %v4499_v52, 16  ;;  %v2090_v48 = vshrl.u32 %v4500_v47, 16  ;;  %v1034_v33 = vld [vmem:[%s4975_s27 + $0xa8] sm:$0xe] }
 0x12f   : > { %v1313_v62 = vpop.f32.mrf.mxu2  ;;  %v5530_v44 = vadd.f32 %v2251_v38, %v1667_v14  ;;  %v2069_v38 = vor.u32 %v2068_v21, %v2064_v60  ;;  %v4876_v21 = vld [vmem:[%s4975_s27 + $0xac] sm:$0xf]  ;;  %v2065_v9 = vsel %vm4987_vm3, %v2060_v56, %v2064_v60 }
 0x130   : > { %v1381_v35 = vadd.f32 %v1313_v62, %v961_v30  ;;  %v1230_v14 = vpack.c.b16 %v1212_v19, %v1211_v27  ;;  %v2086_v62 = vshll.u32 %v4500_v47, 16  ;;  %v2079_v27 = vrot.slane %v2077_v5, 4 }
 0x131   : > { %4453 = vmatmul.msk.bf16.gmra.mxu3 %vm658_vm4, %v4829_v1  ;;  %v2070_v1 = vrot.slane %v2069_v38, 4  ;;  %v2082_v19 = vrot.slane %v2080_v8, 5  ;;  %v2092_v47 = vrot.slane %v2090_v48, 4  ;;  %v4815_v48 = vld [vmem:[%s4975_s27 + $0xa8] sm:$0xff] }
 0x132   : > { %v2088_v38 = vrot.slane %v2086_v62, 5 }
 0x133   : > { %v2254_v50 = vpop.f32.mrf.mxu0  ;;  %v2075_v11 = vsel %vm4987_vm3, %v2070_v1, %v2074_v51 }
 0x134   : > { %v1600_v61 = vpop.f32.mrf.mxu3  ;;  %v965_v24 = vpop.f32.mrf.mxu1  ;;  %v2153_v56 = vunpack.c.l.b16 %v2075_v11  ;;  %v2093_v8 = vor.u32 %v2092_v47, %v2088_v38 }
 0x135   : > { %v1668_v20 = vadd.f32 %v1600_v61, %v1381_v35  ;;  %v1171_v35 = vrot.slane %v4876_v21, 5  ;;  %v4830_v61 = vld [vmem:[%s4975_s27 + $0xa8] sm:$0xff]  ;;  %v966_v60 = vadd.f32 %v965_v24, %v5292_v58 }
 0x136   : > { %4518 = vmatmul.msk.bf16.gmra.mxu0 %vm658_vm4, %v2170_v7  ;;  %v4877_v7 = vld [vmem:[%s4975_s27 + $0xb0] sm:$0x1] }
 0x137   : > { %v1315_v25 = vpop.f32.mrf.mxu2  ;;  %4308 = vmatmul.msk.bf16.gmra.mxu1 %vm658_vm4, %v4814_v3  ;;  %v5544_v30 = vadd.f32 %v2254_v50, %v1668_v20  ;;  %v1174_v23 = vrot.slane %v4877_v7, 5  ;;  %v4325_v20 = vrot.slane %v1034_v33, 9  ;;  %v1173_v52 = vrot.slane %v1171_v35, 4 }
 0x138   : > { %v1382_v41 = vadd.f32 %v1315_v25, %v963_v16  ;;  %v2152_v16 = vunpack.c.l.b16 %v2065_v9  ;;  %v4501_v25 = vld [vmem:[%s4975_s27 + $0xbc] sm:$0x1] }
 0x139   : > { %v1175_v5 = vsel %vm5161_vm7, %v1173_v52, %v1174_v23  ;;  %v2096_v58 = vshll.u32 %v4501_v25, 16  ;;  %v4503_v52 = vld [vmem:[%s4975_s27 + $0xc4] sm:$0xf] }
 0x13a   : > { %v2171_v24 = vpack.c.b16 %v2153_v56, %v2152_v16  ;;  %v1214_v11 = vunpack.c.l.b16 %v1175_v5  ;;  %v1035_v16 = vld [vmem:[%s4975_s27 + $0xb4] sm:$0xe]  ;;  %v4879_v56 = vld [vmem:[%s4975_s27 + $0xb8] sm:$0xf]  ;;  %v2114_v5 = vshrl.u32 %v4503_v52, 16 }
 0x13b   : > { %v2256_v34 = vpop.f32.mrf.mxu0  ;;  %v1178_v25 = vrot.slane %v4879_v56, 5 }
 0x13c   : > { %v1602_v50 = vpop.f32.mrf.mxu3  ;;  %4341 = vmatmul.msk.bf16.gmra.mxu2 %vm658_vm4, %v1230_v14  ;;  %v967_v3 = vpop.f32.mrf.mxu1  ;;  %v2083_v14 = vor.u32 %v2082_v19, %v2079_v27  ;;  %v2098_v27 = vrot.slane %v2096_v58, 5  ;;  %v4502_v19 = vld [vmem:[%s4975_s27 + $0xc0] sm:$0xf]  ;;  %v4880_v58 = vld [vmem:[%s4975_s27 + $0x14] sm:$0x1] }
 0x13d   : > { %v1669_v4 = vadd.f32 %v1602_v50, %v1382_v41  ;;  %v1172_v41 = vsel %vm5161_vm7, %v4325_v20, %v1171_v35  ;;  %v2094_v35 = vrot.slane %v2093_v8, 4  ;;  %v968_v23 = vadd.f32 %v967_v3, %v5309_v28 }
 0x13e   : > { %v1213_v9 = vunpack.c.l.b16 %v1172_v41  ;;  %v2084_v50 = vrot.slane %v2083_v14, 4  ;;  %v2101_v3 = vshrl.u32 %v4502_v19, 16  ;;  %v2104_v14 = vshll.u32 %v4502_v19, 16  ;;  %v4831_v19 = vld [vmem:[%s4975_s27 + $0xb4] sm:$0xff] }
 0x13f   : > { %v1318_v1 = vpop.f32.mrf.mxu2  ;;  %v5557_v51 = vadd.f32 %v2256_v34, %v1669_v4  ;;  %v4878_v4 = vld [vmem:[%s4975_s27 + $0x10] sm:$0xf]  ;;  %v2099_v28 = vsel %vm4987_vm3, %v2094_v35, %v2098_v27  ;;  %v2110_v41 = vshll.u32 %v4503_v52, 16  ;;  %v1180_v35 = vrot.slane %v1178_v25, 4  ;;  %v4522_v27 = vld [vmem:[%s4975_s27 + $0xc] sm:$0xe] }
 0x140   : > { %v1383_v21 = vadd.f32 %v1318_v1, %v966_v60  ;;  %v1231_v60 = vpack.c.b16 %v1214_v11, %v1213_v9  ;;  %v4881_v9 = vld [vmem:[%s4975_s27 + $0xbc] sm:$0x1]  ;;  %v4538_v52 = vrot.slane %v4522_v27, 9 }
 0x141   : > { %4454 = vmatmul.msk.bf16.gmra.mxu3 %vm658_vm4, %v4830_v61  ;;  %v2412_v61 = vrot.slane %v4878_v4, 5  ;;  %v2103_v4 = vrot.slane %v2101_v3, 4 }
 0x143   : > { %v2259_v62 = vpop.f32.mrf.mxu0  ;;  %v2414_v8 = vrot.slane %v2412_v61, 4 }
 0x144   : > { %v1605_v33 = vpop.f32.mrf.mxu3  ;;  %v970_v34 = vpop.f32.mrf.mxu1 }
 0x145   : > { %v1670_v7 = vadd.f32 %v1605_v33, %v1383_v21  ;;  %v2089_v21 = vsel %vm4987_vm3, %v2084_v50, %v2088_v38  ;;  %v4326_v33 = vrot.slane %v1035_v16, 9  ;;  %v971_v56 = vadd.f32 %v970_v34, %v5329_v53 }
 0x146   : > { %4519 = vmatmul.msk.bf16.gmra.mxu0 %vm658_vm4, %v2171_v24  ;;  %v2415_v24 = vrot.slane %v4880_v58, 5  ;;  %v2154_v38 = vunpack.c.l.b16 %v2089_v21  ;;  %v2112_v16 = vrot.slane %v2110_v41, 5  ;;  %v2116_v58 = vrot.slane %v2114_v5, 4  ;;  %v4504_v21 = vld [vmem:[%s4975_s27 + $0xc8] sm:$0x1] }
 0x147   : > { %v1320_v20 = vpop.f32.mrf.mxu2  ;;  %4309 = vmatmul.msk.bf16.gmra.mxu1 %vm658_vm4, %v4815_v48  ;;  %v5573_v1 = vadd.f32 %v2259_v62, %v1670_v7  ;;  %v1181_v62 = vrot.slane %v4881_v9, 5  ;;  %v2155_v7 = vunpack.c.l.b16 %v2099_v28  ;;  %v2413_v28 = vsel %vm5161_vm7, %v4538_v52, %v2412_v61  ;;  %v4684_v41 = vld [vmem:[%s4975_s27 + $0x18] sm:$0xf] }
 0x148   : > { %v1384_v47 = vadd.f32 %v1320_v20, %v968_v23  ;;  %v2106_v20 = vrot.slane %v2104_v14, 5  ;;  %v2524_v53 = vunpack.c.l.b16 %v2413_v28  ;;  %v2120_v27 = vshll.u32 %v4504_v21, 16 }
 0x149   : > { %v1182_v14 = vsel %vm5161_vm7, %v1180_v35, %v1181_v62  ;;  %v2172_v5 = vpack.c.b16 %v2155_v7, %v2154_v38  ;;  %v3080_v62 = vshrl.u32 %v4684_v41, 16  ;;  %v3083_v35 = vshll.u32 %v4684_v41, 16 }
 0x14b   : > { %v2261_v48 = vpop.f32.mrf.mxu0  ;;  %v3082_v21 = vrot.slane %v3080_v62, 4 }
 0x14c   : > { %v1607_v11 = vpop.f32.mrf.mxu3  ;;  %4342 = vmatmul.msk.bf16.gmra.mxu2 %vm658_vm4, %v1231_v60  ;;  %v972_v50 = vpop.f32.mrf.mxu1  ;;  %v1179_v60 = vsel %vm5161_vm7, %v4326_v33, %v1178_v25  ;;  %v5597_v25 = vld [vmem:[%s4975_s27 + $0x1c] sm:$0xf]  ;;  %v2117_v33 = vor.u32 %v2116_v58, %v2112_v16 }
 0x14d   : > { %v1671_v23 = vadd.f32 %v1607_v11, %v1384_v47  ;;  %v2416_v47 = vsel %vm5161_vm7, %v2414_v8, %v2415_v24  ;;  %v2107_v11 = vor.u32 %v2106_v20, %v2103_v4  ;;  %v4816_v24 = vld [vmem:[%s4975_s27 + $0xb4] sm:$0xff]  ;;  %v3093_v38 = vshrl.u32 %v5597_v25, 16 }
 0x14e   : > { %v2525_v34 = vunpack.c.l.b16 %v2416_v47  ;;  %v973_v4 = vadd.f32 %v972_v50, %v5349_v17 }
 0x14f   : > { %v1323_v9 = vpop.f32.mrf.mxu2  ;;  %v5601_v52 = vadd.f32 %v2261_v48, %v1671_v23  ;;  %v2108_v48 = vrot.slane %v2107_v11, 4  ;;  %v2118_v23 = vrot.slane %v2117_v33, 4  ;;  %v3095_v41 = vrot.slane %v3093_v38, 4 }
 0x150   : > { %v1385_v3 = vadd.f32 %v1323_v9, %v971_v56  ;;  %v5599_v61 = vpack.c.b16 %v2525_v34, %v2524_v53  ;;  %v1215_v56 = vunpack.c.l.b16 %v1179_v60  ;;  %v1216_v9 = vunpack.c.l.b16 %v1182_v14 }
 0x151   : > { %4455 = vmatmul.msk.bf16.gmra.mxu3 %vm658_vm4, %v4831_v19  ;;  %6382 = vst [vmem:[#allocation2_spill] sm:$0xff] %v5601_v52  ;;  %v3089_v19 = vshll.u32 %v5597_v25, 16  ;;  %v2122_v60 = vrot.slane %v2120_v27, 5  ;;  %v3085_v14 = vrot.slane %v3083_v35, 5  ;;  %v2113_v17 = vsel %vm4987_vm3, %v2108_v48, %v2112_v16  ;;  %v4749_v48 = vld [vmem:[%s4975_s27 + $0x18] sm:$0xe] }
 0x152   : > { %v1232_v58 = vpack.c.b16 %v1216_v9, %v1215_v56  ;;  %v4832_v9 = vld [vmem:[%s4975_s27 + $0xc0] sm:$0xff]  ;;  %v2156_v16 = vunpack.c.l.b16 %v2113_v17 }
 0x153   : > { %v2264_v8 = vpop.f32.mrf.mxu0  ;;  %v3091_v34 = vrot.slane %v3089_v19, 5  ;;  %v2123_v50 = vsel %vm4987_vm3, %v2118_v23, %v2122_v60  ;;  %v3086_v27 = vor.u32 %v3085_v14, %v3082_v21  ;;  %v4687_v23 = vld [vmem:[%s4975_s27 + $0x24] sm:$0xf]  ;;  %v5627_v60 = vld [vmem:[%s4975_s27 + $0x28] sm:$0xf] }
 0x154   : > { %v1610_v28 = vpop.f32.mrf.mxu3  ;;  %v975_v47 = vpop.f32.mrf.mxu1  ;;  %v2157_v35 = vunpack.c.l.b16 %v2123_v50 }
 0x155   : > { %v1672_v7 = vadd.f32 %v1610_v28, %v1385_v3  ;;  %v5612_v3 = vld [vmem:[%s4975_s27 + $0x20] sm:$0x1]  ;;  %v976_v62 = vadd.f32 %v975_v47, %v5372_v2  ;;  %v3087_v38 = vrot.slane %v3086_v27, 4  ;;  %v4882_v47 = vld [vmem:[%s4975_s27 + $0x1c] sm:$0xf] }
 0x156   : > { %4520 = vmatmul.msk.bf16.gmra.mxu0 %vm658_vm4, %v2172_v5  ;;  %v2419_v14 = vrot.slane %v4882_v47, 5  ;;  %v4523_v27 = vld [vmem:[%s4975_s27 + $0x18] sm:$0xe] }
 0x157   : > { %v1325_v20 = vpop.f32.mrf.mxu2  ;;  %4310 = vmatmul.msk.bf16.gmra.mxu1 %vm658_vm4, %v4816_v24  ;;  %v5609_v52 = vadd.f32 %v2264_v8, %v1672_v7  ;;  %v3096_v24 = vor.u32 %v3095_v41, %v3091_v34  ;;  %v3099_v8 = vshll.u32 %v5612_v3, 16  ;;  %v3092_v17 = vsel %vm4987_vm3, %v3087_v38, %v3091_v34 }
 0x158   : > { %v1386_v53 = vadd.f32 %v1325_v20, %v973_v4  ;;  %v2173_v20 = vpack.c.b16 %v2157_v35, %v2156_v16  ;;  %v3754_v34 = vrot.slane %v5612_v3, 5  ;;  %v4883_v16 = vld [vmem:[%s4975_s27 + $0x20] sm:$0x1]  ;;  %v4539_v38 = vrot.slane %v4523_v27, 9 }
 0x159   : > { %v3097_v7 = vrot.slane %v3096_v24, 4  ;;  %v3101_v4 = vrot.slane %v3099_v8, 5  ;;  %v3104_v24 = vshrl.u32 %v4687_v23, 16  ;;  %v3107_v8 = vshll.u32 %v4687_v23, 16 }
 0x15a   : > { %v2422_v35 = vrot.slane %v4883_v16, 5  ;;  %v2420_v27 = vsel %vm5161_vm7, %v4539_v38, %v2419_v14  ;;  %v4690_v38 = vld [vmem:[%s4975_s27 + $0x30] sm:$0xf] }
 0x15b   : > { %v2266_v5 = vpop.f32.mrf.mxu0  ;;  %v3102_v50 = vsel %vm4987_vm3, %v3097_v7, %v3101_v4  ;;  %v2421_v7 = vrot.slane %v2419_v14, 4  ;;  %v3109_v3 = vrot.slane %v3107_v8, 5 }
 0x15c   : > { %v1612_v11 = vpop.f32.mrf.mxu3  ;;  %4343 = vmatmul.msk.bf16.gmra.mxu2 %vm658_vm4, %v1232_v58  ;;  %v977_v33 = vpop.f32.mrf.mxu1  ;;  %v3751_v58 = vrot.slane %v5597_v25, 5  ;;  %v3466_v23 = vunpack.c.l.b16 %v3102_v50 }
 0x15d   : > { %v1673_v56 = vadd.f32 %v1612_v11, %v1386_v53  ;;  %v4765_v11 = vrot.slane %v4749_v48, 9  ;;  %v4833_v48 = vld [vmem:[%s4975_s27 + $0x18] sm:$0xff]  ;;  %v2423_v50 = vsel %vm5161_vm7, %v2421_v7, %v2422_v35  ;;  %v5667_v7 = vld [vmem:[%s4975_s27 + $0x34] sm:$0xf] }
 0x15f   : > { %v1328_v28 = vpop.f32.mrf.mxu2  ;;  %v5629_v21 = vadd.f32 %v2266_v5, %v1673_v56  ;;  %v3113_v5 = vshll.u32 %v5627_v60, 16  ;;  %v3117_v56 = vshrl.u32 %v5627_v60, 16 }
 0x160   : > { %v1387_v19 = vadd.f32 %v1328_v28, %v976_v62  ;;  %v3753_v62 = vrot.slane %v3751_v58, 4 }
 0x161   : > { %4456 = vmatmul.msk.bf16.gmra.mxu3 %vm658_vm4, %v4832_v9  ;;  %v978_v9 = vadd.f32 %v977_v33, %v5392_v29  ;;  %v3106_v33 = vrot.slane %v3104_v24, 4  ;;  %v5650_v47 = vrot.slane %v3113_v5, 5 }
 0x163   : > { %v2269_v2 = vpop.f32.mrf.mxu0  ;;  %v3110_v5 = vor.u32 %v3109_v3, %v3106_v33  ;;  %v4750_v33 = vld [vmem:[%s4975_s27 + $0x24] sm:$0xe] }
 0x164   : > { %v1615_v53 = vpop.f32.mrf.mxu3  ;;  %v980_v41 = vpop.f32.mrf.mxu1 }
 0x165   : > { %v1674_v25 = vadd.f32 %v1615_v53, %v1387_v19  ;;  %v3465_v19 = vunpack.c.l.b16 %v3092_v17  ;;  %v3119_v53 = vrot.slane %v3117_v56, 4  ;;  %v981_v14 = vadd.f32 %v980_v41, %v5274_v37 }
 0x166   : > { %4521 = vmatmul.msk.bf16.gmra.mxu0 %vm658_vm4, %v2173_v20  ;;  %v3752_v20 = vsel %vm5161_vm7, %v4765_v11, %v3751_v58  ;;  %v3758_v37 = vrot.slane %v5627_v60, 5 }
 0x167   : > { %v1330_v28 = vpop.f32.mrf.mxu2  ;;  %4555 = vmatmul.msk.bf16.vlgmr.msra.gmra.mxu1 %vm658_vm4, %v5599_v61  ;;  %v5648_v29 = vadd.f32 %v2269_v2, %v1674_v25  ;;  %v3755_v61 = vsel %vm5161_vm7, %v3753_v62, %v3754_v34  ;;  %v3497_v2 = vpack.c.b16 %v3466_v23, %v3465_v19  ;;  %v3863_v11 = vunpack.c.l.b16 %v3752_v20 }
 0x168   : > { %v1388_v4 = vadd.f32 %v1330_v28, %v978_v9  ;;  %v5659_v9 = vld [vmem:[%s4975_s27 + $0x2c] sm:$0x1]  ;;  %v3864_v8 = vunpack.c.l.b16 %v3755_v61  ;;  %v3120_v56 = vor.u32 %v3119_v53, %v5650_v47  ;;  %v2526_v62 = vunpack.c.l.b16 %v2420_v27 }
 0x169   : > { %v2527_v34 = vunpack.c.l.b16 %v2423_v50  ;;  %v3123_v16 = vshll.u32 %v5659_v9, 16  ;;  %v3128_v53 = vshrl.u32 %v4690_v38, 16  ;;  %v3131_v61 = vshll.u32 %v4690_v38, 16 }
 0x16a   : > { %v3895_v19 = vpack.c.b16 %v3864_v8, %v3863_v11  ;;  %v3137_v27 = vshll.u32 %v5667_v7, 16  ;;  %v3141_v50 = vshrl.u32 %v5667_v7, 16  ;;  %v4884_v11 = vld [vmem:[%s4975_s27 + $0x28] sm:$0xf]  ;;  %v3761_v60 = vrot.slane %v5659_v9, 5 }
 0x16b   : > { %v2271_v17 = vpop.f32.mrf.mxu0  ;;  %v2557_v23 = vpack.c.b16 %v2527_v34, %v2526_v62  ;;  %v3125_v20 = vrot.slane %v3123_v16, 5  ;;  %v2426_v8 = vrot.slane %v4884_v11, 5  ;;  %v4766_v62 = vrot.slane %v4750_v33, 9  ;;  %v4834_v11 = vld [vmem:[%s4975_s27 + $0x24] sm:$0xff] }
 0x16c   : > { %v1617_v58 = vpop.f32.mrf.mxu3  ;;  %4668 = vmatmul.msk.bf16.vlgmr.msra.gmra.mxu2 %vm658_vm4, %v4833_v48  ;;  %v982_v24 = vpop.f32.mrf.mxu1  ;;  %v3121_v48 = vrot.slane %v3120_v56, 4  ;;  %v3133_v33 = vrot.slane %v3131_v61, 5  ;;  %v5688_v9 = vrot.slane %v3137_v27, 5 }
 0x16d   : > { %v1675_v25 = vadd.f32 %v1617_v58, %v1388_v4  ;;  %v3111_v4 = vrot.slane %v3110_v5, 4  ;;  %v4885_v5 = vld [vmem:[%s4975_s27 + $0x2c] sm:$0x1] }
 0x16e   : > { %v2429_v56 = vrot.slane %v4885_v5, 5  ;;  %v3126_v16 = vsel %vm4987_vm3, %v3121_v48, %v3125_v20  ;;  %v3759_v20 = vsel %vm5161_vm7, %v4766_v62, %v3758_v37 }
 0x16f   : > { %v1333_v35 = vpop.f32.mrf.mxu2  ;;  %v5672_v41 = vadd.f32 %v2271_v17, %v1675_v25  ;;  %v4524_v17 = vld [vmem:[%s4975_s27 + $0x24] sm:$0xe]  ;;  %v983_v25 = vadd.f32 %v982_v24, %v5295_v63  ;;  %v3116_v34 = vsel %vm4987_vm3, %v3111_v4, %v5650_v47  ;;  %v2428_v24 = vrot.slane %v2426_v8, 4 }
 0x170   : > { %v1389_v28 = vadd.f32 %v1333_v35, %v981_v14  ;;  %v3760_v35 = vrot.slane %v3758_v37, 4  ;;  %v4540_v63 = vrot.slane %v4524_v17, 9  ;;  %v3467_v47 = vunpack.c.l.b16 %v3116_v34 }
 0x171   : > { %4733 = vmatmul.msk.bf16.vlgmr.msra.gmra.mxu3 %vm658_vm4, %v3497_v2  ;;  %6383 = vst [vmem:[#allocation3_spill] sm:$0xff] %v5672_v41  ;;  %v3468_v4 = vunpack.c.l.b16 %v3126_v16  ;;  %v5694_v41 = vld [vmem:[%s4975_s27 + $0x38] sm:$0x1] }
 0x172   : > { %v3147_v37 = vshll.u32 %v5694_v41, 16 }
 0x173   : > { %v2274_v3 = vpop.f32.mrf.mxu0  ;;  %v3498_v17 = vpack.c.b16 %v3468_v4, %v3467_v47  ;;  %v4886_v4 = vld [vmem:[%s4975_s27 + $0x34] sm:$0xf] }
 0x174   : > { %v1620_v58 = vpop.f32.mrf.mxu3  ;;  %v985_v2 = vpop.f32.mrf.mxu1 }
 0x175   : > { %v1676_v14 = vadd.f32 %v1620_v58, %v1389_v28  ;;  %v3130_v28 = vrot.slane %v3128_v53, 4  ;;  %v3143_v58 = vrot.slane %v3141_v50, 4  ;;  %v2430_v50 = vsel %vm5161_vm7, %v2428_v24, %v2429_v56  ;;  %v5713_v24 = vld [vmem:[%s4975_s27 + $0x40] sm:$0xf] }
 0x176   : > { %4782 = vmatmul.msk.bf16.vlgmr.msra.gmra.mxu0 %vm658_vm4, %v3895_v19 }
 0x177   : > { %v1335_v38 = vpop.f32.mrf.mxu2  ;;  %4556 = vmatmul.msk.bf16.gmra.mxu1 %vm658_vm4, %v2557_v23  ;;  %v5691_v5 = vadd.f32 %v2274_v3, %v1676_v14  ;;  %v3762_v23 = vsel %vm5161_vm7, %v3760_v35, %v3761_v60  ;;  %v3134_v53 = vor.u32 %v3133_v33, %v3130_v28  ;;  %v2427_v3 = vsel %vm5161_vm7, %v4540_v63, %v2426_v8 }
 0x178   : > { %v1390_v19 = vadd.f32 %v1335_v38, %v983_v25  ;;  %v3144_v14 = vor.u32 %v3143_v58, %v5688_v9  ;;  %v986_v60 = vadd.f32 %v985_v2, %v5312_v22  ;;  %v3865_v25 = vunpack.c.l.b16 %v3759_v20  ;;  %v4751_v58 = vld [vmem:[%s4975_s27 + $0x30] sm:$0xe] }
 0x179   : > { %v3866_v34 = vunpack.c.l.b16 %v3762_v23  ;;  %v2528_v35 = vunpack.c.l.b16 %v2427_v3  ;;  %v2529_v8 = vunpack.c.l.b16 %v2430_v50  ;;  %v3135_v28 = vrot.slane %v3134_v53, 4 }
 0x17a   : > { %v3145_v56 = vrot.slane %v3144_v14, 4  ;;  %v3149_v33 = vrot.slane %v3147_v37, 5  ;;  %v3765_v63 = vrot.slane %v5667_v7, 5  ;;  %v2433_v20 = vrot.slane %v4886_v4, 5  ;;  %v4525_v7 = vld [vmem:[%s4975_s27 + $0x30] sm:$0xe] }
 0x17b   : > { %v2276_v48 = vpop.f32.mrf.mxu0  ;;  %v2558_v47 = vpack.c.b16 %v2529_v8, %v2528_v35  ;;  %v4767_v50 = vrot.slane %v4751_v58, 9 }
 0x17c   : > { %v1622_v61 = vpop.f32.mrf.mxu3  ;;  %4669 = vmatmul.msk.bf16.gmra.mxu2 %vm658_vm4, %v4834_v11  ;;  %v987_v27 = vpop.f32.mrf.mxu1  ;;  %v4693_v11 = vld [vmem:[%s4975_s27 + $0x3c] sm:$0xf]  ;;  %v3150_v3 = vsel %vm4987_vm3, %v3145_v56, %v3149_v33  ;;  %v4835_v33 = vld [vmem:[%s4975_s27 + $0x30] sm:$0xff] }
 0x17d   : > { %v1677_v62 = vadd.f32 %v1622_v61, %v1390_v19  ;;  %v3896_v19 = vpack.c.b16 %v3866_v34, %v3865_v25  ;;  %v3140_v61 = vsel %vm4987_vm3, %v3135_v28, %v5688_v9  ;;  %v3152_v14 = vshrl.u32 %v4693_v11, 16  ;;  %v4887_v34 = vld [vmem:[%s4975_s27 + $0x38] sm:$0x1] }
 0x17e   : > { %v3767_v25 = vrot.slane %v3765_v63, 4  ;;  %v3768_v9 = vrot.slane %v5694_v41, 5  ;;  %v3469_v8 = vunpack.c.l.b16 %v3140_v61  ;;  %v2435_v28 = vrot.slane %v2433_v20, 4 }
 0x17f   : > { %v1338_v16 = vpop.f32.mrf.mxu2  ;;  %v5715_v22 = vadd.f32 %v2276_v48, %v1677_v62  ;;  %v3155_v48 = vshll.u32 %v4693_v11, 16  ;;  %v3161_v62 = vshll.u32 %v5713_v24, 16  ;;  %v3470_v58 = vunpack.c.l.b16 %v3150_v3 }
 0x180   : > { %v1391_v38 = vadd.f32 %v1338_v16, %v986_v60  ;;  %v988_v60 = vadd.f32 %v987_v27, %v5333_v55  ;;  %v2436_v16 = vrot.slane %v4887_v34, 5  ;;  %v3766_v11 = vsel %vm5161_vm7, %v4767_v50, %v3765_v63 }
 0x181   : > { %4734 = vmatmul.msk.bf16.gmra.mxu3 %vm658_vm4, %v3498_v17  ;;  %v3165_v17 = vshrl.u32 %v5713_v24, 16  ;;  %v3154_v55 = vrot.slane %v3152_v14, 4  ;;  %v3157_v27 = vrot.slane %v3155_v48, 5  ;;  %v5736_v41 = vrot.slane %v3161_v62, 5 }
 0x182   : > { %v2437_v3 = vsel %vm5161_vm7, %v2435_v28, %v2436_v16  ;;  %v3867_v50 = vunpack.c.l.b16 %v3766_v11  ;;  %v4752_v11 = vld [vmem:[%s4975_s27 + $0x3c] sm:$0xe] }
 0x183   : > { %v2279_v2 = vpop.f32.mrf.mxu0  ;;  %v3167_v4 = vrot.slane %v3165_v17, 4  ;;  %v3158_v62 = vor.u32 %v3157_v27, %v3154_v55 }
 0x184   : > { %v1625_v23 = vpop.f32.mrf.mxu3  ;;  %v990_v53 = vpop.f32.mrf.mxu1 }
 0x185   : > { %v1678_v37 = vadd.f32 %v1625_v23, %v1391_v38  ;;  %v4541_v38 = vrot.slane %v4525_v7, 9  ;;  %v5745_v7 = vld [vmem:[%s4975_s27 + $0x44] sm:$0x1]  ;;  %v3168_v17 = vor.u32 %v3167_v4, %v5736_v41  ;;  %v3159_v28 = vrot.slane %v3158_v62, 4 }
 0x186   : > { %4783 = vmatmul.msk.bf16.gmra.mxu0 %vm658_vm4, %v3896_v19 }
 0x187   : > { %v1340_v35 = vpop.f32.mrf.mxu2  ;;  %4557 = vmatmul.msk.bf16.gmra.mxu1 %vm658_vm4, %v2558_v47  ;;  %v5734_v19 = vadd.f32 %v2279_v2, %v1678_v37  ;;  %v3769_v47 = vsel %vm5161_vm7, %v3767_v25, %v3768_v9  ;;  %v2434_v61 = vsel %vm5161_vm7, %v4541_v38, %v2433_v20  ;;  %v3499_v2 = vpack.c.b16 %v3470_v58, %v3469_v8  ;;  %v5753_v38 = vld [vmem:[%s4975_s27 + $0x4c] sm:$0xf] }
 0x188   : > { %v1392_v56 = vadd.f32 %v1340_v35, %v988_v60  ;;  %v3868_v48 = vunpack.c.l.b16 %v3769_v47  ;;  %v991_v20 = vadd.f32 %v990_v53, %v5356_v26  ;;  %v2530_v60 = vunpack.c.l.b16 %v2434_v61  ;;  %v4696_v35 = vld [vmem:[%s4975_s27 + $0x48] sm:$0xf] }
 0x189   : > { %v2531_v25 = vunpack.c.l.b16 %v2437_v3  ;;  %v3171_v9 = vshll.u32 %v5745_v7, 16  ;;  %v3772_v26 = vrot.slane %v5713_v24, 5  ;;  %v3176_v27 = vshrl.u32 %v4696_v35, 16 }
 0x18a   : > { %v3897_v8 = vpack.c.b16 %v3868_v48, %v3867_v50  ;;  %v3179_v4 = vshll.u32 %v4696_v35, 16  ;;  %v3185_v47 = vshll.u32 %v5753_v38, 16  ;;  %v3189_v61 = vshrl.u32 %v5753_v38, 16  ;;  %v4889_v48 = vld [vmem:[%s4975_s27 + $0x44] sm:$0x1] }
 0x18b   : > { %v2281_v23 = vpop.f32.mrf.mxu0  ;;  %v3173_v58 = vrot.slane %v3171_v9, 5  ;;  %v2443_v62 = vrot.slane %v4889_v48, 5  ;;  %v3775_v24 = vrot.slane %v5745_v7, 5  ;;  %v3774_v9 = vrot.slane %v3772_v26, 4  ;;  %v5780_v48 = vld [vmem:[%s4975_s27 + $0x50] sm:$0x1] }
 0x18c   : > { %v1627_v63 = vpop.f32.mrf.mxu3  ;;  %4670 = vmatmul.msk.bf16.gmra.mxu2 %vm658_vm4, %v4835_v33  ;;  %v992_v14 = vpop.f32.mrf.mxu1  ;;  %v2559_v33 = vpack.c.b16 %v2531_v25, %v2530_v60  ;;  %v3164_v60 = vsel %vm4987_vm3, %v3159_v28, %v5736_v41  ;;  %v3181_v35 = vrot.slane %v3179_v4, 5  ;;  %v5774_v7 = vrot.slane %v3185_v47, 5 }
 0x18d   : > { %v1679_v37 = vadd.f32 %v1627_v63, %v1392_v56  ;;  %v3169_v56 = vrot.slane %v3168_v17, 4  ;;  %v3471_v41 = vunpack.c.l.b16 %v3164_v60 }
 0x18f   : > { %v1343_v34 = vpop.f32.mrf.mxu2  ;;  %v5758_v53 = vadd.f32 %v2281_v23, %v1679_v37  ;;  %v4526_v23 = vld [vmem:[%s4975_s27 + $0x3c] sm:$0xe]  ;;  %v993_v37 = vadd.f32 %v992_v14, %v5374_v43  ;;  %v3174_v25 = vsel %vm4987_vm3, %v3169_v56, %v3173_v58 }
 0x190   : > { %v1393_v16 = vadd.f32 %v1343_v34, %v991_v20  ;;  %v4768_v20 = vrot.slane %v4752_v11, 9  ;;  %v3191_v11 = vrot.slane %v3189_v61, 4  ;;  %v4542_v43 = vrot.slane %v4526_v23, 9 }
 0x191   : > { %4735 = vmatmul.msk.bf16.gmra.mxu3 %vm658_vm4, %v3499_v2  ;;  %v4888_v2 = vld [vmem:[%s4975_s27 + $0x40] sm:$0xf]  ;;  %v3472_v28 = vunpack.c.l.b16 %v3174_v25 }
 0x192   : > { %v2440_v50 = vrot.slane %v4888_v2, 5  ;;  %v3773_v58 = vsel %vm5161_vm7, %v4768_v20, %v3772_v26  ;;  %v3195_v26 = vshll.u32 %v5780_v48, 16 }
 0x193   : > { %v2284_v55 = vpop.f32.mrf.mxu0  ;;  %v3500_v23 = vpack.c.b16 %v3472_v28, %v3471_v41  ;;  %v4890_v28 = vld [vmem:[%s4975_s27 + $0x4c] sm:$0xf] }
 0x194   : > { %v1630_v3 = vpop.f32.mrf.mxu3  ;;  %v995_v63 = vpop.f32.mrf.mxu1  ;;  %v2442_v14 = vrot.slane %v2440_v50, 4 }
 0x195   : > { %v1680_v17 = vadd.f32 %v1630_v3, %v1393_v16  ;;  %v3178_v16 = vrot.slane %v3176_v27, 4  ;;  %v4836_v3 = vld [vmem:[%s4975_s27 + $0x3c] sm:$0xff] }
 0x196   : > { %4784 = vmatmul.msk.bf16.gmra.mxu0 %vm658_vm4, %v3897_v8  ;;  %v2444_v61 = vsel %vm5161_vm7, %v2442_v14, %v2443_v62  ;;  %v5799_v14 = vld [vmem:[%s4975_s27 + $0x58] sm:$0xf] }
 0x197   : > { %v1345_v34 = vpop.f32.mrf.mxu2  ;;  %4558 = vmatmul.msk.bf16.gmra.mxu1 %vm658_vm4, %v2559_v33  ;;  %v5777_v2 = vadd.f32 %v2284_v55, %v1680_v17  ;;  %v3776_v33 = vsel %vm5161_vm7, %v3774_v9, %v3775_v24  ;;  %v3182_v27 = vor.u32 %v3181_v35, %v3178_v16  ;;  %v2441_v55 = vsel %vm5161_vm7, %v4542_v43, %v2440_v50 }
 0x198   : > { %v1394_v8 = vadd.f32 %v1345_v34, %v993_v37  ;;  %v3192_v17 = vor.u32 %v3191_v11, %v5774_v7  ;;  %v996_v24 = vadd.f32 %v995_v63, %v5395_v40  ;;  %v3869_v37 = vunpack.c.l.b16 %v3773_v58  ;;  %v4753_v11 = vld [vmem:[%s4975_s27 + $0x48] sm:$0xe] }
 0x199   : > { %v3870_v60 = vunpack.c.l.b16 %v3776_v33  ;;  %v2532_v9 = vunpack.c.l.b16 %v2441_v55  ;;  %v2533_v50 = vunpack.c.l.b16 %v2444_v61  ;;  %v3183_v16 = vrot.slane %v3182_v27, 4 }
 0x19a   : > { %v3193_v62 = vrot.slane %v3192_v17, 4  ;;  %v3197_v35 = vrot.slane %v3195_v26, 5  ;;  %v3779_v43 = vrot.slane %v5753_v38, 5  ;;  %v2447_v58 = vrot.slane %v4890_v28, 5  ;;  %v4527_v38 = vld [vmem:[%s4975_s27 + $0x48] sm:$0xe] }
 0x19b   : > { %v2286_v56 = vpop.f32.mrf.mxu0  ;;  %v2560_v41 = vpack.c.b16 %v2533_v50, %v2532_v9  ;;  %v4769_v61 = vrot.slane %v4753_v11, 9 }
 0x19c   : > { %v1632_v4 = vpop.f32.mrf.mxu3  ;;  %4671 = vmatmul.msk.bf16.gmra.mxu2 %vm658_vm4, %v4836_v3  ;;  %v997_v47 = vpop.f32.mrf.mxu1  ;;  %v4699_v3 = vld [vmem:[%s4975_s27 + $0x54] sm:$0xf]  ;;  %v3198_v55 = vsel %vm4987_vm3, %v3193_v62, %v3197_v35  ;;  %v4837_v35 = vld [vmem:[%s4975_s27 + $0x48] sm:$0xff] }
 0x19d   : > { %v1681_v20 = vadd.f32 %v1632_v4, %v1394_v8  ;;  %v3898_v8 = vpack.c.b16 %v3870_v60, %v3869_v37  ;;  %v3188_v4 = vsel %vm4987_vm3, %v3183_v16, %v5774_v7  ;;  %v3200_v17 = vshrl.u32 %v4699_v3, 16  ;;  %v4891_v60 = vld [vmem:[%s4975_s27 + $0x50] sm:$0x1] }
 0x19e   : > { %v3781_v37 = vrot.slane %v3779_v43, 4  ;;  %v3782_v7 = vrot.slane %v5780_v48, 5  ;;  %v3473_v50 = vunpack.c.l.b16 %v3188_v4  ;;  %v2449_v16 = vrot.slane %v2447_v58, 4 }
 0x19f   : > { %v1348_v25 = vpop.f32.mrf.mxu2  ;;  %v5801_v40 = vadd.f32 %v2286_v56, %v1681_v20  ;;  %v3203_v56 = vshll.u32 %v4699_v3, 16  ;;  %v3209_v20 = vshll.u32 %v5799_v14, 16  ;;  %v3474_v11 = vunpack.c.l.b16 %v3198_v55 }
 0x1a0   : > { %v1395_v34 = vadd.f32 %v1348_v25, %v996_v24  ;;  %v998_v24 = vadd.f32 %v997_v47, %v5410_v10  ;;  %v2450_v25 = vrot.slane %v4891_v60, 5  ;;  %v3780_v3 = vsel %vm5161_vm7, %v4769_v61, %v3779_v43 }
 0x1a1   : > { %4736 = vmatmul.msk.bf16.gmra.mxu3 %vm658_vm4, %v3500_v23  ;;  %v3213_v23 = vshrl.u32 %v5799_v14, 16  ;;  %v3202_v10 = vrot.slane %v3200_v17, 4  ;;  %v3205_v47 = vrot.slane %v3203_v56, 5  ;;  %v5822_v48 = vrot.slane %v3209_v20, 5 }
 0x1a2   : > { %v2451_v55 = vsel %vm5161_vm7, %v2449_v16, %v2450_v25  ;;  %v3871_v61 = vunpack.c.l.b16 %v3780_v3  ;;  %v4754_v3 = vld [vmem:[%s4975_s27 + $0x54] sm:$0xe] }
 0x1a3   : > { %v2289_v63 = vpop.f32.mrf.mxu0  ;;  %v3215_v28 = vrot.slane %v3213_v23, 4  ;;  %v3206_v20 = vor.u32 %v3205_v47, %v3202_v10 }
 0x1a4   : > { %v1635_v33 = vpop.f32.mrf.mxu3  ;;  %v1000_v27 = vpop.f32.mrf.mxu1 }
 0x1a5   : > { %v1682_v26 = vadd.f32 %v1635_v33, %v1395_v34  ;;  %v4543_v34 = vrot.slane %v4527_v38, 9  ;;  %v5831_v38 = vld [vmem:[%s4975_s27 + $0x5c] sm:$0x1]  ;;  %v3216_v23 = vor.u32 %v3215_v28, %v5822_v48  ;;  %v3207_v16 = vrot.slane %v3206_v20, 4 }
 0x1a6   : > { %4785 = vmatmul.msk.bf16.gmra.mxu0 %vm658_vm4, %v3898_v8 }
 0x1a7   : > { %v1350_v9 = vpop.f32.mrf.mxu2  ;;  %4559 = vmatmul.msk.bf16.gmra.mxu1 %vm658_vm4, %v2560_v41  ;;  %v5820_v8 = vadd.f32 %v2289_v63, %v1682_v26  ;;  %v3783_v41 = vsel %vm5161_vm7, %v3781_v37, %v3782_v7  ;;  %v2448_v4 = vsel %vm5161_vm7, %v4543_v34, %v2447_v58  ;;  %v3501_v63 = vpack.c.b16 %v3474_v11, %v3473_v50  ;;  %v5839_v34 = vld [vmem:[%s4975_s27 + $0x64] sm:$0xf] }
 0x1a8   : > { %v1396_v62 = vadd.f32 %v1350_v9, %v998_v24  ;;  %v3872_v56 = vunpack.c.l.b16 %v3783_v41  ;;  %v1001_v58 = vadd.f32 %v1000_v27, %v5286_v49  ;;  %v2534_v24 = vunpack.c.l.b16 %v2448_v4  ;;  %v4702_v9 = vld [vmem:[%s4975_s27 + $0x60] sm:$0xf] }
 0x1a9   : > { %v2535_v37 = vunpack.c.l.b16 %v2451_v55  ;;  %v3219_v7 = vshll.u32 %v5831_v38, 16  ;;  %v3786_v49 = vrot.slane %v5799_v14, 5  ;;  %v3224_v47 = vshrl.u32 %v4702_v9, 16 }
 0x1aa   : > { %v3899_v50 = vpack.c.b16 %v3872_v56, %v3871_v61  ;;  %v3227_v28 = vshll.u32 %v4702_v9, 16  ;;  %v3233_v41 = vshll.u32 %v5839_v34, 16  ;;  %v3237_v4 = vshrl.u32 %v5839_v34, 16  ;;  %v4893_v56 = vld [vmem:[%s4975_s27 + $0x5c] sm:$0x1] }
 0x1ab   : > { %v2291_v33 = vpop.f32.mrf.mxu0  ;;  %v3221_v11 = vrot.slane %v3219_v7, 5  ;;  %v2457_v20 = vrot.slane %v4893_v56, 5  ;;  %v3789_v14 = vrot.slane %v5831_v38, 5  ;;  %v3788_v7 = vrot.slane %v3786_v49, 4 }
 0x1ac   : > { %v1637_v43 = vpop.f32.mrf.mxu3  ;;  %4672 = vmatmul.msk.bf16.gmra.mxu2 %vm658_vm4, %v4837_v35  ;;  %v1002_v17 = vpop.f32.mrf.mxu1  ;;  %v2561_v35 = vpack.c.b16 %v2535_v37, %v2534_v24  ;;  %v3212_v24 = vsel %vm4987_vm3, %v3207_v16, %v5822_v48  ;;  %v3229_v9 = vrot.slane %v3227_v28, 5  ;;  %v3235_v38 = vrot.slane %v3233_v41, 5  ;;  %v5864_v16 = vld [vmem:[%s4975_s27 + $0x68] sm:$0x1] }
 0x1ad   : > { %v1683_v26 = vadd.f32 %v1637_v43, %v1396_v62  ;;  %v3217_v62 = vrot.slane %v3216_v23, 4  ;;  %v3475_v56 = vunpack.c.l.b16 %v3212_v24 }
 0x1af   : > { %v1353_v60 = vpop.f32.mrf.mxu2  ;;  %v5844_v27 = vadd.f32 %v2291_v33, %v1683_v26  ;;  %v4528_v33 = vld [vmem:[%s4975_s27 + $0x54] sm:$0xe]  ;;  %v1003_v26 = vadd.f32 %v1002_v17, %v5305_v0  ;;  %v3222_v37 = vsel %vm4987_vm3, %v3217_v62, %v3221_v11 }
 0x1b0   : > { %v1397_v25 = vadd.f32 %v1353_v60, %v1001_v58  ;;  %v4770_v58 = vrot.slane %v4754_v3, 9  ;;  %v3239_v3 = vrot.slane %v3237_v4, 4  ;;  %v3476_v48 = vunpack.c.l.b16 %v3222_v37 }
 0x1b1   : > { %4737 = vmatmul.msk.bf16.gmra.mxu3 %vm658_vm4, %v3501_v63  ;;  %6384 = vst [vmem:[#allocation4_spill] sm:$0xff] %v5844_v27  ;;  %v4892_v63 = vld [vmem:[%s4975_s27 + $0x58] sm:$0xf] }
 0x1b2   : > { %v2454_v61 = vrot.slane %v4892_v63, 5  ;;  %v4544_v63 = vrot.slane %v4528_v33, 9  ;;  %v3787_v62 = vsel %vm5161_vm7, %v4770_v58, %v3786_v49  ;;  %v3240_v4 = vor.u32 %v3239_v3, %v3235_v38 }
 0x1b3   : > { %v2294_v10 = vpop.f32.mrf.mxu0  ;;  %v3502_v58 = vpack.c.b16 %v3476_v48, %v3475_v56  ;;  %v3873_v33 = vunpack.c.l.b16 %v3787_v62 }
 0x1b4   : > { %v1640_v55 = vpop.f32.mrf.mxu3  ;;  %v1005_v43 = vpop.f32.mrf.mxu1  ;;  %v2456_v0 = vrot.slane %v2454_v61, 4 }
 0x1b5   : > { %v1684_v23 = vadd.f32 %v1640_v55, %v1397_v25  ;;  %v3226_v25 = vrot.slane %v3224_v47, 4 }
 0x1b6   : > { %4786 = vmatmul.msk.bf16.gmra.mxu0 %vm658_vm4, %v3899_v50  ;;  %v4838_v50 = vld [vmem:[%s4975_s27 + $0x54] sm:$0xff]  ;;  %v2458_v41 = vsel %vm5161_vm7, %v2456_v0, %v2457_v20  ;;  %v3793_v0 = vrot.slane %v5839_v34, 5  ;;  %v4895_v34 = vld [vmem:[%s4975_s27 + $0x68] sm:$0x1] }
 0x1b7   : > { %v1355_v60 = vpop.f32.mrf.mxu2  ;;  %4560 = vmatmul.msk.bf16.gmra.mxu1 %vm658_vm4, %v2561_v35  ;;  %v5861_v17 = vadd.f32 %v2294_v10, %v1684_v23  ;;  %v3790_v35 = vsel %vm5161_vm7, %v3788_v7, %v3789_v14  ;;  %v3230_v11 = vor.u32 %v3229_v9, %v3226_v25  ;;  %v2455_v10 = vsel %vm5161_vm7, %v4544_v63, %v2454_v61  ;;  %v4705_v9 = vld [vmem:[%s4975_s27 + $0x6c] sm:$0xf]  ;;  %v4755_v63 = vld [vmem:[%s4975_s27 + $0x60] sm:$0xe] }
 0x1b8   : > { %v1398_v55 = vadd.f32 %v1355_v60, %v1003_v26  ;;  %v3243_v23 = vshll.u32 %v5864_v16, 16  ;;  %v1006_v14 = vadd.f32 %v1005_v43, %v5326_v39  ;;  %v3874_v26 = vunpack.c.l.b16 %v3790_v35 }
 0x1b9   : > { %v2536_v37 = vunpack.c.l.b16 %v2455_v10  ;;  %v2537_v7 = vunpack.c.l.b16 %v2458_v41  ;;  %v3231_v61 = vrot.slane %v3230_v11, 4  ;;  %v3241_v25 = vrot.slane %v3240_v4, 4  ;;  %v4894_v11 = vld [vmem:[%s4975_s27 + $0x64] sm:$0xf] }
 0x1ba   : > { %v3245_v20 = vrot.slane %v3243_v23, 5  ;;  %v3900_v3 = vpack.c.b16 %v3874_v26, %v3873_v33  ;;  %v3248_v10 = vshrl.u32 %v4705_v9, 16  ;;  %v3251_v4 = vshll.u32 %v4705_v9, 16 }
 0x1bb   : > { %v2296_v27 = vpop.f32.mrf.mxu0  ;;  %v2562_v43 = vpack.c.b16 %v2537_v7, %v2536_v37  ;;  %v3236_v62 = vsel %vm4987_vm3, %v3231_v61, %v3235_v38  ;;  %v3795_v37 = vrot.slane %v3793_v0, 4  ;;  %v3796_v7 = vrot.slane %v5864_v16, 5  ;;  %v4839_v61 = vld [vmem:[%s4975_s27 + $0x60] sm:$0xff] }
 0x1bc   : > { %v1642_v47 = vpop.f32.mrf.mxu3  ;;  %4673 = vmatmul.msk.bf16.gmra.mxu2 %vm658_vm4, %v4838_v50  ;;  %v1007_v28 = vpop.f32.mrf.mxu1  ;;  %v3246_v35 = vsel %vm4987_vm3, %v3241_v25, %v3245_v20  ;;  %v3477_v26 = vunpack.c.l.b16 %v3236_v62 }
 0x1bd   : > { %v1685_v49 = vadd.f32 %v1642_v47, %v1398_v55  ;;  %v5880_v55 = vld [vmem:[%s4975_s27 + $0x70] sm:$0xf]  ;;  %v2461_v47 = vrot.slane %v4894_v11, 5  ;;  %v1008_v38 = vadd.f32 %v1007_v28, %v5345_v6  ;;  %v5905_v28 = vld [vmem:[%s4975_s27 + $0x74] sm:$0x1]  ;;  %v3797_v16 = vsel %vm5161_vm7, %v3795_v37, %v3796_v7 }
 0x1be   : > { %v3257_v23 = vshll.u32 %v5880_v55, 16 }
 0x1bf   : > { %v1358_v24 = vpop.f32.mrf.mxu2  ;;  %v5882_v50 = vadd.f32 %v2296_v27, %v1685_v49  ;;  %v4529_v27 = vld [vmem:[%s4975_s27 + $0x60] sm:$0xe]  ;;  %v3261_v49 = vshrl.u32 %v5880_v55, 16  ;;  %v2463_v20 = vrot.slane %v2461_v47, 4 }
 0x1c0   : > { %v1399_v60 = vadd.f32 %v1358_v24, %v1006_v14  ;;  %v4771_v14 = vrot.slane %v4755_v63, 9  ;;  %v3478_v24 = vunpack.c.l.b16 %v3246_v35  ;;  %v4545_v25 = vrot.slane %v4529_v27, 9 }
 0x1c1   : > { %4738 = vmatmul.msk.bf16.gmra.mxu3 %vm658_vm4, %v3502_v58  ;;  %v2464_v58 = vrot.slane %v4895_v34, 5  ;;  %v5902_v11 = vrot.slane %v3257_v23, 5  ;;  %v3263_v6 = vrot.slane %v3261_v49, 4  ;;  %v3267_v23 = vshll.u32 %v5905_v28, 16 }
 0x1c3   : > { %v2299_v39 = vpop.f32.mrf.mxu0  ;;  %v3269_v7 = vrot.slane %v3267_v23, 5 }
 0x1c4   : > { %v1645_v56 = vpop.f32.mrf.mxu3  ;;  %v1010_v48 = vpop.f32.mrf.mxu1 }
 0x1c5   : > { %v1686_v41 = vadd.f32 %v1645_v56, %v1399_v60  ;;  %v3250_v56 = vrot.slane %v3248_v10, 4  ;;  %v2462_v10 = vsel %vm5161_vm7, %v4545_v25, %v2461_v47  ;;  %v1011_v49 = vadd.f32 %v1010_v48, %v5364_v45  ;;  %v4708_v47 = vld [vmem:[%s4975_s27 + $0x78] sm:$0xf] }
 0x1c6   : > { %4787 = vmatmul.msk.bf16.gmra.mxu0 %vm658_vm4, %v3900_v3  ;;  %v3253_v3 = vrot.slane %v3251_v4, 5  ;;  %v3800_v25 = vrot.slane %v5880_v55, 5 }
 0x1c7   : > { %v1360_v33 = vpop.f32.mrf.mxu2  ;;  %4561 = vmatmul.msk.bf16.gmra.mxu1 %vm658_vm4, %v2562_v43  ;;  %v5900_v9 = vadd.f32 %v2299_v39, %v1686_v41  ;;  %v3794_v43 = vsel %vm5161_vm7, %v4771_v14, %v3793_v0  ;;  %v3503_v39 = vpack.c.b16 %v3478_v24, %v3477_v26  ;;  %v2465_v41 = vsel %vm5161_vm7, %v2463_v20, %v2464_v58 }
 0x1c8   : > { %v1400_v60 = vadd.f32 %v1360_v33, %v1008_v38  ;;  %v3254_v4 = vor.u32 %v3253_v3, %v3250_v56  ;;  %v3264_v0 = vor.u32 %v3263_v6, %v5902_v11  ;;  %v3875_v34 = vunpack.c.l.b16 %v3794_v43  ;;  %v5926_v56 = vld [vmem:[%s4975_s27 + $0x7c] sm:$0xf] }
 0x1c9   : > { %v3876_v38 = vunpack.c.l.b16 %v3797_v16  ;;  %v2538_v33 = vunpack.c.l.b16 %v2462_v10  ;;  %v2539_v26 = vunpack.c.l.b16 %v2465_v41  ;;  %v3272_v3 = vshrl.u32 %v4708_v47, 16  ;;  %v4896_v10 = vld [vmem:[%s4975_s27 + $0x70] sm:$0xf] }
 0x1ca   : > { %v3255_v58 = vrot.slane %v3254_v4, 4  ;;  %v3265_v37 = vrot.slane %v3264_v0, 4  ;;  %v3275_v6 = vshll.u32 %v4708_v47, 16  ;;  %v2468_v41 = vrot.slane %v4896_v10, 5 }
 0x1cb   : > { %v2301_v63 = vpop.f32.mrf.mxu0  ;;  %v2563_v20 = vpack.c.b16 %v2539_v26, %v2538_v33  ;;  %v3802_v23 = vrot.slane %v3800_v25, 4 }
 0x1cc   : > { %v1647_v62 = vpop.f32.mrf.mxu3  ;;  %4674 = vmatmul.msk.bf16.gmra.mxu2 %vm658_vm4, %v4839_v61  ;;  %v1012_v35 = vpop.f32.mrf.mxu1  ;;  %v3901_v61 = vpack.c.b16 %v3876_v38, %v3875_v34  ;;  %v3260_v55 = vsel %vm4987_vm3, %v3255_v58, %v5902_v11  ;;  %v3285_v34 = vshrl.u32 %v5926_v56, 16  ;;  %v3274_v11 = vrot.slane %v3272_v3, 4  ;;  %v5950_v3 = vld [vmem:[%s4975_s27 + $0x80] sm:$0x1] }
 0x1cd   : > { %v1687_v27 = vadd.f32 %v1647_v62, %v1400_v60  ;;  %v4756_v60 = vld [vmem:[%s4975_s27 + $0x6c] sm:$0xe]  ;;  %v1013_v0 = vadd.f32 %v1012_v35, %v5387_v12  ;;  %v3277_v33 = vrot.slane %v3275_v6, 5  ;;  %v2470_v47 = vrot.slane %v2468_v41, 4 }
 0x1ce   : > { %v4772_v62 = vrot.slane %v4756_v60, 9  ;;  %v3479_v12 = vunpack.c.l.b16 %v3260_v55 }
 0x1cf   : > { %v1363_v14 = vpop.f32.mrf.mxu2  ;;  %v5923_v45 = vadd.f32 %v2301_v63, %v1687_v27  ;;  %v3270_v63 = vsel %vm4987_vm3, %v3265_v37, %v3269_v7  ;;  %v3803_v27 = vrot.slane %v5905_v28, 5  ;;  %v4897_v28 = vld [vmem:[%s4975_s27 + $0x74] sm:$0x1]  ;;  %v3278_v6 = vor.u32 %v3277_v33, %v3274_v11  ;;  %v4757_v33 = vld [vmem:[%s4975_s27 + $0x78] sm:$0xe] }
 0x1d0   : > { %v1401_v24 = vadd.f32 %v1363_v14, %v1011_v49  ;;  %v3281_v49 = vshll.u32 %v5926_v56, 16  ;;  %v2471_v58 = vrot.slane %v4897_v28, 5  ;;  %v3480_v35 = vunpack.c.l.b16 %v3270_v63  ;;  %v5964_v28 = vld [vmem:[%s4975_s27 + $0x88] sm:$0xf] }
 0x1d1   : > { %4739 = vmatmul.msk.bf16.gmra.mxu3 %vm658_vm4, %v3503_v39  ;;  %v4530_v39 = vld [vmem:[%s4975_s27 + $0x6c] sm:$0xe]  ;;  %v3801_v7 = vsel %vm5161_vm7, %v4772_v62, %v3800_v25  ;;  %v3804_v60 = vsel %vm5161_vm7, %v3802_v23, %v3803_v27  ;;  %v3291_v23 = vshll.u32 %v5950_v3, 16  ;;  %v3279_v11 = vrot.slane %v3278_v6, 4 }
 0x1d2   : > { %v4546_v14 = vrot.slane %v4530_v39, 9  ;;  %v2472_v25 = vsel %vm5161_vm7, %v2470_v47, %v2471_v58  ;;  %v3877_v55 = vunpack.c.l.b16 %v3801_v7  ;;  %v3878_v63 = vunpack.c.l.b16 %v3804_v60 }
 0x1d3   : > { %v2304_v48 = vpop.f32.mrf.mxu0 }
 0x1d4   : > { %v1650_v43 = vpop.f32.mrf.mxu3  ;;  %v1015_v16 = vpop.f32.mrf.mxu1  ;;  %v2469_v10 = vsel %vm5161_vm7, %v4546_v14, %v2468_v41  ;;  %v4711_v41 = vld [vmem:[%s4975_s27 + $0x84] sm:$0xf]  ;;  %v3902_v14 = vpack.c.b16 %v3878_v63, %v3877_v55 }
 0x1d5   : > { %v1688_v4 = vadd.f32 %v1650_v43, %v1401_v24  ;;  %v4840_v24 = vld [vmem:[%s4975_s27 + $0x6c] sm:$0xff]  ;;  %v1016_v27 = vadd.f32 %v1015_v16, %v5406_v59  ;;  %v3293_v59 = vrot.slane %v3291_v23, 5  ;;  %v4773_v16 = vrot.slane %v4757_v33, 9  ;;  %v4841_v33 = vld [vmem:[%s4975_s27 + $0x78] sm:$0xff] }
 0x1d6   : > { %4788 = vmatmul.msk.bf16.gmra.mxu0 %vm658_vm4, %v3901_v61  ;;  %v3283_v61 = vrot.slane %v3281_v49, 5  ;;  %v3296_v60 = vshrl.u32 %v4711_v41, 16 }
 0x1d7   : > { %v1365_v38 = vpop.f32.mrf.mxu2  ;;  %4562 = vmatmul.msk.bf16.gmra.mxu1 %vm658_vm4, %v2563_v20  ;;  %v5943_v37 = vadd.f32 %v2304_v48, %v1688_v4  ;;  %v3287_v20 = vrot.slane %v3285_v34, 4  ;;  %v3504_v4 = vpack.c.b16 %v3480_v35, %v3479_v12  ;;  %v2540_v34 = vunpack.c.l.b16 %v2469_v10 }
 0x1d8   : > { %v1402_v26 = vadd.f32 %v1365_v38, %v1013_v0  ;;  %v2541_v38 = vunpack.c.l.b16 %v2472_v25  ;;  %v3284_v7 = vsel %vm4987_vm3, %v3279_v11, %v3283_v61  ;;  %v3810_v10 = vrot.slane %v5950_v3, 5  ;;  %v4531_v25 = vld [vmem:[%s4975_s27 + $0x78] sm:$0xe] }
 0x1d9   : > { %v3288_v0 = vor.u32 %v3287_v20, %v3283_v61  ;;  %v3299_v20 = vshll.u32 %v4711_v41, 16  ;;  %v4899_v41 = vld [vmem:[%s4975_s27 + $0x80] sm:$0x1] }
 0x1da   : > { %v2564_v35 = vpack.c.b16 %v2541_v38, %v2540_v34  ;;  %v3298_v34 = vrot.slane %v3296_v60, 4 }
 0x1db   : > { %v2306_v43 = vpop.f32.mrf.mxu0  ;;  %v3289_v47 = vrot.slane %v3288_v0, 4  ;;  %v3481_v0 = vunpack.c.l.b16 %v3284_v7  ;;  %v3301_v38 = vrot.slane %v3299_v20, 5  ;;  %v4713_v7 = vld [vmem:[%s4975_s27 + $0x8c] sm:$0x1] }
 0x1dc   : > { %v1652_v39 = vpop.f32.mrf.mxu3  ;;  %4675 = vmatmul.msk.bf16.gmra.mxu2 %vm658_vm4, %v4840_v24  ;;  %v1017_v48 = vpop.f32.mrf.mxu1 }
 0x1dd   : > { %v1689_v62 = vadd.f32 %v1652_v39, %v1402_v26  ;;  %v3807_v26 = vrot.slane %v5926_v56, 5  ;;  %v4898_v56 = vld [vmem:[%s4975_s27 + $0x7c] sm:$0xf]  ;;  %v1018_v61 = vadd.f32 %v1017_v48, %v5423_v32 }
 0x1df   : > { %v1368_v49 = vpop.f32.mrf.mxu2  ;;  %v5966_v58 = vadd.f32 %v2306_v43, %v1689_v62  ;;  %v3809_v63 = vrot.slane %v3807_v26, 4  ;;  %v3305_v43 = vshll.u32 %v5964_v28, 16  ;;  %v3309_v62 = vshrl.u32 %v5964_v28, 16 }
 0x1e0   : > { %v1403_v24 = vadd.f32 %v1368_v49, %v1016_v27  ;;  %v3294_v27 = vsel %vm4987_vm3, %v3289_v47, %v3293_v59  ;;  %v3808_v23 = vsel %vm5161_vm7, %v4773_v16, %v3807_v26  ;;  %v4547_v49 = vrot.slane %v4531_v25, 9 }
 0x1e1   : > { %4740 = vmatmul.msk.bf16.gmra.mxu3 %vm658_vm4, %v3504_v4  ;;  %v2475_v4 = vrot.slane %v4898_v56, 5  ;;  %v3482_v48 = vunpack.c.l.b16 %v3294_v27  ;;  %v3811_v47 = vsel %vm5161_vm7, %v3809_v63, %v3810_v10  ;;  %v5988_v59 = vrot.slane %v3305_v43, 5 }
 0x1e2   : > { %v3879_v16 = vunpack.c.l.b16 %v3808_v23  ;;  %v3880_v20 = vunpack.c.l.b16 %v3811_v47  ;;  %v3302_v25 = vor.u32 %v3301_v38, %v3298_v34  ;;  %v3315_v43 = vshll.u32 %v4713_v7, 16  ;;  %v6002_v47 = vld [vmem:[%s4975_s27 + $0x94] sm:$0xf] }
 0x1e3   : > { %v2309_v12 = vpop.f32.mrf.mxu0 }
 0x1e4   : > { %v1655_v6 = vpop.f32.mrf.mxu3  ;;  %v2632_v39 = vpop.f32.mrf.mxu1  ;;  %v3317_v38 = vrot.slane %v3315_v43, 5 }
 0x1e5   : > { %v1690_v55 = vadd.f32 %v1655_v6, %v1403_v24  ;;  %v2477_v24 = vrot.slane %v2475_v4, 4  ;;  %v2712_v27 = vadd.f32 %v2632_v39, %v5440_v46 }
 0x1e6   : > { %4789 = vmatmul.msk.bf16.gmra.mxu0 %vm658_vm4, %v3902_v14  ;;  %v2478_v14 = vrot.slane %v4899_v41, 5  ;;  %v4714_v41 = vld [vmem:[%s4975_s27 + $0x90] sm:$0xf] }
 0x1e7   : > { %v1370_v3 = vpop.f32.mrf.mxu2  ;;  %4563 = vmatmul.msk.bf16.gmra.mxu1 %vm658_vm4, %v2564_v35  ;;  %v5984_v32 = vadd.f32 %v2309_v12, %v1690_v55  ;;  %v3311_v35 = vrot.slane %v3309_v62, 4  ;;  %v2476_v12 = vsel %vm5161_vm7, %v4547_v49, %v2475_v4  ;;  %v3505_v55 = vpack.c.b16 %v3482_v48, %v3481_v0  ;;  %v4758_v62 = vld [vmem:[%s4975_s27 + $0x84] sm:$0xe] }
 0x1e8   : > { %v1404_v11 = vadd.f32 %v1370_v3, %v1018_v61  ;;  %v2479_v10 = vsel %vm5161_vm7, %v2477_v24, %v2478_v14  ;;  %v3814_v61 = vrot.slane %v5964_v28, 5  ;;  %v2542_v23 = vunpack.c.l.b16 %v2476_v12  ;;  %v4900_v12 = vld [vmem:[%s4975_s27 + $0x88] sm:$0xf] }
 0x1e9   : > { %v3312_v63 = vor.u32 %v3311_v35, %v5988_v59  ;;  %v3903_v4 = vpack.c.b16 %v3880_v20, %v3879_v16  ;;  %v3303_v49 = vrot.slane %v3302_v25, 4  ;;  %v3817_v28 = vrot.slane %v4713_v7, 5  ;;  %v6014_v7 = vld [vmem:[%s6376_s2] ss:$0 sm:$0xff] }
 0x1ea   : > { %v3816_v24 = vrot.slane %v3814_v61, 4  ;;  %v3320_v46 = vshrl.u32 %v4714_v41, 16  ;;  %v3323_v35 = vshll.u32 %v4714_v41, 16  ;;  %v3329_v16 = vshll.u32 %v6002_v47, 16 }
 0x1eb   : > { %v2311_v26 = vpop.f32.mrf.mxu0  ;;  %v3313_v34 = vrot.slane %v3312_v63, 4  ;;  %v3333_v25 = vshrl.u32 %v6002_v47, 16 }
 0x1ec   : > { %v1657_v60 = vpop.f32.mrf.mxu3  ;;  %4676 = vmatmul.msk.bf16.gmra.mxu2 %vm658_vm4, %v4841_v33  ;;  %v2634_v6 = vpop.f32.mrf.mxu1  ;;  %v2543_v33 = vunpack.c.l.b16 %v2479_v10  ;;  %v2482_v10 = vrot.slane %v4900_v12, 5  ;;  %v6029_v41 = vrot.slane %v3329_v16, 5 }
 0x1ed   : > { %v1691_v56 = vadd.f32 %v1657_v60, %v1404_v11  ;;  %v4774_v11 = vrot.slane %v4758_v62, 9  ;;  %v3318_v63 = vsel %vm4987_vm3, %v3313_v34, %v3317_v38  ;;  %v3818_v62 = vsel %vm5161_vm7, %v3816_v24, %v3817_v28  ;;  %v6040_v28 = vld [vmem:[%s4975_s27 + $0x98] sm:$0x1] }
 0x1ee   : > { %v2565_v48 = vpack.c.b16 %v2543_v33, %v2542_v23  ;;  %v2713_v23 = vadd.f32 %v2634_v6, %v5453_v42  ;;  %v3335_v38 = vrot.slane %v3333_v25, 4  ;;  %v3484_v24 = vunpack.c.l.b16 %v3318_v63 }
 0x1ef   : > { %v2919_v3 = vpop.f32.mrf.mxu2  ;;  %v6005_v39 = vadd.f32 %v2311_v26, %v1691_v56  ;;  %v3308_v26 = vsel %vm4987_vm3, %v3303_v49, %v5988_v59  ;;  %v4532_v56 = vld [vmem:[%s4975_s27 + $0x84] sm:$0xe]  ;;  %v3815_v43 = vsel %vm5161_vm7, %v4774_v11, %v3814_v61  ;;  %v3325_v59 = vrot.slane %v3323_v35, 5 }
 0x1f0   : > { %v2999_v0 = vadd.f32 %v2919_v3, %v2712_v27  ;;  %v3322_v27 = vrot.slane %v3320_v46, 4  ;;  %v4842_v61 = vld [vmem:[%s4975_s27 + $0x84] sm:$0xff]  ;;  %v2484_v49 = vrot.slane %v2482_v10, 4  ;;  %v3483_v11 = vunpack.c.l.b16 %v3308_v26 }
 0x1f1   : > { %4741 = vmatmul.msk.bf16.gmra.mxu3 %vm658_vm4, %v3505_v55  ;;  %v3339_v63 = vshll.u32 %v6040_v28, 16 }
 0x1f2   : > { %v3326_v25 = vor.u32 %v3325_v59, %v3322_v27 }
 0x1f3   : > { %v3971_v14 = vpop.f32.mrf.mxu0 }
 0x1f4   : > { %v3573_v60 = vpop.f32.mrf.mxu3  ;;  %v2637_v20 = vpop.f32.mrf.mxu1 }
 0x1f5   : > { %v3653_v55 = vadd.f32 %v3573_v60, %v2999_v0  ;;  %v4901_v0 = vld [vmem:[%s4975_s27 + $0x8c] sm:$0x1] }
 0x1f6   : > { %4790 = vmatmul.msk.bf16.gmra.mxu0 %vm658_vm4, %v3903_v4  ;;  %v4548_v4 = vrot.slane %v4532_v56, 9  ;;  %v2485_v34 = vrot.slane %v4901_v0, 5  ;;  %v3506_v56 = vpack.c.b16 %v3484_v24, %v3483_v11 }
 0x1f7   : > { %v4051_v3 = vadd.f32 %v3971_v14, %v3653_v55  ;;  %v2921_v33 = vpop.f32.mrf.mxu2  ;;  %4564 = vmatmul.msk.bf16.gmra.mxu1 %vm658_vm4, %v2565_v48  ;;  %v3881_v14 = vunpack.c.l.b16 %v3815_v43  ;;  %v3882_v48 = vunpack.c.l.b16 %v3818_v62  ;;  %v3336_v55 = vor.u32 %v3335_v38, %v6029_v41  ;;  %v4759_v38 = vld [vmem:[%s4975_s27 + $0x90] sm:$0xe] }
 0x1f8   : > { %v3000_v6 = vadd.f32 %v2921_v33, %v2713_v23  ;;  %v2483_v60 = vsel %vm5161_vm7, %v4548_v4, %v2482_v10  ;;  %v2486_v12 = vsel %vm5161_vm7, %v2484_v49, %v2485_v34  ;;  %v2714_v62 = vadd.f32 %v2637_v20, %v5466_v15  ;;  %v6054_v10 = vld [vmem:[%s4975_s27 + $0xa0] sm:$0xf] }
 0x1f9   : > { %v4087_v42 = vadd.f32 %v6014_v7, %v4051_v3  ;;  %v2544_v23 = vunpack.c.l.b16 %v2483_v60  ;;  %v2545_v33 = vunpack.c.l.b16 %v2486_v12  ;;  %v3904_v4 = vpack.c.b16 %v3882_v48, %v3881_v14  ;;  %v4902_v12 = vld [vmem:[%s4975_s27 + $0x94] sm:$0xf] }
 0x1fa   : > { %v3327_v49 = vrot.slane %v3326_v25, 4  ;;  %v3337_v27 = vrot.slane %v3336_v55, 4  ;;  %v3341_v34 = vrot.slane %v3339_v63, 5  ;;  %v3821_v15 = vrot.slane %v6002_v47, 5  ;;  %v4533_v63 = vld [vmem:[%s4975_s27 + $0x90] sm:$0xe] }
 0x1fb   : > { %4119 = vst.msk [vmem:[%s6034_s15] sm:$0xff] %vm658_vm4, %v4087_v42  ;;  %v3973_v46 = vpop.f32.mrf.mxu0  ;;  %v3357_v11 = vshrl.u32 %v6054_v10, 16  ;;  %v3824_v60 = vrot.slane %v6040_v28, 5  ;;  %v2489_v25 = vrot.slane %v4902_v12, 5 }
 0x1fc   : > { %v3575_v35 = vpop.f32.mrf.mxu3  ;;  %4677 = vmatmul.msk.bf16.gmra.mxu2 %vm658_vm4, %v4842_v61  ;;  %v2639_v16 = vpop.f32.mrf.mxu1  ;;  %v4717_v61 = vld [vmem:[%s4975_s27 + $0x9c] sm:$0xf]  ;;  %v3332_v55 = vsel %vm4987_vm3, %v3327_v49, %v6029_v41  ;;  %v6078_v41 = vld [vmem:[%s4975_s27 + $0xa4] sm:$0x1]  ;;  %v4843_v49 = vld [vmem:[%s4975_s27 + $0x90] sm:$0xff] }
 0x1fd   : > { %v3654_v26 = vadd.f32 %v3575_v35, %v3000_v6  ;;  %v3344_v20 = vshrl.u32 %v4717_v61, 16  ;;  %v3347_v42 = vshll.u32 %v4717_v61, 16  ;;  %v3353_v6 = vshll.u32 %v6054_v10, 16 }
 0x1fe   : > { %v4775_v35 = vrot.slane %v4759_v38, 9 }
 0x1ff   : > { %v4052_v43 = vadd.f32 %v3973_v46, %v3654_v26  ;;  %v2924_v3 = vpop.f32.mrf.mxu2  ;;  %v2566_v46 = vpack.c.b16 %v2545_v33, %v2544_v23  ;;  %v3342_v26 = vsel %vm4987_vm3, %v3337_v27, %v3341_v34  ;;  %v6073_v28 = vrot.slane %v3353_v6, 5  ;;  %v4903_v34 = vld [vmem:[%s4975_s27 + $0x98] sm:$0x1] }
 0x200   : > { %v3001_v0 = vadd.f32 %v2924_v3, %v2714_v62  ;;  %v3349_v62 = vrot.slane %v3347_v42, 5  ;;  %v3359_v3 = vrot.slane %v3357_v11, 4  ;;  %v2715_v33 = vadd.f32 %v2639_v16, %v5479_v13 }
 0x201   : > { %v4088_v59 = vadd.f32 %v6014_v7, %v4052_v43  ;;  %4742 = vmatmul.msk.bf16.gmra.mxu3 %vm658_vm4, %v3506_v56  ;;  %v3823_v56 = vrot.slane %v3821_v15, 4  ;;  %v3346_v43 = vrot.slane %v3344_v20, 4  ;;  %v3485_v27 = vunpack.c.l.b16 %v3332_v55 }
 0x202   : > { %v3486_v42 = vunpack.c.l.b16 %v3342_v26  ;;  %v3822_v6 = vsel %vm5161_vm7, %v4775_v35, %v3821_v15  ;;  %v3360_v11 = vor.u32 %v3359_v3, %v6073_v28 }
 0x203   : > { %4120 = vst.msk [vmem:[%s6034_s15 + $0x8] sm:$0xff] %vm658_vm4, %v4088_v59  ;;  %v3976_v24 = vpop.f32.mrf.mxu0  ;;  %v4549_v59 = vrot.slane %v4533_v63, 9  ;;  %v3825_v13 = vsel %vm5161_vm7, %v3823_v56, %v3824_v60  ;;  %v3350_v16 = vor.u32 %v3349_v62, %v3346_v43  ;;  %v3883_v55 = vunpack.c.l.b16 %v3822_v6 }
 0x204   : > { %v3578_v14 = vpop.f32.mrf.mxu3  ;;  %v2642_v48 = vpop.f32.mrf.mxu1  ;;  %v3507_v60 = vpack.c.b16 %v3486_v42, %v3485_v27  ;;  %v3884_v26 = vunpack.c.l.b16 %v3825_v13  ;;  %v3361_v63 = vrot.slane %v3360_v11, 4  ;;  %v3828_v62 = vrot.slane %v6054_v10, 5 }
 0x205   : > { %v3655_v47 = vadd.f32 %v3578_v14, %v3001_v0  ;;  %v2491_v0 = vrot.slane %v2489_v25, 4  ;;  %v3351_v56 = vrot.slane %v3350_v16, 4  ;;  %v3831_v6 = vrot.slane %v6078_v41, 5 }
 0x206   : > { %4791 = vmatmul.msk.bf16.gmra.mxu0 %vm658_vm4, %v3904_v4  ;;  %v2492_v4 = vrot.slane %v4903_v34, 5  ;;  %v3905_v34 = vpack.c.b16 %v3884_v26, %v3883_v55  ;;  %v3830_v42 = vrot.slane %v3828_v62, 4 }
 0x207   : > { %v4053_v23 = vadd.f32 %v3976_v24, %v3655_v47  ;;  %v2926_v61 = vpop.f32.mrf.mxu2  ;;  %4565 = vmatmul.msk.bf16.gmra.mxu1 %vm658_vm4, %v2566_v46  ;;  %v3363_v24 = vshll.u32 %v6078_v41, 16  ;;  %v2490_v47 = vsel %vm5161_vm7, %v4549_v59, %v2489_v25  ;;  %v4720_v59 = vld [vmem:[%s4975_s27 + $0xa8] sm:$0xf]  ;;  %v3356_v10 = vsel %vm4987_vm3, %v3351_v56, %v6073_v28 }
 0x208   : > { %v3002_v20 = vadd.f32 %v2926_v61, %v2715_v33  ;;  %v2493_v15 = vsel %vm5161_vm7, %v2491_v0, %v2492_v4  ;;  %v2546_v25 = vunpack.c.l.b16 %v2490_v47  ;;  %v6108_v4 = vld [vmem:[%s4975_s27 + $0xac] sm:$0xf]  ;;  %v3368_v13 = vshrl.u32 %v4720_v59, 16  ;;  %v4534_v47 = vld [vmem:[%s4975_s27 + $0x9c] sm:$0xe] }
 0x209   : > { %v4089_v38 = vadd.f32 %v6014_v7, %v4053_v23  ;;  %v3365_v43 = vrot.slane %v3363_v24, 5  ;;  %v2716_v23 = vadd.f32 %v2642_v48, %v5492_v57  ;;  %v2547_v61 = vunpack.c.l.b16 %v2493_v15  ;;  %v4904_v24 = vld [vmem:[%s4975_s27 + $0xa0] sm:$0xf] }
 0x20a   : > { %v3371_v28 = vshll.u32 %v4720_v59, 16  ;;  %v3377_v15 = vshll.u32 %v6108_v4, 16 }
 0x20b   : > { %4121 = vst.msk [vmem:[%s6034_s15 + $0x10] sm:$0xff] %vm658_vm4, %v4089_v38  ;;  %v3978_v46 = vpop.f32.mrf.mxu0  ;;  %v3366_v57 = vsel %vm4987_vm3, %v3361_v63, %v3365_v43  ;;  %v3832_v43 = vsel %vm5161_vm7, %v3830_v42, %v3831_v6 }
 0x20c   : > { %v3580_v14 = vpop.f32.mrf.mxu3  ;;  %4678 = vmatmul.msk.bf16.gmra.mxu2 %vm658_vm4, %v4843_v49  ;;  %v2644_v12 = vpop.f32.mrf.mxu1  ;;  %v4760_v49 = vld [vmem:[%s4975_s27 + $0x9c] sm:$0xe]  ;;  %v3488_v55 = vunpack.c.l.b16 %v3366_v57  ;;  %v3373_v59 = vrot.slane %v3371_v28, 5 }
 0x20d   : > { %v3656_v35 = vadd.f32 %v3580_v14, %v3002_v20  ;;  %v4776_v48 = vrot.slane %v4760_v49, 9  ;;  %v2567_v20 = vpack.c.b16 %v2547_v61, %v2546_v25  ;;  %v2717_v56 = vadd.f32 %v2644_v12, %v5505_v54  ;;  %v4905_v61 = vld [vmem:[%s4975_s27 + $0xa4] sm:$0x1]  ;;  %v6130_v12 = vld [vmem:[%s4975_s27 + $0xb0] sm:$0x1] }
 0x20e   : > { %v2499_v49 = vrot.slane %v4905_v61, 5  ;;  %v3387_v28 = vshll.u32 %v6130_v12, 16 }
 0x20f   : > { %v4054_v3 = vadd.f32 %v3978_v46, %v3656_v35  ;;  %v2929_v33 = vpop.f32.mrf.mxu2  ;;  %v2496_v46 = vrot.slane %v4904_v24, 5  ;;  %v3381_v35 = vshrl.u32 %v6108_v4, 16  ;;  %v3829_v41 = vsel %vm5161_vm7, %v4776_v48, %v3828_v62 }
 0x210   : > { %v3003_v27 = vadd.f32 %v2929_v33, %v2716_v23  ;;  %v4844_v23 = vld [vmem:[%s4975_s27 + $0x9c] sm:$0xff]  ;;  %v4550_v33 = vrot.slane %v4534_v47, 9  ;;  %v3886_v48 = vunpack.c.l.b16 %v3832_v43 }
 0x211   : > { %v4090_v0 = vadd.f32 %v6014_v7, %v4054_v3  ;;  %4743 = vmatmul.msk.bf16.gmra.mxu3 %vm658_vm4, %v3507_v60  ;;  %v3487_v60 = vunpack.c.l.b16 %v3356_v10  ;;  %v3370_v3 = vrot.slane %v3368_v13, 4  ;;  %v2498_v25 = vrot.slane %v2496_v46, 4 }
 0x212   : > { %v3383_v54 = vrot.slane %v3381_v35, 4  ;;  %v3885_v10 = vunpack.c.l.b16 %v3829_v41 }
 0x213   : > { %4122 = vst.msk [vmem:[%s6034_s15 + $0x18] sm:$0xff] %vm658_vm4, %v4090_v0  ;;  %v3981_v38 = vpop.f32.mrf.mxu0  ;;  %v2500_v42 = vsel %vm5161_vm7, %v2498_v25, %v2499_v49  ;;  %v3374_v6 = vor.u32 %v3373_v59, %v3370_v3  ;;  %v3389_v3 = vrot.slane %v3387_v28, 5  ;;  %v3835_v59 = vrot.slane %v6108_v4, 5 }
 0x214   : > { %v3583_v16 = vpop.f32.mrf.mxu3  ;;  %v2647_v11 = vpop.f32.mrf.mxu1  ;;  %v2549_v41 = vunpack.c.l.b16 %v2500_v42  ;;  %v4535_v42 = vld [vmem:[%s4975_s27 + $0xa8] sm:$0xe] }
 0x215   : > { %v3657_v14 = vadd.f32 %v3583_v16, %v3003_v27  ;;  %v6127_v27 = vrot.slane %v3377_v15, 5  ;;  %v3508_v16 = vpack.c.b16 %v3488_v55, %v3487_v60  ;;  %v2718_v47 = vadd.f32 %v2647_v11, %v5517_v31 }
 0x216   : > { %4792 = vmatmul.msk.bf16.gmra.mxu0 %vm658_vm4, %v3905_v34 }
 0x217   : > { %v4055_v26 = vadd.f32 %v3981_v38, %v3657_v14  ;;  %v2931_v63 = vpop.f32.mrf.mxu2  ;;  %4566 = vmatmul.msk.bf16.gmra.mxu1 %vm658_vm4, %v2567_v20  ;;  %v2497_v20 = vsel %vm5161_vm7, %v4550_v33, %v2496_v46  ;;  %v3384_v24 = vor.u32 %v3383_v54, %v6127_v27  ;;  %v6144_v46 = vld [vmem:[%s4975_s27 + $0xb8] sm:$0xf]  ;;  %v4906_v54 = vld [vmem:[%s4975_s27 + $0xac] sm:$0xf] }
 0x218   : > { %v3004_v0 = vadd.f32 %v2931_v63, %v2717_v56  ;;  %v2548_v35 = vunpack.c.l.b16 %v2497_v20  ;;  %v3906_v56 = vpack.c.b16 %v3886_v48, %v3885_v10  ;;  %v3375_v63 = vrot.slane %v3374_v6, 4 }
 0x219   : > { %v4091_v62 = vadd.f32 %v6014_v7, %v4055_v26  ;;  %v4723_v26 = vld [vmem:[%s4975_s27 + $0xb4] sm:$0xf]  ;;  %v3385_v55 = vrot.slane %v3384_v24, 4  ;;  %v3401_v11 = vshll.u32 %v6144_v46, 16  ;;  %v3405_v25 = vshrl.u32 %v6144_v46, 16 }
 0x21a   : > { %v3392_v33 = vshrl.u32 %v4723_v26, 16  ;;  %v3395_v31 = vshll.u32 %v4723_v26, 16  ;;  %v2568_v49 = vpack.c.b16 %v2549_v41, %v2548_v35  ;;  %v4845_v35 = vld [vmem:[%s4975_s27 + $0xa8] sm:$0xff]  ;;  %v4551_v41 = vrot.slane %v4535_v42, 9 }
 0x21b   : > { %4123 = vst.msk [vmem:[%s6034_s15 + $0x20] sm:$0xff] %vm658_vm4, %v4091_v62  ;;  %v3983_v34 = vpop.f32.mrf.mxu0  ;;  %v3390_v48 = vsel %vm4987_vm3, %v3385_v55, %v3389_v3 }
 0x21c   : > { %v3585_v57 = vpop.f32.mrf.mxu3  ;;  %4679 = vmatmul.msk.bf16.gmra.mxu2 %vm658_vm4, %v4844_v23  ;;  %v2649_v38 = vpop.f32.mrf.mxu1  ;;  %v4761_v23 = vld [vmem:[%s4975_s27 + $0xa8] sm:$0xe]  ;;  %v3394_v4 = vrot.slane %v3392_v33, 4  ;;  %v3397_v6 = vrot.slane %v3395_v31, 5  ;;  %v3490_v3 = vunpack.c.l.b16 %v3390_v48 }
 0x21d   : > { %v3658_v13 = vadd.f32 %v3585_v57, %v3004_v0  ;;  %v3380_v57 = vsel %vm4987_vm3, %v3375_v63, %v6127_v27  ;;  %v4777_v20 = vrot.slane %v4761_v23, 9  ;;  %v2719_v28 = vadd.f32 %v2649_v38, %v5530_v44 }
 0x21e   : > { %v3837_v27 = vrot.slane %v3835_v59, 4  ;;  %v3489_v55 = vunpack.c.l.b16 %v3380_v57  ;;  %v3398_v38 = vor.u32 %v3397_v6, %v3394_v4 }
 0x21f   : > { %v4056_v14 = vadd.f32 %v3983_v34, %v3658_v13  ;;  %v2934_v15 = vpop.f32.mrf.mxu2  ;;  %v2503_v34 = vrot.slane %v4906_v54, 5  ;;  %v6162_v13 = vrot.slane %v3401_v11, 5  ;;  %v3836_v44 = vsel %vm5161_vm7, %v4777_v20, %v3835_v59 }
 0x220   : > { %v3005_v60 = vadd.f32 %v2934_v15, %v2718_v47  ;;  %v3838_v47 = vrot.slane %v6130_v12, 5  ;;  %v6168_v15 = vld [vmem:[%s4975_s27 + $0xbc] sm:$0x1]  ;;  %v3887_v54 = vunpack.c.l.b16 %v3836_v44  ;;  %v3399_v57 = vrot.slane %v3398_v38, 4  ;;  %v4536_v38 = vld [vmem:[%s4975_s27 + $0xb4] sm:$0xe] }
 0x221   : > { %v4092_v43 = vadd.f32 %v6014_v7, %v4056_v14  ;;  %4744 = vmatmul.msk.bf16.gmra.mxu3 %vm658_vm4, %v3508_v16  ;;  %v3407_v16 = vrot.slane %v3405_v25, 4  ;;  %v2505_v26 = vrot.slane %v2503_v34, 4  ;;  %v3411_v12 = vshll.u32 %v6168_v15, 16 }
 0x222   : > { %v3839_v31 = vsel %vm5161_vm7, %v3837_v27, %v3838_v47  ;;  %v3842_v47 = vrot.slane %v6144_v46, 5 }
 0x223   : > { %4124 = vst.msk [vmem:[%s6034_s15 + $0x28] sm:$0xff] %vm658_vm4, %v4092_v43  ;;  %v3986_v61 = vpop.f32.mrf.mxu0  ;;  %v3408_v23 = vor.u32 %v3407_v16, %v6162_v13  ;;  %v3413_v20 = vrot.slane %v3411_v12, 5 }
 0x224   : > { %v3588_v62 = vpop.f32.mrf.mxu3  ;;  %v2652_v0 = vpop.f32.mrf.mxu1 }
 0x225   : > { %v3659_v10 = vadd.f32 %v3588_v62, %v3005_v60  ;;  %v3509_v62 = vpack.c.b16 %v3490_v3, %v3489_v55  ;;  %v3409_v48 = vrot.slane %v3408_v23, 4  ;;  %v2720_v4 = vadd.f32 %v2652_v0, %v5544_v30  ;;  %v4908_v55 = vld [vmem:[%s4975_s27 + $0xb8] sm:$0xf] }
 0x226   : > { %4793 = vmatmul.msk.bf16.gmra.mxu0 %vm658_vm4, %v3906_v56  ;;  %v4907_v56 = vld [vmem:[%s4975_s27 + $0xb0] sm:$0x1]  ;;  %v2510_v3 = vrot.slane %v4908_v55, 5 }
 0x227   : > { %v4057_v24 = vadd.f32 %v3986_v61, %v3659_v10  ;;  %v2936_v14 = vpop.f32.mrf.mxu2  ;;  %4567 = vmatmul.msk.bf16.gmra.mxu1 %vm658_vm4, %v2568_v49  ;;  %v2506_v63 = vrot.slane %v4907_v56, 5  ;;  %v2504_v61 = vsel %vm5161_vm7, %v4551_v41, %v2503_v34  ;;  %v3888_v10 = vunpack.c.l.b16 %v3839_v31  ;;  %v4726_v34 = vld [vmem:[%s4975_s27 + $0xc0] sm:$0xf]  ;;  %v4762_v56 = vld [vmem:[%s4975_s27 + $0xb4] sm:$0xe] }
 0x228   : > { %v3006_v60 = vadd.f32 %v2936_v14, %v2719_v28  ;;  %v2550_v16 = vunpack.c.l.b16 %v2504_v61  ;;  %v3404_v41 = vsel %vm4987_vm3, %v3399_v57, %v6162_v13  ;;  %v3419_v46 = vshll.u32 %v4726_v34, 16 }
 0x229   : > { %v4093_v43 = vadd.f32 %v6014_v7, %v4057_v24  ;;  %v2507_v49 = vsel %vm5161_vm7, %v2505_v26, %v2506_v63  ;;  %v3907_v27 = vpack.c.b16 %v3888_v10, %v3887_v54  ;;  %v3414_v26 = vsel %vm4987_vm3, %v3409_v48, %v3413_v20  ;;  %v4846_v10 = vld [vmem:[%s4975_s27 + $0xb4] sm:$0xff]  ;;  %v4909_v20 = vld [vmem:[%s4975_s27 + $0xbc] sm:$0x1] }
 0x22a   : > { %v2551_v24 = vunpack.c.l.b16 %v2507_v49  ;;  %v3416_v63 = vshrl.u32 %v4726_v34, 16  ;;  %v3491_v13 = vunpack.c.l.b16 %v3404_v41  ;;  %v4778_v31 = vrot.slane %v4762_v56, 9 }
 0x22b   : > { %4125 = vst.msk [vmem:[%s6034_s15 + $0x30] sm:$0xff] %vm658_vm4, %v4093_v43  ;;  %v3988_v33 = vpop.f32.mrf.mxu0  ;;  %v4552_v57 = vrot.slane %v4536_v38, 9  ;;  %v2512_v48 = vrot.slane %v2510_v3, 4 }
 0x22c   : > { %v3590_v11 = vpop.f32.mrf.mxu3  ;;  %4680 = vmatmul.msk.bf16.gmra.mxu2 %vm658_vm4, %v4845_v35  ;;  %v2654_v25 = vpop.f32.mrf.mxu1  ;;  %v6192_v35 = vld [vmem:[%s4975_s27 + $0xc4] sm:$0xf]  ;;  %v2569_v0 = vpack.c.b16 %v2551_v24, %v2550_v16  ;;  %v3418_v54 = vrot.slane %v3416_v63, 4 }
 0x22d   : > { %v3660_v59 = vadd.f32 %v3590_v11, %v3006_v60  ;;  %v3425_v23 = vshll.u32 %v6192_v35, 16  ;;  %v3429_v12 = vshrl.u32 %v6192_v35, 16  ;;  %v3844_v11 = vrot.slane %v3842_v47, 4 }
 0x22e   : > { %v2721_v49 = vadd.f32 %v2654_v25, %v5557_v51 }
 0x22f   : > { %v4058_v42 = vadd.f32 %v3988_v33, %v3660_v59  ;;  %v2939_v6 = vpop.f32.mrf.mxu2  ;;  %v3492_v33 = vunpack.c.l.b16 %v3414_v26  ;;  %v3427_v24 = vrot.slane %v3425_v23, 5  ;;  %v3431_v34 = vrot.slane %v3429_v12, 4 }
 0x230   : > { %v3007_v14 = vadd.f32 %v2939_v6, %v2720_v4  ;;  %v3421_v4 = vrot.slane %v3419_v46, 5 }
 0x231   : > { %v4094_v28 = vadd.f32 %v6014_v7, %v4058_v42  ;;  %4745 = vmatmul.msk.bf16.gmra.mxu3 %vm658_vm4, %v3509_v62  ;;  %v3845_v62 = vrot.slane %v6168_v15, 5  ;;  %v2513_v42 = vrot.slane %v4909_v20, 5  ;;  %v3843_v15 = vsel %vm5161_vm7, %v4778_v31, %v3842_v47 }
 0x232   : > { %v3422_v41 = vor.u32 %v3421_v4, %v3418_v54  ;;  %v3510_v56 = vpack.c.b16 %v3492_v33, %v3491_v13  ;;  %v3432_v63 = vor.u32 %v3431_v34, %v3427_v24  ;;  %v6237_v54 = vld [vmem:[%s4975_s27 + $0xd0] sm:$0xf]  ;;  %v4537_v34 = vld [vmem:[%s4975_s27 + $0xc0] sm:$0xe] }
 0x233   : > { %4126 = vst.msk [vmem:[%s6034_s15 + $0x38] sm:$0xff] %vm658_vm4, %v4094_v28  ;;  %v3991_v30 = vpop.f32.mrf.mxu0  ;;  %v6214_v28 = vld [vmem:[%s4975_s27 + $0xc8] sm:$0x1]  ;;  %v3846_v25 = vsel %vm5161_vm7, %v3844_v11, %v3845_v62  ;;  %v4729_v62 = vld [vmem:[%s4975_s27 + $0xcc] sm:$0xf] }
 0x234   : > { %v3593_v43 = vpop.f32.mrf.mxu3  ;;  %v2657_v60 = vpop.f32.mrf.mxu1  ;;  %v3435_v47 = vshll.u32 %v6214_v28, 16  ;;  %v3890_v55 = vunpack.c.l.b16 %v3846_v25  ;;  %v3423_v12 = vrot.slane %v3422_v41, 4  ;;  %v3433_v33 = vrot.slane %v3432_v63, 4 }
 0x235   : > { %v3661_v44 = vadd.f32 %v3593_v43, %v3007_v14  ;;  %v3889_v43 = vunpack.c.l.b16 %v3843_v15  ;;  %v3449_v15 = vshll.u32 %v6237_v54, 16  ;;  %v3453_v25 = vshrl.u32 %v6237_v54, 16 }
 0x236   : > { %4794 = vmatmul.msk.bf16.gmra.mxu0 %vm658_vm4, %v3907_v27  ;;  %v3437_v11 = vrot.slane %v3435_v47, 5  ;;  %v3428_v4 = vsel %vm4987_vm3, %v3423_v12, %v3427_v24  ;;  %v4553_v47 = vrot.slane %v4537_v34, 9 }
 0x237   : > { %v4059_v61 = vadd.f32 %v3991_v30, %v3661_v44  ;;  %v2941_v59 = vpop.f32.mrf.mxu2  ;;  %4568 = vmatmul.msk.bf16.gmra.mxu1 %vm658_vm4, %v2569_v0  ;;  %v2511_v30 = vsel %vm5161_vm7, %v4552_v57, %v2510_v3  ;;  %v2514_v0 = vsel %vm5161_vm7, %v2512_v48, %v2513_v42  ;;  %v2722_v44 = vadd.f32 %v2657_v60, %v5573_v1  ;;  %v4910_v48 = vld [vmem:[%s4975_s27 + $0xc4] sm:$0xf] }
 0x238   : > { %v3008_v16 = vadd.f32 %v2941_v59, %v2721_v49  ;;  %v2552_v3 = vunpack.c.l.b16 %v2511_v30  ;;  %v2553_v23 = vunpack.c.l.b16 %v2514_v0  ;;  %v4763_v49 = vld [vmem:[%s4975_s27 + $0xc0] sm:$0xe]  ;;  %v3849_v59 = vrot.slane %v6192_v35, 5 }
 0x239   : > { %v4095_v6 = vadd.f32 %v6014_v7, %v4059_v61  ;;  %v3908_v61 = vpack.c.b16 %v3890_v55, %v3889_v43  ;;  %v2517_v20 = vrot.slane %v4910_v48, 5  ;;  %v3440_v35 = vshrl.u32 %v4729_v62, 16  ;;  %v6385_v30 = vld [vmem:[#allocation2_spill] sm:$0xff]  ;;  %v4911_v55 = vld [vmem:[%s4975_s27 + $0xc8] sm:$0x1] }
 0x23a   : > { %v2570_v60 = vpack.c.b16 %v2553_v23, %v2552_v3  ;;  %v3851_v24 = vrot.slane %v3849_v59, 4  ;;  %v3493_v63 = vunpack.c.l.b16 %v3428_v4 }
 0x23b   : > { %4127 = vst.msk [vmem:[%s6034_s15 + $0x40] sm:$0xff] %vm658_vm4, %v4095_v6  ;;  %v3993_v51 = vpop.f32.mrf.mxu0  ;;  %v3438_v6 = vsel %vm4987_vm3, %v3433_v33, %v3437_v11  ;;  %v2519_v43 = vrot.slane %v2517_v20, 4  ;;  %v3442_v23 = vrot.slane %v3440_v35, 4  ;;  %v4731_v11 = vld [vmem:[%s4975_s27 + $0xd4] sm:$0x1] }
 0x23c   : > { %v3595_v14 = vpop.f32.mrf.mxu3  ;;  %4681 = vmatmul.msk.bf16.gmra.mxu2 %vm658_vm4, %v4846_v10  ;;  %v2659_v27 = vpop.f32.mrf.mxu1  ;;  %v3494_v3 = vunpack.c.l.b16 %v3438_v6  ;;  %v3459_v6 = vshll.u32 %v4731_v11, 16 }
 0x23d   : > { %v3662_v26 = vadd.f32 %v3595_v14, %v3008_v16  ;;  %v4779_v16 = vrot.slane %v4763_v49, 9  ;;  %v2723_v0 = vadd.f32 %v2659_v27, %v6385_v30 }
 0x23f   : > { %v4060_v46 = vadd.f32 %v3993_v51, %v3662_v26  ;;  %v2944_v38 = vpop.f32.mrf.mxu2  ;;  %v3443_v51 = vshll.u32 %v4729_v62, 16  ;;  %v3852_v26 = vrot.slane %v6214_v28, 5  ;;  %v3850_v27 = vsel %vm5161_vm7, %v4779_v16, %v3849_v59 }
 0x240   : > { %v3009_v13 = vadd.f32 %v2944_v38, %v2722_v44  ;;  %v3511_v62 = vpack.c.b16 %v3494_v3, %v3493_v63 }
 0x241   : > { %v4096_v31 = vadd.f32 %v6014_v7, %v4060_v46  ;;  %4746 = vmatmul.msk.bf16.gmra.mxu3 %vm658_vm4, %v3510_v56  ;;  %v4847_v56 = vld [vmem:[%s4975_s27 + $0xc0] sm:$0xff]  ;;  %v2520_v46 = vrot.slane %v4911_v55, 5  ;;  %v3445_v12 = vrot.slane %v3443_v51, 5  ;;  %v3853_v33 = vsel %vm5161_vm7, %v3851_v24, %v3852_v26 }
 0x242   : > { %v3892_v48 = vunpack.c.l.b16 %v3853_v33 }
 0x243   : > { %4128 = vst.msk [vmem:[%s6034_s15 + $0x48] sm:$0xff] %vm658_vm4, %v4096_v31  ;;  %v3996_v1 = vpop.f32.mrf.mxu0  ;;  %v3451_v31 = vrot.slane %v3449_v15, 5 }
 0x244   : > { %v3598_v10 = vpop.f32.mrf.mxu3  ;;  %v2662_v57 = vpop.f32.mrf.mxu1 }
 0x245   : > { %v3663_v42 = vadd.f32 %v3598_v10, %v3009_v13  ;;  %v3455_v13 = vrot.slane %v3453_v25, 4  ;;  %v3891_v10 = vunpack.c.l.b16 %v3850_v27  ;;  %v2724_v34 = vadd.f32 %v2662_v57, %v5609_v52 }
 0x246   : > { %4795 = vmatmul.msk.bf16.gmra.mxu0 %vm658_vm4, %v3908_v61  ;;  %v3856_v52 = vrot.slane %v6237_v54, 5  ;;  %v3859_v27 = vrot.slane %v4731_v11, 5 }
 0x247   : > { %v4061_v14 = vadd.f32 %v3996_v1, %v3663_v42  ;;  %v2946_v41 = vpop.f32.mrf.mxu2  ;;  %4569 = vmatmul.msk.bf16.gmra.mxu1 %vm658_vm4, %v2570_v60  ;;  %v2518_v1 = vsel %vm5161_vm7, %v4553_v47, %v2517_v20  ;;  %v2521_v60 = vsel %vm5161_vm7, %v2519_v43, %v2520_v46  ;;  %v3446_v42 = vor.u32 %v3445_v12, %v3442_v23  ;;  %v4848_v23 = vld [vmem:[%s4975_s27 + $0xcc] sm:$0xff] }
 0x248   : > { %v3010_v38 = vadd.f32 %v2946_v41, %v2723_v0  ;;  %v3456_v4 = vor.u32 %v3455_v13, %v3451_v31  ;;  %v2554_v51 = vunpack.c.l.b16 %v2518_v1  ;;  %v2555_v15 = vunpack.c.l.b16 %v2521_v60 }
 0x249   : > { %v4097_v44 = vadd.f32 %v6014_v7, %v4061_v14  ;;  %v3909_v14 = vpack.c.b16 %v3892_v48, %v3891_v10  ;;  %v3447_v30 = vrot.slane %v3446_v42, 4  ;;  %v3461_v41 = vrot.slane %v3459_v6, 5 }
 0x24a   : > { %v3457_v0 = vrot.slane %v3456_v4, 4  ;;  %v2571_v26 = vpack.c.b16 %v2555_v15, %v2554_v51  ;;  %v3858_v54 = vrot.slane %v3856_v52, 4  ;;  %v6386_v15 = vld [vmem:[#allocation3_spill] sm:$0xff] }
 0x24b   : > { %4129 = vst.msk [vmem:[%s6034_s15 + $0x50] sm:$0xff] %vm658_vm4, %v4097_v44  ;;  %v3998_v28 = vpop.f32.mrf.mxu0  ;;  %v3452_v43 = vsel %vm4987_vm3, %v3447_v30, %v3451_v31 }
 0x24c   : > { %v3600_v61 = vpop.f32.mrf.mxu3  ;;  %4682 = vmatmul.msk.bf16.gmra.mxu2 %vm658_vm4, %v4847_v56  ;;  %v2664_v49 = vpop.f32.mrf.mxu1  ;;  %v4764_v56 = vld [vmem:[%s4975_s27 + $0xcc] sm:$0xe]  ;;  %v3462_v55 = vsel %vm4987_vm3, %v3457_v0, %v3461_v41 }
 0x24d   : > { %v3664_v59 = vadd.f32 %v3600_v61, %v3010_v38  ;;  %v4780_v46 = vrot.slane %v4764_v56, 9  ;;  %v2725_v38 = vadd.f32 %v2664_v49, %v5629_v21  ;;  %v3496_v33 = vunpack.c.l.b16 %v3462_v55 }
 0x24e   : > { %v3860_v21 = vsel %vm5161_vm7, %v3858_v54, %v3859_v27 }
 0x24f   : > { %v4062_v16 = vadd.f32 %v3998_v28, %v3664_v59  ;;  %v2949_v35 = vpop.f32.mrf.mxu2  ;;  %v3495_v28 = vunpack.c.l.b16 %v3452_v43  ;;  %v3857_v36 = vsel %vm5161_vm7, %v4780_v46, %v3856_v52  ;;  %v3894_v59 = vunpack.c.l.b16 %v3860_v21 }
 0x250   : > { %v3011_v25 = vadd.f32 %v2949_v35, %v2724_v34  ;;  %v3893_v60 = vunpack.c.l.b16 %v3857_v36 }
 0x251   : > { %v4098_v20 = vadd.f32 %v6014_v7, %v4062_v16  ;;  %4747 = vmatmul.msk.bf16.gmra.mxu3 %vm658_vm4, %v3511_v62  ;;  %v3512_v1 = vpack.c.b16 %v3496_v33, %v3495_v28 }
 0x252   : > { %v3910_v4 = vpack.c.b16 %v3894_v59, %v3893_v60 }
 0x253   : > { %4130 = vst.msk [vmem:[%s6034_s15 + $0x58] sm:$0xff] %vm658_vm4, %v4098_v20  ;;  %v4001_v24 = vpop.f32.mrf.mxu0 }
 0x254   : > { %v3603_v57 = vpop.f32.mrf.mxu3  ;;  %v2667_v63 = vpop.f32.mrf.mxu1 }
 0x255   : > { %v3665_v47 = vadd.f32 %v3603_v57, %v3011_v25  ;;  %v2726_v10 = vadd.f32 %v2667_v63, %v5648_v29 }
 0x256   : > { %4796 = vmatmul.msk.bf16.gmra.mxu0 %vm658_vm4, %v3909_v14 }
 0x257   : > { %v4063_v44 = vadd.f32 %v4001_v24, %v3665_v47  ;;  %v2951_v3 = vpop.f32.mrf.mxu2  ;;  %4570 = vmatmul.msk.bf16.gmra.mxu1 %vm658_vm4, %v2571_v26 }
 0x258   : > { %v3012_v13 = vadd.f32 %v2951_v3, %v2725_v38 }
 0x259   : > { %v4099_v12 = vadd.f32 %v6014_v7, %v4063_v44 }
 0x25b   : > { %4131 = vst.msk [vmem:[%s6034_s15 + $0x60] sm:$0xff] %vm658_vm4, %v4099_v12  ;;  %v4003_v31 = vpop.f32.mrf.mxu0 }
 0x25c   : > { %v3605_v61 = vpop.f32.mrf.mxu3  ;;  %4683 = vmatmul.msk.bf16.gmra.mxu2 %vm658_vm4, %v4848_v23  ;;  %v2669_v11 = vpop.f32.mrf.mxu1 }
 0x25d   : > { %v3666_v49 = vadd.f32 %v3605_v61, %v3012_v13  ;;  %v2727_v29 = vadd.f32 %v2669_v11, %v6386_v15 }
 0x25f   : > { %v4064_v62 = vadd.f32 %v4003_v31, %v3666_v49  ;;  %v2954_v48 = vpop.f32.mrf.mxu2 }
 0x260   : > { %v3013_v18 = vadd.f32 %v2954_v48, %v2726_v10 }
 0x261   : > { %v4100_v42 = vadd.f32 %v6014_v7, %v4064_v62  ;;  %4748 = vmatmul.msk.bf16.gmra.mxu3 %vm658_vm4, %v3512_v1 }
 0x263   : > { %4132 = vst.msk [vmem:[%s6034_s15 + $0x68] sm:$0xff] %vm658_vm4, %v4100_v42  ;;  %v4006_v6 = vpop.f32.mrf.mxu0 }
 0x264   : > { %v3608_v16 = vpop.f32.mrf.mxu3  ;;  %v2672_v34 = vpop.f32.mrf.mxu1 }
 0x265   : > { %v3667_v35 = vadd.f32 %v3608_v16, %v3013_v18  ;;  %v2728_v56 = vadd.f32 %v2672_v34, %v5691_v5 }
 0x266   : > { %4797 = vmatmul.msk.bf16.gmra.mxu0 %vm658_vm4, %v3910_v4 }
 0x267   : > { %v4065_v51 = vadd.f32 %v4006_v6, %v3667_v35  ;;  %v2956_v20 = vpop.f32.mrf.mxu2 }
 0x268   : > { %v3014_v14 = vadd.f32 %v2956_v20, %v2727_v29 }
 0x269   : > { %v4101_v25 = vadd.f32 %v6014_v7, %v4065_v51 }
 0x26b   : > { %4133 = vst.msk [vmem:[%s6034_s15 + $0x70] sm:$0xff] %vm658_vm4, %v4101_v25  ;;  %v4008_v30 = vpop.f32.mrf.mxu0 }
 0x26c   : > { %v3610_v0 = vpop.f32.mrf.mxu3  ;;  %v2674_v41 = vpop.f32.mrf.mxu1 }
 0x26d   : > { %v3668_v24 = vadd.f32 %v3610_v0, %v3014_v14  ;;  %v2729_v38 = vadd.f32 %v2674_v41, %v5715_v22 }
 0x26f   : > { %v4066_v26 = vadd.f32 %v4008_v30, %v3668_v24  ;;  %v2959_v52 = vpop.f32.mrf.mxu2 }
 0x270   : > { %v3015_v63 = vadd.f32 %v2959_v52, %v2728_v56 }
 0x271   : > { %v4102_v57 = vadd.f32 %v6014_v7, %v4066_v26 }
 0x273   : > { %4134 = vst.msk [vmem:[%s6034_s15 + $0x78] sm:$0xff] %vm658_vm4, %v4102_v57  ;;  %v4011_v47 = vpop.f32.mrf.mxu0 }
 0x274   : > { %v3613_v43 = vpop.f32.mrf.mxu3  ;;  %v2677_v55 = vpop.f32.mrf.mxu1 }
 0x275   : > { %v3669_v46 = vadd.f32 %v3613_v43, %v3015_v63  ;;  %v2730_v33 = vadd.f32 %v2677_v55, %v5734_v19 }
 0x277   : > { %v4067_v44 = vadd.f32 %v4011_v47, %v3669_v46  ;;  %v2961_v3 = vpop.f32.mrf.mxu2 }
 0x278   : > { %v3016_v27 = vadd.f32 %v2961_v3, %v2729_v38  ;;  %v6387_v38 = vld [vmem:[#allocation4_spill] sm:$0xff] }
 0x279   : > { %v4103_v54 = vadd.f32 %v6014_v7, %v4067_v44 }
 0x27b   : > { %4135 = vst.msk [vmem:[%s6034_s15 + $0x80] sm:$0xff] %vm658_vm4, %v4103_v54  ;;  %v4013_v5 = vpop.f32.mrf.mxu0 }
 0x27c   : > { %v3615_v23 = vpop.f32.mrf.mxu3  ;;  %v2679_v12 = vpop.f32.mrf.mxu1 }
 0x27d   : > { %v3670_v13 = vadd.f32 %v3615_v23, %v3016_v27  ;;  %v2731_v60 = vadd.f32 %v2679_v12, %v5758_v53  ;;  %v6331_v27 = vld [vmem:[%s6376_s2] ss:$0 sm:$0xff] }
 0x27f   : > { %v4068_v28 = vadd.f32 %v4013_v5, %v3670_v13  ;;  %v2964_v31 = vpop.f32.mrf.mxu2 }
 0x280   : > { %v3017_v21 = vadd.f32 %v2964_v31, %v2730_v33 }
 0x281   : > { %v4104_v36 = vadd.f32 %v6014_v7, %v4068_v28 }
 0x283   : > { %4136 = vst.msk [vmem:[%s6034_s15 + $0x88] sm:$0xff] %vm658_vm4, %v4104_v36  ;;  %v4016_v22 = vpop.f32.mrf.mxu0 }
 0x284   : > { %v3618_v61 = vpop.f32.mrf.mxu3  ;;  %v2682_v11 = vpop.f32.mrf.mxu1 }
 0x285   : > { %v3671_v49 = vadd.f32 %v3618_v61, %v3017_v21  ;;  %v2732_v6 = vadd.f32 %v2682_v11, %v5777_v2 }
 0x287   : > { %v4069_v1 = vadd.f32 %v4016_v22, %v3671_v49  ;;  %v2966_v59 = vpop.f32.mrf.mxu2 }
 0x288   : > { %v3018_v10 = vadd.f32 %v2966_v59, %v2731_v60 }
 0x289   : > { %v4105_v62 = vadd.f32 %v6014_v7, %v4069_v1 }
 0x28b   : > { %4137 = vst.msk [vmem:[%s6034_s15 + $0x90] sm:$0xff] %vm658_vm4, %v4105_v62  ;;  %v4018_v19 = vpop.f32.mrf.mxu0 }
 0x28c   : > { %v3620_v48 = vpop.f32.mrf.mxu3  ;;  %v2684_v42 = vpop.f32.mrf.mxu1 }
 0x28d   : > { %v3672_v18 = vadd.f32 %v3620_v48, %v3018_v10  ;;  %v2733_v25 = vadd.f32 %v2684_v42, %v5801_v40 }
 0x28f   : > { %v4070_v4 = vadd.f32 %v4018_v19, %v3672_v18  ;;  %v2969_v16 = vpop.f32.mrf.mxu2 }
 0x290   : > { %v3019_v35 = vadd.f32 %v2969_v16, %v2732_v6 }
 0x291   : > { %v4106_v34 = vadd.f32 %v6014_v7, %v4070_v4 }
 0x293   : > { %4138 = vst.msk [vmem:[%s6034_s15 + $0x98] sm:$0xff] %vm658_vm4, %v4106_v34  ;;  %v4021_v53 = vpop.f32.mrf.mxu0 }
 0x294   : > { %v3623_v51 = vpop.f32.mrf.mxu3  ;;  %v2687_v15 = vpop.f32.mrf.mxu1 }
 0x295   : > { %v3673_v29 = vadd.f32 %v3623_v51, %v3019_v35  ;;  %v2734_v52 = vadd.f32 %v2687_v15, %v5820_v8 }
 0x297   : > { %v4071_v20 = vadd.f32 %v4021_v53, %v3673_v29  ;;  %v2971_v14 = vpop.f32.mrf.mxu2 }
 0x298   : > { %v3020_v0 = vadd.f32 %v2971_v14, %v2733_v25 }
 0x299   : > { %v4107_v30 = vadd.f32 %v6014_v7, %v4071_v20 }
 0x29b   : > { %4139 = vst.msk [vmem:[%s6034_s15 + $0xa0] sm:$0xff] %vm658_vm4, %v4107_v30  ;;  %v4023_v2 = vpop.f32.mrf.mxu0 }
 0x29c   : > { %v3625_v41 = vpop.f32.mrf.mxu3  ;;  %v2689_v24 = vpop.f32.mrf.mxu1 }
 0x29d   : > { %v3674_v26 = vadd.f32 %v3625_v41, %v3020_v0  ;;  %v2735_v3 = vadd.f32 %v2689_v24, %v6387_v38 }
 0x29f   : > { %v4072_v56 = vadd.f32 %v4023_v2, %v3674_v26  ;;  %v2974_v57 = vpop.f32.mrf.mxu2 }
 0x2a0   : > { %v3021_v47 = vadd.f32 %v2974_v57, %v2734_v52 }
 0x2a1   : > { %v4108_v63 = vadd.f32 %v6014_v7, %v4072_v56 }
 0x2a3   : > { %4140 = vst.msk [vmem:[%s6034_s15 + $0xa8] sm:$0xff] %vm658_vm4, %v4108_v63  ;;  %v4026_v40 = vpop.f32.mrf.mxu0 }
 0x2a4   : > { %v3628_v43 = vpop.f32.mrf.mxu3  ;;  %v2692_v55 = vpop.f32.mrf.mxu1 }
 0x2a5   : > { %v3675_v46 = vadd.f32 %v3628_v43, %v3021_v47  ;;  %v2736_v33 = vadd.f32 %v2692_v55, %v5861_v17 }
 0x2a7   : > { %v4073_v44 = vadd.f32 %v4026_v40, %v3675_v46  ;;  %v2976_v54 = vpop.f32.mrf.mxu2 }
 0x2a8   : > { %v3022_v7 = vadd.f32 %v2976_v54, %v2735_v3 }
 0x2a9   : > { %v4109_v8 = vadd.f32 %v6331_v27, %v4073_v44 }
 0x2ab   : > { %4141 = vst.msk [vmem:[%s6034_s15 + $0xb0] sm:$0xff] %vm658_vm4, %v4109_v8  ;;  %v4028_v5 = vpop.f32.mrf.mxu0 }
 0x2ac   : > { %v3630_v23 = vpop.f32.mrf.mxu3  ;;  %v2694_v12 = vpop.f32.mrf.mxu1 }
 0x2ad   : > { %v3676_v13 = vadd.f32 %v3630_v23, %v3022_v7  ;;  %v2737_v60 = vadd.f32 %v2694_v12, %v5882_v50 }
 0x2af   : > { %v4074_v28 = vadd.f32 %v4028_v5, %v3676_v13  ;;  %v2979_v31 = vpop.f32.mrf.mxu2 }
 0x2b0   : > { %v3023_v21 = vadd.f32 %v2979_v31, %v2736_v33 }
 0x2b1   : > { %v4110_v36 = vadd.f32 %v6331_v27, %v4074_v28 }
 0x2b3   : > { %4142 = vst.msk [vmem:[%s6034_s15 + $0xb8] sm:$0xff] %vm658_vm4, %v4110_v36  ;;  %v4031_v22 = vpop.f32.mrf.mxu0 }
 0x2b4   : > { %v3633_v61 = vpop.f32.mrf.mxu3  ;;  %v2697_v11 = vpop.f32.mrf.mxu1 }
 0x2b5   : > { %v3677_v49 = vadd.f32 %v3633_v61, %v3023_v21  ;;  %v2738_v4 = vadd.f32 %v2697_v11, %v5900_v9 }
 0x2b7   : > { %v4075_v1 = vadd.f32 %v4031_v22, %v3677_v49  ;;  %v2981_v59 = vpop.f32.mrf.mxu2 }
 0x2b8   : > { %v3024_v10 = vadd.f32 %v2981_v59, %v2737_v60 }
 0x2b9   : > { %v4111_v62 = vadd.f32 %v6331_v27, %v4075_v1 }
 0x2bb   : > { %4143 = vst.msk [vmem:[%s6034_s15 + $0xc0] sm:$0xff] %vm658_vm4, %v4111_v62  ;;  %v4033_v17 = vpop.f32.mrf.mxu0 }
 0x2bc   : > { %v3635_v19 = vpop.f32.mrf.mxu3  ;;  %v2699_v48 = vpop.f32.mrf.mxu1 }
 0x2bd   : > { %v3678_v42 = vadd.f32 %v3635_v19, %v3024_v10  ;;  %v2739_v29 = vadd.f32 %v2699_v48, %v5923_v45 }
 0x2bf   : > { %v4076_v18 = vadd.f32 %v4033_v17, %v3678_v42  ;;  %v2984_v6 = vpop.f32.mrf.mxu2 }
 0x2c0   : > { %v3025_v34 = vadd.f32 %v2984_v6, %v2738_v4 }
 0x2c1   : > { %v4112_v16 = vadd.f32 %v6331_v27, %v4076_v18 }
 0x2c3   : > { %4144 = vst.msk [vmem:[%s6034_s15 + $0xc8] sm:$0xff] %vm658_vm4, %v4112_v16  ;;  %v4036_v50 = vpop.f32.mrf.mxu0 }
 0x2c4   : > { %v3638_v35 = vpop.f32.mrf.mxu3  ;;  %v2702_v51 = vpop.f32.mrf.mxu1 }
 0x2c5   : > { %v3679_v53 = vadd.f32 %v3638_v35, %v3025_v34  ;;  %v2740_v41 = vadd.f32 %v2702_v51, %v5943_v37 }
 0x2c7   : > { %v4077_v15 = vadd.f32 %v4036_v50, %v3679_v53  ;;  %v2986_v20 = vpop.f32.mrf.mxu2 }
 0x2c8   : > { %v3026_v14 = vadd.f32 %v2986_v20, %v2739_v29 }
 0x2c9   : > { %v4113_v25 = vadd.f32 %v6331_v27, %v4077_v15 }
 0x2cb   : > { %4145 = vst.msk [vmem:[%s6034_s15 + $0xd0] sm:$0xff] %vm658_vm4, %v4113_v25  ;;  %v4038_v9 = vpop.f32.mrf.mxu0 }
 0x2cc   : > { %v3640_v30 = vpop.f32.mrf.mxu3  ;;  %v2704_v26 = vpop.f32.mrf.mxu1 }
 0x2cd   : > { %v3680_v0 = vadd.f32 %v3640_v30, %v3026_v14  ;;  %v2741_v40 = vadd.f32 %v2704_v26, %v5966_v58 }
 0x2cf   : > { %v4078_v2 = vadd.f32 %v4038_v9, %v3680_v0  ;;  %v2989_v24 = vpop.f32.mrf.mxu2 }
 0x2d0   : > { %v3027_v52 = vadd.f32 %v2989_v24, %v2740_v41 }
 0x2d1   : > { %v4114_v56 = vadd.f32 %v6331_v27, %v4078_v2 }
 0x2d3   : > { %4146 = vst.msk [vmem:[%s6034_s15 + $0xd8] sm:$0xff] %vm658_vm4, %v4114_v56  ;;  %v4041_v45 = vpop.f32.mrf.mxu0 }
 0x2d4   : > { %v3643_v57 = vpop.f32.mrf.mxu3  ;;  %v2707_v44 = vpop.f32.mrf.mxu1 }
 0x2d5   : > { %v3681_v63 = vadd.f32 %v3643_v57, %v3027_v52  ;;  %v2742_v8 = vadd.f32 %v2707_v44, %v5984_v32 }
 0x2d7   : > { %v4079_v47 = vadd.f32 %v4041_v45, %v3681_v63  ;;  %v2991_v43 = vpop.f32.mrf.mxu2 }
 0x2d8   : > { %v3028_v46 = vadd.f32 %v2991_v43, %v2741_v40 }
 0x2d9   : > { %v4115_v55 = vadd.f32 %v6331_v27, %v4079_v47 }
 0x2db   : > { %4147 = vst.msk [vmem:[%s6034_s15 + $0xe0] sm:$0xff] %vm658_vm4, %v4115_v55  ;;  %v4043_v37 = vpop.f32.mrf.mxu0 }
 0x2dc   : > { %v3645_v38 = vpop.f32.mrf.mxu3  ;;  %v2709_v58 = vpop.f32.mrf.mxu1 }
 0x2dd   : > { %v3682_v3 = vadd.f32 %v3645_v38, %v3028_v46  ;;  %v2743_v31 = vadd.f32 %v2709_v58, %v6005_v39 }
 0x2df   : > { %v4080_v54 = vadd.f32 %v4043_v37, %v3682_v3  ;;  %v2994_v7 = vpop.f32.mrf.mxu2 }
 0x2e0   : > { %v3029_v23 = vadd.f32 %v2994_v7, %v2742_v8 }
 0x2e1   : > { %v4116_v5 = vadd.f32 %v6331_v27, %v4080_v54 }
 0x2e3   : > { %4148 = vst.msk [vmem:[%s6034_s15 + $0xe8] sm:$0xff] %vm658_vm4, %v4116_v5  ;;  %v4046_v12 = vpop.f32.mrf.mxu0 }
 0x2e4   : > { %v3648_v13 = vpop.f32.mrf.mxu3 }
 0x2e5   : > { %v3683_v28 = vadd.f32 %v3648_v13, %v3029_v23 }
 0x2e7   : > { %v4081_v33 = vadd.f32 %v4046_v12, %v3683_v28  ;;  %v2996_v36 = vpop.f32.mrf.mxu2 }
 0x2e8   : > { %v3030_v22 = vadd.f32 %v2996_v36, %v2743_v31 }
 0x2e9   : > { %v4117_v21 = vadd.f32 %v6331_v27, %v4081_v33 }
 0x2eb   : > { %4149 = vst.msk [vmem:[%s6034_s15 + $0xf0] sm:$0xff] %vm658_vm4, %v4117_v21  ;;  %v4048_v11 = vpop.f32.mrf.mxu0 }
 0x2ec   : > { %v3650_v32 = vpop.f32.mrf.mxu3 }
 0x2ed   : > { %v3684_v61 = vadd.f32 %v3650_v32, %v3030_v22 }
 0x2ef   : > { %v4082_v49 = vadd.f32 %v4048_v11, %v3684_v61 }
 0x2f1   : > { %v4118_v1 = vadd.f32 %v6331_v27, %v4082_v49 }
 0x2f3   : > { %4150 = vst.msk [vmem:[%s6034_s15 + $0xf8] sm:$0xff] %vm658_vm4, %v4118_v1 }
 0x2f4 PF: > { %s13_s12 = sadd.s32 1, %s4919_s12  }
 0x2f5   : > { %p10_p4 = scmp.ge.s32.totalorder %s13_s12, 4  }
 0x2f7   :  { %12 = sbr.rel (!%p10_p4) target bundleno = 1 (0x1), region = 72 }

// kernel: upstep_forward.4
= control target key start
LH: loop header
LB: loop body
LE: loop exit
PB: predicated region body
PF: predicated region fallthrough
CT: control target
= control target key end

     0   :  { %s9747_s18 = smov 0   ;;  %s12959_s0 = inlined_call_operand.vmem [shape: bf16[2,18,18,4], index: 0, kind: input, shape index: {}]   ;;  %s12960_s1 = inlined_call_operand.vmem [shape: bf16[2,18,18,4], index: 1, kind: input, shape index: {}]   ;;  %s12961_s2 = inlined_call_operand.vmem [shape: bf16[3,3,4,4], index: 2, kind: input, shape index: {}]   ;;  %s12962_s3 = inlined_call_operand.vmem [shape: bf16[3,3,4,4], index: 3, kind: input, shape index: {}]   ;;  %s12963_s4 = inlined_call_operand.vmem [shape: f32[1,4], index: 4, kind: input, shape index: {}]   ;;  %s12964_s5 = inlined_call_operand.vmem [shape: bf16[2,256,4], index: 5, kind: output, shape index: {}]  }
   0x1 LB: > { %s8372_s19 = sadd.s32 4294967295, %s9715_s18   ;;  %p8376_p0 = scmp.ge.s32.totalorder %s9715_s18, 1  ;;  %s9715_s18 = sphi %s9747_s18, %s15_s18  }
   0x2   : > { %p197_p1 = scmp.lt.s32.totalorder %s9715_s18, 3 }
   0x4   : > { %p198_p2 = pnand %p8376_p0, %p197_p1 }
   0x6   : > { %201 = sbr.rel (%p198_p2) target bundleno = 1323 (0x52b), region = 40 }
   0xb   : > { %v278_v0 = vld [vmem:[%s12961_s2] sm:$0x3]  ;;  %vm781_vm0 = vcmask 1041408   ;;  %p230_p3 = scmp.lt.s32.totalorder %s8372_s19, 1  ;;  %v8381_v2 = vld [vmem:[%s12961_s2 + $0x2] sm:$0x3] }
   0xc   : > { %v1003_v1 = vsel %vm781_vm0, %v278_v0, 0  ;;  %v783_v3 = vsel %vm781_vm0, %v8381_v2, 0  ;;  %v8494_v4 = vld [vmem:[%s12961_s2 + $0x4] sm:$0x3]  ;;  %v8543_v6 = vld [vmem:[%s12961_s2 + $0x6] sm:$0x3] }
   0xd   : > { %9649 = vmatpush.bf16.msra.mxu3 %v1003_v1  ;;  %s13030_s19 = smov (!%p230_p3, %s8372_s19), 1  ;;  %1012 = vmatpush.bf16.msra.mxu1 %v1003_v1  ;;  %v1356_v5 = vsel %vm781_vm0, %v8494_v4, 0  ;;  %v8672_v7 = vld [vmem:[%s12961_s2 + $0x8] sm:$0x3]  ;;  %v1643_v8 = vsel %vm781_vm0, %v8543_v6, 0  ;;  %vm732_vm1 = vcmask 31744  }
   0xe   : > { %9648 = vmatpush.bf16.msra.mxu2 %v783_v3  ;;  %792 = vmatpush.bf16.msra.mxu0 %v783_v3  ;;  %s9650_s30 = smul.u32 216, %s13030_s19  ;;  %v2297_v9 = vsel %vm781_vm0, %v8672_v7, 0  ;;  %v8721_v10 = vld [vmem:[%s12961_s2 + $0xa] sm:$0x3]  ;;  %vm295_vm2 = vsmask.f32 3328 }
   0xf   : > { %v2695_v11 = vsel %vm781_vm0, %v8721_v10, 0  ;;  %vm296_vm3 = vsmask.f32 7440  ;;  %vm1142_vm5 = vcmask 1042432   ;;  %vm1143_vm6 = vcmask 1046532   ;;  %s9551_s17 = sshll.u32 %s13030_s19, 7 }
  0x10   : > { %s9787_s10 = scalar_lea.vmem %s12959_s0, %s9650_s30  ;;  %vm9809_vm4 = vmor %vm295_vm2, %vm296_vm3  ;;  %s10657_s7 = scalar_lea.vmem %s12960_s1, %s9650_s30  ;;  %vm8272_vm8 = vcmask 27648  }
  0x11   : > { %1652 = vmatpush.bf16.msrb.mxu3 %v1643_v8  ;;  %2704 = vmatpush.bf16.msrb.mxu1 %v2695_v11  ;;  %v9560_v12 = vld [vmem:[%s9787_s10 + $0x60] sm:$0xff]  ;;  %v287_v15 = vld [vmem:[%s9787_s10 + $0x68] sm:$0x1]  ;;  %v264_v37 = vld [vmem:[%s9787_s10 + $0x6c] sm:$0xf]  ;;  %s12606_s21 = scalar_lea.vmem %s12964_s5, %s9551_s17 }
  0x12   : > { %1365 = vmatpush.bf16.msrb.mxu2 %v1356_v5  ;;  %2306 = vmatpush.bf16.msrb.mxu0 %v2297_v9  ;;  %v262_v13 = vld [vmem:[%s9787_s10 + $0x60] sm:$0xf]  ;;  %v263_v14 = vld [vmem:[%s9787_s10 + $0x64] sm:$0xf]  ;;  %v510_v20 = vshll.u32 %v287_v15, 16  ;;  %v515_v48 = vshrl.u32 %v264_v37, 16  ;;  %vm10025_vm7 = vmor %vm1142_vm5, %vm1143_vm6 }
  0x13   : > { %v491_v16 = vshrl.u32 %v262_v13, 16  ;;  %v494_v17 = vshll.u32 %v262_v13, 16  ;;  %v500_v18 = vshll.u32 %v263_v14, 16  ;;  %v504_v19 = vshrl.u32 %v263_v14, 16  ;;  %8470 = vmatmul.msk.bf16.vlgmr.msra.gmra.mxu3 %vm732_vm1, %v9560_v12  ;;  %v246_v21 = vld [vmem:[%s9787_s10] sm:$0xf] }
  0x14   : > { %v9796_v22 = vld [vmem:[%s9787_s10 + $0x4] sm:$0xf]  ;;  %v9799_v27 = vld [vmem:[%s9787_s10 + $0x8] sm:$0x1]  ;;  %v512_v28 = vrot.slane %v510_v20, 5  ;;  %v299_v29 = vshrl.u32 %v246_v21, 16 }
  0x15   : > { %v493_v23 = vrot.slane %v491_v16, 4  ;;  %v496_v24 = vrot.slane %v494_v17, 5  ;;  %v502_v25 = vrot.slane %v500_v18, 5  ;;  %v506_v26 = vrot.slane %v504_v19, 4  ;;  %v9552_v32 = vld [vmem:[%s9787_s10] sm:$0xff]  ;;  %v9561_v11 = vld [vmem:[%s9787_s10 + $0x6c] sm:$0xff] }
  0x16   : > { %v302_v30 = vshll.u32 %v246_v21, 16  ;;  %v308_v31 = vshll.u32 %v9796_v22, 16  ;;  %v312_v35 = vshrl.u32 %v9796_v22, 16  ;;  %v318_v36 = vshll.u32 %v9799_v27, 16  ;;  %v265_v38 = vld [vmem:[%s9787_s10 + $0x70] sm:$0xf]  ;;  %8462 = vmatmul.msk.bf16.vlgmr.msra.gmra.mxu1 %vm732_vm1, %v9552_v32 }
  0x17   : > { %v497_v33 = vor.u32 %v496_v24, %v493_v23  ;;  %v507_v34 = vor.u32 %v506_v26, %v502_v25  ;;  %v301_v40 = vrot.slane %v299_v29, 4  ;;  %v518_v49 = vshll.u32 %v264_v37, 16  ;;  %v288_v54 = vld [vmem:[%s9787_s10 + $0x74] sm:$0x1]  ;;  %v248_v0 = vld [vmem:[%s9787_s10 + $0xc] sm:$0xf] }
  0x18   : > { %v304_v41 = vrot.slane %v302_v30, 5  ;;  %v310_v42 = vrot.slane %v308_v31, 5  ;;  %v314_v45 = vrot.slane %v312_v35, 4  ;;  %v320_v46 = vrot.slane %v318_v36, 5  ;;  %v9823_v4 = vld [vmem:[%s9787_s10 + $0x10] sm:$0xf] }
  0x19   : > { %v498_v43 = vrot.slane %v497_v33, 4  ;;  %v508_v44 = vrot.slane %v507_v34, 4  ;;  %v524_v50 = vshll.u32 %v265_v38, 16  ;;  %v528_v55 = vshrl.u32 %v265_v38, 16  ;;  %v9828_v9 = vld [vmem:[%s9787_s10 + $0x14] sm:$0x1] }
  0x1a   : > { %v305_v47 = vor.u32 %v304_v41, %v301_v40  ;;  %v315_v53 = vor.u32 %v314_v45, %v310_v42  ;;  %v517_v59 = vrot.slane %v515_v48, 4  ;;  %v520_v61 = vrot.slane %v518_v49, 5  ;;  %v266_v19 = vld [vmem:[%s9787_s10 + $0x78] sm:$0xf]  ;;  %v9553_v33 = vld [vmem:[%s9787_s10 + $0xc] sm:$0xff] }
  0x1b   : > { %v503_v51 = vsel %vm9809_vm4, %v498_v43, %v502_v25  ;;  %v513_v52 = vsel %vm9809_vm4, %v508_v44, %v512_v28  ;;  %v526_v62 = vrot.slane %v524_v50, 5  ;;  %v530_v63 = vrot.slane %v528_v55, 4  ;;  %v267_v25 = vld [vmem:[%s9787_s10 + $0x7c] sm:$0xf]  ;;  %v250_v41 = vld [vmem:[%s9787_s10 + $0x18] sm:$0xf] }
  0x1c   : > { %v700_v56 = vunpack.c.l.b16 %v503_v51  ;;  %v701_v57 = vunpack.c.l.b16 %v513_v52  ;;  %v306_v58 = vrot.slane %v305_v47, 4  ;;  %v316_v60 = vrot.slane %v315_v53, 4  ;;  %v9846_v45 = vld [vmem:[%s9787_s10 + $0x1c] sm:$0xf]  ;;  %v289_v53 = vld [vmem:[%s9787_s10 + $0x80] sm:$0x1] }
  0x1d   : > { %v534_v3 = vshll.u32 %v288_v54, 16  ;;  %v521_v7 = vor.u32 %v520_v61, %v517_v59  ;;  %v531_v8 = vor.u32 %v530_v63, %v526_v62  ;;  %v323_v13 = vshrl.u32 %v248_v0, 16 }
  0x1e   : > { %v724_v1 = vpack.c.b16 %v701_v57, %v700_v56  ;;  %v311_v2 = vsel %vm9809_vm4, %v306_v58, %v310_v42  ;;  %v321_v5 = vsel %vm9809_vm4, %v316_v60, %v320_v46  ;;  %v326_v14 = vshll.u32 %v248_v0, 16 }
  0x1f   : > { %v684_v6 = vunpack.c.l.b16 %v311_v2  ;;  %v685_v10 = vunpack.c.l.b16 %v321_v5  ;;  %v536_v12 = vrot.slane %v534_v3, 5  ;;  %v522_v15 = vrot.slane %v521_v7, 4  ;;  %v9857_v2 = vld [vmem:[%s9787_s10 + $0x20] sm:$0x1] }
  0x20   : > { %8390 = vmatmul.msk.bf16.vlgmr.msra.gmra.mxu2 %vm732_vm1, %v724_v1  ;;  %v532_v16 = vrot.slane %v531_v8, 4  ;;  %v332_v17 = vshll.u32 %v9823_v4, 16  ;;  %v336_v18 = vshrl.u32 %v9823_v4, 16  ;;  %v325_v21 = vrot.slane %v323_v13, 4 }
  0x21   : > { %v716_v20 = vpack.c.b16 %v685_v10, %v684_v6  ;;  %v328_v23 = vrot.slane %v326_v14, 5  ;;  %v342_v24 = vshll.u32 %v9828_v9, 16  ;;  %v527_v29 = vsel %vm9809_vm4, %v522_v15, %v526_v62  ;;  %v9562_v6 = vld [vmem:[%s9787_s10 + $0x78] sm:$0xff] }
  0x22   : > { %v334_v26 = vrot.slane %v332_v17, 5  ;;  %v338_v28 = vrot.slane %v336_v18, 4  ;;  %v537_v30 = vsel %vm9809_vm4, %v532_v16, %v536_v12  ;;  %v539_v35 = vshrl.u32 %v266_v19, 16  ;;  %v269_v12 = vld [vmem:[%s9787_s10 + $0x88] sm:$0xf] }
  0x23   : > { %8382 = vmatmul.msk.bf16.vlgmr.msra.gmra.mxu0 %vm732_vm1, %v716_v20  ;;  %8471 = vmatmul.msk.bf16.gmra.mxu3 %vm732_vm1, %v9561_v11  ;;  %v329_v31 = vor.u32 %v328_v23, %v325_v21  ;;  %v344_v32 = vrot.slane %v342_v24, 5  ;;  %v542_v36 = vshll.u32 %v266_v19, 16  ;;  %v548_v37 = vshll.u32 %v267_v25, 16  ;;  %v268_v11 = vld [vmem:[%s9787_s10 + $0x84] sm:$0xf]  ;;  %v9554_v24 = vld [vmem:[%s9787_s10 + $0x18] sm:$0xff] }
  0x24   : > { %v339_v34 = vor.u32 %v338_v28, %v334_v26  ;;  %v552_v40 = vshrl.u32 %v267_v25, 16  ;;  %v702_v42 = vunpack.c.l.b16 %v527_v29  ;;  %v703_v43 = vunpack.c.l.b16 %v537_v30  ;;  %v252_v28 = vld [vmem:[%s9787_s10 + $0x24] sm:$0xf]  ;;  %v9873_v29 = vld [vmem:[%s9787_s10 + $0x28] sm:$0xf] }
  0x25   : > { %v330_v38 = vrot.slane %v329_v31, 4  ;;  %v541_v47 = vrot.slane %v539_v35, 4  ;;  %v544_v48 = vrot.slane %v542_v36, 5  ;;  %v550_v50 = vrot.slane %v548_v37, 5 }
  0x26   : > { %v340_v44 = vrot.slane %v339_v34, 4  ;;  %8463 = vmatmul.msk.bf16.gmra.mxu1 %vm732_vm1, %v9553_v33  ;;  %v554_v51 = vrot.slane %v552_v40, 4  ;;  %v347_v52 = vshrl.u32 %v250_v41, 16  ;;  %v350_v54 = vshll.u32 %v250_v41, 16 }
  0x27   : > { %v335_v46 = vsel %vm9809_vm4, %v330_v38, %v334_v26  ;;  %v356_v55 = vshll.u32 %v9846_v45, 16  ;;  %v725_v56 = vpack.c.b16 %v703_v43, %v702_v42  ;;  %v360_v58 = vshrl.u32 %v9846_v45, 16  ;;  %v290_v38 = vld [vmem:[%s9787_s10 + $0x8c] sm:$0x1] }
  0x28   : > { %v345_v49 = vsel %vm9809_vm4, %v340_v44, %v344_v32  ;;  %v686_v57 = vunpack.c.l.b16 %v335_v46  ;;  %v349_v60 = vrot.slane %v347_v52, 4  ;;  %v352_v61 = vrot.slane %v350_v54, 5 }
  0x29   : > { %v687_v59 = vunpack.c.l.b16 %v345_v49  ;;  %v358_v62 = vrot.slane %v356_v55, 5  ;;  %v545_v63 = vor.u32 %v544_v48, %v541_v47  ;;  %v555_v0 = vor.u32 %v554_v51, %v550_v50  ;;  %v9884_v55 = vld [vmem:[%s9787_s10 + $0x2c] sm:$0x1] }
  0x2a   : > { %v558_v1 = vshll.u32 %v289_v53, 16  ;;  %v362_v3 = vrot.slane %v360_v58, 4  ;;  %v353_v7 = vor.u32 %v352_v61, %v349_v60  ;;  %v366_v10 = vshll.u32 %v9857_v2, 16  ;;  %v9563_v60 = vld [vmem:[%s9787_s10 + $0x84] sm:$0xff] }
  0x2b   : > { %v717_v5 = vpack.c.b16 %v687_v59, %v686_v57  ;;  %v546_v13 = vrot.slane %v545_v63, 4  ;;  %v556_v14 = vrot.slane %v555_v0, 4  ;;  %v563_v16 = vshrl.u32 %v268_v11, 16  ;;  %v270_v0 = vld [vmem:[%s9787_s10 + $0x90] sm:$0xf] }
  0x2c   : > { %v363_v8 = vor.u32 %v362_v3, %v358_v62  ;;  %v560_v15 = vrot.slane %v558_v1, 5  ;;  %v566_v17 = vshll.u32 %v268_v11, 16  ;;  %v572_v18 = vshll.u32 %v269_v12, 16  ;;  %v271_v1 = vld [vmem:[%s9787_s10 + $0x94] sm:$0xf] }
  0x2d   : > { %v576_v19 = vshrl.u32 %v269_v12, 16  ;;  %v354_v20 = vrot.slane %v353_v7, 4  ;;  %v368_v23 = vrot.slane %v366_v10, 5  ;;  %v551_v25 = vsel %vm9809_vm4, %v546_v13, %v550_v50  ;;  %v254_v7 = vld [vmem:[%s9787_s10 + $0x30] sm:$0xf] }
  0x2e   : > { %v364_v21 = vrot.slane %v363_v8, 4  ;;  %v561_v26 = vsel %vm9809_vm4, %v556_v14, %v560_v15  ;;  %v565_v30 = vrot.slane %v563_v16, 4  ;;  %v568_v31 = vrot.slane %v566_v17, 5  ;;  %v9900_v13 = vld [vmem:[%s9787_s10 + $0x34] sm:$0xf] }
  0x2f   : > { %v574_v32 = vrot.slane %v572_v18, 5  ;;  %v578_v33 = vrot.slane %v576_v19, 4  ;;  %v704_v34 = vunpack.c.l.b16 %v551_v25  ;;  %v705_v35 = vunpack.c.l.b16 %v561_v26  ;;  %v291_v19 = vld [vmem:[%s9787_s10 + $0x98] sm:$0x1] }
  0x30   : > { %8391 = vmatmul.msk.bf16.gmra.mxu2 %vm732_vm1, %v725_v56  ;;  %v359_v36 = vsel %vm9809_vm4, %v354_v20, %v358_v62  ;;  %v369_v37 = vsel %vm9809_vm4, %v364_v21, %v368_v23  ;;  %v371_v40 = vshrl.u32 %v252_v28, 16  ;;  %v374_v41 = vshll.u32 %v252_v28, 16 }
  0x31   : > { %v380_v42 = vshll.u32 %v9873_v29, 16  ;;  %v384_v43 = vshrl.u32 %v9873_v29, 16  ;;  %v569_v44 = vor.u32 %v568_v31, %v565_v30  ;;  %v579_v46 = vor.u32 %v578_v33, %v574_v32 }
  0x32   : > { %v582_v47 = vshll.u32 %v290_v38, 16  ;;  %v726_v48 = vpack.c.b16 %v705_v35, %v704_v34  ;;  %v688_v49 = vunpack.c.l.b16 %v359_v36  ;;  %v689_v50 = vunpack.c.l.b16 %v369_v37 }
  0x33   : > { %8383 = vmatmul.msk.bf16.gmra.mxu0 %vm732_vm1, %v717_v5  ;;  %8472 = vmatmul.msk.bf16.gmra.mxu3 %vm732_vm1, %v9562_v6  ;;  %v373_v51 = vrot.slane %v371_v40, 4  ;;  %v376_v52 = vrot.slane %v374_v41, 5  ;;  %v382_v53 = vrot.slane %v380_v42, 5  ;;  %v386_v54 = vrot.slane %v384_v43, 4  ;;  %v9555_v6 = vld [vmem:[%s9787_s10 + $0x24] sm:$0xff] }
  0x34   : > { %v570_v56 = vrot.slane %v569_v44, 4  ;;  %v580_v57 = vrot.slane %v579_v46, 4  ;;  %v584_v58 = vrot.slane %v582_v47, 5  ;;  %v718_v59 = vpack.c.b16 %v689_v50, %v688_v49  ;;  %v9911_v44 = vld [vmem:[%s9787_s10 + $0x38] sm:$0x1]  ;;  %v9564_v50 = vld [vmem:[%s9787_s10 + $0x90] sm:$0xff] }
  0x35   : > { %v377_v61 = vor.u32 %v376_v52, %v373_v51  ;;  %v387_v62 = vor.u32 %v386_v54, %v382_v53  ;;  %v390_v63 = vshll.u32 %v9884_v55, 16  ;;  %v587_v8 = vshrl.u32 %v270_v0, 16  ;;  %v272_v54 = vld [vmem:[%s9787_s10 + $0x9c] sm:$0xf] }
  0x36   : > { %8464 = vmatmul.msk.bf16.gmra.mxu1 %vm732_vm1, %v9554_v24  ;;  %v575_v3 = vsel %vm9809_vm4, %v570_v56, %v574_v32  ;;  %v585_v5 = vsel %vm9809_vm4, %v580_v57, %v584_v58  ;;  %v590_v10 = vshll.u32 %v270_v0, 16  ;;  %v596_v11 = vshll.u32 %v271_v1, 16  ;;  %v273_v56 = vld [vmem:[%s9787_s10 + $0xa0] sm:$0xf] }
  0x37   : > { %v600_v12 = vshrl.u32 %v271_v1, 16  ;;  %v378_v14 = vrot.slane %v377_v61, 4  ;;  %v388_v15 = vrot.slane %v387_v62, 4  ;;  %v392_v16 = vrot.slane %v390_v63, 5  ;;  %v9556_v62 = vld [vmem:[%s9787_s10 + $0x30] sm:$0xff] }
  0x38   : > { %v706_v17 = vunpack.c.l.b16 %v575_v3  ;;  %v707_v18 = vunpack.c.l.b16 %v585_v5  ;;  %v395_v20 = vshrl.u32 %v254_v7, 16  ;;  %v398_v21 = vshll.u32 %v254_v7, 16  ;;  %v256_v5 = vld [vmem:[%s9787_s10 + $0x3c] sm:$0xf] }
  0x39   : > { %v404_v23 = vshll.u32 %v9900_v13, 16  ;;  %v408_v24 = vshrl.u32 %v9900_v13, 16  ;;  %v589_v25 = vrot.slane %v587_v8, 4  ;;  %v592_v26 = vrot.slane %v590_v10, 5 }
  0x3a   : > { %v598_v28 = vrot.slane %v596_v11, 5  ;;  %v602_v30 = vrot.slane %v600_v12, 4  ;;  %v383_v31 = vsel %vm9809_vm4, %v378_v14, %v382_v53  ;;  %v393_v32 = vsel %vm9809_vm4, %v388_v15, %v392_v16 }
  0x3b   : > { %v727_v33 = vpack.c.b16 %v707_v18, %v706_v17  ;;  %v606_v34 = vshll.u32 %v291_v19, 16  ;;  %v397_v35 = vrot.slane %v395_v20, 4  ;;  %v400_v36 = vrot.slane %v398_v21, 5  ;;  %v292_v21 = vld [vmem:[%s9787_s10 + $0xa4] sm:$0x1] }
  0x3c   : > { %v406_v37 = vrot.slane %v404_v23, 5  ;;  %v410_v38 = vrot.slane %v408_v24, 4  ;;  %v690_v40 = vunpack.c.l.b16 %v383_v31  ;;  %v691_v41 = vunpack.c.l.b16 %v393_v32 }
  0x3d   : > { %v593_v42 = vor.u32 %v592_v26, %v589_v25  ;;  %v603_v43 = vor.u32 %v602_v30, %v598_v28  ;;  %v401_v46 = vor.u32 %v400_v36, %v397_v35  ;;  %v608_v53 = vrot.slane %v606_v34, 5  ;;  %v9938_v35 = vld [vmem:[%s9787_s10 + $0x44] sm:$0x1] }
  0x3e   : > { %v411_v47 = vor.u32 %v410_v38, %v406_v37  ;;  %v719_v49 = vpack.c.b16 %v691_v41, %v690_v40  ;;  %v611_v63 = vshrl.u32 %v272_v54, 16  ;;  %v614_v0 = vshll.u32 %v272_v54, 16 }
  0x3f   : > { %v594_v51 = vrot.slane %v593_v42, 4  ;;  %v604_v52 = vrot.slane %v603_v43, 4  ;;  %v402_v57 = vrot.slane %v401_v46, 4  ;;  %v620_v1 = vshll.u32 %v273_v56, 16  ;;  %v274_v42 = vld [vmem:[%s9787_s10 + $0xa8] sm:$0xf] }
  0x40   : > { %8392 = vmatmul.msk.bf16.gmra.mxu2 %vm732_vm1, %v726_v48  ;;  %v414_v48 = vshll.u32 %v9911_v44, 16  ;;  %v412_v58 = vrot.slane %v411_v47, 4  ;;  %v624_v3 = vshrl.u32 %v273_v56, 16  ;;  %v419_v12 = vshrl.u32 %v256_v5, 16  ;;  %v275_v43 = vld [vmem:[%s9787_s10 + $0xac] sm:$0xf] }
  0x41   : > { %v609_v61 = vsel %vm9809_vm4, %v604_v52, %v608_v53  ;;  %v407_v10 = vsel %vm9809_vm4, %v402_v57, %v406_v37  ;;  %v422_v14 = vshll.u32 %v256_v5, 16  ;;  %v613_v17 = vrot.slane %v611_v63, 4  ;;  %v9565_v37 = vld [vmem:[%s9787_s10 + $0x9c] sm:$0xff] }
  0x42   : > { %v709_v8 = vunpack.c.l.b16 %v609_v61  ;;  %v616_v18 = vrot.slane %v614_v0, 5  ;;  %v622_v19 = vrot.slane %v620_v1, 5  ;;  %v626_v20 = vrot.slane %v624_v3, 4  ;;  %v9557_v57 = vld [vmem:[%s9787_s10 + $0x3c] sm:$0xff]  ;;  %v9954_v61 = vld [vmem:[%s9787_s10 + $0x4c] sm:$0xf] }
  0x43   : > { %8384 = vmatmul.msk.bf16.gmra.mxu0 %vm732_vm1, %v718_v59  ;;  %8473 = vmatmul.msk.bf16.gmra.mxu3 %vm732_vm1, %v9563_v60  ;;  %v416_v59 = vrot.slane %v414_v48, 5  ;;  %v599_v60 = vsel %vm9809_vm4, %v594_v51, %v598_v28  ;;  %v692_v24 = vunpack.c.l.b16 %v407_v10  ;;  %v421_v26 = vrot.slane %v419_v12, 4  ;;  %v293_v10 = vld [vmem:[%s9787_s10 + $0xb0] sm:$0x1] }
  0x44   : > { %v708_v7 = vunpack.c.l.b16 %v599_v60  ;;  %v424_v28 = vrot.slane %v422_v14, 5  ;;  %v617_v32 = vor.u32 %v616_v18, %v613_v17  ;;  %v630_v34 = vshll.u32 %v292_v21, 16  ;;  %v258_v60 = vld [vmem:[%s9787_s10 + $0x48] sm:$0xf] }
  0x45   : > { %v417_v11 = vsel %vm9809_vm4, %v412_v58, %v416_v59  ;;  %v438_v41 = vshll.u32 %v9938_v35, 16  ;;  %v644_v51 = vshll.u32 %v275_v43, 16  ;;  %v648_v52 = vshrl.u32 %v275_v43, 16 }
  0x46   : > { %8465 = vmatmul.msk.bf16.gmra.mxu1 %vm732_vm1, %v9555_v6  ;;  %v9927_v6 = vld [vmem:[%s9787_s10 + $0x40] sm:$0xf]  ;;  %v728_v23 = vpack.c.b16 %v709_v8, %v708_v7  ;;  %v693_v25 = vunpack.c.l.b16 %v417_v11  ;;  %v425_v38 = vor.u32 %v424_v28, %v421_v26  ;;  %v618_v46 = vrot.slane %v617_v32, 4  ;;  %v9965_v28 = vld [vmem:[%s9787_s10 + $0x50] sm:$0x1] }
  0x47   : > { %v428_v15 = vshll.u32 %v9927_v6, 16  ;;  %v432_v16 = vshrl.u32 %v9927_v6, 16  ;;  %v632_v48 = vrot.slane %v630_v34, 5  ;;  %v440_v56 = vrot.slane %v438_v41, 5  ;;  %v277_v41 = vld [vmem:[%s9787_s10 + $0xb8] sm:$0xf] }
  0x48   : > { %v720_v36 = vpack.c.b16 %v693_v25, %v692_v24  ;;  %v426_v53 = vrot.slane %v425_v38, 4  ;;  %v623_v58 = vsel %vm9809_vm4, %v618_v46, %v622_v19  ;;  %v646_v0 = vrot.slane %v644_v51, 5  ;;  %v260_v51 = vld [vmem:[%s9787_s10 + $0x54] sm:$0xf] }
  0x49   : > { %v430_v30 = vrot.slane %v428_v15, 5  ;;  %v434_v31 = vrot.slane %v432_v16, 4  ;;  %v650_v1 = vrot.slane %v648_v52, 4  ;;  %v710_v3 = vunpack.c.l.b16 %v623_v58  ;;  %v9981_v52 = vld [vmem:[%s9787_s10 + $0x58] sm:$0xf] }
  0x4a   : > { %v443_v11 = vshrl.u32 %v258_v60, 16  ;;  %v446_v12 = vshll.u32 %v258_v60, 16  ;;  %v452_v14 = vshll.u32 %v9954_v61, 16  ;;  %v456_v15 = vshrl.u32 %v9954_v61, 16 }
  0x4b   : > { %v435_v40 = vor.u32 %v434_v31, %v430_v30  ;;  %v431_v7 = vsel %vm9809_vm4, %v426_v53, %v430_v30  ;;  %v651_v17 = vor.u32 %v650_v1, %v646_v0  ;;  %v654_v18 = vshll.u32 %v293_v10, 16  ;;  %v294_v10 = vld [vmem:[%s9787_s10 + $0xbc] sm:$0x1] }
  0x4c   : > { %v448_v24 = vrot.slane %v446_v12, 5  ;;  %v454_v25 = vrot.slane %v452_v14, 5  ;;  %v458_v26 = vrot.slane %v456_v15, 4  ;;  %v480_v1 = vshrl.u32 %v9981_v52, 16 }
  0x4d   : > { %v436_v54 = vrot.slane %v435_v40, 4  ;;  %v652_v31 = vrot.slane %v651_v17, 4  ;;  %v656_v32 = vrot.slane %v654_v18, 5  ;;  %v462_v40 = vshll.u32 %v9965_v28, 16 }
  0x4e   : > { %v459_v38 = vor.u32 %v458_v26, %v454_v25  ;;  %v482_v17 = vrot.slane %v480_v1, 4 }
  0x4f   : > { %v441_v8 = vsel %vm9809_vm4, %v436_v54, %v440_v56  ;;  %v464_v56 = vrot.slane %v462_v40, 5 }
  0x50   : > { %8393 = vmatmul.msk.bf16.gmra.mxu2 %vm732_vm1, %v727_v33  ;;  %v627_v33 = vor.u32 %v626_v20, %v622_v19  ;;  %v694_v20 = vunpack.c.l.b16 %v431_v7  ;;  %v695_v21 = vunpack.c.l.b16 %v441_v8  ;;  %v460_v54 = vrot.slane %v459_v38, 4 }
  0x52   : > { %v628_v47 = vrot.slane %v627_v33, 4  ;;  %v276_v33 = vld [vmem:[%s9787_s10 + $0xb4] sm:$0xf]  ;;  %v721_v34 = vpack.c.b16 %v695_v21, %v694_v20  ;;  %v465_v8 = vsel %vm9809_vm4, %v460_v54, %v464_v56  ;;  %v678_v21 = vshll.u32 %v294_v10, 16  ;;  %v8689_v54 = vld [vmem:[%s9787_s10 + $0xc] sm:$0xe] }
  0x53   : > { %8385 = vmatmul.msk.bf16.gmra.mxu0 %vm732_vm1, %v719_v49  ;;  %8474 = vmatmul.msk.bf16.gmra.mxu3 %vm732_vm1, %v9564_v50  ;;  %v635_v49 = vshrl.u32 %v274_v42, 16  ;;  %v638_v50 = vshll.u32 %v274_v42, 16  ;;  %v659_v42 = vshrl.u32 %v276_v33, 16  ;;  %v662_v43 = vshll.u32 %v276_v33, 16 }
  0x54   : > { %v633_v59 = vsel %vm9809_vm4, %v628_v47, %v632_v48  ;;  %v657_v47 = vsel %vm9809_vm4, %v652_v31, %v656_v32  ;;  %v9558_v48 = vld [vmem:[%s9787_s10 + $0x48] sm:$0xff]  ;;  %v9567_v32 = vld [vmem:[%s9787_s10 + $0xb4] sm:$0xff]  ;;  %v8705_v1 = vrot.slane %v8689_v54, 9 }
  0x55   : > { %v640_v63 = vrot.slane %v638_v50, 5  ;;  %v711_v5 = vunpack.c.l.b16 %v633_v59  ;;  %v672_v50 = vshrl.u32 %v277_v41, 16  ;;  %v713_v58 = vunpack.c.l.b16 %v657_v47  ;;  %v8624_v47 = vld [vmem:[%s9787_s10 + $0xc] sm:$0xf] }
  0x56   : > { %8466 = vmatmul.msk.bf16.gmra.mxu1 %vm732_vm1, %v9556_v62  ;;  %v637_v62 = vrot.slane %v635_v49, 4  ;;  %v668_v49 = vshll.u32 %v277_v41, 16  ;;  %v661_v59 = vrot.slane %v659_v42, 4  ;;  %v664_v60 = vrot.slane %v662_v43, 5  ;;  %v9559_v42 = vld [vmem:[%s9787_s10 + $0x54] sm:$0xff] }
  0x57   : > { %v729_v19 = vpack.c.b16 %v711_v5, %v710_v3  ;;  %v674_v5 = vrot.slane %v672_v50, 4 }
  0x58   : > { %v641_v16 = vor.u32 %v640_v63, %v637_v62  ;;  %v467_v62 = vshrl.u32 %v260_v51, 16  ;;  %v470_v63 = vshll.u32 %v260_v51, 16  ;;  %v670_v3 = vrot.slane %v668_v49, 5  ;;  %v8899_v49 = vld [vmem:[%s12961_s2 + $0xe] sm:$0x3] }
  0x59   : > { %v665_v12 = vor.u32 %v664_v60, %v661_v59  ;;  %v3636_v50 = vsel %vm781_vm0, %v8899_v49, 0  ;;  %v1815_v59 = vshrl.u32 %v8624_v47, 16  ;;  %v8626_v60 = vld [vmem:[%s9787_s10 + $0x14] sm:$0x1] }
  0x5a   : > { %v642_v30 = vrot.slane %v641_v16, 4  ;;  %v469_v14 = vrot.slane %v467_v62, 4  ;;  %v472_v15 = vrot.slane %v470_v63, 5  ;;  %v675_v20 = vor.u32 %v674_v5, %v670_v3  ;;  %3645 = vmatpush.bf16.msra.mxu3 %v3636_v50 }
  0x5b   : > { %v1818_v62 = vshll.u32 %v8624_v47, 16  ;;  %v2489_v5 = vrot.slane %v8626_v60, 5  ;;  %v8628_v47 = vld [vmem:[%s9787_s10 + $0x1c] sm:$0xf] }
  0x5c   : > { %v647_v46 = vsel %vm9809_vm4, %v642_v30, %v646_v0  ;;  %v476_v0 = vshll.u32 %v9981_v52, 16  ;;  %v676_v33 = vrot.slane %v675_v20, 4  ;;  %v1094_v20 = vld [vmem:[%s9787_s10] sm:$0xe] }
  0x5e   : > { %v478_v16 = vrot.slane %v476_v0, 5 }
  0x60   : > { %8394 = vmatmul.msk.bf16.gmra.mxu2 %vm732_vm1, %v728_v23  ;;  %v445_v23 = vrot.slane %v443_v11, 4  ;;  %v483_v26 = vor.u32 %v482_v17, %v478_v16  ;;  %v1820_v17 = vrot.slane %v1818_v62, 5 }
  0x62   : > { %v484_v40 = vrot.slane %v483_v26, 4 }
  0x63   : > { %8386 = vmatmul.msk.bf16.gmra.mxu0 %vm732_vm1, %v720_v36  ;;  %8475 = vmatmul.msk.bf16.gmra.mxu3 %vm732_vm1, %v9565_v37  ;;  %v9566_v36 = vld [vmem:[%s9787_s10 + $0xa8] sm:$0xff]  ;;  %v449_v37 = vor.u32 %v448_v24, %v445_v23  ;;  %v9992_v23 = vld [vmem:[%s9787_s10 + $0x5c] sm:$0x1]  ;;  %v666_v24 = vrot.slane %v665_v12, 4 }
  0x64   : > { %v486_v30 = vshll.u32 %v9992_v23, 16 }
  0x65   : > { %v450_v53 = vrot.slane %v449_v37, 4  ;;  %v8770_v37 = vld [vmem:[%s12961_s2 + $0xc] sm:$0x3] }
  0x66   : > { %8467 = vmatmul.msk.bf16.gmra.mxu1 %vm732_vm1, %v9557_v57  ;;  %v712_v57 = vunpack.c.l.b16 %v647_v46  ;;  %v488_v41 = vrot.slane %v486_v30, 5  ;;  %v2982_v43 = vsel %vm781_vm0, %v8770_v37, 0  ;;  %v9568_v30 = vld [vmem:[%s9787_s10 + $0xc] sm:$0xff] }
  0x67   : > { %v455_v7 = vsel %vm9809_vm4, %v450_v53, %v454_v25  ;;  %v473_v25 = vor.u32 %v472_v15, %v469_v14  ;;  %2991 = vmatpush.bf16.msra.mxu2 %v2982_v43  ;;  %v1147_v15 = vrot.slane %v9796_v22, 5 }
  0x68   : > { %v730_v11 = vpack.c.b16 %v713_v58, %v712_v57  ;;  %v696_v18 = vunpack.c.l.b16 %v455_v7  ;;  %v489_v58 = vsel %vm9809_vm4, %v484_v40, %v488_v41  ;;  %v8948_v7 = vld [vmem:[%s12961_s2 + $0x10] sm:$0x3]  ;;  %v1834_v40 = vshll.u32 %v8626_v60, 16 }
  0x69   : > { %v474_v38 = vrot.slane %v473_v25, 4  ;;  %v4034_v12 = vsel %vm781_vm0, %v8948_v7, 0  ;;  %v1149_v37 = vrot.slane %v1147_v15, 4 }
  0x6a   : > { %4043 = vmatpush.bf16.msra.mxu0 %v4034_v12  ;;  %v1836_v50 = vrot.slane %v1834_v40, 5 }
  0x6b   : > { %v479_v57 = vsel %vm9809_vm4, %v474_v38, %v478_v16  ;;  %v1817_v16 = vrot.slane %v1815_v59, 4  ;;  %v1852_v59 = vshrl.u32 %v8628_v47, 16 }
  0x6c   : > { %v698_v10 = vunpack.c.l.b16 %v479_v57 }
  0x6d   : > { %v1854_v12 = vrot.slane %v1852_v59, 4 }
  0x70   : > { %8395 = vmatmul.msk.bf16.gmra.mxu2 %vm732_vm1, %v729_v19  ;;  %v697_v19 = vunpack.c.l.b16 %v465_v8 }
  0x72   : > { %v722_v31 = vpack.c.b16 %v697_v19, %v696_v18  ;;  %v4189_v19 = vld [vmem:[%s12962_s3] sm:$0x3] }
  0x73   : > { %8387 = vmatmul.msk.bf16.gmra.mxu0 %vm732_vm1, %v721_v34  ;;  %8476 = vmatmul.msk.bf16.gmra.mxu3 %vm732_vm1, %v9566_v36  ;;  %v680_v34 = vrot.slane %v678_v21, 5  ;;  %v671_v36 = vsel %vm9809_vm4, %v666_v24, %v670_v3  ;;  %v4319_v26 = vsel %vm781_vm0, %v4189_v19, 0 }
  0x74   : > { %v714_v53 = vunpack.c.l.b16 %v671_v36  ;;  %4328 = vmatpush.bf16.msra.mxu1 %v4319_v26  ;;  %v1150_v36 = vrot.slane %v9799_v27, 5 }
  0x75   : > { %v681_v46 = vsel %vm9809_vm4, %v676_v33, %v680_v34 }
  0x76   : > { %8468 = vmatmul.msk.bf16.gmra.mxu1 %vm732_vm1, %v9558_v48  ;;  %v8625_v48 = vld [vmem:[%s9787_s10 + $0x10] sm:$0xf]  ;;  %v715_v56 = vunpack.c.l.b16 %v681_v46  ;;  %v8627_v46 = vld [vmem:[%s9787_s10 + $0x18] sm:$0xf]  ;;  %v1151_v27 = vsel %vm10025_vm7, %v1149_v37, %v1150_v36 }
  0x77   : > { %v2486_v51 = vrot.slane %v8625_v48, 5  ;;  %v1824_v63 = vshll.u32 %v8625_v48, 16  ;;  %v1828_v0 = vshrl.u32 %v8625_v48, 16  ;;  %v1842_v57 = vshll.u32 %v8627_v46, 16 }
  0x78   : > { %v731_v8 = vpack.c.b16 %v715_v56, %v714_v53  ;;  %v8690_v53 = vld [vmem:[%s9787_s10 + $0x18] sm:$0xe]  ;;  %v1839_v56 = vshrl.u32 %v8627_v46, 16  ;;  %v1260_v62 = vunpack.c.l.b16 %v1151_v27 }
  0x79   : > { %v2488_v3 = vrot.slane %v2486_v51, 4  ;;  %v1826_v18 = vrot.slane %v1824_v63, 5  ;;  %v1830_v21 = vrot.slane %v1828_v0, 4  ;;  %v2487_v24 = vsel %vm10025_vm7, %v8705_v1, %v2486_v51  ;;  %v8629_v0 = vld [vmem:[%s9787_s10 + $0x20] sm:$0x1] }
  0x7a   : > { %v2598_v33 = vunpack.c.l.b16 %v2487_v24  ;;  %v2493_v51 = vrot.slane %v8628_v47, 5  ;;  %v2496_v7 = vrot.slane %v8629_v0, 5  ;;  %v1095_v24 = vld [vmem:[%s9787_s10 + $0xc] sm:$0xe] }
  0x7b   : > { %v2490_v25 = vsel %vm10025_vm7, %v2488_v3, %v2489_v5  ;;  %v1831_v38 = vor.u32 %v1830_v21, %v1826_v18  ;;  %v8706_v3 = vrot.slane %v8690_v53, 9  ;;  %v8479_v36 = vrot.slane %v1095_v24, 9 }
  0x7c   : > { %v2599_v34 = vunpack.c.l.b16 %v2490_v25  ;;  %v2495_v5 = vrot.slane %v2493_v51, 4 }
  0x7d   : > { %v1832_v49 = vrot.slane %v1831_v38, 4  ;;  %v1157_v38 = vrot.slane %v9828_v9, 5 }
  0x7e   : > { %v2630_v43 = vpack.c.b16 %v2599_v34, %v2598_v33  ;;  %v2497_v21 = vsel %vm10025_vm7, %v2495_v5, %v2496_v7 }
  0x7f   : > { %v1837_v1 = vsel %vm9809_vm4, %v1832_v49, %v1836_v50  ;;  %v2601_v34 = vunpack.c.l.b16 %v2497_v21  ;;  %v8630_v49 = vld [vmem:[%s9787_s10 + $0x24] sm:$0xf]  ;;  %v8631_v50 = vld [vmem:[%s9787_s10 + $0x28] sm:$0xf] }
  0x80   : > { %8396 = vmatmul.msk.bf16.gmra.mxu2 %vm732_vm1, %v730_v11  ;;  %v699_v11 = vunpack.c.l.b16 %v489_v58  ;;  %v1848_v58 = vshll.u32 %v8628_v47, 16  ;;  %v2500_v53 = vrot.slane %v8631_v50, 5  ;;  %v1863_v59 = vshrl.u32 %v8630_v49, 16 }
  0x82   : > { %v723_v22 = vpack.c.b16 %v699_v11, %v698_v10  ;;  %v1844_v10 = vrot.slane %v1842_v57, 5  ;;  %v1850_v11 = vrot.slane %v1848_v58, 5 }
  0x83   : > { %8388 = vmatmul.msk.bf16.gmra.mxu0 %vm732_vm1, %v722_v31  ;;  %8477 = vmatmul.msk.bf16.gmra.mxu3 %vm732_vm1, %v9567_v32  ;;  %v8478_v31 = vrot.slane %v1094_v20, 9  ;;  %v1821_v32 = vor.u32 %v1820_v17, %v1817_v16  ;;  %v2201_v17 = vunpack.c.l.b16 %v1837_v1  ;;  %v2494_v20 = vsel %vm10025_vm7, %v8706_v3, %v2493_v51 }
  0x84   : > { %v2600_v33 = vunpack.c.l.b16 %v2494_v20  ;;  %v1872_v1 = vshll.u32 %v8631_v50, 16  ;;  %v1876_v3 = vshrl.u32 %v8631_v50, 16 }
  0x85   : > { %v1148_v41 = vsel %vm10025_vm7, %v8478_v31, %v1147_v15 }
  0x86   : > { %8469 = vmatmul.msk.bf16.gmra.mxu1 %vm732_vm1, %v9559_v42  ;;  %v1822_v42 = vrot.slane %v1821_v32, 4  ;;  %v1259_v60 = vunpack.c.l.b16 %v1148_v41  ;;  %v9569_v32 = vld [vmem:[%s9787_s10 + $0x18] sm:$0xff]  ;;  %v2631_v27 = vpack.c.b16 %v2601_v34, %v2600_v33 }
  0x88   : > { %v1827_v63 = vsel %vm9809_vm4, %v1822_v42, %v1826_v18  ;;  %v1291_v15 = vpack.c.b16 %v1260_v62, %v1259_v60  ;;  %v1154_v18 = vrot.slane %v9823_v4, 5  ;;  %v1866_v60 = vshll.u32 %v8630_v49, 16 }
  0x89   : > { %v2200_v16 = vunpack.c.l.b16 %v1827_v63 }
  0x8a   : > { %v1156_v37 = vrot.slane %v1154_v18, 4  ;;  %v1155_v9 = vsel %vm10025_vm7, %v8479_v36, %v1154_v18  ;;  %v1865_v18 = vrot.slane %v1863_v59, 4  ;;  %v1868_v20 = vrot.slane %v1866_v60, 5 }
  0x8b   : > { %v2232_v31 = vpack.c.b16 %v2201_v17, %v2200_v16  ;;  %v1261_v62 = vunpack.c.l.b16 %v1155_v9  ;;  %v1161_v17 = vrot.slane %v9846_v45, 5  ;;  %v1164_v36 = vrot.slane %v9857_v2, 5 }
  0x8d   : > { %v1163_v45 = vrot.slane %v1161_v17, 4 }
  0x8f   : > { %v1165_v2 = vsel %vm10025_vm7, %v1163_v45, %v1164_v36 }
  0x90   : > { %8397 = vmatmul.msk.bf16.gmra.mxu2 %vm732_vm1, %v731_v8  ;;  %v1841_v8 = vrot.slane %v1839_v56, 4  ;;  %v8691_v56 = vld [vmem:[%s9787_s10 + $0x24] sm:$0xe] }
  0x91   : > { %v8707_v7 = vrot.slane %v8691_v56, 9 }
  0x92   : > { %v1845_v26 = vor.u32 %v1844_v10, %v1841_v8  ;;  %v2502_v8 = vrot.slane %v2500_v53, 4 }
  0x93   : > { %8389 = vmatmul.msk.bf16.gmra.mxu0 %vm732_vm1, %v723_v22  ;;  %8608 = vmatmul.msk.bf16.vlgmr.msrb.gmra.mxu3 %vm732_vm1, %v9568_v30  ;;  %v1014_v48 = vpop.f32.mrf.mxu1  ;;  %v1855_v22 = vor.u32 %v1854_v12, %v1850_v11  ;;  %v1858_v30 = vshll.u32 %v8629_v0, 16  ;;  %v8632_v0 = vld [vmem:[%s9787_s10 + $0x2c] sm:$0x1] }
  0x94   : > { %v1846_v42 = vrot.slane %v1845_v26, 4  ;;  %v2503_v10 = vrot.slane %v8632_v0, 5  ;;  %v1096_v26 = vld [vmem:[%s9787_s10 + $0x18] sm:$0xe] }
  0x95   : > { %v1860_v46 = vrot.slane %v1858_v30, 5  ;;  %v1878_v30 = vrot.slane %v1876_v3, 4 }
  0x96   : > { %v1054_v54 = vpop.f32.mrf.mxu3  ;;  %8722 = vmatmul.msk.bf16.vlgmr.msrb.gmra.mxu1 %vm732_vm1, %v2630_v43  ;;  %v1856_v43 = vrot.slane %v1855_v22, 4  ;;  %v1874_v22 = vrot.slane %v1872_v1, 5  ;;  %v1264_v1 = vunpack.c.l.b16 %v1165_v2 }
  0x98   : > { %v1861_v58 = vsel %vm9809_vm4, %v1856_v43, %v1860_v46 }
  0x9b   : > { %v1016_v19 = vpop.f32.mrf.mxu1 }
  0x9e   : > { %v1056_v25 = vpop.f32.mrf.mxu3 }
  0xa0   : > { %8495 = vmatmul.msk.bf16.vlgmr.msrb.gmra.mxu2 %vm732_vm1, %v1291_v15  ;;  %v794_v4 = vpop.f32.mrf.mxu0  ;;  %v2203_v15 = vunpack.c.l.b16 %v1861_v58  ;;  %v8634_v58 = vld [vmem:[%s9787_s10 + $0x34] sm:$0xf] }
  0xa1   : > { %v10066_v40 = vadd.f32 %v1014_v48, %v794_v4  ;;  %v1158_v48 = vsel %vm10025_vm7, %v1156_v37, %v1157_v38  ;;  %v8480_v4 = vrot.slane %v1096_v26, 9  ;;  %v1869_v37 = vor.u32 %v1868_v20, %v1865_v18 }
  0xa2   : > { %v1262_v63 = vunpack.c.l.b16 %v1158_v48  ;;  %v1879_v38 = vor.u32 %v1878_v30, %v1874_v22  ;;  %v2507_v60 = vrot.slane %v8634_v58, 5 }
  0xa3   : > { %v834_v41 = vpop.f32.mrf.mxu2  ;;  %8673 = vmatmul.msk.bf16.vlgmr.msrb.gmra.mxu0 %vm732_vm1, %v2232_v31  ;;  %8609 = vmatmul.msk.bf16.gmra.mxu3 %vm732_vm1, %v9569_v32  ;;  %v1019_v51 = vpop.f32.mrf.mxu1  ;;  %v2501_v32 = vsel %vm10025_vm7, %v8707_v7, %v2500_v53  ;;  %v1162_v50 = vsel %vm10025_vm7, %v8480_v4, %v1161_v17  ;;  %v1870_v9 = vrot.slane %v1869_v37, 4  ;;  %v1097_v4 = vld [vmem:[%s9787_s10 + $0x24] sm:$0xe] }
  0xa4   : > { %v10069_v47 = vadd.f32 %v1054_v54, %v834_v41  ;;  %v1851_v54 = vsel %vm9809_vm4, %v1846_v42, %v1850_v11  ;;  %v1292_v24 = vpack.c.b16 %v1262_v63, %v1261_v62  ;;  %v1882_v41 = vshll.u32 %v8632_v0, 16  ;;  %v8692_v62 = vld [vmem:[%s9787_s10 + $0x30] sm:$0xe] }
  0xa5   : > { %v2202_v11 = vunpack.c.l.b16 %v1851_v54  ;;  %v2602_v42 = vunpack.c.l.b16 %v2501_v32  ;;  %v1880_v53 = vrot.slane %v1879_v38, 4  ;;  %v1263_v0 = vunpack.c.l.b16 %v1162_v50 }
  0xa6   : > { %v1059_v57 = vpop.f32.mrf.mxu3  ;;  %8723 = vmatmul.msk.bf16.gmra.mxu1 %vm732_vm1, %v2631_v27  ;;  %v1884_v56 = vrot.slane %v1882_v41, 5  ;;  %v2509_v17 = vrot.slane %v2507_v60, 4 }
  0xa7   : > { %v2233_v33 = vpack.c.b16 %v2203_v15, %v2202_v11  ;;  %v1900_v11 = vshrl.u32 %v8634_v58, 16 }
  0xa8   : > { %v796_v5 = vpop.f32.mrf.mxu0  ;;  %v1885_v7 = vsel %vm9809_vm4, %v1880_v53, %v1884_v56  ;;  %v1171_v56 = vrot.slane %v9884_v55, 5  ;;  %v8637_v55 = vld [vmem:[%s9787_s10 + $0x40] sm:$0xf] }
  0xa9   : > { %v10085_v12 = vadd.f32 %v1016_v19, %v796_v5  ;;  %v2504_v19 = vsel %vm10025_vm7, %v2502_v8, %v2503_v10  ;;  %v8635_v8 = vld [vmem:[%s9787_s10 + $0x38] sm:$0x1]  ;;  %v1896_v10 = vshll.u32 %v8634_v58, 16  ;;  %v2205_v30 = vunpack.c.l.b16 %v1885_v7 }
  0xaa   : > { %v2603_v43 = vunpack.c.l.b16 %v2504_v19  ;;  %v2510_v18 = vrot.slane %v8635_v8, 5  ;;  %v1902_v36 = vrot.slane %v1900_v11, 4  ;;  %v1906_v50 = vshll.u32 %v8635_v8, 16  ;;  %v8693_v8 = vld [vmem:[%s9787_s10 + $0x3c] sm:$0xe] }
  0xab   : > { %v836_v16 = vpop.f32.mrf.mxu2  ;;  %v1021_v31 = vpop.f32.mrf.mxu1  ;;  %v1898_v45 = vrot.slane %v1896_v10, 5  ;;  %v2514_v7 = vrot.slane %v8637_v55, 5 }
  0xac   : > { %v10088_v21 = vadd.f32 %v1056_v25, %v836_v16  ;;  %v9570_v25 = vld [vmem:[%s9787_s10 + $0x24] sm:$0xff]  ;;  %v2632_v54 = vpack.c.b16 %v2603_v43, %v2602_v42  ;;  %v8708_v16 = vrot.slane %v8692_v62, 9  ;;  %v8481_v43 = vrot.slane %v1097_v4, 9 }
  0xae   : > { %v1061_v34 = vpop.f32.mrf.mxu3  ;;  %v2508_v38 = vsel %vm10025_vm7, %v8708_v16, %v2507_v60 }
  0xaf   : > { %v2604_v2 = vunpack.c.l.b16 %v2508_v38 }
  0xb0   : > { %8496 = vmatmul.msk.bf16.gmra.mxu2 %vm732_vm1, %v1292_v24  ;;  %v799_v46 = vpop.f32.mrf.mxu0 }
  0xb1   : > { %v10098_v27 = vadd.f32 %v1019_v51, %v799_v46  ;;  %v8633_v51 = vld [vmem:[%s9787_s10 + $0x30] sm:$0xf] }
  0xb2   : > { %v1887_v3 = vshrl.u32 %v8633_v51, 16  ;;  %v1890_v5 = vshll.u32 %v8633_v51, 16 }
  0xb3   : > { %v839_v49 = vpop.f32.mrf.mxu2  ;;  %8674 = vmatmul.msk.bf16.gmra.mxu0 %vm732_vm1, %v2233_v33  ;;  %8610 = vmatmul.msk.bf16.gmra.mxu3 %vm732_vm1, %v9570_v25  ;;  %v1024_v59 = vpop.f32.mrf.mxu1  ;;  %v1293_v33 = vpack.c.b16 %v1264_v1, %v1263_v0  ;;  %v1168_v25 = vrot.slane %v9873_v29, 5  ;;  %v1908_v1 = vrot.slane %v1906_v50, 5 }
  0xb4   : > { %v10105_v48 = vadd.f32 %v1059_v57, %v839_v49  ;;  %v1875_v57 = vsel %vm9809_vm4, %v1870_v9, %v1874_v22  ;;  %v1889_v32 = vrot.slane %v1887_v3, 4  ;;  %v1892_v22 = vrot.slane %v1890_v5, 5  ;;  %v8636_v5 = vld [vmem:[%s9787_s10 + $0x3c] sm:$0xf] }
  0xb5   : > { %v2204_v26 = vunpack.c.l.b16 %v1875_v57  ;;  %v1903_v49 = vor.u32 %v1902_v36, %v1898_v45  ;;  %v1170_v53 = vrot.slane %v1168_v25, 4  ;;  %v1169_v58 = vsel %vm10025_vm7, %v8481_v43, %v1168_v25 }
  0xb6   : > { %v1064_v63 = vpop.f32.mrf.mxu3  ;;  %8724 = vmatmul.msk.bf16.gmra.mxu1 %vm732_vm1, %v2632_v54  ;;  %v1893_v46 = vor.u32 %v1892_v22, %v1889_v32  ;;  %v1265_v11 = vunpack.c.l.b16 %v1169_v58  ;;  %v1914_v16 = vshll.u32 %v8636_v5, 16  ;;  %v8709_v22 = vrot.slane %v8693_v8, 9 }
  0xb7   : > { %v2234_v41 = vpack.c.b16 %v2205_v30, %v2204_v26  ;;  %v1904_v0 = vrot.slane %v1903_v49, 4  ;;  %v1920_v26 = vshll.u32 %v8637_v55, 16  ;;  %v1924_v30 = vshrl.u32 %v8637_v55, 16  ;;  %v1098_v49 = vld [vmem:[%s9787_s10 + $0x30] sm:$0xe] }
  0xb8   : > { %v801_v15 = vpop.f32.mrf.mxu0  ;;  %v1894_v60 = vrot.slane %v1893_v46, 4  ;;  %v1916_v43 = vrot.slane %v1914_v16, 5 }
  0xb9   : > { %v10117_v20 = vadd.f32 %v1021_v31, %v801_v15  ;;  %v2511_v31 = vsel %vm10025_vm7, %v2509_v17, %v2510_v18  ;;  %v1911_v15 = vshrl.u32 %v8636_v5, 16  ;;  %v1909_v18 = vsel %vm9809_vm4, %v1904_v0, %v1908_v1 }
  0xba   : > { %v2605_v9 = vunpack.c.l.b16 %v2511_v31  ;;  %v2207_v38 = vunpack.c.l.b16 %v1909_v18  ;;  %v1175_v31 = vrot.slane %v9900_v13, 5  ;;  %v1922_v50 = vrot.slane %v1920_v26, 5  ;;  %v8640_v18 = vld [vmem:[%s9787_s10 + $0x4c] sm:$0xf] }
  0xbb   : > { %v841_v24 = vpop.f32.mrf.mxu2  ;;  %v1026_v37 = vpop.f32.mrf.mxu1  ;;  %v2521_v26 = vrot.slane %v8640_v18, 5 }
  0xbc   : > { %v10119_v19 = vadd.f32 %v1061_v34, %v841_v24  ;;  %v9571_v34 = vld [vmem:[%s9787_s10 + $0x30] sm:$0xff]  ;;  %v2633_v3 = vpack.c.b16 %v2605_v9, %v2604_v2  ;;  %v8638_v24 = vld [vmem:[%s9787_s10 + $0x44] sm:$0x1]  ;;  %v1926_v2 = vrot.slane %v1924_v30, 4  ;;  %v1177_v58 = vrot.slane %v1175_v31, 4 }
  0xbd   : > { %v2517_v4 = vrot.slane %v8638_v24, 5  ;;  %v1930_v1 = vshll.u32 %v8638_v24, 16  ;;  %v8694_v30 = vld [vmem:[%s9787_s10 + $0x48] sm:$0xe] }
  0xbe   : > { %v1066_v42 = vpop.f32.mrf.mxu3  ;;  %v1927_v0 = vor.u32 %v1926_v2, %v1922_v50 }
  0xbf   : > { %v1932_v16 = vrot.slane %v1930_v1, 5 }
  0xc0   : > { %8497 = vmatmul.msk.bf16.gmra.mxu2 %vm732_vm1, %v1293_v33  ;;  %v804_v29 = vpop.f32.mrf.mxu0  ;;  %v2516_v33 = vrot.slane %v2514_v7, 4 }
  0xc1   : > { %v10130_v54 = vadd.f32 %v1024_v59, %v804_v29  ;;  %v1172_v59 = vsel %vm10025_vm7, %v1170_v53, %v1171_v56  ;;  %v2515_v29 = vsel %vm10025_vm7, %v8709_v22, %v2514_v7  ;;  %v1178_v53 = vrot.slane %v9911_v44, 5 }
  0xc2   : > { %v1266_v17 = vunpack.c.l.b16 %v1172_v59 }
  0xc3   : > { %v844_v51 = vpop.f32.mrf.mxu2  ;;  %8675 = vmatmul.msk.bf16.gmra.mxu0 %vm732_vm1, %v2234_v41  ;;  %8611 = vmatmul.msk.bf16.gmra.mxu3 %vm732_vm1, %v9571_v34  ;;  %v1029_v57 = vpop.f32.mrf.mxu1  ;;  %v1913_v41 = vrot.slane %v1911_v15, 4  ;;  %v1179_v8 = vsel %vm10025_vm7, %v1177_v58, %v1178_v53  ;;  %v1928_v15 = vrot.slane %v1927_v0, 4 }
  0xc4   : > { %v10135_v62 = vadd.f32 %v1064_v63, %v844_v51  ;;  %v1899_v63 = vsel %vm9809_vm4, %v1894_v60, %v1898_v45  ;;  %v1294_v34 = vpack.c.b16 %v1266_v17, %v1265_v11  ;;  %v8482_v51 = vrot.slane %v1098_v49, 9 }
  0xc5   : > { %v2206_v25 = vunpack.c.l.b16 %v1899_v63  ;;  %v1917_v60 = vor.u32 %v1916_v43, %v1913_v41  ;;  %v1948_v41 = vshrl.u32 %v8640_v18, 16  ;;  %v2523_v49 = vrot.slane %v2521_v26, 4 }
  0xc6   : > { %v1069_v10 = vpop.f32.mrf.mxu3  ;;  %8725 = vmatmul.msk.bf16.gmra.mxu1 %vm732_vm1, %v2633_v3  ;;  %v2606_v3 = vunpack.c.l.b16 %v2515_v29  ;;  %v1176_v44 = vsel %vm10025_vm7, %v8482_v51, %v1175_v31  ;;  %v1944_v31 = vshll.u32 %v8640_v18, 16 }
  0xc7   : > { %v2235_v56 = vpack.c.b16 %v2207_v38, %v2206_v25  ;;  %v1918_v11 = vrot.slane %v1917_v60, 4  ;;  %v1267_v22 = vunpack.c.l.b16 %v1176_v44  ;;  %v8641_v38 = vld [vmem:[%s9787_s10 + $0x50] sm:$0x1]  ;;  %v1950_v1 = vrot.slane %v1948_v41, 4 }
  0xc8   : > { %v806_v32 = vpop.f32.mrf.mxu0  ;;  %v2524_v2 = vrot.slane %v8641_v38, 5  ;;  %v1946_v0 = vrot.slane %v1944_v31, 5  ;;  %v8643_v31 = vld [vmem:[%s9787_s10 + $0x58] sm:$0xf] }
  0xc9   : > { %v10149_v36 = vadd.f32 %v1026_v37, %v806_v32  ;;  %v2518_v37 = vsel %vm10025_vm7, %v2516_v33, %v2517_v4  ;;  %v1268_v33 = vunpack.c.l.b16 %v1179_v8 }
  0xca   : > { %v2607_v5 = vunpack.c.l.b16 %v2518_v37 }
  0xcb   : > { %v846_v45 = vpop.f32.mrf.mxu2  ;;  %v1031_v9 = vpop.f32.mrf.mxu1  ;;  %v1295_v60 = vpack.c.b16 %v1268_v33, %v1267_v22 }
  0xcc   : > { %v10152_v46 = vadd.f32 %v1066_v42, %v846_v45  ;;  %v9572_v42 = vld [vmem:[%s9787_s10 + $0x3c] sm:$0xff]  ;;  %v2634_v17 = vpack.c.b16 %v2607_v5, %v2606_v3  ;;  %v1933_v45 = vsel %vm9809_vm4, %v1928_v15, %v1932_v16  ;;  %v1182_v5 = vrot.slane %v9927_v6, 5 }
  0xcd   : > { %v1951_v15 = vor.u32 %v1950_v1, %v1946_v0  ;;  %v1954_v16 = vshll.u32 %v8641_v38, 16  ;;  %v1185_v6 = vrot.slane %v9938_v35, 5  ;;  %v8642_v38 = vld [vmem:[%s9787_s10 + $0x54] sm:$0xf] }
  0xce   : > { %v1071_v13 = vpop.f32.mrf.mxu3 }
  0xd0   : > { %8498 = vmatmul.msk.bf16.gmra.mxu2 %vm732_vm1, %v1294_v34  ;;  %v809_v55 = vpop.f32.mrf.mxu0  ;;  %v8710_v34 = vrot.slane %v8694_v30, 9 }
  0xd1   : > { %v10162_v59 = vadd.f32 %v1029_v57, %v809_v55  ;;  %v8639_v57 = vld [vmem:[%s9787_s10 + $0x48] sm:$0xf] }
  0xd2   : > { %v1935_v4 = vshrl.u32 %v8639_v57, 16  ;;  %v1938_v25 = vshll.u32 %v8639_v57, 16  ;;  %v2522_v55 = vsel %vm10025_vm7, %v8710_v34, %v2521_v26  ;;  %v1184_v26 = vrot.slane %v1182_v5, 4  ;;  %v8695_v34 = vld [vmem:[%s9787_s10 + $0x54] sm:$0xe] }
  0xd3   : > { %v849_v7 = vpop.f32.mrf.mxu2  ;;  %8676 = vmatmul.msk.bf16.gmra.mxu0 %vm732_vm1, %v2235_v56  ;;  %8612 = vmatmul.msk.bf16.gmra.mxu3 %vm732_vm1, %v9572_v42  ;;  %v1034_v24 = vpop.f32.mrf.mxu1  ;;  %v2209_v56 = vunpack.c.l.b16 %v1933_v45  ;;  %v1099_v42 = vld [vmem:[%s9787_s10 + $0x3c] sm:$0xe]  ;;  %v1956_v45 = vrot.slane %v1954_v16, 5 }
  0xd4   : > { %v10169_v63 = vadd.f32 %v1069_v10, %v849_v7  ;;  %v1923_v10 = vsel %vm9809_vm4, %v1918_v11, %v1922_v50  ;;  %v1937_v51 = vrot.slane %v1935_v4, 4  ;;  %v1940_v50 = vrot.slane %v1938_v25, 5 }
  0xd5   : > { %v2208_v53 = vunpack.c.l.b16 %v1923_v10  ;;  %v8483_v8 = vrot.slane %v1099_v42, 9  ;;  %v1952_v10 = vrot.slane %v1951_v15, 4  ;;  %v1972_v42 = vshrl.u32 %v8643_v31, 16 }
  0xd6   : > { %v1074_v32 = vpop.f32.mrf.mxu3  ;;  %8726 = vmatmul.msk.bf16.gmra.mxu1 %vm732_vm1, %v2634_v17  ;;  %v1941_v11 = vor.u32 %v1940_v50, %v1937_v51  ;;  %v2608_v17 = vunpack.c.l.b16 %v2522_v55  ;;  %v8644_v50 = vld [vmem:[%s9787_s10 + $0x5c] sm:$0x1] }
  0xd7   : > { %v2236_v7 = vpack.c.b16 %v2209_v56, %v2208_v53  ;;  %v1183_v33 = vsel %vm10025_vm7, %v8483_v8, %v1182_v5  ;;  %v1962_v53 = vshll.u32 %v8642_v38, 16  ;;  %v1957_v51 = vsel %vm9809_vm4, %v1952_v10, %v1956_v45 }
  0xd8   : > { %v811_v43 = vpop.f32.mrf.mxu0  ;;  %v1942_v4 = vrot.slane %v1941_v11, 4  ;;  %v8711_v5 = vrot.slane %v8695_v34, 9  ;;  %v2211_v11 = vunpack.c.l.b16 %v1957_v51 }
  0xd9   : > { %v10181_v29 = vadd.f32 %v1031_v9, %v811_v43  ;;  %v2525_v9 = vsel %vm10025_vm7, %v2523_v49, %v2524_v2  ;;  %v2528_v43 = vrot.slane %v8643_v31, 5  ;;  %v1269_v2 = vunpack.c.l.b16 %v1183_v33 }
  0xda   : > { %v2609_v57 = vunpack.c.l.b16 %v2525_v9  ;;  %v2531_v9 = vrot.slane %v8644_v50, 5  ;;  %v1964_v16 = vrot.slane %v1962_v53, 5 }
  0xdb   : > { %v851_v37 = vpop.f32.mrf.mxu2  ;;  %v1036_v3 = vpop.f32.mrf.mxu1  ;;  %v2530_v55 = vrot.slane %v2528_v43, 4  ;;  %v2529_v33 = vsel %vm10025_vm7, %v8711_v5, %v2528_v43 }
  0xdc   : > { %v10183_v58 = vadd.f32 %v1071_v13, %v851_v37  ;;  %v9573_v13 = vld [vmem:[%s9787_s10 + $0x48] sm:$0xff]  ;;  %v2635_v35 = vpack.c.b16 %v2609_v57, %v2608_v17  ;;  %v1959_v37 = vshrl.u32 %v8642_v38, 16  ;;  %v2610_v34 = vunpack.c.l.b16 %v2529_v33 }
  0xde   : > { %v1076_v44 = vpop.f32.mrf.mxu3  ;;  %v1961_v15 = vrot.slane %v1959_v37, 4 }
  0xe0   : > { %8499 = vmatmul.msk.bf16.gmra.mxu2 %vm732_vm1, %v1295_v60  ;;  %v814_v18 = vpop.f32.mrf.mxu0  ;;  %v1968_v60 = vshll.u32 %v8643_v31, 16  ;;  %v1965_v38 = vor.u32 %v1964_v16, %v1961_v15 }
  0xe1   : > { %v10194_v30 = vadd.f32 %v1034_v24, %v814_v18  ;;  %v1186_v24 = vsel %vm10025_vm7, %v1184_v26, %v1185_v6  ;;  %v1100_v6 = vld [vmem:[%s9787_s10 + $0x48] sm:$0xe]  ;;  %v1974_v26 = vrot.slane %v1972_v42, 4 }
  0xe2   : > { %v1270_v56 = vunpack.c.l.b16 %v1186_v24  ;;  %v1970_v18 = vrot.slane %v1968_v60, 5  ;;  %v8484_v45 = vrot.slane %v1100_v6, 9  ;;  %v1978_v24 = vshll.u32 %v8644_v50, 16 }
  0xe3   : > { %v854_v22 = vpop.f32.mrf.mxu2  ;;  %8677 = vmatmul.msk.bf16.gmra.mxu0 %vm732_vm1, %v2236_v7  ;;  %8613 = vmatmul.msk.bf16.gmra.mxu3 %vm732_vm1, %v9573_v13  ;;  %v1039_v41 = vpop.f32.mrf.mxu1  ;;  %v1189_v13 = vrot.slane %v9954_v61, 5 }
  0xe4   : > { %v10199_v25 = vadd.f32 %v1074_v32, %v854_v22  ;;  %v1947_v32 = vsel %vm9809_vm4, %v1942_v4, %v1946_v0  ;;  %v1296_v57 = vpack.c.b16 %v1270_v56, %v1269_v2  ;;  %v1192_v4 = vrot.slane %v9965_v28, 5 }
  0xe5   : > { %v2210_v8 = vunpack.c.l.b16 %v1947_v32  ;;  %v1975_v31 = vor.u32 %v1974_v26, %v1970_v18  ;;  %v1190_v28 = vsel %vm10025_vm7, %v8484_v45, %v1189_v13  ;;  %v1966_v56 = vrot.slane %v1965_v38, 4 }
  0xe6   : > { %v1079_v49 = vpop.f32.mrf.mxu3  ;;  %8727 = vmatmul.msk.bf16.gmra.mxu1 %vm732_vm1, %v2635_v35  ;;  %v1191_v35 = vrot.slane %v1189_v13, 4  ;;  %v1980_v60 = vrot.slane %v1978_v24, 5 }
  0xe7   : > { %v2237_v10 = vpack.c.b16 %v2211_v11, %v2210_v8  ;;  %v1976_v50 = vrot.slane %v1975_v31, 4 }
  0xe8   : > { %v816_v1 = vpop.f32.mrf.mxu0  ;;  %v1193_v53 = vsel %vm10025_vm7, %v1191_v35, %v1192_v4 }
  0xe9   : > { %v10213_v7 = vadd.f32 %v1036_v3, %v816_v1  ;;  %v2532_v3 = vsel %vm10025_vm7, %v2530_v55, %v2531_v9  ;;  %v8646_v1 = vld [vmem:[%s9787_s10 + $0x64] sm:$0xf]  ;;  %v8696_v9 = vld [vmem:[%s9787_s10 + $0x60] sm:$0xe]  ;;  %v1272_v11 = vunpack.c.l.b16 %v1193_v53  ;;  %v1981_v16 = vsel %vm9809_vm4, %v1976_v50, %v1980_v60 }
  0xea   : > { %v2611_v2 = vunpack.c.l.b16 %v2532_v3  ;;  %v2535_v55 = vrot.slane %v8646_v1, 5  ;;  %v1992_v6 = vshll.u32 %v8646_v1, 16  ;;  %v1996_v26 = vshrl.u32 %v8646_v1, 16 }
  0xeb   : > { %v856_v0 = vpop.f32.mrf.mxu2  ;;  %v1041_v22 = vpop.f32.mrf.mxu1  ;;  %v8712_v3 = vrot.slane %v8696_v9, 9  ;;  %v1196_v53 = vrot.slane %v9981_v52, 5  ;;  %v1199_v52 = vrot.slane %v9992_v23, 5 }
  0xec   : > { %v10216_v17 = vadd.f32 %v1076_v44, %v856_v0  ;;  %v9574_v44 = vld [vmem:[%s9787_s10 + $0x54] sm:$0xff]  ;;  %v2636_v42 = vpack.c.b16 %v2611_v2, %v2610_v34  ;;  %v1271_v0 = vunpack.c.l.b16 %v1190_v28  ;;  %v2537_v4 = vrot.slane %v2535_v55, 4 }
  0xed   : > { %v1101_v2 = vld [vmem:[%s9787_s10 + $0x54] sm:$0xe] }
  0xee   : > { %v1081_v61 = vpop.f32.mrf.mxu3  ;;  %v1297_v34 = vpack.c.b16 %v1272_v11, %v1271_v0 }
  0xf0   : > { %8500 = vmatmul.msk.bf16.gmra.mxu2 %vm732_vm1, %v1296_v57  ;;  %v819_v43 = vpop.f32.mrf.mxu0  ;;  %v8647_v57 = vld [vmem:[%s9787_s10 + $0x68] sm:$0x1] }
  0xf1   : > { %v10226_v32 = vadd.f32 %v1039_v41, %v819_v43  ;;  %v8645_v41 = vld [vmem:[%s9787_s10 + $0x60] sm:$0xf]  ;;  %v1994_v43 = vrot.slane %v1992_v6, 5  ;;  %v2002_v9 = vshll.u32 %v8647_v57, 16 }
  0xf2   : > { %v1983_v13 = vshrl.u32 %v8645_v41, 16  ;;  %v1986_v15 = vshll.u32 %v8645_v41, 16 }
  0xf3   : > { %v859_v37 = vpop.f32.mrf.mxu2  ;;  %8678 = vmatmul.msk.bf16.gmra.mxu0 %vm732_vm1, %v2237_v10  ;;  %8614 = vmatmul.msk.bf16.gmra.mxu3 %vm732_vm1, %v9574_v44  ;;  %v1044_v5 = vpop.f32.mrf.mxu1  ;;  %v2538_v10 = vrot.slane %v8647_v57, 5  ;;  %v2213_v44 = vunpack.c.l.b16 %v1981_v16 }
  0xf4   : > { %v10233_v51 = vadd.f32 %v1079_v49, %v859_v37  ;;  %v1971_v49 = vsel %vm9809_vm4, %v1966_v56, %v1970_v18  ;;  %v1985_v31 = vrot.slane %v1983_v13, 4  ;;  %v1988_v18 = vrot.slane %v1986_v15, 5 }
  0xf5   : > { %v2212_v38 = vunpack.c.l.b16 %v1971_v49  ;;  %v1998_v37 = vrot.slane %v1996_v26, 4  ;;  %v2536_v56 = vsel %vm10025_vm7, %v8712_v3, %v2535_v55  ;;  %v1198_v55 = vrot.slane %v1196_v53, 4  ;;  %v8648_v3 = vld [vmem:[%s9787_s10 + $0x6c] sm:$0xf] }
  0xf6   : > { %v1084_v8 = vpop.f32.mrf.mxu3  ;;  %8728 = vmatmul.msk.bf16.gmra.mxu1 %vm732_vm1, %v2636_v42  ;;  %v8485_v42 = vrot.slane %v1101_v2, 9  ;;  %v1989_v41 = vor.u32 %v1988_v18, %v1985_v31  ;;  %v2612_v0 = vunpack.c.l.b16 %v2536_v56  ;;  %v2007_v18 = vshrl.u32 %v8648_v3, 16 }
  0xf7   : > { %v2238_v50 = vpack.c.b16 %v2213_v44, %v2212_v38  ;;  %v1999_v1 = vor.u32 %v1998_v37, %v1994_v43  ;;  %v8697_v38 = vld [vmem:[%s9787_s10 + $0x6c] sm:$0xe] }
  0xf8   : > { %v821_v33 = vpop.f32.mrf.mxu0  ;;  %v1197_v16 = vsel %vm10025_vm7, %v8485_v42, %v1196_v53  ;;  %v1990_v6 = vrot.slane %v1989_v41, 4  ;;  %v8650_v53 = vld [vmem:[%s9787_s10 + $0x74] sm:$0x1]  ;;  %v8713_v42 = vrot.slane %v8697_v38, 9 }
  0xf9   : > { %v10245_v45 = vadd.f32 %v1041_v22, %v821_v33  ;;  %v2539_v22 = vsel %vm10025_vm7, %v2537_v4, %v2538_v10  ;;  %v2000_v57 = vrot.slane %v1999_v1, 4  ;;  %v2004_v33 = vrot.slane %v2002_v9, 5  ;;  %v8649_v4 = vld [vmem:[%s9787_s10 + $0x70] sm:$0xf] }
  0xfa   : > { %v2613_v11 = vunpack.c.l.b16 %v2539_v22  ;;  %v1273_v31 = vunpack.c.l.b16 %v1197_v16  ;;  %v2016_v56 = vshll.u32 %v8649_v4, 16  ;;  %v2020_v22 = vshrl.u32 %v8649_v4, 16 }
  0xfb   : > { %v861_v35 = vpop.f32.mrf.mxu2  ;;  %v1046_v28 = vpop.f32.mrf.mxu1  ;;  %v2005_v37 = vsel %vm9809_vm4, %v2000_v57, %v2004_v33 }
  0xfc   : > { %v10247_v24 = vadd.f32 %v1081_v61, %v861_v35  ;;  %v9575_v61 = vld [vmem:[%s9787_s10 + $0x60] sm:$0xff]  ;;  %v2637_v23 = vpack.c.b16 %v2613_v11, %v2612_v0  ;;  %v2542_v35 = vrot.slane %v8649_v4, 5  ;;  %v2215_v0 = vunpack.c.l.b16 %v2005_v37  ;;  %v9661_v4 = vld [vmem:[%s9787_s10 + $0x68] sm:$0x1] }
  0xfd   : > { %v9660_v11 = vld [vmem:[%s9787_s10 + $0x64] sm:$0xf]  ;;  %v2018_v57 = vrot.slane %v2016_v56, 5  ;;  %v2022_v33 = vrot.slane %v2020_v22, 4  ;;  %v2026_v37 = vshll.u32 %v8650_v53, 16 }
  0xfe   : > { %v1086_v60 = vpop.f32.mrf.mxu3  ;;  %v2544_v41 = vrot.slane %v2542_v35, 4 }
 0x100   : > { %8501 = vmatmul.msk.bf16.gmra.mxu2 %vm732_vm1, %v1297_v34  ;;  %v824_v13 = vpop.f32.mrf.mxu0  ;;  %v2010_v34 = vshll.u32 %v8648_v3, 16 }
 0x101   : > { %v10258_v15 = vadd.f32 %v1044_v5, %v824_v13  ;;  %v1200_v5 = vsel %vm10025_vm7, %v1198_v55, %v1199_v52  ;;  %v1203_v52 = vrot.slane %v9660_v11, 5  ;;  %v2009_v13 = vrot.slane %v2007_v18, 4 }
 0x102   : > { %v1274_v2 = vunpack.c.l.b16 %v1200_v5  ;;  %v2012_v55 = vrot.slane %v2010_v34, 5  ;;  %v1206_v5 = vrot.slane %v9661_v4, 5 }
 0x103   : > { %v864_v49 = vpop.f32.mrf.mxu2  ;;  %8679 = vmatmul.msk.bf16.gmra.mxu0 %vm732_vm1, %v2238_v50  ;;  %8615 = vmatmul.msk.bf16.gmra.mxu3 %vm732_vm1, %v9575_v61  ;;  %v1049_v10 = vpop.f32.mrf.mxu1  ;;  %v2545_v61 = vrot.slane %v8650_v53, 5  ;;  %v1205_v34 = vrot.slane %v1203_v52, 4 }
 0x104   : > { %v10263_v26 = vadd.f32 %v1084_v8, %v864_v49  ;;  %v1995_v8 = vsel %vm9809_vm4, %v1990_v6, %v1994_v43  ;;  %v1298_v16 = vpack.c.b16 %v1274_v2, %v1273_v31  ;;  %v1102_v6 = vld [vmem:[%s9787_s10 + $0x60] sm:$0xe]  ;;  %v9576_v31 = vld [vmem:[%s9787_s10 + $0x6c] sm:$0xff]  ;;  %v2023_v2 = vor.u32 %v2022_v33, %v2018_v57 }
 0x105   : > { %v2214_v43 = vunpack.c.l.b16 %v1995_v8  ;;  %v2546_v3 = vsel %vm10025_vm7, %v2544_v41, %v2545_v61  ;;  %v8486_v18 = vrot.slane %v1102_v6, 9  ;;  %v1207_v61 = vsel %vm10025_vm7, %v1205_v34, %v1206_v5 }
 0x106   : > { %v1089_v44 = vpop.f32.mrf.mxu3  ;;  %8729 = vmatmul.msk.bf16.gmra.mxu1 %vm732_vm1, %v2637_v23  ;;  %v2615_v22 = vunpack.c.l.b16 %v2546_v3  ;;  %v2024_v53 = vrot.slane %v2023_v2, 4 }
 0x107   : > { %v2239_v38 = vpack.c.b16 %v2215_v0, %v2214_v43  ;;  %v1204_v41 = vsel %vm10025_vm7, %v8486_v18, %v1203_v52  ;;  %v2028_v0 = vrot.slane %v2026_v37, 5  ;;  %v8698_v52 = vld [vmem:[%s9787_s10 + $0x78] sm:$0xe] }
 0x108   : > { %v826_v50 = vpop.f32.mrf.mxu0  ;;  %v1275_v33 = vunpack.c.l.b16 %v1204_v41 }
 0x109   : > { %v10277_v1 = vadd.f32 %v1046_v28, %v826_v50  ;;  %v2543_v28 = vsel %vm10025_vm7, %v8713_v42, %v2542_v35  ;;  %v2029_v5 = vsel %vm9809_vm4, %v2024_v53, %v2028_v0  ;;  %v1103_v53 = vld [vmem:[%s9787_s10 + $0x6c] sm:$0xe] }
 0x10a   : > { %v2614_v56 = vunpack.c.l.b16 %v2543_v28  ;;  %v1276_v28 = vunpack.c.l.b16 %v1207_v61 }
 0x10b   : > { %v866_v9 = vpop.f32.mrf.mxu2  ;;  %v1051_v23 = vpop.f32.mrf.mxu1 }
 0x10c   : > { %v10280_v49 = vadd.f32 %v1086_v60, %v866_v9  ;;  %v2013_v60 = vor.u32 %v2012_v55, %v2009_v13  ;;  %v2638_v11 = vpack.c.b16 %v2615_v22, %v2614_v56  ;;  %v8652_v13 = vld [vmem:[%s9787_s10 + $0x7c] sm:$0xf] }
 0x10d   : > { %v2040_v18 = vshll.u32 %v8652_v13, 16  ;;  %v2044_v34 = vshrl.u32 %v8652_v13, 16 }
 0x10e   : > { %v1091_v8 = vpop.f32.mrf.mxu3  ;;  %v2014_v43 = vrot.slane %v2013_v60, 4 }
 0x10f   : > { %v2042_v0 = vrot.slane %v2040_v18, 5 }
 0x110   : > { %8502 = vmatmul.msk.bf16.gmra.mxu2 %vm732_vm1, %v1298_v16  ;;  %v829_v35 = vpop.f32.mrf.mxu0  ;;  %v2549_v16 = vrot.slane %v8652_v13, 5  ;;  %v9662_v13 = vld [vmem:[%s9787_s10 + $0x70] sm:$0xf] }
 0x111   : > { %v10290_v50 = vadd.f32 %v1049_v10, %v829_v35  ;;  %v8651_v10 = vld [vmem:[%s9787_s10 + $0x78] sm:$0xf] }
 0x112   : > { %v2031_v3 = vshrl.u32 %v8651_v10, 16  ;;  %v2034_v4 = vshll.u32 %v8651_v10, 16  ;;  %v2551_v2 = vrot.slane %v2549_v16, 4 }
 0x113   : > { %v869_v42 = vpop.f32.mrf.mxu2  ;;  %8680 = vmatmul.msk.bf16.gmra.mxu0 %vm732_vm1, %v2239_v38  ;;  %8616 = vmatmul.msk.bf16.gmra.mxu3 %vm732_vm1, %v9576_v31  ;;  %v10302_v55 = vpop.f32.mrf.mxu1  ;;  %v8653_v38 = vld [vmem:[%s9787_s10 + $0x80] sm:$0x1]  ;;  %v8714_v31 = vrot.slane %v8698_v52, 9  ;;  %v1210_v52 = vrot.slane %v9662_v13, 5 }
 0x114   : > { %v10297_v9 = vadd.f32 %v1089_v44, %v869_v42  ;;  %v2019_v44 = vsel %vm9809_vm4, %v2014_v43, %v2018_v57  ;;  %v2552_v37 = vrot.slane %v8653_v38, 5  ;;  %v2217_v42 = vunpack.c.l.b16 %v2029_v5 }
 0x115   : > { %v2216_v35 = vunpack.c.l.b16 %v2019_v44  ;;  %v2033_v57 = vrot.slane %v2031_v3, 4  ;;  %v2036_v41 = vrot.slane %v2034_v4, 5  ;;  %v1299_v43 = vpack.c.b16 %v1276_v28, %v1275_v33  ;;  %v9577_v28 = vld [vmem:[%s9787_s10 + $0x78] sm:$0xff] }
 0x116   : > { %12969 = vst [vmem:[#allocation2_spill] sm:$0xff] %v10297_v9  ;;  %v1654_v6 = vpop.f32.mrf.mxu3  ;;  %8730 = vmatmul.msk.bf16.gmra.mxu1 %vm732_vm1, %v2638_v11  ;;  %v2046_v11 = vrot.slane %v2044_v34, 4  ;;  %v2553_v3 = vsel %vm10025_vm7, %v2551_v2, %v2552_v37  ;;  %v2050_v18 = vshll.u32 %v8653_v38, 16 }
 0x117   : > { %v2240_v4 = vpack.c.b16 %v2217_v42, %v2216_v35  ;;  %v2037_v33 = vor.u32 %v2036_v41, %v2033_v57  ;;  %v8655_v35 = vld [vmem:[%s9787_s10 + $0x88] sm:$0xf] }
 0x118   : > { %v831_v60 = vpop.f32.mrf.mxu0  ;;  %v2047_v5 = vor.u32 %v2046_v11, %v2042_v0  ;;  %v2052_v57 = vrot.slane %v2050_v18, 5  ;;  %v8656_v18 = vld [vmem:[%s9787_s10 + $0x8c] sm:$0x1] }
 0x119   : > { %v10311_v56 = vadd.f32 %v1051_v23, %v831_v60  ;;  %v2550_v23 = vsel %vm10025_vm7, %v8714_v31, %v2549_v16  ;;  %v2617_v60 = vunpack.c.l.b16 %v2553_v3  ;;  %v1212_v16 = vrot.slane %v1210_v52, 4  ;;  %v8654_v31 = vld [vmem:[%s9787_s10 + $0x84] sm:$0xf] }
 0x11a   : > { %v2616_v34 = vunpack.c.l.b16 %v2550_v23  ;;  %v2038_v37 = vrot.slane %v2037_v33, 4  ;;  %v2048_v38 = vrot.slane %v2047_v5, 4  ;;  %v2055_v11 = vshrl.u32 %v8654_v31, 16 }
 0x11b   : > { %v871_v22 = vpop.f32.mrf.mxu2  ;;  %v10316_v10 = vpop.f32.mrf.mxu1  ;;  %v2058_v3 = vshll.u32 %v8654_v31, 16  ;;  %v2068_v33 = vshrl.u32 %v8655_v35, 16  ;;  %v2559_v31 = vrot.slane %v8656_v18, 5 }
 0x11c   : > { %v10313_v61 = vadd.f32 %v1091_v8, %v871_v22  ;;  %v8487_v8 = vrot.slane %v1103_v53, 9  ;;  %v9663_v22 = vld [vmem:[%s9787_s10 + $0x74] sm:$0x1]  ;;  %v2639_v41 = vpack.c.b16 %v2617_v60, %v2616_v34  ;;  %v2053_v5 = vsel %vm9809_vm4, %v2048_v38, %v2052_v57 }
 0x11d   : > { %v1213_v13 = vrot.slane %v9663_v22, 5 }
 0x11e   : > { %12970 = vst [vmem:[#allocation3_spill] sm:$0xff] %v10313_v61  ;;  %v1656_v44 = vpop.f32.mrf.mxu3  ;;  %v1211_v2 = vsel %vm10025_vm7, %v8487_v8, %v1210_v52  ;;  %v2556_v52 = vrot.slane %v8655_v35, 5  ;;  %v2064_v8 = vshll.u32 %v8655_v35, 16  ;;  %v2060_v35 = vrot.slane %v2058_v3, 5 }
 0x120   : > { %8503 = vmatmul.msk.bf16.gmra.mxu2 %vm732_vm1, %v1299_v43  ;;  %v2308_v61 = vpop.f32.mrf.mxu0  ;;  %v1214_v43 = vsel %vm10025_vm7, %v1212_v16, %v1213_v13  ;;  %v2558_v16 = vrot.slane %v2556_v52, 4 }
 0x123   : > { %v1367_v9 = vpop.f32.mrf.mxu2  ;;  %8681 = vmatmul.msk.bf16.gmra.mxu0 %vm732_vm1, %v2240_v4  ;;  %8617 = vmatmul.msk.bf16.gmra.mxu3 %vm732_vm1, %v9577_v28  ;;  %v10335_v53 = vpop.f32.mrf.mxu1  ;;  %v8699_v4 = vld [vmem:[%s9787_s10 + $0x84] sm:$0xe]  ;;  %v2043_v28 = vsel %vm9809_vm4, %v2038_v37, %v2042_v0 }
 0x124   : > { %v1447_v42 = vadd.f32 %v1367_v9, %v10066_v40  ;;  %v1277_v40 = vunpack.c.l.b16 %v1211_v2  ;;  %v1278_v9 = vunpack.c.l.b16 %v1214_v43  ;;  %v8715_v13 = vrot.slane %v8699_v4, 9 }
 0x125   : > { %v10344_v2 = vrot.slane %v2064_v8, 5  ;;  %v2560_v8 = vsel %vm10025_vm7, %v2558_v16, %v2559_v31 }
 0x126   : > { %v1734_v23 = vadd.f32 %v1654_v6, %v1447_v42  ;;  %v1659_v22 = vpop.f32.mrf.mxu3  ;;  %8731 = vmatmul.msk.bf16.gmra.mxu1 %vm732_vm1, %v2639_v41  ;;  %v2057_v6 = vrot.slane %v2055_v11, 4  ;;  %v2070_v42 = vrot.slane %v2068_v33, 4  ;;  %v1300_v57 = vpack.c.b16 %v1278_v9, %v1277_v40  ;;  %v9664_v11 = vld [vmem:[%s9787_s10 + $0x7c] sm:$0xf]  ;;  %v1104_v33 = vld [vmem:[%s9787_s10 + $0x78] sm:$0xe] }
 0x127   : > { %v2219_v41 = vunpack.c.l.b16 %v2053_v5  ;;  %v2557_v3 = vsel %vm10025_vm7, %v8715_v13, %v2556_v52  ;;  %v2074_v40 = vshll.u32 %v8656_v18, 16  ;;  %v9578_v5 = vld [vmem:[%s9787_s10 + $0x84] sm:$0xff]  ;;  %v9665_v52 = vld [vmem:[%s9787_s10 + $0x80] sm:$0x1] }
 0x128   : > { %v2388_v34 = vadd.f32 %v2308_v61, %v1734_v23  ;;  %v2310_v60 = vpop.f32.mrf.mxu0  ;;  %v2218_v61 = vunpack.c.l.b16 %v2043_v28  ;;  %v1217_v23 = vrot.slane %v9664_v11, 5  ;;  %v2061_v4 = vor.u32 %v2060_v35, %v2057_v6 }
 0x129   : > { %v1220_v13 = vrot.slane %v9665_v52, 5  ;;  %v8659_v52 = vld [vmem:[%s9787_s10 + $0x98] sm:$0x1] }
 0x12a   : > { %v10347_v0 = vadd.f32 %v10302_v55, %v2388_v34  ;;  %v2241_v28 = vpack.c.b16 %v2219_v41, %v2218_v61  ;;  %v2618_v34 = vunpack.c.l.b16 %v2557_v3  ;;  %v1219_v31 = vrot.slane %v1217_v23, 4  ;;  %v8657_v61 = vld [vmem:[%s9787_s10 + $0x90] sm:$0xf]  ;;  %v8658_v41 = vld [vmem:[%s9787_s10 + $0x94] sm:$0xf] }
 0x12b   : > { %v1369_v37 = vpop.f32.mrf.mxu2  ;;  %v10350_v43 = vpop.f32.mrf.mxu1  ;;  %v2062_v6 = vrot.slane %v2061_v4, 4 }
 0x12c   : > { %v1448_v38 = vadd.f32 %v1369_v37, %v10085_v12  ;;  %v2071_v12 = vor.u32 %v2070_v42, %v10344_v2  ;;  %v2619_v37 = vunpack.c.l.b16 %v2560_v8  ;;  %v2076_v42 = vrot.slane %v2074_v40, 5 }
 0x12d   : > { %v1221_v8 = vsel %vm10025_vm7, %v1219_v31, %v1220_v13  ;;  %v2566_v31 = vrot.slane %v8659_v52, 5 }
 0x12e   : > { %v1735_v55 = vadd.f32 %v1656_v44, %v1448_v38  ;;  %v10359_v9 = vpop.f32.mrf.mxu3  ;;  %v8488_v44 = vrot.slane %v1104_v33, 9  ;;  %v2072_v35 = vrot.slane %v2071_v12, 4  ;;  %v8700_v12 = vld [vmem:[%s9787_s10 + $0x90] sm:$0xe] }
 0x130   : > { %8504 = vmatmul.msk.bf16.gmra.mxu2 %vm732_vm1, %v1300_v57  ;;  %v2389_v11 = vadd.f32 %v2310_v60, %v1735_v55  ;;  %v2313_v16 = vpop.f32.mrf.mxu0  ;;  %v2640_v60 = vpack.c.b16 %v2619_v37, %v2618_v34  ;;  %v1218_v3 = vsel %vm10025_vm7, %v8488_v44, %v1217_v23  ;;  %v2077_v4 = vsel %vm9809_vm4, %v2072_v35, %v2076_v42 }
 0x131   : > { %v2088_v23 = vshll.u32 %v8658_v41, 16  ;;  %v2092_v34 = vshrl.u32 %v8658_v41, 16  ;;  %v1279_v37 = vunpack.c.l.b16 %v1218_v3  ;;  %v8716_v44 = vrot.slane %v8700_v12, 9 }
 0x132   : > { %v10365_v18 = vadd.f32 %v10316_v10, %v2389_v11  ;;  %v2563_v10 = vrot.slane %v8658_v41, 5  ;;  %v1280_v11 = vunpack.c.l.b16 %v1221_v8  ;;  %v2221_v35 = vunpack.c.l.b16 %v2077_v4  ;;  %v9667_v4 = vld [vmem:[%s9787_s10 + $0x8c] sm:$0x1] }
 0x133   : > { %v1372_v38 = vpop.f32.mrf.mxu2  ;;  %8682 = vmatmul.msk.bf16.gmra.mxu0 %vm732_vm1, %v2241_v28  ;;  %8618 = vmatmul.msk.bf16.gmra.mxu3 %vm732_vm1, %v9578_v5  ;;  %v10376_v55 = vpop.f32.mrf.mxu1  ;;  %v2079_v28 = vshrl.u32 %v8657_v61, 16  ;;  %v2082_v5 = vshll.u32 %v8657_v61, 16  ;;  %v2090_v41 = vrot.slane %v2088_v23, 5  ;;  %v2094_v3 = vrot.slane %v2092_v34, 4 }
 0x134   : > { %12971 = vst [vmem:[#allocation4_spill] sm:$0xff] %v10365_v18  ;;  %v1449_v57 = vadd.f32 %v1372_v38, %v10098_v27  ;;  %v2067_v27 = vsel %vm9809_vm4, %v2062_v6, %v10344_v2  ;;  %v2565_v2 = vrot.slane %v2563_v10, 4  ;;  %v1301_v8 = vpack.c.b16 %v1280_v11, %v1279_v37 }
 0x135   : > { %v2220_v6 = vunpack.c.l.b16 %v2067_v27  ;;  %v2084_v61 = vrot.slane %v2082_v5, 5  ;;  %v2564_v27 = vsel %vm10025_vm7, %v8716_v44, %v2563_v10  ;;  %v2095_v11 = vor.u32 %v2094_v3, %v2090_v41  ;;  %v8661_v3 = vld [vmem:[%s9787_s10 + $0xa0] sm:$0xf] }
 0x136   : > { %v1736_v33 = vadd.f32 %v1659_v22, %v1449_v57  ;;  %v1664_v40 = vpop.f32.mrf.mxu3  ;;  %8732 = vmatmul.msk.bf16.gmra.mxu1 %vm732_vm1, %v2640_v60  ;;  %v2081_v57 = vrot.slane %v2079_v28, 4  ;;  %v1227_v28 = vrot.slane %v9667_v4, 5 }
 0x137   : > { %v2242_v23 = vpack.c.b16 %v2221_v35, %v2220_v6 }
 0x138   : > { %v2390_v22 = vadd.f32 %v2313_v16, %v1736_v33  ;;  %v2315_v13 = vpop.f32.mrf.mxu0  ;;  %v1105_v16 = vld [vmem:[%s9787_s10 + $0x84] sm:$0xe]  ;;  %v9666_v33 = vld [vmem:[%s9787_s10 + $0x88] sm:$0xf]  ;;  %v2085_v37 = vor.u32 %v2084_v61, %v2081_v57 }
 0x139   : > { %v1224_v12 = vrot.slane %v9666_v33, 5 }
 0x13a   : > { %v10387_v42 = vadd.f32 %v10335_v53, %v2390_v22  ;;  %v2567_v53 = vsel %vm10025_vm7, %v2565_v2, %v2566_v31  ;;  %v2098_v22 = vshll.u32 %v8659_v52, 16  ;;  %v2086_v35 = vrot.slane %v2085_v37, 4 }
 0x13b   : > { %v1374_v38 = vpop.f32.mrf.mxu2  ;;  %v10392_v18 = vpop.f32.mrf.mxu1  ;;  %v1226_v33 = vrot.slane %v1224_v12, 4  ;;  %v2621_v10 = vunpack.c.l.b16 %v2567_v53  ;;  %v2096_v52 = vrot.slane %v2095_v11, 4  ;;  %v2112_v37 = vshll.u32 %v8661_v3, 16 }
 0x13c   : > { %12972 = vst [vmem:[#allocation5_spill] sm:$0xff] %v10387_v42  ;;  %v1450_v60 = vadd.f32 %v1374_v38, %v10117_v20  ;;  %v8489_v20 = vrot.slane %v1105_v16, 9  ;;  %v9579_v38 = vld [vmem:[%s9787_s10 + $0x90] sm:$0xff]  ;;  %v2620_v42 = vunpack.c.l.b16 %v2564_v27  ;;  %v2100_v57 = vrot.slane %v2098_v22, 5  ;;  %v8701_v27 = vld [vmem:[%s9787_s10 + $0x9c] sm:$0xe] }
 0x13d   : > { %v2570_v16 = vrot.slane %v8661_v3, 5  ;;  %v2116_v22 = vshrl.u32 %v8661_v3, 16 }
 0x13e   : > { %v1737_v5 = vadd.f32 %v10359_v9, %v1450_v60  ;;  %v1666_v34 = vpop.f32.mrf.mxu3  ;;  %v1225_v6 = vsel %vm10025_vm7, %v8489_v20, %v1224_v12 }
 0x13f   : > { %v1281_v4 = vunpack.c.l.b16 %v1225_v6 }
 0x140   : > { %8505 = vmatmul.msk.bf16.gmra.mxu2 %vm732_vm1, %v1301_v8  ;;  %v2391_v44 = vadd.f32 %v2315_v13, %v1737_v5  ;;  %v2318_v2 = vpop.f32.mrf.mxu0  ;;  %v1228_v13 = vsel %vm10025_vm7, %v1226_v33, %v1227_v28  ;;  %v8660_v8 = vld [vmem:[%s9787_s10 + $0x9c] sm:$0xf]  ;;  %v2572_v33 = vrot.slane %v2570_v16, 4 }
 0x141   : > { %v1282_v5 = vunpack.c.l.b16 %v1228_v13  ;;  %v2103_v28 = vshrl.u32 %v8660_v8, 16  ;;  %v2106_v20 = vshll.u32 %v8660_v8, 16  ;;  %v10433_v8 = vrot.slane %v2112_v37, 5 }
 0x142   : > { %v10403_v31 = vadd.f32 %v10350_v43, %v2391_v44  ;;  %v2641_v43 = vpack.c.b16 %v2621_v10, %v2620_v42  ;;  %v8662_v42 = vld [vmem:[%s9787_s10 + $0xa4] sm:$0x1] }
 0x143   : > { %v1377_v9 = vpop.f32.mrf.mxu2  ;;  %8683 = vmatmul.msk.bf16.gmra.mxu0 %vm732_vm1, %v2242_v23  ;;  %8619 = vmatmul.msk.bf16.gmra.mxu3 %vm732_vm1, %v9579_v38  ;;  %v10413_v60 = vpop.f32.mrf.mxu1  ;;  %v2101_v23 = vsel %vm9809_vm4, %v2096_v52, %v2100_v57  ;;  %v8717_v38 = vrot.slane %v8701_v27, 9  ;;  %v2573_v10 = vrot.slane %v8662_v42, 5  ;;  %v1106_v57 = vld [vmem:[%s9787_s10 + $0x90] sm:$0xe] }
 0x144   : > { %v1451_v61 = vadd.f32 %v1377_v9, %v10130_v54  ;;  %v2091_v54 = vsel %vm9809_vm4, %v2086_v35, %v2090_v41  ;;  %v1302_v9 = vpack.c.b16 %v1282_v5, %v1281_v4  ;;  %v2223_v35 = vunpack.c.l.b16 %v2101_v23  ;;  %v9580_v23 = vld [vmem:[%s9787_s10 + $0x9c] sm:$0xff] }
 0x145   : > { %v2222_v6 = vunpack.c.l.b16 %v2091_v54  ;;  %v2574_v27 = vsel %vm10025_vm7, %v2572_v33, %v2573_v10  ;;  %v8490_v54 = vrot.slane %v1106_v57, 9  ;;  %v8663_v57 = vld [vmem:[%s9787_s10 + $0xa8] sm:$0xf] }
 0x146   : > { %v1738_v12 = vadd.f32 %v1664_v40, %v1451_v61  ;;  %v10417_v53 = vpop.f32.mrf.mxu3  ;;  %8733 = vmatmul.msk.bf16.gmra.mxu1 %vm732_vm1, %v2641_v43  ;;  %v9668_v61 = vld [vmem:[%s9787_s10 + $0x94] sm:$0xf]  ;;  %v2105_v43 = vrot.slane %v2103_v28, 4 }
 0x147   : > { %v1231_v13 = vrot.slane %v9668_v61, 5  ;;  %v8664_v61 = vld [vmem:[%s9787_s10 + $0xac] sm:$0xf] }
 0x148   : > { %v2392_v40 = vadd.f32 %v2318_v2, %v1738_v12  ;;  %v2320_v11 = vpop.f32.mrf.mxu0  ;;  %v2108_v2 = vrot.slane %v2106_v20, 5  ;;  %v2118_v12 = vrot.slane %v2116_v22, 4  ;;  %v9669_v22 = vld [vmem:[%s9787_s10 + $0x98] sm:$0x1] }
 0x14a   : > { %v10426_v44 = vadd.f32 %v10376_v55, %v2392_v40  ;;  %v2571_v55 = vsel %vm10025_vm7, %v8717_v38, %v2570_v16  ;;  %v2109_v28 = vor.u32 %v2108_v2, %v2105_v43  ;;  %v2623_v40 = vunpack.c.l.b16 %v2574_v27 }
 0x14b   : > { %v1379_v41 = vpop.f32.mrf.mxu2  ;;  %v10431_v3 = vpop.f32.mrf.mxu1  ;;  %v2622_v20 = vunpack.c.l.b16 %v2571_v55  ;;  %v1233_v38 = vrot.slane %v1231_v13, 4  ;;  %v2119_v33 = vor.u32 %v2118_v12, %v10433_v8  ;;  %v2577_v12 = vrot.slane %v8664_v61, 5  ;;  %v8702_v55 = vld [vmem:[%s9787_s10 + $0xa8] sm:$0xe] }
 0x14c   : > { %v1452_v52 = vadd.f32 %v1379_v41, %v10149_v36  ;;  %v2243_v36 = vpack.c.b16 %v2223_v35, %v2222_v6  ;;  %v1234_v41 = vrot.slane %v9669_v22, 5  ;;  %v2110_v35 = vrot.slane %v2109_v28, 4 }
 0x14d   : > { %v2120_v43 = vrot.slane %v2119_v33, 4 }
 0x14e   : > { %v1739_v4 = vadd.f32 %v1666_v34, %v1452_v52  ;;  %v10439_v5 = vpop.f32.mrf.mxu3  ;;  %v2122_v34 = vshll.u32 %v8662_v42, 16  ;;  %v2642_v52 = vpack.c.b16 %v2623_v40, %v2622_v20  ;;  %v1235_v42 = vsel %vm10025_vm7, %v1233_v38, %v1234_v41  ;;  %v8665_v40 = vld [vmem:[%s9787_s10 + $0xb0] sm:$0x1] }
 0x14f   : > { %v1284_v28 = vunpack.c.l.b16 %v1235_v42  ;;  %v2115_v20 = vsel %vm9809_vm4, %v2110_v35, %v10433_v8  ;;  %v8718_v41 = vrot.slane %v8702_v55, 9  ;;  %v2579_v38 = vrot.slane %v2577_v12, 4 }
 0x150   : > { %8506 = vmatmul.msk.bf16.gmra.mxu2 %vm732_vm1, %v1302_v9  ;;  %v2393_v37 = vadd.f32 %v2320_v11, %v1739_v4  ;;  %v2323_v16 = vpop.f32.mrf.mxu0  ;;  %v1232_v11 = vsel %vm10025_vm7, %v8490_v54, %v1231_v13  ;;  %v2124_v2 = vrot.slane %v2122_v34, 5  ;;  %v2127_v13 = vshrl.u32 %v8663_v57, 16  ;;  %v9670_v34 = vld [vmem:[%s9787_s10 + $0xa0] sm:$0xf] }
 0x151   : > { %v2130_v4 = vshll.u32 %v8663_v57, 16  ;;  %v2140_v54 = vshrl.u32 %v8664_v61, 16  ;;  %v2580_v33 = vrot.slane %v8665_v40, 5  ;;  %v1107_v57 = vld [vmem:[%s9787_s10 + $0x9c] sm:$0xe]  ;;  %v2578_v55 = vsel %vm10025_vm7, %v8718_v41, %v2577_v12 }
 0x152   : > { %v10446_v10 = vadd.f32 %v10392_v18, %v2393_v37  ;;  %v2125_v22 = vsel %vm9809_vm4, %v2120_v43, %v2124_v2  ;;  %v2129_v8 = vrot.slane %v2127_v13, 4  ;;  %v2224_v43 = vunpack.c.l.b16 %v2115_v20 }
 0x153   : > { %v1382_v6 = vpop.f32.mrf.mxu2  ;;  %8684 = vmatmul.msk.bf16.gmra.mxu0 %vm732_vm1, %v2243_v36  ;;  %8620 = vmatmul.msk.bf16.gmra.mxu3 %vm732_vm1, %v9580_v23  ;;  %v10457_v18 = vpop.f32.mrf.mxu1  ;;  %v2136_v36 = vshll.u32 %v8664_v61, 16  ;;  %v1283_v23 = vunpack.c.l.b16 %v1232_v11  ;;  %v2132_v35 = vrot.slane %v2130_v4, 5  ;;  %v2225_v2 = vunpack.c.l.b16 %v2125_v22  ;;  %v9581_v22 = vld [vmem:[%s9787_s10 + $0xa8] sm:$0xff] }
 0x154   : > { %12973 = vst [vmem:[#allocation6_spill] sm:$0xff] %v10446_v10  ;;  %v1453_v9 = vadd.f32 %v1382_v6, %v10162_v59  ;;  %v1238_v6 = vrot.slane %v9670_v34, 5  ;;  %v2146_v20 = vshll.u32 %v8665_v40, 16  ;;  %v2624_v41 = vunpack.c.l.b16 %v2578_v55 }
 0x155   : > { %v1303_v42 = vpack.c.b16 %v1284_v28, %v1283_v23  ;;  %v2133_v23 = vor.u32 %v2132_v35, %v2129_v8  ;;  %v2244_v12 = vpack.c.b16 %v2225_v2, %v2224_v43 }
 0x156   : > { %v1740_v59 = vadd.f32 %v10417_v53, %v1453_v9  ;;  %v10461_v27 = vpop.f32.mrf.mxu3  ;;  %8734 = vmatmul.msk.bf16.gmra.mxu1 %vm732_vm1, %v2642_v52  ;;  %v10475_v52 = vrot.slane %v2136_v36, 5  ;;  %v8491_v36 = vrot.slane %v1107_v57, 9  ;;  %v8667_v57 = vld [vmem:[%s9787_s10 + $0xb8] sm:$0xf] }
 0x157   : > { %v2134_v35 = vrot.slane %v2133_v23, 4  ;;  %v2160_v55 = vshll.u32 %v8667_v57, 16  ;;  %v9673_v23 = vld [vmem:[%s9787_s10 + $0xb0] sm:$0x1] }
 0x158   : > { %v2394_v37 = vadd.f32 %v2323_v16, %v1740_v59  ;;  %v2325_v53 = vpop.f32.mrf.mxu0  ;;  %v2142_v16 = vrot.slane %v2140_v54, 4  ;;  %v1240_v54 = vrot.slane %v1238_v6, 4 }
 0x15a   : > { %v10472_v9 = vadd.f32 %v10413_v60, %v2394_v37  ;;  %v2581_v60 = vsel %vm10025_vm7, %v2579_v38, %v2580_v33  ;;  %v9671_v37 = vld [vmem:[%s9787_s10 + $0xa4] sm:$0x1]  ;;  %v2143_v28 = vor.u32 %v2142_v16, %v10475_v52 }
 0x15b   : > { %v1384_v11 = vpop.f32.mrf.mxu2  ;;  %v10478_v59 = vpop.f32.mrf.mxu1  ;;  %v1241_v13 = vrot.slane %v9671_v37, 5  ;;  %v2625_v38 = vunpack.c.l.b16 %v2581_v60  ;;  %v2584_v60 = vrot.slane %v8667_v57, 5 }
 0x15c   : > { %12974 = vst [vmem:[#allocation7_spill] sm:$0xff] %v10472_v9  ;;  %v1454_v61 = vadd.f32 %v1384_v11, %v10181_v29  ;;  %v8666_v11 = vld [vmem:[%s9787_s10 + $0xb4] sm:$0xf]  ;;  %v2144_v16 = vrot.slane %v2143_v28, 4  ;;  %v1248_v28 = vrot.slane %v9673_v23, 5 }
 0x15d   : > { %v1242_v40 = vsel %vm10025_vm7, %v1240_v54, %v1241_v13  ;;  %v2151_v43 = vshrl.u32 %v8666_v11, 16  ;;  %v9672_v13 = vld [vmem:[%s9787_s10 + $0xac] sm:$0xf]  ;;  %v8703_v54 = vld [vmem:[%s9787_s10 + $0xb4] sm:$0xe] }
 0x15e   : > { %v1741_v4 = vadd.f32 %v10439_v5, %v1454_v61  ;;  %v10486_v29 = vpop.f32.mrf.mxu3  ;;  %v1239_v5 = vsel %vm10025_vm7, %v8491_v36, %v1238_v6  ;;  %v2643_v6 = vpack.c.b16 %v2625_v38, %v2624_v41  ;;  %v2164_v36 = vshrl.u32 %v8667_v57, 16  ;;  %v1108_v41 = vld [vmem:[%s9787_s10 + $0xa8] sm:$0xe] }
 0x15f   : > { %v8492_v23 = vrot.slane %v1108_v41, 9 }
 0x160   : > { %8507 = vmatmul.msk.bf16.gmra.mxu2 %vm732_vm1, %v1303_v42  ;;  %v2395_v33 = vadd.f32 %v2325_v53, %v1741_v4  ;;  %v2328_v34 = vpop.f32.mrf.mxu0  ;;  %v2148_v42 = vrot.slane %v2146_v20, 5  ;;  %v1245_v4 = vrot.slane %v9672_v13, 5  ;;  %v1285_v20 = vunpack.c.l.b16 %v1239_v5 }
 0x161   : > { %v8719_v13 = vrot.slane %v8703_v54, 9  ;;  %v2586_v5 = vrot.slane %v2584_v60, 4  ;;  %v2166_v9 = vrot.slane %v2164_v36, 4 }
 0x162   : > { %v10496_v61 = vadd.f32 %v10431_v3, %v2395_v33  ;;  %v2154_v3 = vshll.u32 %v8666_v11, 16  ;;  %v2149_v38 = vsel %vm9809_vm4, %v2144_v16, %v2148_v42  ;;  %v2153_v33 = vrot.slane %v2151_v43, 4 }
 0x163   : > { %v1387_v8 = vpop.f32.mrf.mxu2  ;;  %8685 = vmatmul.msk.bf16.gmra.mxu0 %vm732_vm1, %v2244_v12  ;;  %8621 = vmatmul.msk.bf16.gmra.mxu3 %vm732_vm1, %v9581_v22  ;;  %v10503_v2 = vpop.f32.mrf.mxu1  ;;  %v1286_v12 = vunpack.c.l.b16 %v1242_v40  ;;  %v2139_v22 = vsel %vm9809_vm4, %v2134_v35, %v10475_v52  ;;  %v2227_v43 = vunpack.c.l.b16 %v2149_v38  ;;  %v1246_v54 = vsel %vm10025_vm7, %v8492_v23, %v1245_v4 }
 0x164   : > { %12975 = vst [vmem:[#allocation8_spill] sm:$0xff] %v10496_v61  ;;  %v1455_v53 = vadd.f32 %v1387_v8, %v10194_v30  ;;  %v2156_v11 = vrot.slane %v2154_v3, 5  ;;  %v1247_v61 = vrot.slane %v1245_v4, 4 }
 0x165   : > { %v1304_v42 = vpack.c.b16 %v1286_v12, %v1285_v20 }
 0x166   : > { %v1742_v37 = vadd.f32 %v10461_v27, %v1455_v53  ;;  %v1679_v30 = vpop.f32.mrf.mxu3  ;;  %8735 = vmatmul.msk.bf16.gmra.mxu1 %vm732_vm1, %v2643_v6  ;;  %v8668_v27 = vld [vmem:[%s9787_s10 + $0xbc] sm:$0x1]  ;;  %v10517_v53 = vrot.slane %v2160_v55, 5  ;;  %v2226_v6 = vunpack.c.l.b16 %v2139_v22  ;;  %v2157_v3 = vor.u32 %v2156_v11, %v2153_v33 }
 0x167   : > { %v2587_v40 = vrot.slane %v8668_v27, 5  ;;  %v2170_v55 = vshll.u32 %v8668_v27, 16  ;;  %v1287_v27 = vunpack.c.l.b16 %v1246_v54 }
 0x168   : > { %v2396_v57 = vadd.f32 %v2328_v34, %v1742_v37  ;;  %v2330_v8 = vpop.f32.mrf.mxu0  ;;  %v2585_v37 = vsel %vm10025_vm7, %v8719_v13, %v2584_v60  ;;  %v2167_v20 = vor.u32 %v2166_v9, %v10517_v53  ;;  %v2245_v22 = vpack.c.b16 %v2227_v43, %v2226_v6  ;;  %v9582_v60 = vld [vmem:[%s9787_s10 + $0xb4] sm:$0xff]  ;;  %v10551_v6 = vld [vmem:[%s9787_s10 + $0x1c] sm:$0xf] }
 0x169   : > { %v2588_v36 = vsel %vm10025_vm7, %v2586_v5, %v2587_v40  ;;  %v2626_v41 = vunpack.c.l.b16 %v2585_v37  ;;  %v2158_v4 = vrot.slane %v2157_v3, 4  ;;  %v8670_v5 = vld [vmem:[%s9787_s10 + $0xc4] sm:$0xf]  ;;  %v8851_v40 = vld [vmem:[%s9787_s10 + $0x18] sm:$0xf] }
 0x16a   : > { %v10520_v52 = vadd.f32 %v10457_v18, %v2396_v57  ;;  %v2627_v38 = vunpack.c.l.b16 %v2588_v36  ;;  %v2168_v11 = vrot.slane %v2167_v20, 4  ;;  %v2172_v57 = vrot.slane %v2170_v55, 5  ;;  %v8704_v36 = vld [vmem:[%s9787_s10 + $0xc0] sm:$0xe] }
 0x16b   : > { %v1389_v35 = vpop.f32.mrf.mxu2  ;;  %v10523_v34 = vpop.f32.mrf.mxu1  ;;  %v2188_v20 = vshrl.u32 %v8670_v5, 16 }
 0x16c   : > { %12976 = vst [vmem:[#allocation9_spill] sm:$0xff] %v10520_v52  ;;  %v1456_v16 = vadd.f32 %v1389_v35, %v10213_v7  ;;  %v1249_v7 = vsel %vm10025_vm7, %v1247_v61, %v1248_v28  ;;  %v8669_v28 = vld [vmem:[%s9787_s10 + $0xc0] sm:$0xf]  ;;  %v2644_v13 = vpack.c.b16 %v2627_v38, %v2626_v41 }
 0x16d   : > { %v1288_v33 = vunpack.c.l.b16 %v1249_v7  ;;  %v2175_v55 = vshrl.u32 %v8669_v28, 16  ;;  %v2178_v37 = vshll.u32 %v8669_v28, 16  ;;  %v2184_v7 = vshll.u32 %v8670_v5, 16 }
 0x16e   : > { %v1743_v18 = vadd.f32 %v10486_v29, %v1456_v16  ;;  %v10535_v12 = vpop.f32.mrf.mxu3  ;;  %v2163_v16 = vsel %vm9809_vm4, %v2158_v4, %v10517_v53  ;;  %v8671_v53 = vld [vmem:[%s9787_s10 + $0xc8] sm:$0x1] }
 0x16f   : > { %v1305_v23 = vpack.c.b16 %v1288_v33, %v1287_v27  ;;  %v2228_v27 = vunpack.c.l.b16 %v2163_v16  ;;  %v8720_v33 = vrot.slane %v8704_v36, 9  ;;  %v2180_v28 = vrot.slane %v2178_v37, 5  ;;  %v10574_v36 = vld [vmem:[%s9787_s10 + $0x20] sm:$0x1] }
 0x170   : > { %8508 = vmatmul.msk.bf16.gmra.mxu2 %vm732_vm1, %v1304_v42  ;;  %v2333_v29 = vpop.f32.mrf.mxu0  ;;  %v2591_v42 = vrot.slane %v8670_v5, 5  ;;  %v2397_v43 = vadd.f32 %v2330_v8, %v1743_v18  ;;  %v3157_v8 = vshll.u32 %v8851_v40, 16  ;;  %v3167_v18 = vshrl.u32 %v10551_v6, 16 }
 0x172   : > { %v2593_v4 = vrot.slane %v2591_v42, 4 }
 0x173   : > { %v1392_v61 = vpop.f32.mrf.mxu2  ;;  %8686 = vmatmul.msk.bf16.gmra.mxu0 %vm732_vm1, %v2245_v22  ;;  %8622 = vmatmul.msk.bf16.gmra.mxu3 %vm732_vm1, %v9582_v60  ;;  %v10545_v35 = vpop.f32.mrf.mxu1  ;;  %v3154_v22 = vshrl.u32 %v8851_v40, 16  ;;  %v10559_v60 = vadd.f32 %v10478_v59, %v2397_v43  ;;  %v1109_v40 = vld [vmem:[%s9787_s10 + $0xb4] sm:$0xe]  ;;  %v10570_v43 = vrot.slane %v2184_v7, 5 }
 0x174   : > { %v1457_v9 = vadd.f32 %v1392_v61, %v10226_v32  ;;  %v2173_v32 = vsel %vm9809_vm4, %v2168_v11, %v2172_v57  ;;  %v2594_v11 = vrot.slane %v8671_v53, 5  ;;  %v9674_v57 = vld [vmem:[%s9787_s10 + $0xb8] sm:$0xf]  ;;  %v2177_v61 = vrot.slane %v2175_v55, 4  ;;  %v9675_v55 = vld [vmem:[%s9787_s10 + $0xbc] sm:$0x1] }
 0x175   : > { %12977 = vst [vmem:[#allocation10_spill] sm:$0xff] %v10559_v60  ;;  %v1252_v59 = vrot.slane %v9674_v57, 5  ;;  %v2229_v5 = vunpack.c.l.b16 %v2173_v32  ;;  %v3159_v60 = vrot.slane %v3157_v8, 5  ;;  %v3169_v57 = vrot.slane %v3167_v18, 4 }
 0x176   : > { %v1744_v3 = vadd.f32 %v1679_v30, %v1457_v9  ;;  %v10556_v54 = vpop.f32.mrf.mxu3  ;;  %8736 = vmatmul.msk.bf16.gmra.mxu1 %vm732_vm1, %v2644_v13  ;;  %v3163_v30 = vshll.u32 %v10551_v6, 16  ;;  %v1255_v37 = vrot.slane %v9675_v55, 5  ;;  %v2592_v32 = vsel %vm10025_vm7, %v8720_v33, %v2591_v42 }
 0x177   : > { %v2595_v7 = vsel %vm10025_vm7, %v2593_v4, %v2594_v11  ;;  %v2246_v8 = vpack.c.b16 %v2229_v5, %v2228_v27  ;;  %v3173_v55 = vshll.u32 %v10574_v36, 16  ;;  %v2628_v42 = vunpack.c.l.b16 %v2592_v32  ;;  %v9045_v27 = vld [vmem:[%s12962_s3 + $0x2] sm:$0x3] }
 0x178   : > { %v2398_v41 = vadd.f32 %v2333_v29, %v1744_v3  ;;  %v2335_v38 = vpop.f32.mrf.mxu0  ;;  %v2190_v29 = vrot.slane %v2188_v20, 4  ;;  %v3156_v3 = vrot.slane %v3154_v22, 4  ;;  %v10576_v52 = vrot.slane %v3163_v30, 5 }
 0x179   : > { %v1254_v22 = vrot.slane %v1252_v59, 4  ;;  %v2629_v33 = vunpack.c.l.b16 %v2595_v7 }
 0x17a   : > { %v10567_v9 = vadd.f32 %v10503_v2, %v2398_v41  ;;  %v2181_v41 = vor.u32 %v2180_v28, %v2177_v61  ;;  %v2191_v18 = vor.u32 %v2190_v29, %v10570_v43  ;;  %v3160_v10 = vor.u32 %v3159_v60, %v3156_v3 }
 0x17b   : > { %v1394_v13 = vpop.f32.mrf.mxu2  ;;  %v10579_v2 = vpop.f32.mrf.mxu1  ;;  %v3170_v4 = vor.u32 %v3169_v57, %v10576_v52  ;;  %v3175_v29 = vrot.slane %v3173_v55, 5 }
 0x17c   : > { %12978 = vst [vmem:[#allocation11_spill] sm:$0xff] %v10567_v9  ;;  %v1458_v16 = vadd.f32 %v1394_v13, %v10245_v45  ;;  %v8493_v45 = vrot.slane %v1109_v40, 9  ;;  %v2194_v13 = vshll.u32 %v8671_v53, 16  ;;  %v9583_v9 = vld [vmem:[%s9787_s10 + $0xc0] sm:$0xff]  ;;  %v1256_v53 = vsel %vm10025_vm7, %v1254_v22, %v1255_v37 }
 0x17d   : > { %v2182_v28 = vrot.slane %v2181_v41, 4  ;;  %v2192_v40 = vrot.slane %v2191_v18, 4  ;;  %v3171_v57 = vrot.slane %v3170_v4, 4  ;;  %v9078_v37 = vld [vmem:[%s12962_s3 + $0x4] sm:$0x3] }
 0x17e   : > { %v1745_v20 = vadd.f32 %v10535_v12, %v1458_v16  ;;  %v10586_v30 = vpop.f32.mrf.mxu3  ;;  %v1253_v61 = vsel %vm10025_vm7, %v8493_v45, %v1252_v59  ;;  %v2196_v60 = vrot.slane %v2194_v13, 5  ;;  %v2645_v59 = vpack.c.b16 %v2629_v33, %v2628_v42  ;;  %v10616_v45 = vld [vmem:[%s9787_s10 + $0x28] sm:$0xf]  ;;  %v9127_v4 = vld [vmem:[%s12962_s3 + $0x6] sm:$0x3] }
 0x17f   : > { %v3161_v16 = vrot.slane %v3160_v10, 4  ;;  %v5371_v7 = vsel %vm781_vm0, %v9078_v37, 0  ;;  %v1289_v22 = vunpack.c.l.b16 %v1253_v61  ;;  %v2187_v10 = vsel %vm9809_vm4, %v2182_v28, %v10570_v43 }
 0x180   : > { %8509 = vmatmul.msk.bf16.gmra.mxu2 %vm732_vm1, %v1305_v23  ;;  %v2338_v12 = vpop.f32.mrf.mxu0  ;;  %v2399_v11 = vadd.f32 %v2335_v38, %v1745_v20  ;;  %v4973_v23 = vsel %vm781_vm0, %v9045_v27, 0  ;;  %5380 = vmatpush.bf16.msrb.mxu3 %v5371_v7  ;;  %v8854_v20 = vld [vmem:[%s9787_s10 + $0x24] sm:$0xf]  ;;  %v2197_v41 = vsel %vm9809_vm4, %v2192_v40, %v2196_v60  ;;  %v3187_v33 = vshll.u32 %v10616_v45, 16 }
 0x181   : > { %4982 = vmatpush.bf16.msrb.mxu2 %v4973_v23  ;;  %v3178_v55 = vshrl.u32 %v8854_v20, 16  ;;  %v3181_v42 = vshll.u32 %v8854_v20, 16  ;;  %v3191_v43 = vshrl.u32 %v10616_v45, 16  ;;  %v5658_v27 = vsel %vm781_vm0, %v9127_v4, 0  ;;  %v10669_v4 = vld [vmem:[%s9787_s10 + $0x34] sm:$0xf] }
 0x182   : > { %v10602_v3 = vadd.f32 %v10523_v34, %v2399_v11  ;;  %5667 = vmatpush.bf16.msrb.mxu0 %v5658_v27  ;;  %v2231_v28 = vunpack.c.l.b16 %v2197_v41 }
 0x183   : > { %v1397_v5 = vpop.f32.mrf.mxu2  ;;  %8687 = vmatmul.msk.bf16.gmra.mxu0 %vm732_vm1, %v2246_v8  ;;  %8623 = vmatmul.msk.bf16.gmra.mxu3 %vm732_vm1, %v9583_v9  ;;  %v10610_v32 = vpop.f32.mrf.mxu1  ;;  %v1290_v9 = vunpack.c.l.b16 %v1256_v53  ;;  %v3176_v8 = vsel %vm9809_vm4, %v3171_v57, %v3175_v29  ;;  %v3180_v60 = vrot.slane %v3178_v55, 4  ;;  %v3183_v29 = vrot.slane %v3181_v42, 5  ;;  %v9256_v57 = vld [vmem:[%s12962_s3 + $0x8] sm:$0x3] }
 0x184   : > { %v1459_v38 = vadd.f32 %v1397_v5, %v10258_v15  ;;  %v3540_v5 = vunpack.c.l.b16 %v3176_v8  ;;  %v6312_v7 = vsel %vm781_vm0, %v9256_v57, 0 }
 0x185   : > { %v1306_v61 = vpack.c.b16 %v1290_v9, %v1289_v22  ;;  %v3825_v22 = vrot.slane %v10551_v6, 5  ;;  %6321 = vmatpush.bf16.msrb.mxu1 %v6312_v7  ;;  %v3184_v9 = vor.u32 %v3183_v29, %v3180_v60  ;;  %v3215_v60 = vshrl.u32 %v10669_v4, 16 }
 0x186   : > { %v1746_v34 = vadd.f32 %v10556_v54, %v1459_v38  ;;  %v1689_v15 = vpop.f32.mrf.mxu3  ;;  %8737 = vmatmul.msk.bf16.gmra.mxu1 %vm732_vm1, %v2645_v59  ;;  %v3166_v54 = vsel %vm9809_vm4, %v3161_v16, %v10576_v52  ;;  %v3189_v38 = vrot.slane %v3187_v33, 5  ;;  %v3193_v59 = vrot.slane %v3191_v43, 4  ;;  %v10643_v16 = vld [vmem:[%s9787_s10 + $0x2c] sm:$0x1]  ;;  %v9600_v33 = vld [vmem:[%s10657_s7] sm:$0xff] }
 0x187   : > { %v3539_v23 = vunpack.c.l.b16 %v3166_v54  ;;  %v3197_v41 = vshll.u32 %v10643_v16, 16  ;;  %v3827_v42 = vrot.slane %v3825_v22, 4  ;;  %v8857_v43 = vld [vmem:[%s9787_s10 + $0x30] sm:$0xf] }
 0x188   : > { %v2400_v18 = vadd.f32 %v2338_v12, %v1746_v34  ;;  %v2340_v13 = vpop.f32.mrf.mxu0  ;;  %v2230_v12 = vunpack.c.l.b16 %v2187_v10  ;;  %v3194_v10 = vor.u32 %v3193_v59, %v3189_v38 }
 0x189   : > { %v3571_v20 = vpack.c.b16 %v3540_v5, %v3539_v23  ;;  %v3205_v23 = vshll.u32 %v8857_v43, 16  ;;  %v3211_v5 = vshll.u32 %v10669_v4, 16 }
 0x18a   : > { %v10636_v52 = vadd.f32 %v10545_v35, %v2400_v18  ;;  %v2247_v34 = vpack.c.b16 %v2231_v28, %v2230_v12  ;;  %v3199_v12 = vrot.slane %v3197_v41, 5 }
 0x18b   : > { %v1399_v11 = vpop.f32.mrf.mxu2  ;;  %v10639_v40 = vpop.f32.mrf.mxu1 }
 0x18c   : > { %v1460_v53 = vadd.f32 %v1399_v11, %v10277_v1  ;;  %v8916_v1 = vld [vmem:[%s9787_s10 + $0x18] sm:$0xe]  ;;  %v3185_v11 = vrot.slane %v3184_v9, 4 }
 0x18d   : > { %v8932_v8 = vrot.slane %v8916_v1, 9 }
 0x18e   : > { %v1747_v35 = vadd.f32 %v10586_v30, %v1460_v53  ;;  %v1691_v37 = vpop.f32.mrf.mxu3 }
 0x18f   : > { %v3826_v53 = vsel %vm10025_vm7, %v8932_v8, %v3825_v22  ;;  %v3213_v22 = vrot.slane %v3211_v5, 5 }
 0x190   : > { %8510 = vmatmul.msk.bf16.gmra.mxu2 %vm732_vm1, %v1306_v61  ;;  %v2343_v30 = vpop.f32.mrf.mxu0  ;;  %v2401_v54 = vadd.f32 %v2340_v13, %v1747_v35  ;;  %v3828_v13 = vrot.slane %v10574_v36, 5  ;;  %v3195_v61 = vrot.slane %v3194_v10, 4  ;;  %v3937_v57 = vunpack.c.l.b16 %v3826_v53  ;;  %v9584_v10 = vld [vmem:[%s9787_s10 + $0x18] sm:$0xff] }
 0x192   : > { %v10661_v6 = vadd.f32 %v10579_v2, %v2401_v54  ;;  %v3829_v36 = vsel %vm10025_vm7, %v3827_v42, %v3828_v13  ;;  %v3200_v35 = vsel %vm9809_vm4, %v3195_v61, %v3199_v12 }
 0x193   : > { %v1402_v18 = vpop.f32.mrf.mxu2  ;;  %8688 = vmatmul.msk.bf16.gmra.mxu0 %vm732_vm1, %v2247_v34  ;;  %8900 = vmatmul.msk.bf16.vlgmr.msra.gmra.mxu3 %vm732_vm1, %v3571_v20  ;;  %v10671_v27 = vpop.f32.mrf.mxu1  ;;  %v3207_v20 = vrot.slane %v3205_v23, 5  ;;  %v3938_v41 = vunpack.c.l.b16 %v3829_v36  ;;  %v3542_v8 = vunpack.c.l.b16 %v3200_v35  ;;  %v8860_v35 = vld [vmem:[%s9787_s10 + $0x3c] sm:$0xf] }
 0x194   : > { %v1461_v55 = vadd.f32 %v1402_v18, %v10290_v50  ;;  %v3202_v50 = vshrl.u32 %v8857_v43, 16 }
 0x196   : > { %v1748_v2 = vadd.f32 %v1689_v15, %v1461_v55  ;;  %v1694_v28 = vpop.f32.mrf.mxu3  ;;  %9029 = vmatmul.msk.bf16.vlgmr.msra.gmra.mxu1 %vm732_vm1, %v9600_v33  ;;  %v3190_v15 = vsel %vm9809_vm4, %v3185_v11, %v3189_v38  ;;  %v3204_v34 = vrot.slane %v3202_v50, 4  ;;  %v10691_v38 = vld [vmem:[%s9787_s10 + $0x38] sm:$0x1]  ;;  %v8917_v33 = vld [vmem:[%s9787_s10 + $0x24] sm:$0xe] }
 0x197   : > { %v3541_v54 = vunpack.c.l.b16 %v3190_v15  ;;  %v3221_v11 = vshll.u32 %v10691_v38, 16  ;;  %v8933_v53 = vrot.slane %v8917_v33, 9  ;;  %v9601_v15 = vld [vmem:[%s10657_s7 + $0xc] sm:$0xff] }
 0x198   : > { %v2402_v29 = vadd.f32 %v2343_v30, %v1748_v2  ;;  %v2345_v59 = vpop.f32.mrf.mxu0  ;;  %v3217_v30 = vrot.slane %v3215_v60, 4  ;;  %v3208_v43 = vor.u32 %v3207_v20, %v3204_v34 }
 0x199   : > { %v3572_v61 = vpack.c.b16 %v3542_v8, %v3541_v54  ;;  %v3223_v60 = vrot.slane %v3221_v11, 5 }
 0x19a   : > { %v10686_v1 = vadd.f32 %v10610_v32, %v2402_v29  ;;  %v3832_v32 = vrot.slane %v10616_v45, 5  ;;  %v3218_v13 = vor.u32 %v3217_v30, %v3213_v22  ;;  %v3209_v23 = vrot.slane %v3208_v43, 4 }
 0x19b   : > { %v1404_v7 = vpop.f32.mrf.mxu2  ;;  %v10693_v18 = vpop.f32.mrf.mxu1  ;;  %v3226_v30 = vshrl.u32 %v8860_v35, 16 }
 0x19c   : > { %v1462_v9 = vadd.f32 %v1404_v7, %v10311_v56  ;;  %v3969_v56 = vpack.c.b16 %v3938_v41, %v3937_v57  ;;  %v3834_v50 = vrot.slane %v3832_v32, 4  ;;  %v3219_v5 = vrot.slane %v3218_v13, 4  ;;  %v10711_v57 = vld [vmem:[%s9787_s10 + $0x40] sm:$0xf] }
 0x19d   : > { %v3833_v7 = vsel %vm10025_vm7, %v8933_v53, %v3832_v32  ;;  %v3214_v20 = vsel %vm9809_vm4, %v3209_v23, %v3213_v22  ;;  %v3228_v13 = vrot.slane %v3226_v30, 4  ;;  %v3839_v23 = vrot.slane %v10669_v4, 5  ;;  %v9602_v30 = vld [vmem:[%s10657_s7 + $0x18] sm:$0xff] }
 0x19e   : > { %v1749_v55 = vadd.f32 %v1691_v37, %v1462_v9  ;;  %v1696_v42 = vpop.f32.mrf.mxu3  ;;  %v3835_v37 = vrot.slane %v10643_v16, 5  ;;  %v3229_v9 = vshll.u32 %v8860_v35, 16  ;;  %v3939_v8 = vunpack.c.l.b16 %v3833_v7 }
 0x19f   : > { %v3543_v33 = vunpack.c.l.b16 %v3214_v20  ;;  %v3842_v20 = vrot.slane %v10691_v38, 5 }
 0x1a0   : > { %8835 = vmatmul.msk.bf16.vlgmr.msra.gmra.mxu2 %vm732_vm1, %v9584_v10  ;;  %v2348_v12 = vpop.f32.mrf.mxu0  ;;  %v2403_v2 = vadd.f32 %v2345_v59, %v1749_v55  ;;  %v3239_v10 = vshrl.u32 %v10711_v57, 16 }
 0x1a2   : > { %v10701_v29 = vadd.f32 %v10639_v40, %v2403_v2  ;;  %v3836_v40 = vsel %vm10025_vm7, %v3834_v50, %v3835_v37  ;;  %v3241_v53 = vrot.slane %v3239_v10, 4 }
 0x1a3   : > { %v1407_v45 = vpop.f32.mrf.mxu2  ;;  %8949 = vmatmul.msk.bf16.vlgmr.msra.gmra.mxu0 %vm732_vm1, %v3969_v56  ;;  %8901 = vmatmul.msk.bf16.gmra.mxu3 %vm732_vm1, %v3572_v61  ;;  %v10708_v59 = vpop.f32.mrf.mxu1  ;;  %v3940_v32 = vunpack.c.l.b16 %v3836_v40  ;;  %v9585_v56 = vld [vmem:[%s9787_s10 + $0x24] sm:$0xff]  ;;  %v3231_v61 = vrot.slane %v3229_v9, 5 }
 0x1a4   : > { %v1463_v36 = vadd.f32 %v1407_v45, %v10069_v47  ;;  %v3224_v47 = vsel %vm9809_vm4, %v3219_v5, %v3223_v60  ;;  %v8918_v60 = vld [vmem:[%s9787_s10 + $0x30] sm:$0xe] }
 0x1a5   : > { %v3544_v43 = vunpack.c.l.b16 %v3224_v47  ;;  %v3970_v45 = vpack.c.b16 %v3940_v32, %v3939_v8  ;;  %v8934_v40 = vrot.slane %v8918_v60, 9  ;;  %v8863_v8 = vld [vmem:[%s9787_s10 + $0x48] sm:$0xf] }
 0x1a6   : > { %v1750_v16 = vadd.f32 %v1694_v28, %v1463_v36  ;;  %v1699_v34 = vpop.f32.mrf.mxu3  ;;  %9030 = vmatmul.msk.bf16.gmra.mxu1 %vm732_vm1, %v9601_v15  ;;  %v3235_v28 = vshll.u32 %v10711_v57, 16  ;;  %v3232_v36 = vor.u32 %v3231_v61, %v3228_v13  ;;  %v3250_v13 = vshrl.u32 %v8863_v8, 16 }
 0x1a7   : > { %v3573_v5 = vpack.c.b16 %v3544_v43, %v3543_v33 }
 0x1a8   : > { %v2404_v41 = vadd.f32 %v2348_v12, %v1750_v16  ;;  %v2350_v54 = vpop.f32.mrf.mxu0  ;;  %v3237_v2 = vrot.slane %v3235_v28, 5  ;;  %v10732_v12 = vld [vmem:[%s9787_s10 + $0x44] sm:$0x1]  ;;  %v3233_v9 = vrot.slane %v3232_v36, 4 }
 0x1a9   : > { %v3245_v15 = vshll.u32 %v10732_v12, 16 }
 0x1aa   : > { %v10725_v55 = vadd.f32 %v10671_v27, %v2404_v41  ;;  %v3238_v32 = vsel %vm9809_vm4, %v3233_v9, %v3237_v2 }
 0x1ab   : > { %v1409_v22 = vpop.f32.mrf.mxu2  ;;  %v10729_v50 = vpop.f32.mrf.mxu1  ;;  %v3247_v10 = vrot.slane %v3245_v15, 5  ;;  %v3545_v60 = vunpack.c.l.b16 %v3238_v32  ;;  %v3252_v15 = vrot.slane %v3250_v13, 4  ;;  %v10786_v13 = vld [vmem:[%s9787_s10 + $0x58] sm:$0xf] }
 0x1ac   : > { %v1464_v11 = vadd.f32 %v1409_v22, %v10088_v21  ;;  %v3242_v21 = vor.u32 %v3241_v53, %v3237_v2  ;;  %v10750_v22 = vld [vmem:[%s9787_s10 + $0x4c] sm:$0xf] }
 0x1ad   : > { %v3263_v61 = vshrl.u32 %v10750_v22, 16 }
 0x1ae   : > { %v1751_v37 = vadd.f32 %v1696_v42, %v1464_v11  ;;  %v1701_v27 = vpop.f32.mrf.mxu3  ;;  %v3841_v42 = vrot.slane %v3839_v23, 4  ;;  %v3243_v28 = vrot.slane %v3242_v21, 4  ;;  %v3253_v11 = vshll.u32 %v8863_v8, 16 }
 0x1b0   : > { %8836 = vmatmul.msk.bf16.gmra.mxu2 %vm732_vm1, %v9585_v56  ;;  %v2353_v35 = vpop.f32.mrf.mxu0  ;;  %v2405_v16 = vadd.f32 %v2350_v54, %v1751_v37  ;;  %v3248_v33 = vsel %vm9809_vm4, %v3243_v28, %v3247_v10  ;;  %v3259_v56 = vshll.u32 %v10750_v22, 16 }
 0x1b1   : > { %v3546_v36 = vunpack.c.l.b16 %v3248_v33 }
 0x1b2   : > { %v10740_v4 = vadd.f32 %v10693_v18, %v2405_v16  ;;  %v3840_v18 = vsel %vm10025_vm7, %v8934_v40, %v3839_v23  ;;  %v9586_v23 = vld [vmem:[%s9787_s10 + $0x30] sm:$0xff]  ;;  %v3261_v16 = vrot.slane %v3259_v56, 5 }
 0x1b3   : > { %v1412_v7 = vpop.f32.mrf.mxu2  ;;  %8950 = vmatmul.msk.bf16.gmra.mxu0 %vm732_vm1, %v3970_v45  ;;  %8902 = vmatmul.msk.bf16.gmra.mxu3 %vm732_vm1, %v3573_v5  ;;  %v10746_v41 = vpop.f32.mrf.mxu1  ;;  %v3941_v45 = vunpack.c.l.b16 %v3840_v18 }
 0x1b4   : > { %v1465_v47 = vadd.f32 %v1412_v7, %v10105_v48  ;;  %v3843_v48 = vsel %vm10025_vm7, %v3841_v42, %v3842_v20  ;;  %v3265_v7 = vrot.slane %v3263_v61, 4  ;;  %v10771_v42 = vld [vmem:[%s9787_s10 + $0x50] sm:$0x1]  ;;  %v8919_v20 = vld [vmem:[%s9787_s10 + $0x3c] sm:$0xe] }
 0x1b5   : > { %v3942_v5 = vunpack.c.l.b16 %v3843_v48 }
 0x1b6   : > { %v1752_v54 = vadd.f32 %v1699_v34, %v1465_v47  ;;  %v1704_v38 = vpop.f32.mrf.mxu3  ;;  %9031 = vmatmul.msk.bf16.gmra.mxu1 %vm732_vm1, %v9602_v30  ;;  %v3846_v30 = vrot.slane %v10711_v57, 5  ;;  %v3266_v10 = vor.u32 %v3265_v7, %v3261_v16  ;;  %v8866_v57 = vld [vmem:[%s9787_s10 + $0x54] sm:$0xf] }
 0x1b7   : > { %v3971_v47 = vpack.c.b16 %v3942_v5, %v3941_v45  ;;  %v3283_v5 = vshll.u32 %v10786_v13, 16 }
 0x1b8   : > { %v2406_v34 = vadd.f32 %v2353_v35, %v1752_v54  ;;  %v2355_v43 = vpop.f32.mrf.mxu0  ;;  %v3255_v35 = vrot.slane %v3253_v11, 5  ;;  %v3269_v54 = vshll.u32 %v10771_v42, 16  ;;  %v3848_v33 = vrot.slane %v3846_v30, 4 }
 0x1b9   : > { %v3267_v61 = vrot.slane %v3266_v10, 4  ;;  %v9587_v10 = vld [vmem:[%s9787_s10 + $0x3c] sm:$0xff] }
 0x1ba   : > { %v10764_v53 = vadd.f32 %v10708_v59, %v2406_v34  ;;  %v3256_v28 = vor.u32 %v3255_v35, %v3252_v15  ;;  %v9603_v34 = vld [vmem:[%s10657_s7 + $0x24] sm:$0xff] }
 0x1bb   : > { %v1414_v37 = vpop.f32.mrf.mxu2  ;;  %v10768_v21 = vpop.f32.mrf.mxu1 }
 0x1bc   : > { %v1466_v2 = vadd.f32 %v1414_v37, %v10119_v19  ;;  %v3574_v19 = vpack.c.b16 %v3546_v36, %v3545_v60  ;;  %v3257_v56 = vrot.slane %v3256_v28, 4  ;;  %v3271_v37 = vrot.slane %v3269_v54, 5 }
 0x1bd   : > { %v3287_v60 = vshrl.u32 %v10786_v13, 16 }
 0x1be   : > { %v1753_v40 = vadd.f32 %v1701_v27, %v1466_v2  ;;  %v1706_v59 = vpop.f32.mrf.mxu3  ;;  %v8935_v27 = vrot.slane %v8919_v20, 9  ;;  %v3272_v35 = vsel %vm9809_vm4, %v3267_v61, %v3271_v37 }
 0x1c0   : > { %8837 = vmatmul.msk.bf16.gmra.mxu2 %vm732_vm1, %v9586_v23  ;;  %v2358_v9 = vpop.f32.mrf.mxu0  ;;  %v2407_v8 = vadd.f32 %v2355_v43, %v1753_v40  ;;  %v3849_v43 = vrot.slane %v10732_v12, 5  ;;  %v3847_v45 = vsel %vm10025_vm7, %v8935_v27, %v3846_v30  ;;  %v3277_v23 = vshll.u32 %v8866_v57, 16 }
 0x1c1   : > { %v3943_v7 = vunpack.c.l.b16 %v3847_v45  ;;  %v3285_v30 = vrot.slane %v3283_v5, 5  ;;  %v3548_v27 = vunpack.c.l.b16 %v3272_v35  ;;  %v8869_v35 = vld [vmem:[%s9787_s10 + $0x60] sm:$0xf] }
 0x1c2   : > { %v10778_v48 = vadd.f32 %v10729_v50, %v2407_v8  ;;  %v3850_v12 = vsel %vm10025_vm7, %v3848_v33, %v3849_v43 }
 0x1c3   : > { %v1417_v18 = vpop.f32.mrf.mxu2  ;;  %8951 = vmatmul.msk.bf16.gmra.mxu0 %vm732_vm1, %v3971_v47  ;;  %8903 = vmatmul.msk.bf16.gmra.mxu3 %vm732_vm1, %v3574_v19  ;;  %v10788_v11 = vpop.f32.mrf.mxu1  ;;  %v3279_v19 = vrot.slane %v3277_v23, 5  ;;  %v3944_v54 = vunpack.c.l.b16 %v3850_v12 }
 0x1c4   : > { %v1467_v32 = vadd.f32 %v1417_v18, %v10135_v62  ;;  %v3274_v62 = vshrl.u32 %v8866_v57, 16 }
 0x1c6   : > { %v1754_v50 = vadd.f32 %v1704_v38, %v1467_v32  ;;  %v1709_v2 = vpop.f32.mrf.mxu3  ;;  %9032 = vmatmul.msk.bf16.gmra.mxu1 %vm732_vm1, %v9603_v34  ;;  %v3262_v38 = vsel %vm9809_vm4, %v3257_v56, %v3261_v16  ;;  %v3276_v47 = vrot.slane %v3274_v62, 4  ;;  %v10808_v16 = vld [vmem:[%s9787_s10 + $0x5c] sm:$0x1]  ;;  %v8920_v34 = vld [vmem:[%s9787_s10 + $0x48] sm:$0xe] }
 0x1c7   : > { %v3547_v8 = vunpack.c.l.b16 %v3262_v38  ;;  %v3293_v56 = vshll.u32 %v10808_v16, 16  ;;  %v8936_v45 = vrot.slane %v8920_v34, 9  ;;  %v9604_v38 = vld [vmem:[%s10657_s7 + $0x30] sm:$0xff] }
 0x1c8   : > { %v2408_v36 = vadd.f32 %v2358_v9, %v1754_v50  ;;  %v2360_v15 = vpop.f32.mrf.mxu0  ;;  %v3289_v9 = vrot.slane %v3287_v60, 4  ;;  %v3280_v57 = vor.u32 %v3279_v19, %v3276_v47 }
 0x1c9   : > { %v3575_v61 = vpack.c.b16 %v3548_v27, %v3547_v8  ;;  %v3295_v60 = vrot.slane %v3293_v56, 5 }
 0x1ca   : > { %v10803_v40 = vadd.f32 %v10746_v41, %v2408_v36  ;;  %v3853_v41 = vrot.slane %v10750_v22, 5  ;;  %v3290_v43 = vor.u32 %v3289_v9, %v3285_v30  ;;  %v3281_v23 = vrot.slane %v3280_v57, 4 }
 0x1cb   : > { %v1419_v20 = vpop.f32.mrf.mxu2  ;;  %v10810_v18 = vpop.f32.mrf.mxu1  ;;  %v3298_v9 = vshrl.u32 %v8869_v35, 16 }
 0x1cc   : > { %v1468_v28 = vadd.f32 %v1419_v20, %v10152_v46  ;;  %v3972_v46 = vpack.c.b16 %v3944_v54, %v3943_v7  ;;  %v3855_v62 = vrot.slane %v3853_v41, 4  ;;  %v3291_v5 = vrot.slane %v3290_v43, 4  ;;  %v10828_v7 = vld [vmem:[%s9787_s10 + $0x64] sm:$0xf] }
 0x1cd   : > { %v3854_v20 = vsel %vm10025_vm7, %v8936_v45, %v3853_v41  ;;  %v3286_v19 = vsel %vm9809_vm4, %v3281_v23, %v3285_v30  ;;  %v3300_v43 = vrot.slane %v3298_v9, 4  ;;  %v3860_v23 = vrot.slane %v10786_v13, 5  ;;  %v9605_v9 = vld [vmem:[%s10657_s7 + $0x3c] sm:$0xff] }
 0x1ce   : > { %v1755_v32 = vadd.f32 %v1706_v59, %v1468_v28  ;;  %v1711_v33 = vpop.f32.mrf.mxu3  ;;  %v3856_v59 = vrot.slane %v10771_v42, 5  ;;  %v3301_v28 = vshll.u32 %v8869_v35, 16  ;;  %v3945_v27 = vunpack.c.l.b16 %v3854_v20 }
 0x1cf   : > { %v3549_v34 = vunpack.c.l.b16 %v3286_v19  ;;  %v3863_v19 = vrot.slane %v10808_v16, 5 }
 0x1d0   : > { %8838 = vmatmul.msk.bf16.gmra.mxu2 %vm732_vm1, %v9587_v10  ;;  %v2363_v37 = vpop.f32.mrf.mxu0  ;;  %v2409_v50 = vadd.f32 %v2360_v15, %v1755_v32  ;;  %v3311_v10 = vshrl.u32 %v10828_v7, 16 }
 0x1d2   : > { %v10818_v36 = vadd.f32 %v10768_v21, %v2409_v50  ;;  %v3857_v21 = vsel %vm10025_vm7, %v3855_v62, %v3856_v59  ;;  %v3313_v45 = vrot.slane %v3311_v10, 4 }
 0x1d3   : > { %v1422_v22 = vpop.f32.mrf.mxu2  ;;  %8952 = vmatmul.msk.bf16.gmra.mxu0 %vm732_vm1, %v3972_v46  ;;  %8904 = vmatmul.msk.bf16.gmra.mxu3 %vm732_vm1, %v3575_v61  ;;  %v10825_v15 = vpop.f32.mrf.mxu1  ;;  %v3946_v41 = vunpack.c.l.b16 %v3857_v21  ;;  %v9588_v46 = vld [vmem:[%s9787_s10 + $0x48] sm:$0xff]  ;;  %v3303_v61 = vrot.slane %v3301_v28, 5 }
 0x1d4   : > { %v1469_v12 = vadd.f32 %v1422_v22, %v10169_v63  ;;  %v3296_v63 = vsel %vm9809_vm4, %v3291_v5, %v3295_v60  ;;  %v8921_v60 = vld [vmem:[%s9787_s10 + $0x54] sm:$0xe] }
 0x1d5   : > { %v3550_v57 = vunpack.c.l.b16 %v3296_v63  ;;  %v3973_v22 = vpack.c.b16 %v3946_v41, %v3945_v27  ;;  %v8937_v21 = vrot.slane %v8921_v60, 9  ;;  %v8872_v27 = vld [vmem:[%s9787_s10 + $0x6c] sm:$0xf] }
 0x1d6   : > { %v1756_v42 = vadd.f32 %v1709_v2, %v1469_v12  ;;  %v1714_v47 = vpop.f32.mrf.mxu3  ;;  %9033 = vmatmul.msk.bf16.gmra.mxu1 %vm732_vm1, %v9604_v38  ;;  %v3307_v2 = vshll.u32 %v10828_v7, 16  ;;  %v3304_v12 = vor.u32 %v3303_v61, %v3300_v43  ;;  %v3322_v43 = vshrl.u32 %v8872_v27, 16 }
 0x1d7   : > { %v3576_v5 = vpack.c.b16 %v3550_v57, %v3549_v34 }
 0x1d8   : > { %v2410_v54 = vadd.f32 %v2363_v37, %v1756_v42  ;;  %v2365_v8 = vpop.f32.mrf.mxu0  ;;  %v3309_v50 = vrot.slane %v3307_v2, 5  ;;  %v10849_v37 = vld [vmem:[%s9787_s10 + $0x68] sm:$0x1]  ;;  %v3305_v28 = vrot.slane %v3304_v12, 4 }
 0x1d9   : > { %v3317_v38 = vshll.u32 %v10849_v37, 16 }
 0x1da   : > { %v10842_v32 = vadd.f32 %v10788_v11, %v2410_v54  ;;  %v3310_v41 = vsel %vm9809_vm4, %v3305_v28, %v3309_v50 }
 0x1db   : > { %v1424_v30 = vpop.f32.mrf.mxu2  ;;  %v10846_v62 = vpop.f32.mrf.mxu1  ;;  %v3319_v10 = vrot.slane %v3317_v38, 5  ;;  %v3551_v60 = vunpack.c.l.b16 %v3310_v41  ;;  %v3324_v38 = vrot.slane %v3322_v43, 4  ;;  %v10903_v43 = vld [vmem:[%s9787_s10 + $0x7c] sm:$0xf] }
 0x1dc   : > { %v1470_v56 = vadd.f32 %v1424_v30, %v10183_v58  ;;  %v3314_v58 = vor.u32 %v3313_v45, %v3309_v50  ;;  %v10867_v30 = vld [vmem:[%s9787_s10 + $0x70] sm:$0xf] }
 0x1dd   : > { %v3335_v61 = vshrl.u32 %v10867_v30, 16 }
 0x1de   : > { %v1757_v59 = vadd.f32 %v1711_v33, %v1470_v56  ;;  %v1716_v11 = vpop.f32.mrf.mxu3  ;;  %v3862_v33 = vrot.slane %v3860_v23, 4  ;;  %v3315_v2 = vrot.slane %v3314_v58, 4  ;;  %v3325_v56 = vshll.u32 %v8872_v27, 16 }
 0x1e0   : > { %8839 = vmatmul.msk.bf16.gmra.mxu2 %vm732_vm1, %v9588_v46  ;;  %v2368_v35 = vpop.f32.mrf.mxu0  ;;  %v2411_v42 = vadd.f32 %v2365_v8, %v1757_v59  ;;  %v3320_v34 = vsel %vm9809_vm4, %v3315_v2, %v3319_v10  ;;  %v3331_v46 = vshll.u32 %v10867_v30, 16 }
 0x1e1   : > { %v3552_v12 = vunpack.c.l.b16 %v3320_v34 }
 0x1e2   : > { %v10857_v13 = vadd.f32 %v10810_v18, %v2411_v42  ;;  %v3861_v18 = vsel %vm10025_vm7, %v8937_v21, %v3860_v23  ;;  %v9589_v23 = vld [vmem:[%s9787_s10 + $0x54] sm:$0xff]  ;;  %v3333_v42 = vrot.slane %v3331_v46, 5 }
 0x1e3   : > { %v1427_v20 = vpop.f32.mrf.mxu2  ;;  %8953 = vmatmul.msk.bf16.gmra.mxu0 %vm732_vm1, %v3973_v22  ;;  %8905 = vmatmul.msk.bf16.gmra.mxu3 %vm732_vm1, %v3576_v5  ;;  %v10863_v54 = vpop.f32.mrf.mxu1  ;;  %v3947_v22 = vunpack.c.l.b16 %v3861_v18 }
 0x1e4   : > { %v1471_v63 = vadd.f32 %v1427_v20, %v10199_v25  ;;  %v3864_v25 = vsel %vm10025_vm7, %v3862_v33, %v3863_v19  ;;  %v3337_v20 = vrot.slane %v3335_v61, 4  ;;  %v10888_v33 = vld [vmem:[%s9787_s10 + $0x74] sm:$0x1]  ;;  %v8922_v19 = vld [vmem:[%s9787_s10 + $0x60] sm:$0xe] }
 0x1e5   : > { %v3948_v5 = vunpack.c.l.b16 %v3864_v25 }
 0x1e6   : > { %v1758_v8 = vadd.f32 %v1714_v47, %v1471_v63  ;;  %v1719_v16 = vpop.f32.mrf.mxu3  ;;  %9034 = vmatmul.msk.bf16.gmra.mxu1 %vm732_vm1, %v9605_v9  ;;  %v3867_v9 = vrot.slane %v10828_v7, 5  ;;  %v3338_v10 = vor.u32 %v3337_v20, %v3333_v42  ;;  %v8875_v7 = vld [vmem:[%s9787_s10 + $0x78] sm:$0xf] }
 0x1e7   : > { %v3974_v63 = vpack.c.b16 %v3948_v5, %v3947_v22  ;;  %v3355_v5 = vshll.u32 %v10903_v43, 16 }
 0x1e8   : > { %v2412_v47 = vadd.f32 %v2368_v35, %v1758_v8  ;;  %v2370_v57 = vpop.f32.mrf.mxu0  ;;  %v3327_v35 = vrot.slane %v3325_v56, 5  ;;  %v3341_v8 = vshll.u32 %v10888_v33, 16  ;;  %v3869_v34 = vrot.slane %v3867_v9, 4 }
 0x1e9   : > { %v3339_v61 = vrot.slane %v3338_v10, 4  ;;  %v9590_v10 = vld [vmem:[%s9787_s10 + $0x60] sm:$0xff] }
 0x1ea   : > { %v10881_v45 = vadd.f32 %v10825_v15, %v2412_v47  ;;  %v3328_v2 = vor.u32 %v3327_v35, %v3324_v38  ;;  %v9606_v47 = vld [vmem:[%s10657_s7 + $0x48] sm:$0xff] }
 0x1eb   : > { %v1429_v59 = vpop.f32.mrf.mxu2  ;;  %v10885_v58 = vpop.f32.mrf.mxu1 }
 0x1ec   : > { %v1472_v50 = vadd.f32 %v1429_v59, %v10216_v17  ;;  %v3577_v17 = vpack.c.b16 %v3552_v12, %v3551_v60  ;;  %v3329_v46 = vrot.slane %v3328_v2, 4  ;;  %v3343_v59 = vrot.slane %v3341_v8, 5 }
 0x1ed   : > { %v3359_v60 = vshrl.u32 %v10903_v43, 16 }
 0x1ee   : > { %v1759_v21 = vadd.f32 %v1716_v11, %v1472_v50  ;;  %v1721_v15 = vpop.f32.mrf.mxu3  ;;  %v8938_v11 = vrot.slane %v8922_v19, 9  ;;  %v3344_v35 = vsel %vm9809_vm4, %v3339_v61, %v3343_v59 }
 0x1f0   : > { %8840 = vmatmul.msk.bf16.gmra.mxu2 %vm732_vm1, %v9589_v23  ;;  %v2373_v28 = vpop.f32.mrf.mxu0  ;;  %v2413_v27 = vadd.f32 %v2370_v57, %v1759_v21  ;;  %v3870_v57 = vrot.slane %v10849_v37, 5  ;;  %v3868_v22 = vsel %vm10025_vm7, %v8938_v11, %v3867_v9  ;;  %v3349_v23 = vshll.u32 %v8875_v7, 16 }
 0x1f1   : > { %v3949_v20 = vunpack.c.l.b16 %v3868_v22  ;;  %v3357_v9 = vrot.slane %v3355_v5, 5  ;;  %v3554_v11 = vunpack.c.l.b16 %v3344_v35  ;;  %v8878_v35 = vld [vmem:[%s9787_s10 + $0x84] sm:$0xf] }
 0x1f2   : > { %v10895_v25 = vadd.f32 %v10846_v62, %v2413_v27  ;;  %v3871_v37 = vsel %vm10025_vm7, %v3869_v34, %v3870_v57 }
 0x1f3   : > { %v1432_v18 = vpop.f32.mrf.mxu2  ;;  %8954 = vmatmul.msk.bf16.gmra.mxu0 %vm732_vm1, %v3974_v63  ;;  %8906 = vmatmul.msk.bf16.gmra.mxu3 %vm732_vm1, %v3577_v17  ;;  %v10905_v56 = vpop.f32.mrf.mxu1  ;;  %v3351_v17 = vrot.slane %v3349_v23, 5  ;;  %v3950_v8 = vunpack.c.l.b16 %v3871_v37 }
 0x1f4   : > { %v1473_v41 = vadd.f32 %v1432_v18, %v10233_v51  ;;  %v3346_v51 = vshrl.u32 %v8875_v7, 16 }
 0x1f6   : > { %v1760_v62 = vadd.f32 %v1719_v16, %v1473_v41  ;;  %v1724_v50 = vpop.f32.mrf.mxu3  ;;  %9035 = vmatmul.msk.bf16.gmra.mxu1 %vm732_vm1, %v9606_v47  ;;  %v3334_v16 = vsel %vm9809_vm4, %v3329_v46, %v3333_v42  ;;  %v3348_v63 = vrot.slane %v3346_v51, 4  ;;  %v10925_v42 = vld [vmem:[%s9787_s10 + $0x80] sm:$0x1]  ;;  %v8923_v47 = vld [vmem:[%s9787_s10 + $0x6c] sm:$0xe] }
 0x1f7   : > { %v3553_v27 = vunpack.c.l.b16 %v3334_v16  ;;  %v3365_v46 = vshll.u32 %v10925_v42, 16  ;;  %v8939_v22 = vrot.slane %v8923_v47, 9  ;;  %v9607_v16 = vld [vmem:[%s10657_s7 + $0x54] sm:$0xff] }
 0x1f8   : > { %v2414_v12 = vadd.f32 %v2373_v28, %v1760_v62  ;;  %v2375_v38 = vpop.f32.mrf.mxu0  ;;  %v3361_v28 = vrot.slane %v3359_v60, 4  ;;  %v3352_v7 = vor.u32 %v3351_v17, %v3348_v63 }
 0x1f9   : > { %v3578_v61 = vpack.c.b16 %v3554_v11, %v3553_v27  ;;  %v3367_v60 = vrot.slane %v3365_v46, 5 }
 0x1fa   : > { %v10920_v21 = vadd.f32 %v10863_v54, %v2414_v12  ;;  %v3874_v54 = vrot.slane %v10867_v30, 5  ;;  %v3362_v57 = vor.u32 %v3361_v28, %v3357_v9  ;;  %v3353_v23 = vrot.slane %v3352_v7, 4 }
 0x1fb   : > { %v1434_v19 = vpop.f32.mrf.mxu2  ;;  %v10927_v18 = vpop.f32.mrf.mxu1  ;;  %v3370_v28 = vshrl.u32 %v8878_v35, 16 }
 0x1fc   : > { %v1474_v2 = vadd.f32 %v1434_v19, %v10247_v24  ;;  %v3975_v24 = vpack.c.b16 %v3950_v8, %v3949_v20  ;;  %v3876_v51 = vrot.slane %v3874_v54, 4  ;;  %v3363_v5 = vrot.slane %v3362_v57, 4  ;;  %v10945_v20 = vld [vmem:[%s9787_s10 + $0x88] sm:$0xf] }
 0x1fd   : > { %v3875_v19 = vsel %vm10025_vm7, %v8939_v22, %v3874_v54  ;;  %v3358_v17 = vsel %vm9809_vm4, %v3353_v23, %v3357_v9  ;;  %v3372_v57 = vrot.slane %v3370_v28, 4  ;;  %v3881_v23 = vrot.slane %v10903_v43, 5 }
 0x1fe   : > { %v1761_v41 = vadd.f32 %v1721_v15, %v1474_v2  ;;  %v1726_v34 = vpop.f32.mrf.mxu3  ;;  %v3877_v15 = vrot.slane %v10888_v33, 5  ;;  %v3373_v2 = vshll.u32 %v8878_v35, 16  ;;  %v3951_v11 = vunpack.c.l.b16 %v3875_v19 }
 0x1ff   : > { %v3555_v47 = vunpack.c.l.b16 %v3358_v17  ;;  %v3884_v17 = vrot.slane %v10925_v42, 5 }
 0x200   : > { %8841 = vmatmul.msk.bf16.gmra.mxu2 %vm732_vm1, %v9590_v10  ;;  %v2378_v59 = vpop.f32.mrf.mxu0  ;;  %v2415_v62 = vadd.f32 %v2375_v38, %v1761_v41  ;;  %v3383_v10 = vshrl.u32 %v10945_v20, 16 }
 0x202   : > { %v10935_v12 = vadd.f32 %v10885_v58, %v2415_v62  ;;  %v3878_v58 = vsel %vm10025_vm7, %v3876_v51, %v3877_v15  ;;  %v3385_v22 = vrot.slane %v3383_v10, 4 }
 0x203   : > { %v1437_v30 = vpop.f32.mrf.mxu2  ;;  %8955 = vmatmul.msk.bf16.gmra.mxu0 %vm732_vm1, %v3975_v24  ;;  %8907 = vmatmul.msk.bf16.gmra.mxu3 %vm732_vm1, %v3578_v61  ;;  %v10942_v38 = vpop.f32.mrf.mxu1  ;;  %v3952_v54 = vunpack.c.l.b16 %v3878_v58  ;;  %v9591_v24 = vld [vmem:[%s9787_s10 + $0x6c] sm:$0xff]  ;;  %v3375_v61 = vrot.slane %v3373_v2, 5  ;;  %v9608_v2 = vld [vmem:[%s10657_s7 + $0x60] sm:$0xff] }
 0x204   : > { %v1475_v37 = vadd.f32 %v1437_v30, %v10263_v26  ;;  %v3368_v26 = vsel %vm9809_vm4, %v3363_v5, %v3367_v60  ;;  %v8924_v60 = vld [vmem:[%s9787_s10 + $0x78] sm:$0xe] }
 0x205   : > { %v3556_v7 = vunpack.c.l.b16 %v3368_v26  ;;  %v3976_v30 = vpack.c.b16 %v3952_v54, %v3951_v11  ;;  %v8940_v58 = vrot.slane %v8924_v60, 9  ;;  %v12979_v26 = vld [vmem:[#allocation2_spill] sm:$0xff]  ;;  %v10984_v54 = vld [vmem:[%s9787_s10 + $0x94] sm:$0xf]  ;;  %v12980_v60 = vld [vmem:[#allocation3_spill] sm:$0xff] }
 0x206   : > { %v1762_v33 = vadd.f32 %v1724_v50, %v1475_v37  ;;  %v1729_v63 = vpop.f32.mrf.mxu3  ;;  %9036 = vmatmul.msk.bf16.gmra.mxu1 %vm732_vm1, %v9607_v16  ;;  %v3379_v50 = vshll.u32 %v10945_v20, 16  ;;  %v3376_v37 = vor.u32 %v3375_v61, %v3372_v57 }
 0x207   : > { %v3579_v5 = vpack.c.b16 %v3556_v7, %v3555_v47 }
 0x208   : > { %v2416_v8 = vadd.f32 %v2378_v59, %v1762_v33  ;;  %v2380_v27 = vpop.f32.mrf.mxu0  ;;  %v3381_v62 = vrot.slane %v3379_v50, 5  ;;  %v10966_v59 = vld [vmem:[%s9787_s10 + $0x8c] sm:$0x1]  ;;  %v3377_v50 = vrot.slane %v3376_v37, 4  ;;  %v9592_v37 = vld [vmem:[%s9787_s10 + $0x78] sm:$0xff] }
 0x209   : > { %v3389_v16 = vshll.u32 %v10966_v59, 16 }
 0x20a   : > { %v10959_v41 = vadd.f32 %v10905_v56, %v2416_v8  ;;  %v3382_v7 = vsel %vm9809_vm4, %v3377_v50, %v3381_v62 }
 0x20b   : > { %v1439_v9 = vpop.f32.mrf.mxu2  ;;  %v10963_v51 = vpop.f32.mrf.mxu1  ;;  %v3391_v8 = vrot.slane %v3389_v16, 5  ;;  %v3557_v16 = vunpack.c.l.b16 %v3382_v7 }
 0x20c   : > { %v1476_v46 = vadd.f32 %v1439_v9, %v10280_v49  ;;  %v3386_v49 = vor.u32 %v3385_v22, %v3381_v62  ;;  %v8881_v9 = vld [vmem:[%s9787_s10 + $0x90] sm:$0xf]  ;;  %v3403_v22 = vshll.u32 %v10984_v54, 16 }
 0x20d   : > { %v3397_v61 = vshll.u32 %v8881_v9, 16 }
 0x20e   : > { %v1763_v15 = vadd.f32 %v1726_v34, %v1476_v46  ;;  %v1731_v56 = vpop.f32.mrf.mxu3  ;;  %v3883_v34 = vrot.slane %v3881_v23, 4  ;;  %v3387_v10 = vrot.slane %v3386_v49, 4 }
 0x210   : > { %8842 = vmatmul.msk.bf16.gmra.mxu2 %vm732_vm1, %v9591_v24  ;;  %v2383_v35 = vpop.f32.mrf.mxu0  ;;  %v2417_v33 = vadd.f32 %v2380_v27, %v1763_v15  ;;  %v3885_v47 = vsel %vm10025_vm7, %v3883_v34, %v3884_v17  ;;  %v3392_v57 = vsel %vm9809_vm4, %v3387_v10, %v3391_v8  ;;  %v3394_v24 = vshrl.u32 %v8881_v9, 16 }
 0x211   : > { %v3407_v15 = vshrl.u32 %v10984_v54, 16  ;;  %v3954_v49 = vunpack.c.l.b16 %v3885_v47  ;;  %v3405_v34 = vrot.slane %v3403_v22, 5  ;;  %v3888_v8 = vrot.slane %v10945_v20, 5  ;;  %v9609_v22 = vld [vmem:[%s10657_s7 + $0x6c] sm:$0xff]  ;;  %v8884_v20 = vld [vmem:[%s9787_s10 + $0x9c] sm:$0xf] }
 0x212   : > { %v10974_v43 = vadd.f32 %v10927_v18, %v2417_v33  ;;  %v3882_v18 = vsel %vm10025_vm7, %v8940_v58, %v3881_v23  ;;  %v3399_v58 = vrot.slane %v3397_v61, 5 }
 0x213   : > { %v1442_v19 = vpop.f32.mrf.mxu2  ;;  %8956 = vmatmul.msk.bf16.gmra.mxu0 %vm732_vm1, %v3976_v30  ;;  %8908 = vmatmul.msk.bf16.gmra.mxu3 %vm732_vm1, %v3579_v5  ;;  %v10980_v27 = vpop.f32.mrf.mxu1  ;;  %v3953_v5 = vunpack.c.l.b16 %v3882_v18  ;;  %v3409_v17 = vrot.slane %v3407_v15, 4  ;;  %v3890_v61 = vrot.slane %v3888_v8, 4  ;;  %v11020_v15 = vld [vmem:[%s9787_s10 + $0xa0] sm:$0xf] }
 0x214   : > { %v1477_v28 = vadd.f32 %v1442_v19, %v12979_v26  ;;  %v3396_v19 = vrot.slane %v3394_v24, 4 }
 0x215   : > { %v3977_v50 = vpack.c.b16 %v3954_v49, %v3953_v5  ;;  %v3410_v18 = vor.u32 %v3409_v17, %v3405_v34 }
 0x216   : > { %v1764_v11 = vadd.f32 %v1729_v63, %v1477_v28  ;;  %v3647_v42 = vpop.f32.mrf.mxu3  ;;  %9037 = vmatmul.msk.bf16.gmra.mxu1 %vm732_vm1, %v9608_v2  ;;  %v11005_v28 = vld [vmem:[%s9787_s10 + $0x98] sm:$0x1]  ;;  %v8925_v2 = vld [vmem:[%s9787_s10 + $0x84] sm:$0xe]  ;;  %v3400_v9 = vor.u32 %v3399_v58, %v3396_v19  ;;  %v3431_v19 = vshrl.u32 %v11020_v15, 16 }
 0x217   : > { %v3413_v47 = vshll.u32 %v11005_v28, 16 }
 0x218   : > { %v2418_v63 = vadd.f32 %v2383_v35, %v1764_v11  ;;  %v2385_v46 = vpop.f32.mrf.mxu0  ;;  %v3558_v35 = vunpack.c.l.b16 %v3392_v57  ;;  %v3401_v5 = vrot.slane %v3400_v9, 4 }
 0x21a   : > { %v10998_v30 = vadd.f32 %v10942_v38, %v2418_v63  ;;  %v3580_v10 = vpack.c.b16 %v3558_v35, %v3557_v16  ;;  %v3421_v16 = vshll.u32 %v8884_v20, 16  ;;  %v3427_v35 = vshll.u32 %v11020_v15, 16 }
 0x21b   : > { %v1444_v23 = vpop.f32.mrf.mxu2  ;;  %v11002_v33 = vpop.f32.mrf.mxu1 }
 0x21c   : > { %v1478_v62 = vadd.f32 %v1444_v23, %v12980_v60  ;;  %v3411_v60 = vrot.slane %v3410_v18, 4  ;;  %v3423_v9 = vrot.slane %v3421_v16, 5  ;;  %v3433_v18 = vrot.slane %v3431_v19, 4 }
 0x21e   : > { %v1765_v26 = vadd.f32 %v1731_v56, %v1478_v62  ;;  %v3649_v38 = vpop.f32.mrf.mxu3  ;;  %v8941_v56 = vrot.slane %v8925_v2, 9  ;;  %v3415_v62 = vrot.slane %v3413_v47, 5  ;;  %v12982_v47 = vld [vmem:[#allocation4_spill] sm:$0xff] }
 0x220   : > { %8843 = vmatmul.msk.bf16.gmra.mxu2 %vm732_vm1, %v9592_v37  ;;  %v4045_v11 = vpop.f32.mrf.mxu0  ;;  %v2419_v7 = vadd.f32 %v2385_v46, %v1765_v26  ;;  %v3891_v46 = vrot.slane %v10966_v59, 5  ;;  %v3889_v37 = vsel %vm10025_vm7, %v8941_v56, %v3888_v8  ;;  %v3416_v26 = vsel %vm9809_vm4, %v3411_v60, %v3415_v62  ;;  %v9593_v56 = vld [vmem:[%s9787_s10 + $0x84] sm:$0xff] }
 0x221   : > { %v3955_v2 = vunpack.c.l.b16 %v3889_v37 }
 0x222   : > { %v11012_v63 = vadd.f32 %v10963_v51, %v2419_v7  ;;  %v3892_v59 = vsel %vm10025_vm7, %v3890_v61, %v3891_v46  ;;  %v3560_v61 = vunpack.c.l.b16 %v3416_v26 }
 0x223   : > { %v2993_v57 = vpop.f32.mrf.mxu2  ;;  %8957 = vmatmul.msk.bf16.gmra.mxu0 %vm732_vm1, %v3977_v50  ;;  %8909 = vmatmul.msk.bf16.gmra.mxu3 %vm732_vm1, %v3580_v10  ;;  %v11022_v23 = vpop.f32.mrf.mxu1 }
 0x224   : > { %v3073_v24 = vadd.f32 %v2993_v57, %v10347_v0  ;;  %v3418_v0 = vshrl.u32 %v8884_v20, 16  ;;  %v3956_v57 = vunpack.c.l.b16 %v3892_v59 }
 0x226   : > { %v3727_v51 = vadd.f32 %v3647_v42, %v3073_v24  ;;  %v3652_v49 = vpop.f32.mrf.mxu3  ;;  %9038 = vmatmul.msk.bf16.gmra.mxu1 %vm732_vm1, %v9609_v22  ;;  %v3406_v42 = vsel %vm9809_vm4, %v3401_v5, %v3405_v34  ;;  %v3420_v8 = vrot.slane %v3418_v0, 4  ;;  %v11042_v34 = vld [vmem:[%s9787_s10 + $0xa4] sm:$0x1]  ;;  %v8926_v5 = vld [vmem:[%s9787_s10 + $0x90] sm:$0xe]  ;;  %v3978_v37 = vpack.c.b16 %v3956_v57, %v3955_v2 }
 0x227   : > { %v3559_v24 = vunpack.c.l.b16 %v3406_v42  ;;  %v8942_v19 = vrot.slane %v8926_v5, 9 }
 0x228   : > { %v4125_v58 = vadd.f32 %v4045_v11, %v3727_v51  ;;  %v4047_v17 = vpop.f32.mrf.mxu0  ;;  %v3429_v11 = vrot.slane %v3427_v35, 5  ;;  %v3424_v60 = vor.u32 %v3423_v9, %v3420_v8  ;;  %v3437_v51 = vshll.u32 %v11042_v34, 16  ;;  %v12984_v8 = vld [vmem:[#allocation5_spill] sm:$0xff] }
 0x229   : > { %v3581_v0 = vpack.c.b16 %v3560_v61, %v3559_v24  ;;  %v9610_v9 = vld [vmem:[%s10657_s7 + $0x78] sm:$0xff] }
 0x22a   : > { %v11037_v50 = vadd.f32 %v10980_v27, %v4125_v58  ;;  %v3895_v27 = vrot.slane %v10984_v54, 5  ;;  %v3434_v62 = vor.u32 %v3433_v18, %v3429_v11  ;;  %v3425_v59 = vrot.slane %v3424_v60, 4  ;;  %v8887_v18 = vld [vmem:[%s9787_s10 + $0xa8] sm:$0xf] }
 0x22b   : > { %v2995_v10 = vpop.f32.mrf.mxu2  ;;  %v11044_v22 = vpop.f32.mrf.mxu1  ;;  %v3439_v26 = vrot.slane %v3437_v51, 5  ;;  %v3442_v61 = vshrl.u32 %v8887_v18, 16 }
 0x22c   : > { %12981 = vst [vmem:[#allocation2_spill] sm:$0xff] %v11037_v50  ;;  %v3074_v7 = vadd.f32 %v2995_v10, %v12982_v47  ;;  %v3897_v58 = vrot.slane %v3895_v27, 4  ;;  %v3435_v42 = vrot.slane %v3434_v62, 4  ;;  %v11062_v47 = vld [vmem:[%s9787_s10 + $0xac] sm:$0xf]  ;;  %v3430_v57 = vsel %vm9809_vm4, %v3425_v59, %v3429_v11 }
 0x22d   : > { %v3455_v5 = vshrl.u32 %v11062_v47, 16 }
 0x22e   : > { %v3728_v20 = vadd.f32 %v3649_v38, %v3074_v7  ;;  %v3654_v46 = vpop.f32.mrf.mxu3  ;;  %v3898_v38 = vrot.slane %v11005_v28, 5  ;;  %v3896_v7 = vsel %vm10025_vm7, %v8942_v19, %v3895_v27  ;;  %v3440_v24 = vsel %vm9809_vm4, %v3435_v42, %v3439_v26 }
 0x22f   : > { %v3957_v62 = vunpack.c.l.b16 %v3896_v7  ;;  %v3444_v19 = vrot.slane %v3442_v61, 4  ;;  %v3457_v42 = vrot.slane %v3455_v5, 4 }
 0x230   : > { %8844 = vmatmul.msk.bf16.gmra.mxu2 %vm732_vm1, %v9593_v56  ;;  %v4050_v16 = vpop.f32.mrf.mxu0  ;;  %v4126_v35 = vadd.f32 %v4047_v17, %v3728_v20  ;;  %v3445_v20 = vshll.u32 %v8887_v18, 16 }
 0x232   : > { %v11052_v10 = vadd.f32 %v11002_v33, %v4126_v35  ;;  %v3899_v33 = vsel %vm10025_vm7, %v3897_v58, %v3898_v38  ;;  %v3562_v35 = vunpack.c.l.b16 %v3440_v24  ;;  %v9594_v38 = vld [vmem:[%s9787_s10 + $0x90] sm:$0xff] }
 0x233   : > { %v2998_v54 = vpop.f32.mrf.mxu2  ;;  %8958 = vmatmul.msk.bf16.gmra.mxu0 %vm732_vm1, %v3978_v37  ;;  %8910 = vmatmul.msk.bf16.gmra.mxu3 %vm732_vm1, %v3581_v0  ;;  %v11059_v17 = vpop.f32.mrf.mxu1  ;;  %v3958_v37 = vunpack.c.l.b16 %v3899_v33  ;;  %v3561_v0 = vunpack.c.l.b16 %v3430_v57 }
 0x234   : > { %12983 = vst [vmem:[#allocation3_spill] sm:$0xff] %v11052_v10  ;;  %v3075_v2 = vadd.f32 %v2998_v54, %v12984_v8  ;;  %v3447_v54 = vrot.slane %v3445_v20, 5 }
 0x235   : > { %v3582_v18 = vpack.c.b16 %v3562_v35, %v3561_v0  ;;  %v8890_v35 = vld [vmem:[%s9787_s10 + $0xb4] sm:$0xf] }
 0x236   : > { %v3729_v28 = vadd.f32 %v3652_v49, %v3075_v2  ;;  %v3657_v56 = vpop.f32.mrf.mxu3  ;;  %9039 = vmatmul.msk.bf16.gmra.mxu1 %vm732_vm1, %v9610_v9  ;;  %v3451_v49 = vshll.u32 %v11062_v47, 16  ;;  %v3979_v2 = vpack.c.b16 %v3958_v37, %v3957_v62  ;;  %v3902_v9 = vrot.slane %v11020_v15, 5 }
 0x237   : > { %v3448_v7 = vor.u32 %v3447_v54, %v3444_v19  ;;  %v11101_v19 = vld [vmem:[%s9787_s10 + $0xb8] sm:$0xf] }
 0x238   : > { %v4127_v27 = vadd.f32 %v4050_v16, %v3729_v28  ;;  %v4052_v60 = vpop.f32.mrf.mxu0  ;;  %v3453_v59 = vrot.slane %v3451_v49, 5  ;;  %v11083_v16 = vld [vmem:[%s9787_s10 + $0xb0] sm:$0x1]  ;;  %v8927_v28 = vld [vmem:[%s9787_s10 + $0x9c] sm:$0xe]  ;;  %v3905_v49 = vrot.slane %v11042_v34, 5 }
 0x239   : > { %v3461_v33 = vshll.u32 %v11083_v16, 16  ;;  %v8943_v20 = vrot.slane %v8927_v28, 9  ;;  %v3449_v62 = vrot.slane %v3448_v7, 4 }
 0x23a   : > { %v11076_v51 = vadd.f32 %v11022_v23, %v4127_v27  ;;  %v9611_v27 = vld [vmem:[%s10657_s7 + $0x84] sm:$0xff] }
 0x23b   : > { %v3000_v11 = vpop.f32.mrf.mxu2  ;;  %v11080_v26 = vpop.f32.mrf.mxu1  ;;  %v3463_v37 = vrot.slane %v3461_v33, 5 }
 0x23c   : > { %12985 = vst [vmem:[#allocation4_spill] sm:$0xff] %v11076_v51  ;;  %v3076_v58 = vadd.f32 %v3000_v11, %v10403_v31  ;;  %v3458_v31 = vor.u32 %v3457_v42, %v3453_v59  ;;  %v3466_v42 = vshrl.u32 %v8890_v35, 16 }
 0x23e   : > { %v3730_v8 = vadd.f32 %v3654_v46, %v3076_v58  ;;  %v3659_v23 = vpop.f32.mrf.mxu3  ;;  %v3904_v46 = vrot.slane %v3902_v9, 4  ;;  %v3459_v11 = vrot.slane %v3458_v31, 4  ;;  %v3454_v58 = vsel %vm9809_vm4, %v3449_v62, %v3453_v59  ;;  %v12988_v31 = vld [vmem:[#allocation6_spill] sm:$0xff] }
 0x23f   : > { %v9595_v59 = vld [vmem:[%s9787_s10 + $0x9c] sm:$0xff] }
 0x240   : > { %8845 = vmatmul.msk.bf16.gmra.mxu2 %vm732_vm1, %v9594_v38  ;;  %v4055_v57 = vpop.f32.mrf.mxu0  ;;  %v4128_v24 = vadd.f32 %v4052_v60, %v3730_v8  ;;  %v3464_v38 = vsel %vm9809_vm4, %v3459_v11, %v3463_v37  ;;  %v3469_v8 = vshll.u32 %v8890_v35, 16  ;;  %v11122_v11 = vld [vmem:[%s9787_s10 + $0xbc] sm:$0x1]  ;;  %v3909_v35 = vrot.slane %v11062_v47, 5 }
 0x242   : > { %v11091_v15 = vadd.f32 %v11044_v22, %v4128_v24  ;;  %v3903_v22 = vsel %vm10025_vm7, %v8943_v20, %v3902_v9  ;;  %v3479_v9 = vshrl.u32 %v11101_v19, 16 }
 0x243   : > { %v3003_v61 = vpop.f32.mrf.mxu2  ;;  %8959 = vmatmul.msk.bf16.gmra.mxu0 %vm732_vm1, %v3979_v2  ;;  %8911 = vmatmul.msk.bf16.gmra.mxu3 %vm732_vm1, %v3582_v18  ;;  %v11097_v60 = vpop.f32.mrf.mxu1  ;;  %v3475_v2 = vshll.u32 %v11101_v19, 16  ;;  %v3959_v7 = vunpack.c.l.b16 %v3903_v22 }
 0x244   : > { %12986 = vst [vmem:[#allocation5_spill] sm:$0xff] %v11091_v15  ;;  %v3077_v5 = vadd.f32 %v3003_v61, %v10426_v44  ;;  %v3906_v44 = vsel %vm10025_vm7, %v3904_v46, %v3905_v49  ;;  %v3563_v61 = vunpack.c.l.b16 %v3454_v58  ;;  %v3468_v46 = vrot.slane %v3466_v42, 4  ;;  %v8928_v58 = vld [vmem:[%s9787_s10 + $0xa8] sm:$0xe] }
 0x245   : > { %v3960_v24 = vunpack.c.l.b16 %v3906_v44  ;;  %v3471_v49 = vrot.slane %v3469_v8, 5  ;;  %v3485_v42 = vshll.u32 %v11122_v11, 16 }
 0x246   : > { %v3731_v0 = vadd.f32 %v3657_v56, %v3077_v5  ;;  %v3662_v34 = vpop.f32.mrf.mxu3  ;;  %9040 = vmatmul.msk.bf16.gmra.mxu1 %vm732_vm1, %v9611_v27  ;;  %v3477_v5 = vrot.slane %v3475_v2, 5  ;;  %v3481_v27 = vrot.slane %v3479_v9, 4  ;;  %v12989_v2 = vld [vmem:[#allocation7_spill] sm:$0xff] }
 0x247   : > { %v3980_v37 = vpack.c.b16 %v3960_v24, %v3959_v7  ;;  %v3911_v7 = vrot.slane %v3909_v35, 4 }
 0x248   : > { %v4129_v56 = vadd.f32 %v4055_v57, %v3731_v0  ;;  %v4057_v54 = vpop.f32.mrf.mxu0  ;;  %v3564_v57 = vunpack.c.l.b16 %v3464_v38  ;;  %v3472_v38 = vor.u32 %v3471_v49, %v3468_v46 }
 0x24a   : > { %v11115_v18 = vadd.f32 %v11059_v17, %v4129_v56  ;;  %v3583_v0 = vpack.c.b16 %v3564_v57, %v3563_v61  ;;  %v3482_v56 = vor.u32 %v3481_v27, %v3477_v5  ;;  %v3473_v24 = vrot.slane %v3472_v38, 4 }
 0x24b   : > { %v3005_v28 = vpop.f32.mrf.mxu2  ;;  %v11119_v20 = vpop.f32.mrf.mxu1  ;;  %v3487_v57 = vrot.slane %v3485_v42, 5 }
 0x24c   : > { %12987 = vst [vmem:[#allocation12_spill] sm:$0xff] %v11115_v18  ;;  %v3078_v33 = vadd.f32 %v3005_v28, %v12988_v31  ;;  %v8944_v28 = vrot.slane %v8928_v58, 9  ;;  %v9612_v31 = vld [vmem:[%s10657_s7 + $0x90] sm:$0xff]  ;;  %v3483_v61 = vrot.slane %v3482_v56, 4 }
 0x24e   : > { %v3732_v62 = vadd.f32 %v3659_v23, %v3078_v33  ;;  %v3664_v17 = vpop.f32.mrf.mxu3  ;;  %v8893_v23 = vld [vmem:[%s9787_s10 + $0xc0] sm:$0xf]  ;;  %v11134_v33 = vld [vmem:[%s9787_s10 + $0xc4] sm:$0xf]  ;;  %v3488_v38 = vsel %vm9809_vm4, %v3483_v61, %v3487_v57 }
 0x24f   : > { %v3490_v49 = vshrl.u32 %v8893_v23, 16  ;;  %v3493_v27 = vshll.u32 %v8893_v23, 16 }
 0x250   : > { %8846 = vmatmul.msk.bf16.gmra.mxu2 %vm732_vm1, %v9595_v59  ;;  %v4130_v22 = vadd.f32 %v4057_v54, %v3732_v62  ;;  %v4060_v44 = vpop.f32.mrf.mxu0  ;;  %v3912_v59 = vrot.slane %v11083_v16, 5 }
 0x251   : > { %v3492_v56 = vrot.slane %v3490_v49, 4  ;;  %v3495_v42 = vrot.slane %v3493_v27, 5  ;;  %v8929_v27 = vld [vmem:[%s9787_s10 + $0xb4] sm:$0xe] }
 0x252   : > { %v11137_v47 = vadd.f32 %v11080_v26, %v4130_v22  ;;  %v3910_v26 = vsel %vm10025_vm7, %v8944_v28, %v3909_v35  ;;  %v3913_v16 = vsel %vm10025_vm7, %v3911_v7, %v3912_v59 }
 0x253   : > { %v3008_v8 = vpop.f32.mrf.mxu2  ;;  %8960 = vmatmul.msk.bf16.gmra.mxu0 %vm732_vm1, %v3980_v37  ;;  %8912 = vmatmul.msk.bf16.gmra.mxu3 %vm732_vm1, %v3583_v0  ;;  %v11139_v54 = vpop.f32.mrf.mxu1  ;;  %v3499_v37 = vshll.u32 %v11134_v33, 16  ;;  %v3503_v0 = vshrl.u32 %v11134_v33, 16  ;;  %v3961_v23 = vunpack.c.l.b16 %v3910_v26  ;;  %v3962_v7 = vunpack.c.l.b16 %v3913_v16 }
 0x254   : > { %v3079_v9 = vadd.f32 %v3008_v8, %v12989_v2  ;;  %12990 = vst [vmem:[#allocation6_spill] sm:$0xff] %v11137_v47 }
 0x255   : > { %v3505_v2 = vrot.slane %v3503_v0, 4  ;;  %v3981_v26 = vpack.c.b16 %v3962_v7, %v3961_v23  ;;  %v12993_v23 = vld [vmem:[#allocation9_spill] sm:$0xff] }
 0x256   : > { %v3733_v46 = vadd.f32 %v3662_v34, %v3079_v9  ;;  %v3667_v62 = vpop.f32.mrf.mxu3  ;;  %9041 = vmatmul.msk.bf16.gmra.mxu1 %vm732_vm1, %v9612_v31  ;;  %v3478_v34 = vsel %vm9809_vm4, %v3473_v24, %v3477_v5  ;;  %v12992_v9 = vld [vmem:[#allocation8_spill] sm:$0xff]  ;;  %v9596_v31 = vld [vmem:[%s9787_s10 + $0xa8] sm:$0xff]  ;;  %v3566_v5 = vunpack.c.l.b16 %v3488_v38 }
 0x257   : > { %v3565_v59 = vunpack.c.l.b16 %v3478_v34  ;;  %v11159_v24 = vld [vmem:[%s9787_s10 + $0xc8] sm:$0x1]  ;;  %v8896_v38 = vld [vmem:[%s9787_s10 + $0xcc] sm:$0xf] }
 0x258   : > { %v4131_v22 = vadd.f32 %v4060_v44, %v3733_v46  ;;  %v4062_v58 = vpop.f32.mrf.mxu0  ;;  %v3501_v44 = vrot.slane %v3499_v37, 5  ;;  %v3496_v46 = vor.u32 %v3495_v42, %v3492_v56  ;;  %v3509_v0 = vshll.u32 %v11159_v24, 16 }
 0x259   : > { %v3517_v47 = vshll.u32 %v8896_v38, 16 }
 0x25a   : > { %v11154_v8 = vadd.f32 %v11097_v60, %v4131_v22  ;;  %v3916_v60 = vrot.slane %v11101_v19, 5  ;;  %v3506_v37 = vor.u32 %v3505_v2, %v3501_v44  ;;  %v3584_v22 = vpack.c.b16 %v3566_v5, %v3565_v59 }
 0x25b   : > { %v3010_v35 = vpop.f32.mrf.mxu2  ;;  %v11161_v61 = vpop.f32.mrf.mxu1  ;;  %v3919_v19 = vrot.slane %v11122_v11, 5  ;;  %v3497_v56 = vrot.slane %v3496_v46, 4  ;;  %v3511_v2 = vrot.slane %v3509_v0, 5 }
 0x25c   : > { %12991 = vst [vmem:[#allocation7_spill] sm:$0xff] %v11154_v8  ;;  %v3080_v28 = vadd.f32 %v3010_v35, %v12992_v9  ;;  %v11169_v35 = vld [vmem:[%s9787_s10 + $0xd0] sm:$0xf]  ;;  %v8945_v9 = vrot.slane %v8929_v27, 9  ;;  %v3514_v8 = vshrl.u32 %v8896_v38, 16 }
 0x25d   : > { %v3523_v7 = vshll.u32 %v11169_v35, 16  ;;  %v3527_v59 = vshrl.u32 %v11169_v35, 16  ;;  %v3502_v0 = vsel %vm9809_vm4, %v3497_v56, %v3501_v44 }
 0x25e   : > { %v3734_v57 = vadd.f32 %v3664_v17, %v3080_v28  ;;  %v3669_v49 = vpop.f32.mrf.mxu3  ;;  %v3918_v17 = vrot.slane %v3916_v60, 4  ;;  %v3507_v28 = vrot.slane %v3506_v37, 4  ;;  %v3917_v46 = vsel %vm10025_vm7, %v8945_v9, %v3916_v60  ;;  %v11193_v9 = vld [vmem:[%s9787_s10 + $0xd4] sm:$0x1] }
 0x25f   : > { %v3567_v56 = vunpack.c.l.b16 %v3502_v0 }
 0x260   : > { %8847 = vmatmul.msk.bf16.gmra.mxu2 %vm732_vm1, %v9596_v31  ;;  %v4132_v16 = vadd.f32 %v4062_v58, %v3734_v57  ;;  %v4065_v34 = vpop.f32.mrf.mxu0  ;;  %v9613_v58 = vld [vmem:[%s10657_s7 + $0x9c] sm:$0xff]  ;;  %v3920_v37 = vsel %vm10025_vm7, %v3918_v17, %v3919_v19 }
 0x261   : > { %v3964_v17 = vunpack.c.l.b16 %v3920_v37 }
 0x262   : > { %v11179_v11 = vadd.f32 %v11119_v20, %v4132_v16  ;;  %v3519_v20 = vrot.slane %v3517_v47, 5  ;;  %v3529_v16 = vrot.slane %v3527_v59, 4  ;;  %v8930_v47 = vld [vmem:[%s9787_s10 + $0xc0] sm:$0xe] }
 0x263   : > { %v3013_v42 = vpop.f32.mrf.mxu2  ;;  %8961 = vmatmul.msk.bf16.gmra.mxu0 %vm732_vm1, %v3981_v26  ;;  %8913 = vmatmul.msk.bf16.gmra.mxu3 %vm732_vm1, %v3584_v22  ;;  %v11181_v5 = vpop.f32.mrf.mxu1  ;;  %v3512_v26 = vsel %vm9809_vm4, %v3507_v28, %v3511_v2  ;;  %v3516_v22 = vrot.slane %v3514_v8, 4  ;;  %v3923_v8 = vrot.slane %v11134_v33, 5  ;;  %v12996_v2 = vld [vmem:[#allocation10_spill] sm:$0xff] }
 0x264   : > { %v3081_v31 = vadd.f32 %v3013_v42, %v12993_v23  ;;  %12994 = vst [vmem:[#allocation8_spill] sm:$0xff] %v11179_v11  ;;  %v3963_v42 = vunpack.c.l.b16 %v3917_v46  ;;  %v3568_v28 = vunpack.c.l.b16 %v3512_v26  ;;  %v3926_v26 = vrot.slane %v11159_v24, 5  ;;  %v12998_v24 = vld [vmem:[#allocation11_spill] sm:$0xff] }
 0x265   : > { %v3925_v0 = vrot.slane %v3923_v8, 4 }
 0x266   : > { %v3735_v57 = vadd.f32 %v3667_v62, %v3081_v31  ;;  %v3672_v27 = vpop.f32.mrf.mxu3  ;;  %9042 = vmatmul.msk.bf16.gmra.mxu1 %vm732_vm1, %v9613_v58  ;;  %v3525_v62 = vrot.slane %v3523_v7, 5  ;;  %v9597_v31 = vld [vmem:[%s9787_s10 + $0xb4] sm:$0xff]  ;;  %v3520_v58 = vor.u32 %v3519_v20, %v3516_v22  ;;  %v3982_v46 = vpack.c.b16 %v3964_v17, %v3963_v42 }
 0x267   : > { %v3927_v42 = vsel %vm10025_vm7, %v3925_v0, %v3926_v26  ;;  %v5096_v0 = vld [vmem:[%s10657_s7] sm:$0xe] }
 0x268   : > { %v4133_v38 = vadd.f32 %v4065_v34, %v3735_v57  ;;  %v4067_v60 = vpop.f32.mrf.mxu0  ;;  %v3530_v7 = vor.u32 %v3529_v16, %v3525_v62  ;;  %v3533_v34 = vshll.u32 %v11193_v9, 16  ;;  %v3521_v33 = vrot.slane %v3520_v58, 4 }
 0x26a   : > { %v11196_v19 = vadd.f32 %v11139_v54, %v4133_v38  ;;  %v3585_v54 = vpack.c.b16 %v3568_v28, %v3567_v56  ;;  %v8946_v38 = vrot.slane %v8930_v47, 9  ;;  %v3966_v47 = vunpack.c.l.b16 %v3927_v42  ;;  %v9208_v42 = vld [vmem:[%s10657_s7 + $0xc] sm:$0xf] }
 0x26b   : > { %v3015_v44 = vpop.f32.mrf.mxu2  ;;  %v11203_v59 = vpop.f32.mrf.mxu1 }
 0x26c   : > { %12995 = vst [vmem:[#allocation9_spill] sm:$0xff] %v11196_v19  ;;  %v3082_v23 = vadd.f32 %v3015_v44, %v12996_v2  ;;  %v3531_v44 = vrot.slane %v3530_v7, 4  ;;  %v3535_v2 = vrot.slane %v3533_v34, 5  ;;  %v8931_v7 = vld [vmem:[%s9787_s10 + $0xcc] sm:$0xe]  ;;  %v3930_v34 = vrot.slane %v11169_v35, 5 }
 0x26e   : > { %v3736_v57 = vadd.f32 %v3669_v49, %v3082_v23  ;;  %v3674_v37 = vpop.f32.mrf.mxu3  ;;  %v3924_v49 = vsel %vm10025_vm7, %v8946_v38, %v3923_v8  ;;  %v3536_v56 = vsel %vm9809_vm4, %v3531_v44, %v3535_v2  ;;  %v8947_v38 = vrot.slane %v8931_v7, 9  ;;  %v4444_v7 = vld [vmem:[%s10657_s7 + $0x8] sm:$0x1] }
 0x26f   : > { %v3965_v23 = vunpack.c.l.b16 %v3924_v49  ;;  %v5165_v50 = vrot.slane %v4444_v7, 5 }
 0x270   : > { %8848 = vmatmul.msk.bf16.gmra.mxu2 %vm732_vm1, %v9597_v31  ;;  %v4134_v22 = vadd.f32 %v4067_v60, %v3736_v57  ;;  %v4070_v20 = vpop.f32.mrf.mxu0  ;;  %v9614_v60 = vld [vmem:[%s10657_s7 + $0xa8] sm:$0xff] }
 0x271   : > { %v3983_v2 = vpack.c.b16 %v3966_v47, %v3965_v23  ;;  %v5833_v47 = vshll.u32 %v9208_v42, 16 }
 0x272   : > { %v11208_v16 = vadd.f32 %v11161_v61, %v4134_v22  ;;  %v3526_v61 = vsel %vm9809_vm4, %v3521_v33, %v3525_v62  ;;  %v4442_v62 = vld [vmem:[%s10657_s7] sm:$0xf]  ;;  %v3932_v22 = vrot.slane %v3930_v34, 4 }
 0x273   : > { %v3018_v19 = vpop.f32.mrf.mxu2  ;;  %8962 = vmatmul.msk.bf16.gmra.mxu0 %vm732_vm1, %v3982_v46  ;;  %8914 = vmatmul.msk.bf16.gmra.mxu3 %vm732_vm1, %v3585_v54  ;;  %v11222_v28 = vpop.f32.mrf.mxu1  ;;  %v11226_v58 = vunpack.c.l.b16 %v3526_v61  ;;  %v4443_v46 = vld [vmem:[%s10657_s7 + $0x4] sm:$0xf]  ;;  %v4494_v26 = vshll.u32 %v4442_v62, 16  ;;  %v5835_v51 = vrot.slane %v5833_v47, 5 }
 0x274   : > { %12997 = vst [vmem:[#allocation10_spill] sm:$0xff] %v11208_v16  ;;  %v3083_v17 = vadd.f32 %v3018_v19, %v12998_v24  ;;  %v11228_v19 = vunpack.c.l.b16 %v3536_v56  ;;  %v4500_v33 = vshll.u32 %v4443_v46, 16  ;;  %v4504_v49 = vshrl.u32 %v4443_v46, 16  ;;  %v9209_v24 = vld [vmem:[%s10657_s7 + $0x10] sm:$0xf] }
 0x275   : > { %v5162_v61 = vrot.slane %v4443_v46, 5  ;;  %v5830_v56 = vshrl.u32 %v9208_v42, 16  ;;  %v5839_v16 = vshll.u32 %v9209_v24, 16  ;;  %v5843_v46 = vshrl.u32 %v9209_v24, 16 }
 0x276   : > { %v3737_v8 = vadd.f32 %v3672_v27, %v3083_v17  ;;  %v11224_v31 = vpop.f32.mrf.mxu3  ;;  %9043 = vmatmul.msk.bf16.gmra.mxu1 %vm732_vm1, %v9614_v60  ;;  %v4491_v27 = vshrl.u32 %v4442_v62, 16  ;;  %v3586_v35 = vpack.c.b16 %v11228_v19, %v11226_v58  ;;  %v9598_v60 = vld [vmem:[%s9787_s10 + $0xc0] sm:$0xff]  ;;  %v9062_v62 = vrot.slane %v5096_v0, 9 }
 0x277   : > { %v4496_v19 = vrot.slane %v4494_v26, 5  ;;  %v11246_v11 = vrot.slane %v4500_v33, 5  ;;  %v5832_v18 = vrot.slane %v5830_v56, 4  ;;  %v5164_v10 = vrot.slane %v5162_v61, 4  ;;  %v9305_v33 = vld [vmem:[%s12962_s3 + $0xa] sm:$0x3] }
 0x278   : > { %v4072_v57 = vpop.f32.mrf.mxu0  ;;  %v4135_v54 = vadd.f32 %v4070_v20, %v3737_v8  ;;  %v3933_v20 = vrot.slane %v11193_v9, 5  ;;  %v4493_v23 = vrot.slane %v4491_v27, 4  ;;  %v5841_v9 = vrot.slane %v5839_v16, 5 }
 0x279   : > { %v3931_v26 = vsel %vm10025_vm7, %v8947_v38, %v3930_v34  ;;  %v5845_v16 = vrot.slane %v5843_v46, 4 }
 0x27a   : > { %v11253_v27 = vadd.f32 %v11181_v5, %v4135_v54  ;;  %v3934_v24 = vsel %vm10025_vm7, %v3932_v22, %v3933_v20  ;;  %v5163_v5 = vsel %vm10025_vm7, %v9062_v62, %v5162_v61  ;;  %v6710_v54 = vsel %vm781_vm0, %v9305_v33, 0  ;;  %v9615_v22 = vld [vmem:[%s10657_s7 + $0xb4] sm:$0xff]  ;;  %v9354_v61 = vld [vmem:[%s12962_s3 + $0xc] sm:$0x3] }
 0x27b   : > { %v3020_v44 = vpop.f32.mrf.mxu2  ;;  %v11243_v8 = vpop.f32.mrf.mxu1  ;;  %6719 = vmatpush.bf16.msra.mxu2 %v6710_v54  ;;  %v5846_v38 = vor.u32 %v5845_v16, %v5841_v9  ;;  %v5166_v20 = vsel %vm10025_vm7, %v5164_v10, %v5165_v50  ;;  %v5274_v47 = vunpack.c.l.b16 %v5163_v5  ;;  %v9212_v54 = vld [vmem:[%s10657_s7 + $0x1c] sm:$0xf] }
 0x27c   : > { %v3084_v17 = vadd.f32 %v3020_v44, %v10602_v3  ;;  %v4506_v3 = vrot.slane %v4504_v49, 4  ;;  %v9210_v44 = vld [vmem:[%s10657_s7 + $0x14] sm:$0x1]  ;;  %12999 = vst [vmem:[#allocation11_spill] sm:$0xff] %v11253_v27  ;;  %v5836_v49 = vor.u32 %v5835_v51, %v5832_v18  ;;  %v5275_v10 = vunpack.c.l.b16 %v5166_v20 }
 0x27d   : > { %v5849_v42 = vshll.u32 %v9210_v44, 16  ;;  %v5847_v62 = vrot.slane %v5846_v38, 4 }
 0x27e   : > { %v3738_v58 = vadd.f32 %v3674_v37, %v3084_v17  ;;  %v11248_v15 = vpop.f32.mrf.mxu3  ;;  %v4507_v34 = vor.u32 %v4506_v3, %v11246_v11 }
 0x280   : > { %8849 = vmatmul.msk.bf16.gmra.mxu2 %vm732_vm1, %v9598_v60  ;;  %v4136_v0 = vadd.f32 %v4072_v57, %v3738_v58  ;;  %v11255_v37 = vpop.f32.mrf.mxu0  ;;  %v4510_v57 = vshll.u32 %v4444_v7, 16  ;;  %v4497_v60 = vor.u32 %v4496_v19, %v4493_v23  ;;  %v6997_v7 = vsel %vm781_vm0, %v9354_v61, 0  ;;  %v11319_v61 = vld [vmem:[%s10657_s7 + $0x14] sm:$0x1] }
 0x281   : > { %v3967_v23 = vunpack.c.l.b16 %v3931_v26  ;;  %7006 = vmatpush.bf16.msra.mxu3 %v6997_v7  ;;  %v11288_v19 = vrot.slane %v4507_v34, 4  ;;  %v9483_v26 = vld [vmem:[%s12962_s3 + $0xe] sm:$0x3] }
 0x282   : > { %v11269_v51 = vadd.f32 %v11203_v59, %v4136_v0  ;;  %v5837_v59 = vrot.slane %v5836_v49, 4  ;;  %v11286_v58 = vrot.slane %v4497_v60, 4  ;;  %v11290_v3 = vrot.slane %v4510_v57, 5  ;;  %v4446_v0 = vld [vmem:[%s10657_s7 + $0x10] sm:$0xf] }
 0x283   : > { %v3023_v17 = vpop.f32.mrf.mxu2  ;;  %8963 = vmatmul.msk.bf16.gmra.mxu0 %vm732_vm1, %v3983_v2  ;;  %8915 = vmatmul.msk.bf16.gmra.mxu3 %vm732_vm1, %v3586_v35  ;;  %v11280_v56 = vpop.f32.mrf.mxu1  ;;  %v5851_v2 = vrot.slane %v5849_v42, 5  ;;  %v3968_v35 = vunpack.c.l.b16 %v3934_v24  ;;  %v7651_v33 = vsel %vm781_vm0, %v9483_v26, 0  ;;  %v4445_v49 = vld [vmem:[%s10657_s7 + $0xc] sm:$0xf]  ;;  %v5306_v24 = vpack.c.b16 %v5275_v10, %v5274_v47  ;;  %v9211_v57 = vld [vmem:[%s10657_s7 + $0x18] sm:$0xf] }
 0x284   : > { %13000 = vst [vmem:[#allocation13_spill] sm:$0xff] %v11269_v51  ;;  %v3085_v18 = vadd.f32 %v3023_v17, %v10636_v52  ;;  %v4513_v5 = vsel %vm9809_vm4, %v11288_v19, %v11290_v3  ;;  %7660 = vmatpush.bf16.msra.mxu0 %v7651_v33  ;;  %v9599_v60 = vld [vmem:[%s9787_s10 + $0xcc] sm:$0xff]  ;;  %v4518_v7 = vshll.u32 %v4445_v49, 16  ;;  %v5863_v47 = vshll.u32 %v9212_v54, 16 }
 0x285   : > { %v5852_v46 = vsel %vm9809_vm4, %v5847_v62, %v5851_v2  ;;  %v3984_v42 = vpack.c.b16 %v3968_v35, %v3967_v23  ;;  %v5857_v62 = vshll.u32 %v9211_v57, 16  ;;  %v9532_v23 = vld [vmem:[%s12962_s3 + $0x10] sm:$0x3]  ;;  %v4528_v35 = vshrl.u32 %v4446_v0, 16 }
 0x286   : > { %v3739_v52 = vadd.f32 %v11224_v31, %v3085_v18  ;;  %v11284_v50 = vpop.f32.mrf.mxu3  ;;  %9044 = vmatmul.msk.bf16.gmra.mxu1 %vm732_vm1, %v9615_v22  ;;  %v5842_v31 = vsel %vm9809_vm4, %v5837_v59, %v5841_v9  ;;  %v4503_v9 = vsel %vm9809_vm4, %v11286_v58, %v11246_v11  ;;  %v6216_v38 = vunpack.c.l.b16 %v5852_v46  ;;  %v5097_v18 = vld [vmem:[%s10657_s7 + $0xc] sm:$0xe] }
 0x287   : > { %v6215_v34 = vunpack.c.l.b16 %v5842_v31  ;;  %v5169_v22 = vrot.slane %v4446_v0, 5  ;;  %v4515_v11 = vshrl.u32 %v4445_v49, 16  ;;  %v5854_v59 = vshrl.u32 %v9211_v57, 16  ;;  %v9213_v57 = vld [vmem:[%s10657_s7 + $0x20] sm:$0x1] }
 0x288   : > { %v4077_v44 = vpop.f32.mrf.mxu0  ;;  %v9063_v58 = vrot.slane %v5097_v18, 9  ;;  %v8049_v19 = vsel %vm781_vm0, %v9532_v23, 0  ;;  %v5859_v31 = vrot.slane %v5857_v62, 5  ;;  %v5865_v26 = vrot.slane %v5863_v47, 5 }
 0x289   : > { %v5856_v3 = vrot.slane %v5854_v59, 4  ;;  %v5171_v46 = vrot.slane %v5169_v22, 4  ;;  %8058 = vmatpush.bf16.msra.mxu1 %v8049_v19  ;;  %v5867_v33 = vshrl.u32 %v9212_v54, 16  ;;  %v4520_v18 = vrot.slane %v4518_v7, 5 }
 0x28a   : > { %v4530_v59 = vrot.slane %v4528_v35, 4  ;;  %v5170_v19 = vsel %vm10025_vm7, %v9063_v58, %v5169_v22 }
 0x28b   : > { %v3025_v16 = vpop.f32.mrf.mxu2  ;;  %v11316_v20 = vpop.f32.mrf.mxu1  ;;  %v5869_v62 = vrot.slane %v5867_v33, 4 }
 0x28c   : > { %v3086_v17 = vadd.f32 %v3025_v16, %v10661_v6  ;;  %v4524_v6 = vshll.u32 %v4446_v0, 16  ;;  %v4517_v16 = vrot.slane %v4515_v11, 4  ;;  %v5860_v0 = vor.u32 %v5859_v31, %v5856_v3  ;;  %v5098_v3 = vld [vmem:[%s10657_s7 + $0x18] sm:$0xe] }
 0x28e   : > { %v3740_v2 = vadd.f32 %v11248_v15, %v3086_v17  ;;  %v11325_v10 = vpop.f32.mrf.mxu3  ;;  %v5172_v15 = vrot.slane %v11319_v61, 5  ;;  %v4137_v17 = vadd.f32 %v11255_v37, %v3739_v52  ;;  %v11332_v27 = vrot.slane %v4524_v6, 5 }
 0x28f   : > { %v5861_v22 = vrot.slane %v5860_v0, 4  ;;  %v4521_v7 = vor.u32 %v4520_v18, %v4517_v16  ;;  %v5276_v6 = vunpack.c.l.b16 %v5170_v19  ;;  %v9214_v18 = vld [vmem:[%s10657_s7 + $0x24] sm:$0xf] }
 0x290   : > { %8850 = vmatmul.msk.bf16.gmra.mxu2 %vm732_vm1, %v9599_v60  ;;  %v4080_v49 = vpop.f32.mrf.mxu0  ;;  %v4138_v51 = vadd.f32 %v4077_v44, %v3740_v2  ;;  %v6247_v60 = vpack.c.b16 %v6216_v38, %v6215_v34  ;;  %v11337_v54 = vadd.f32 %v11222_v28, %v4137_v17  ;;  %v5173_v52 = vsel %vm10025_vm7, %v5171_v46, %v5172_v15  ;;  %v11369_v15 = vld [vmem:[%s10657_s7 + $0x20] sm:$0x1]  ;;  %v4448_v17 = vld [vmem:[%s10657_s7 + $0x18] sm:$0xf] }
 0x291   : > { %v5870_v44 = vor.u32 %v5869_v62, %v5865_v26  ;;  %v5873_v34 = vshll.u32 %v9213_v57, 16  ;;  %v4877_v2 = vunpack.c.l.b16 %v4513_v5  ;;  %v5277_v35 = vunpack.c.l.b16 %v5173_v52 }
 0x292   : > { %v11340_v11 = vadd.f32 %v11243_v8, %v4138_v51  ;;  %v4531_v8 = vor.u32 %v4530_v59, %v11332_v27  ;;  %v4534_v51 = vshll.u32 %v11319_v61, 16  ;;  %v5866_v61 = vsel %vm9809_vm4, %v5861_v22, %v5865_v26  ;;  %v9215_v59 = vld [vmem:[%s10657_s7 + $0x28] sm:$0xf] }
 0x293   : > { %v3028_v23 = vpop.f32.mrf.mxu2  ;;  %8964 = vmatmul.msk.bf16.gmra.mxu0 %vm732_vm1, %v3984_v42  ;;  %9079 = vmatmul.msk.bf16.vlgmr.msrb.gmra.mxu3 %vm732_vm1, %v5306_v24  ;;  %v11347_v38 = vpop.f32.mrf.mxu1  ;;  %v11353_v42 = vld [vmem:[%s10657_s7 + $0x1c] sm:$0xf]  ;;  %v4876_v24 = vunpack.c.l.b16 %v4503_v9  ;;  %v5871_v47 = vrot.slane %v5870_v44, 4  ;;  %v11362_v46 = vrot.slane %v4521_v7, 4  ;;  %v5307_v0 = vpack.c.b16 %v5277_v35, %v5276_v6  ;;  %v9616_v35 = vld [vmem:[%s10657_s7 + $0xc] sm:$0xff] }
 0x294   : > { %v3087_v37 = vadd.f32 %v3028_v23, %v10686_v1  ;;  %v5176_v31 = vrot.slane %v11353_v42, 5  ;;  %v11364_v9 = vrot.slane %v4531_v8, 4  ;;  %v11366_v5 = vrot.slane %v4534_v51, 5  ;;  %v9216_v51 = vld [vmem:[%s10657_s7 + $0x2c] sm:$0x1] }
 0x295   : > { %v4908_v57 = vpack.c.b16 %v4877_v2, %v4876_v24  ;;  %v6217_v23 = vunpack.c.l.b16 %v5866_v61  ;;  %v5878_v52 = vshrl.u32 %v9214_v18, 16  ;;  %v5881_v44 = vshll.u32 %v9214_v18, 16 }
 0x296   : > { %v3741_v28 = vadd.f32 %v11284_v50, %v3087_v37  ;;  %v11355_v1 = vpop.f32.mrf.mxu3  ;;  %9257 = vmatmul.msk.bf16.vlgmr.msrb.gmra.mxu1 %vm732_vm1, %v6247_v60  ;;  %v5875_v50 = vrot.slane %v5873_v34, 5  ;;  %v9064_v60 = vrot.slane %v5098_v3, 9  ;;  %v5178_v37 = vrot.slane %v5176_v31, 4 }
 0x297   : > { %v4539_v22 = vshrl.u32 %v4448_v17, 16  ;;  %v5887_v7 = vshll.u32 %v9215_v59, 16  ;;  %v5880_v24 = vrot.slane %v5878_v52, 4  ;;  %v5883_v2 = vrot.slane %v5881_v44, 5 }
 0x298   : > { %v4082_v58 = vpop.f32.mrf.mxu0  ;;  %v4139_v33 = vadd.f32 %v4080_v49, %v3741_v28  ;;  %v5876_v62 = vsel %vm9809_vm4, %v5871_v47, %v5875_v50  ;;  %v5179_v49 = vrot.slane %v11369_v15, 5  ;;  %v4542_v28 = vshll.u32 %v4448_v17, 16 }
 0x299   : > { %v5891_v6 = vshrl.u32 %v9215_v59, 16  ;;  %v4548_v47 = vshll.u32 %v11353_v42, 16  ;;  %v4552_v50 = vshrl.u32 %v11353_v42, 16  ;;  %v5889_v61 = vrot.slane %v5887_v7, 5 }
 0x29a   : > { %v5897_v3 = vshll.u32 %v9216_v51, 16  ;;  %v11389_v18 = vadd.f32 %v11280_v56, %v4139_v33  ;;  %v4527_v59 = vsel %vm9809_vm4, %v11362_v46, %v11332_v27  ;;  %v4541_v42 = vrot.slane %v4539_v22, 4 }
 0x29b   : > { %v3030_v16 = vpop.f32.mrf.mxu2  ;;  %v11377_v19 = vpop.f32.mrf.mxu1  ;;  %v5893_v17 = vrot.slane %v5891_v6, 4  ;;  %v5177_v7 = vsel %vm10025_vm7, %v9064_v60, %v5176_v31  ;;  %v5180_v56 = vsel %vm10025_vm7, %v5178_v37, %v5179_v49  ;;  %v11406_v46 = vrot.slane %v4548_v47, 5  ;;  %v5099_v47 = vld [vmem:[%s10657_s7 + $0x24] sm:$0xe] }
 0x29c   : > { %v3088_v26 = vadd.f32 %v3030_v16, %v10701_v29  ;;  %v6218_v29 = vunpack.c.l.b16 %v5876_v62  ;;  %v5884_v16 = vor.u32 %v5883_v2, %v5880_v24  ;;  %v4544_v62 = vrot.slane %v4542_v28, 5 }
 0x29d   : > { %v5899_v60 = vrot.slane %v5897_v3, 5  ;;  %v4878_v22 = vunpack.c.l.b16 %v4527_v59  ;;  %v9217_v59 = vld [vmem:[%s10657_s7 + $0x30] sm:$0xf] }
 0x29e   : > { %v3742_v34 = vadd.f32 %v11325_v10, %v3088_v26  ;;  %v11381_v8 = vpop.f32.mrf.mxu3  ;;  %v6248_v44 = vpack.c.b16 %v6218_v29, %v6217_v23  ;;  %v5885_v31 = vrot.slane %v5884_v16, 4  ;;  %v4545_v49 = vor.u32 %v4544_v62, %v4541_v42 }
 0x29f   : > { %v5279_v29 = vunpack.c.l.b16 %v5180_v56  ;;  %v9065_v56 = vrot.slane %v5099_v47, 9 }
 0x2a0   : > { %9046 = vmatmul.msk.bf16.vlgmr.msrb.gmra.mxu2 %vm732_vm1, %v4908_v57  ;;  %v4085_v10 = vpop.f32.mrf.mxu0  ;;  %v4140_v26 = vadd.f32 %v4082_v58, %v3742_v34  ;;  %v4537_v57 = vsel %vm9809_vm4, %v11364_v9, %v11366_v5  ;;  %v5894_v58 = vor.u32 %v5893_v17, %v5889_v61  ;;  %v4554_v9 = vrot.slane %v4552_v50, 4 }
 0x2a1   : > { %v4558_v34 = vshll.u32 %v11369_v15, 16  ;;  %v4879_v28 = vunpack.c.l.b16 %v4537_v57  ;;  %v5890_v24 = vsel %vm9809_vm4, %v5885_v31, %v5889_v61  ;;  %v11427_v6 = vrot.slane %v4545_v49, 4  ;;  %v9218_v57 = vld [vmem:[%s10657_s7 + $0x34] sm:$0xf]  ;;  %v9219_v49 = vld [vmem:[%s10657_s7 + $0x38] sm:$0x1] }
 0x2a2   : > { %v11409_v5 = vadd.f32 %v11316_v20, %v4140_v26  ;;  %v5895_v23 = vrot.slane %v5894_v58, 4  ;;  %v5278_v20 = vunpack.c.l.b16 %v5177_v7  ;;  %v4555_v51 = vor.u32 %v4554_v9, %v11406_v46  ;;  %v4451_v26 = vld [vmem:[%s10657_s7 + $0x24] sm:$0xf] }
 0x2a3   : > { %v3033_v52 = vpop.f32.mrf.mxu2  ;;  %9192 = vmatmul.msk.bf16.vlgmr.msrb.gmra.mxu0 %vm732_vm1, %v9616_v35  ;;  %9080 = vmatmul.msk.bf16.gmra.mxu3 %vm732_vm1, %v5307_v0  ;;  %v11411_v33 = vpop.f32.mrf.mxu1  ;;  %v11429_v35 = vrot.slane %v4558_v34, 5  ;;  %v4909_v16 = vpack.c.b16 %v4879_v28, %v4878_v22  ;;  %v6219_v62 = vunpack.c.l.b16 %v5890_v24  ;;  %v4563_v31 = vshrl.u32 %v4451_v26, 16 }
 0x2a4   : > { %v3089_v27 = vadd.f32 %v3033_v52, %v10725_v55  ;;  %v11416_v55 = vld [vmem:[%s10657_s7 + $0x28] sm:$0xf]  ;;  %v5900_v15 = vsel %vm9809_vm4, %v5895_v23, %v5899_v60  ;;  %v5308_v17 = vpack.c.b16 %v5279_v29, %v5278_v20  ;;  %v4556_v42 = vrot.slane %v4555_v51, 4  ;;  %v9617_v20 = vld [vmem:[%s10657_s7 + $0x18] sm:$0xff] }
 0x2a5   : > { %v5183_v2 = vrot.slane %v11416_v55, 5  ;;  %v6220_v52 = vunpack.c.l.b16 %v5900_v15  ;;  %v4566_v23 = vshll.u32 %v4451_v26, 16  ;;  %v5911_v60 = vshll.u32 %v9218_v57, 16 }
 0x2a6   : > { %v3743_v37 = vadd.f32 %v11355_v1, %v3089_v27  ;;  %v11418_v0 = vpop.f32.mrf.mxu3  ;;  %9258 = vmatmul.msk.bf16.gmra.mxu1 %vm732_vm1, %v6248_v44  ;;  %v4453_v44 = vld [vmem:[%s10657_s7 + $0x2c] sm:$0x1]  ;;  %v5902_v27 = vshrl.u32 %v9217_v59, 16  ;;  %v5915_v28 = vshrl.u32 %v9218_v57, 16  ;;  %v4572_v29 = vshll.u32 %v11416_v55, 16 }
 0x2a7   : > { %v5185_v58 = vrot.slane %v5183_v2, 4  ;;  %v4576_v51 = vshrl.u32 %v11416_v55, 16  ;;  %v5913_v24 = vrot.slane %v5911_v60, 5  ;;  %v5921_v26 = vshll.u32 %v9219_v49, 16 }
 0x2a8   : > { %v4087_v1 = vpop.f32.mrf.mxu0  ;;  %v4141_v50 = vadd.f32 %v4085_v10, %v3743_v37  ;;  %v5905_v10 = vshll.u32 %v9217_v59, 16  ;;  %v5904_v34 = vrot.slane %v5902_v27, 4  ;;  %v4551_v57 = vsel %vm9809_vm4, %v11427_v6, %v11406_v46 }
 0x2a9   : > { %v4568_v55 = vrot.slane %v4566_v23, 5  ;;  %v11473_v23 = vld [vmem:[%s10657_s7 + $0x34] sm:$0xf] }
 0x2aa   : > { %v5907_v22 = vrot.slane %v5905_v10, 5  ;;  %v6249_v10 = vpack.c.b16 %v6220_v52, %v6219_v62 }
 0x2ab   : > { %v3035_v3 = vpop.f32.mrf.mxu2  ;;  %v11437_v7 = vpop.f32.mrf.mxu1 }
 0x2ac   : > { %v3090_v61 = vadd.f32 %v3035_v3, %v10740_v4  ;;  %v5186_v4 = vrot.slane %v4453_v44, 5  ;;  %v5908_v47 = vor.u32 %v5907_v22, %v5904_v34  ;;  %v5917_v3 = vrot.slane %v5915_v28, 4 }
 0x2ad   : > { %v5190_v22 = vrot.slane %v11473_v23, 5 }
 0x2ae   : > { %v3744_v9 = vadd.f32 %v11381_v8, %v3090_v61  ;;  %v11440_v37 = vpop.f32.mrf.mxu3  ;;  %v11448_v8 = vadd.f32 %v11347_v38, %v4141_v50  ;;  %v4565_v61 = vrot.slane %v4563_v31, 4  ;;  %v5184_v38 = vsel %vm10025_vm7, %v9065_v56, %v5183_v2 }
 0x2af   : > { %v5918_v50 = vor.u32 %v5917_v3, %v5913_v24  ;;  %v5187_v6 = vsel %vm10025_vm7, %v5185_v58, %v5186_v4  ;;  %v5909_v2 = vrot.slane %v5908_v47, 4  ;;  %v5923_v56 = vrot.slane %v5921_v26, 5 }
 0x2b0   : > { %9047 = vmatmul.msk.bf16.gmra.mxu2 %vm732_vm1, %v4909_v16  ;;  %v4090_v15 = vpop.f32.mrf.mxu0  ;;  %v4142_v59 = vadd.f32 %v4087_v1, %v3744_v9  ;;  %v4561_v16 = vsel %vm9809_vm4, %v4556_v42, %v11429_v35  ;;  %v11467_v35 = vrot.slane %v4572_v29, 5  ;;  %v4578_v42 = vrot.slane %v4576_v51, 4  ;;  %v5100_v29 = vld [vmem:[%s10657_s7 + $0x30] sm:$0xe] }
 0x2b1   : > { %v5919_v52 = vrot.slane %v5918_v50, 4  ;;  %v4569_v9 = vor.u32 %v4568_v55, %v4565_v61  ;;  %v4582_v31 = vshll.u32 %v4453_v44, 16  ;;  %v4881_v60 = vunpack.c.l.b16 %v4561_v16  ;;  %v9221_v16 = vld [vmem:[%s10657_s7 + $0x40] sm:$0xf] }
 0x2b2   : > { %v11460_v1 = vadd.f32 %v11377_v19, %v4142_v59  ;;  %v5280_v58 = vunpack.c.l.b16 %v5184_v38  ;;  %v5281_v4 = vunpack.c.l.b16 %v5187_v6  ;;  %v4579_v49 = vor.u32 %v4578_v42, %v11467_v35  ;;  %v4454_v59 = vld [vmem:[%s10657_s7 + $0x30] sm:$0xf] }
 0x2b3   : > { %v3038_v27 = vpop.f32.mrf.mxu2  ;;  %9193 = vmatmul.msk.bf16.gmra.mxu0 %vm732_vm1, %v9617_v20  ;;  %9081 = vmatmul.msk.bf16.gmra.mxu3 %vm732_vm1, %v5308_v17  ;;  %v11469_v62 = vpop.f32.mrf.mxu1  ;;  %v4880_v17 = vunpack.c.l.b16 %v4551_v57  ;;  %v5924_v44 = vsel %vm9809_vm4, %v5919_v52, %v5923_v56  ;;  %v11484_v28 = vrot.slane %v4569_v9, 4  ;;  %v11486_v20 = vrot.slane %v4582_v31, 5  ;;  %v9220_v57 = vld [vmem:[%s10657_s7 + $0x3c] sm:$0xf]  ;;  %v9222_v9 = vld [vmem:[%s10657_s7 + $0x44] sm:$0x1] }
 0x2b4   : > { %v3091_v46 = vadd.f32 %v3038_v27, %v10764_v53  ;;  %v5309_v26 = vpack.c.b16 %v5281_v4, %v5280_v58  ;;  %v4580_v61 = vrot.slane %v4579_v49, 4  ;;  %v6222_v27 = vunpack.c.l.b16 %v5924_v44  ;;  %v9618_v58 = vld [vmem:[%s10657_s7 + $0x24] sm:$0xff] }
 0x2b5   : > { %v4910_v3 = vpack.c.b16 %v4881_v60, %v4880_v17  ;;  %v9066_v50 = vrot.slane %v5100_v29, 9  ;;  %v5926_v6 = vshrl.u32 %v9220_v57, 16  ;;  %v4590_v52 = vshll.u32 %v4454_v59, 16 }
 0x2b6   : > { %v3745_v19 = vadd.f32 %v11418_v0, %v3091_v46  ;;  %v11475_v53 = vpop.f32.mrf.mxu3  ;;  %9259 = vmatmul.msk.bf16.gmra.mxu1 %vm732_vm1, %v6249_v10  ;;  %v5914_v0 = vsel %vm9809_vm4, %v5909_v2, %v5913_v24  ;;  %v4456_v10 = vld [vmem:[%s10657_s7 + $0x38] sm:$0x1]  ;;  %v5192_v46 = vrot.slane %v5190_v22, 4  ;;  %v4587_v2 = vshrl.u32 %v4454_v59, 16 }
 0x2b7   : > { %v6221_v55 = vunpack.c.l.b16 %v5914_v0  ;;  %v5935_v56 = vshll.u32 %v9221_v16, 16  ;;  %v5928_v31 = vrot.slane %v5926_v6, 4  ;;  %v5939_v60 = vshrl.u32 %v9221_v16, 16 }
 0x2b8   : > { %v4092_v34 = vpop.f32.mrf.mxu0  ;;  %v4143_v51 = vadd.f32 %v4090_v15, %v3745_v19  ;;  %v5929_v15 = vshll.u32 %v9220_v57, 16  ;;  %v4596_v4 = vshll.u32 %v11473_v23, 16  ;;  %v4600_v49 = vshrl.u32 %v11473_v23, 16 }
 0x2b9   : > { %v5937_v0 = vrot.slane %v5935_v56, 5  ;;  %v5945_v59 = vshll.u32 %v9222_v9, 16  ;;  %v4575_v16 = vsel %vm9809_vm4, %v11484_v28, %v11467_v35  ;;  %v4592_v23 = vrot.slane %v4590_v52, 5  ;;  %v11530_v52 = vld [vmem:[%s10657_s7 + $0x40] sm:$0xf] }
 0x2ba   : > { %v5931_v17 = vrot.slane %v5929_v15, 5  ;;  %v6250_v15 = vpack.c.b16 %v6222_v27, %v6221_v55 }
 0x2bb   : > { %v3040_v47 = vpop.f32.mrf.mxu2  ;;  %v11494_v38 = vpop.f32.mrf.mxu1 }
 0x2bc   : > { %v3092_v24 = vadd.f32 %v3040_v47, %v10778_v48  ;;  %v5193_v48 = vrot.slane %v4456_v10, 5  ;;  %v5932_v29 = vor.u32 %v5931_v17, %v5928_v31  ;;  %v5941_v47 = vrot.slane %v5939_v60, 4 }
 0x2bd   : > { %v5197_v17 = vrot.slane %v11530_v52, 5 }
 0x2be   : > { %v3746_v42 = vadd.f32 %v11440_v37, %v3092_v24  ;;  %v11497_v19 = vpop.f32.mrf.mxu3  ;;  %v11505_v37 = vadd.f32 %v11411_v33, %v4143_v51  ;;  %v4589_v24 = vrot.slane %v4587_v2, 4  ;;  %v5191_v33 = vsel %vm10025_vm7, %v9066_v50, %v5190_v22 }
 0x2bf   : > { %v5942_v51 = vor.u32 %v5941_v47, %v5937_v0  ;;  %v5194_v28 = vsel %vm10025_vm7, %v5192_v46, %v5193_v48  ;;  %v5933_v22 = vrot.slane %v5932_v29, 4  ;;  %v5947_v50 = vrot.slane %v5945_v59, 5 }
 0x2c0   : > { %9048 = vmatmul.msk.bf16.gmra.mxu2 %vm732_vm1, %v4910_v3  ;;  %v4095_v44 = vpop.f32.mrf.mxu0  ;;  %v4144_v57 = vadd.f32 %v4092_v34, %v3746_v42  ;;  %v4585_v3 = vsel %vm9809_vm4, %v4580_v61, %v11486_v20  ;;  %v11524_v20 = vrot.slane %v4596_v4, 5  ;;  %v4602_v61 = vrot.slane %v4600_v49, 4  ;;  %v5101_v4 = vld [vmem:[%s10657_s7 + $0x3c] sm:$0xe] }
 0x2c1   : > { %v5943_v27 = vrot.slane %v5942_v51, 4  ;;  %v4593_v42 = vor.u32 %v4592_v23, %v4589_v24  ;;  %v4606_v2 = vshll.u32 %v4456_v10, 16  ;;  %v4883_v56 = vunpack.c.l.b16 %v4585_v3  ;;  %v9224_v3 = vld [vmem:[%s10657_s7 + $0x4c] sm:$0xf] }
 0x2c2   : > { %v11517_v34 = vadd.f32 %v11437_v7, %v4144_v57  ;;  %v5282_v46 = vunpack.c.l.b16 %v5191_v33  ;;  %v5283_v48 = vunpack.c.l.b16 %v5194_v28  ;;  %v4603_v9 = vor.u32 %v4602_v61, %v11524_v20  ;;  %v4457_v57 = vld [vmem:[%s10657_s7 + $0x3c] sm:$0xf] }
 0x2c3   : > { %v3043_v6 = vpop.f32.mrf.mxu2  ;;  %9194 = vmatmul.msk.bf16.gmra.mxu0 %vm732_vm1, %v9618_v58  ;;  %9082 = vmatmul.msk.bf16.gmra.mxu3 %vm732_vm1, %v5309_v26  ;;  %v11526_v55 = vpop.f32.mrf.mxu1  ;;  %v4882_v26 = vunpack.c.l.b16 %v4575_v16  ;;  %v5948_v10 = vsel %vm9809_vm4, %v5943_v27, %v5947_v50  ;;  %v11541_v60 = vrot.slane %v4593_v42, 4  ;;  %v11543_v58 = vrot.slane %v4606_v2, 5  ;;  %v9223_v16 = vld [vmem:[%s10657_s7 + $0x48] sm:$0xf]  ;;  %v9225_v42 = vld [vmem:[%s10657_s7 + $0x50] sm:$0x1] }
 0x2c4   : > { %v3093_v35 = vadd.f32 %v3043_v6, %v10803_v40  ;;  %v5310_v59 = vpack.c.b16 %v5283_v48, %v5282_v46  ;;  %v4604_v24 = vrot.slane %v4603_v9, 4  ;;  %v6224_v6 = vunpack.c.l.b16 %v5948_v10  ;;  %v9619_v46 = vld [vmem:[%s10657_s7 + $0x30] sm:$0xff] }
 0x2c5   : > { %v4911_v47 = vpack.c.b16 %v4883_v56, %v4882_v26  ;;  %v9067_v51 = vrot.slane %v5101_v4, 9  ;;  %v5950_v28 = vshrl.u32 %v9223_v16, 16  ;;  %v4614_v27 = vshll.u32 %v4457_v57, 16 }
 0x2c6   : > { %v3747_v7 = vadd.f32 %v11475_v53, %v3093_v35  ;;  %v11532_v40 = vpop.f32.mrf.mxu3  ;;  %9260 = vmatmul.msk.bf16.gmra.mxu1 %vm732_vm1, %v6250_v15  ;;  %v5938_v53 = vsel %vm9809_vm4, %v5933_v22, %v5937_v0  ;;  %v4459_v15 = vld [vmem:[%s10657_s7 + $0x44] sm:$0x1]  ;;  %v5199_v35 = vrot.slane %v5197_v17, 4  ;;  %v4611_v22 = vshrl.u32 %v4457_v57, 16 }
 0x2c7   : > { %v6223_v23 = vunpack.c.l.b16 %v5938_v53  ;;  %v5959_v50 = vshll.u32 %v9224_v3, 16  ;;  %v5952_v2 = vrot.slane %v5950_v28, 4  ;;  %v5963_v56 = vshrl.u32 %v9224_v3, 16 }
 0x2c8   : > { %v4097_v31 = vpop.f32.mrf.mxu0  ;;  %v4145_v49 = vadd.f32 %v4095_v44, %v3747_v7  ;;  %v5953_v44 = vshll.u32 %v9223_v16, 16  ;;  %v4620_v48 = vshll.u32 %v11530_v52, 16  ;;  %v4624_v9 = vshrl.u32 %v11530_v52, 16 }
 0x2c9   : > { %v5961_v53 = vrot.slane %v5959_v50, 5  ;;  %v5969_v57 = vshll.u32 %v9225_v42, 16  ;;  %v4599_v3 = vsel %vm9809_vm4, %v11541_v60, %v11524_v20  ;;  %v4616_v52 = vrot.slane %v4614_v27, 5  ;;  %v11587_v27 = vld [vmem:[%s10657_s7 + $0x4c] sm:$0xf] }
 0x2ca   : > { %v5955_v26 = vrot.slane %v5953_v44, 5  ;;  %v6251_v44 = vpack.c.b16 %v6224_v6, %v6223_v23 }
 0x2cb   : > { %v3045_v29 = vpop.f32.mrf.mxu2  ;;  %v11551_v33 = vpop.f32.mrf.mxu1 }
 0x2cc   : > { %v3094_v0 = vadd.f32 %v3045_v29, %v10818_v36  ;;  %v5200_v36 = vrot.slane %v4459_v15, 5  ;;  %v5956_v4 = vor.u32 %v5955_v26, %v5952_v2  ;;  %v5965_v29 = vrot.slane %v5963_v56, 4 }
 0x2cd   : > { %v5204_v26 = vrot.slane %v11587_v27, 5 }
 0x2ce   : > { %v3748_v61 = vadd.f32 %v11497_v19, %v3094_v0  ;;  %v11554_v7 = vpop.f32.mrf.mxu3  ;;  %v11562_v19 = vadd.f32 %v11469_v62, %v4145_v49  ;;  %v4613_v0 = vrot.slane %v4611_v22, 4  ;;  %v5198_v62 = vsel %vm10025_vm7, %v9067_v51, %v5197_v17 }
 0x2cf   : > { %v5966_v49 = vor.u32 %v5965_v29, %v5961_v53  ;;  %v5201_v60 = vsel %vm10025_vm7, %v5199_v35, %v5200_v36  ;;  %v5957_v17 = vrot.slane %v5956_v4, 4  ;;  %v5971_v51 = vrot.slane %v5969_v57, 5 }
 0x2d0   : > { %9049 = vmatmul.msk.bf16.gmra.mxu2 %vm732_vm1, %v4911_v47  ;;  %v4100_v10 = vpop.f32.mrf.mxu0  ;;  %v4146_v16 = vadd.f32 %v4097_v31, %v3748_v61  ;;  %v4609_v47 = vsel %vm9809_vm4, %v4604_v24, %v11543_v58  ;;  %v11581_v58 = vrot.slane %v4620_v48, 5  ;;  %v4626_v24 = vrot.slane %v4624_v9, 4  ;;  %v5102_v48 = vld [vmem:[%s10657_s7 + $0x48] sm:$0xe] }
 0x2d1   : > { %v5967_v6 = vrot.slane %v5966_v49, 4  ;;  %v4617_v61 = vor.u32 %v4616_v52, %v4613_v0  ;;  %v4630_v22 = vshll.u32 %v4459_v15, 16  ;;  %v4885_v50 = vunpack.c.l.b16 %v4609_v47  ;;  %v9227_v47 = vld [vmem:[%s10657_s7 + $0x58] sm:$0xf] }
 0x2d2   : > { %v11574_v31 = vadd.f32 %v11494_v38, %v4146_v16  ;;  %v5284_v35 = vunpack.c.l.b16 %v5198_v62  ;;  %v5285_v36 = vunpack.c.l.b16 %v5201_v60  ;;  %v4627_v42 = vor.u32 %v4626_v24, %v11581_v58  ;;  %v4460_v16 = vld [vmem:[%s10657_s7 + $0x48] sm:$0xf] }
 0x2d3   : > { %v3048_v28 = vpop.f32.mrf.mxu2  ;;  %9195 = vmatmul.msk.bf16.gmra.mxu0 %vm732_vm1, %v9619_v46  ;;  %9083 = vmatmul.msk.bf16.gmra.mxu3 %vm732_vm1, %v5310_v59  ;;  %v11583_v23 = vpop.f32.mrf.mxu1  ;;  %v4884_v59 = vunpack.c.l.b16 %v4599_v3  ;;  %v5972_v15 = vsel %vm9809_vm4, %v5967_v6, %v5971_v51  ;;  %v11598_v56 = vrot.slane %v4617_v61, 4  ;;  %v11600_v46 = vrot.slane %v4630_v22, 5  ;;  %v9226_v3 = vld [vmem:[%s10657_s7 + $0x54] sm:$0xf]  ;;  %v9228_v61 = vld [vmem:[%s10657_s7 + $0x5c] sm:$0x1] }
 0x2d4   : > { %v3095_v20 = vadd.f32 %v3048_v28, %v10842_v32  ;;  %v5311_v57 = vpack.c.b16 %v5285_v36, %v5284_v35  ;;  %v4628_v0 = vrot.slane %v4627_v42, 4  ;;  %v6226_v28 = vunpack.c.l.b16 %v5972_v15  ;;  %v9620_v35 = vld [vmem:[%s10657_s7 + $0x3c] sm:$0xff] }
 0x2d5   : > { %v4912_v29 = vpack.c.b16 %v4885_v50, %v4884_v59  ;;  %v9068_v49 = vrot.slane %v5102_v48, 9  ;;  %v5974_v60 = vshrl.u32 %v9226_v3, 16  ;;  %v4638_v6 = vshll.u32 %v4460_v16, 16 }
 0x2d6   : > { %v3749_v38 = vadd.f32 %v11532_v40, %v3095_v20  ;;  %v11589_v32 = vpop.f32.mrf.mxu3  ;;  %9261 = vmatmul.msk.bf16.gmra.mxu1 %vm732_vm1, %v6251_v44  ;;  %v5962_v40 = vsel %vm9809_vm4, %v5957_v17, %v5961_v53  ;;  %v4462_v44 = vld [vmem:[%s10657_s7 + $0x50] sm:$0x1]  ;;  %v5206_v20 = vrot.slane %v5204_v26, 4  ;;  %v4635_v17 = vshrl.u32 %v4460_v16, 16 }
 0x2d7   : > { %v6225_v52 = vunpack.c.l.b16 %v5962_v40  ;;  %v5983_v51 = vshll.u32 %v9227_v47, 16  ;;  %v5976_v22 = vrot.slane %v5974_v60, 4  ;;  %v5987_v50 = vshrl.u32 %v9227_v47, 16 }
 0x2d8   : > { %v4102_v2 = vpop.f32.mrf.mxu0  ;;  %v4147_v9 = vadd.f32 %v4100_v10, %v3749_v38  ;;  %v5977_v10 = vshll.u32 %v9226_v3, 16  ;;  %v4644_v36 = vshll.u32 %v11587_v27, 16  ;;  %v4648_v42 = vshrl.u32 %v11587_v27, 16 }
 0x2d9   : > { %v5985_v40 = vrot.slane %v5983_v51, 5  ;;  %v5993_v16 = vshll.u32 %v9228_v61, 16  ;;  %v4623_v47 = vsel %vm9809_vm4, %v11598_v56, %v11581_v58  ;;  %v4640_v27 = vrot.slane %v4638_v6, 5  ;;  %v11644_v6 = vld [vmem:[%s10657_s7 + $0x58] sm:$0xf] }
 0x2da   : > { %v5979_v59 = vrot.slane %v5977_v10, 5  ;;  %v6252_v10 = vpack.c.b16 %v6226_v28, %v6225_v52 }
 0x2db   : > { %v3050_v4 = vpop.f32.mrf.mxu2  ;;  %v11608_v62 = vpop.f32.mrf.mxu1 }
 0x2dc   : > { %v3096_v53 = vadd.f32 %v3050_v4, %v10857_v13  ;;  %v5207_v13 = vrot.slane %v4462_v44, 5  ;;  %v5980_v48 = vor.u32 %v5979_v59, %v5976_v22  ;;  %v5989_v4 = vrot.slane %v5987_v50, 4 }
 0x2dd   : > { %v5211_v59 = vrot.slane %v11644_v6, 5 }
 0x2de   : > { %v3750_v24 = vadd.f32 %v11554_v7, %v3096_v53  ;;  %v11611_v38 = vpop.f32.mrf.mxu3  ;;  %v11619_v7 = vadd.f32 %v11526_v55, %v4147_v9  ;;  %v4637_v53 = vrot.slane %v4635_v17, 4  ;;  %v5205_v55 = vsel %vm10025_vm7, %v9068_v49, %v5204_v26 }
 0x2df   : > { %v5990_v9 = vor.u32 %v5989_v4, %v5985_v40  ;;  %v5208_v56 = vsel %vm10025_vm7, %v5206_v20, %v5207_v13  ;;  %v5981_v26 = vrot.slane %v5980_v48, 4  ;;  %v5995_v49 = vrot.slane %v5993_v16, 5 }
 0x2e0   : > { %9050 = vmatmul.msk.bf16.gmra.mxu2 %vm732_vm1, %v4912_v29  ;;  %v4105_v15 = vpop.f32.mrf.mxu0  ;;  %v4148_v3 = vadd.f32 %v4102_v2, %v3750_v24  ;;  %v4633_v29 = vsel %vm9809_vm4, %v4628_v0, %v11600_v46  ;;  %v11638_v46 = vrot.slane %v4644_v36, 5  ;;  %v4650_v0 = vrot.slane %v4648_v42, 4  ;;  %v5103_v36 = vld [vmem:[%s10657_s7 + $0x54] sm:$0xe] }
 0x2e1   : > { %v5991_v28 = vrot.slane %v5990_v9, 4  ;;  %v4641_v24 = vor.u32 %v4640_v27, %v4637_v53  ;;  %v4654_v17 = vshll.u32 %v4462_v44, 16  ;;  %v4887_v51 = vunpack.c.l.b16 %v4633_v29  ;;  %v9230_v29 = vld [vmem:[%s10657_s7 + $0x64] sm:$0xf] }
 0x2e2   : > { %v11631_v2 = vadd.f32 %v11551_v33, %v4148_v3  ;;  %v5286_v20 = vunpack.c.l.b16 %v5205_v55  ;;  %v5287_v13 = vunpack.c.l.b16 %v5208_v56  ;;  %v4651_v61 = vor.u32 %v4650_v0, %v11638_v46  ;;  %v4463_v3 = vld [vmem:[%s10657_s7 + $0x54] sm:$0xf] }
 0x2e3   : > { %v3053_v60 = vpop.f32.mrf.mxu2  ;;  %9196 = vmatmul.msk.bf16.gmra.mxu0 %vm732_vm1, %v9620_v35  ;;  %9084 = vmatmul.msk.bf16.gmra.mxu3 %vm732_vm1, %v5311_v57  ;;  %v11640_v52 = vpop.f32.mrf.mxu1  ;;  %v4886_v57 = vunpack.c.l.b16 %v4623_v47  ;;  %v5996_v44 = vsel %vm9809_vm4, %v5991_v28, %v5995_v49  ;;  %v11655_v50 = vrot.slane %v4641_v24, 4  ;;  %v11657_v35 = vrot.slane %v4654_v17, 5  ;;  %v9229_v47 = vld [vmem:[%s10657_s7 + $0x60] sm:$0xf]  ;;  %v9231_v24 = vld [vmem:[%s10657_s7 + $0x68] sm:$0x1] }
 0x2e4   : > { %v3097_v58 = vadd.f32 %v3053_v60, %v10881_v45  ;;  %v5312_v16 = vpack.c.b16 %v5287_v13, %v5286_v20  ;;  %v4652_v53 = vrot.slane %v4651_v61, 4  ;;  %v6228_v60 = vunpack.c.l.b16 %v5996_v44  ;;  %v9621_v20 = vld [vmem:[%s10657_s7 + $0x48] sm:$0xff] }
 0x2e5   : > { %v4913_v4 = vpack.c.b16 %v4887_v51, %v4886_v57  ;;  %v9069_v9 = vrot.slane %v5103_v36, 9  ;;  %v5998_v56 = vshrl.u32 %v9229_v47, 16  ;;  %v4662_v28 = vshll.u32 %v4463_v3, 16 }
 0x2e6   : > { %v3751_v33 = vadd.f32 %v11589_v32, %v3097_v58  ;;  %v11646_v45 = vpop.f32.mrf.mxu3  ;;  %9262 = vmatmul.msk.bf16.gmra.mxu1 %vm732_vm1, %v6252_v10  ;;  %v5986_v32 = vsel %vm9809_vm4, %v5981_v26, %v5985_v40  ;;  %v4465_v10 = vld [vmem:[%s10657_s7 + $0x5c] sm:$0x1]  ;;  %v5213_v58 = vrot.slane %v5211_v59, 4  ;;  %v4659_v26 = vshrl.u32 %v4463_v3, 16 }
 0x2e7   : > { %v6227_v27 = vunpack.c.l.b16 %v5986_v32  ;;  %v6007_v49 = vshll.u32 %v9230_v29, 16  ;;  %v6000_v17 = vrot.slane %v5998_v56, 4  ;;  %v6011_v51 = vshrl.u32 %v9230_v29, 16 }
 0x2e8   : > { %v4107_v22 = vpop.f32.mrf.mxu0  ;;  %v4149_v42 = vadd.f32 %v4105_v15, %v3751_v33  ;;  %v6001_v15 = vshll.u32 %v9229_v47, 16  ;;  %v4668_v13 = vshll.u32 %v11644_v6, 16  ;;  %v4672_v61 = vshrl.u32 %v11644_v6, 16 }
 0x2e9   : > { %v6009_v32 = vrot.slane %v6007_v49, 5  ;;  %v6017_v3 = vshll.u32 %v9231_v24, 16  ;;  %v4647_v29 = vsel %vm9809_vm4, %v11655_v50, %v11638_v46  ;;  %v4664_v6 = vrot.slane %v4662_v28, 5  ;;  %v11701_v28 = vld [vmem:[%s10657_s7 + $0x64] sm:$0xf] }
 0x2ea   : > { %v6003_v57 = vrot.slane %v6001_v15, 5  ;;  %v6253_v15 = vpack.c.b16 %v6228_v60, %v6227_v27 }
 0x2eb   : > { %v3055_v48 = vpop.f32.mrf.mxu2  ;;  %v11665_v55 = vpop.f32.mrf.mxu1 }
 0x2ec   : > { %v3098_v40 = vadd.f32 %v3055_v48, %v10895_v25  ;;  %v5214_v25 = vrot.slane %v4465_v10, 5  ;;  %v6004_v36 = vor.u32 %v6003_v57, %v6000_v17  ;;  %v6013_v48 = vrot.slane %v6011_v51, 4 }
 0x2ed   : > { %v5218_v57 = vrot.slane %v11701_v28, 5 }
 0x2ee   : > { %v3752_v0 = vadd.f32 %v11611_v38, %v3098_v40  ;;  %v11668_v33 = vpop.f32.mrf.mxu3  ;;  %v11676_v38 = vadd.f32 %v11583_v23, %v4149_v42  ;;  %v4661_v40 = vrot.slane %v4659_v26, 4  ;;  %v5212_v23 = vsel %vm10025_vm7, %v9069_v9, %v5211_v59 }
 0x2ef   : > { %v6014_v42 = vor.u32 %v6013_v48, %v6009_v32  ;;  %v5215_v50 = vsel %vm10025_vm7, %v5213_v58, %v5214_v25  ;;  %v6005_v59 = vrot.slane %v6004_v36, 4  ;;  %v6019_v9 = vrot.slane %v6017_v3, 5 }
 0x2f0   : > { %9051 = vmatmul.msk.bf16.gmra.mxu2 %vm732_vm1, %v4913_v4  ;;  %v4110_v44 = vpop.f32.mrf.mxu0  ;;  %v4150_v47 = vadd.f32 %v4107_v22, %v3752_v0  ;;  %v4657_v4 = vsel %vm9809_vm4, %v4652_v53, %v11657_v35  ;;  %v11695_v35 = vrot.slane %v4668_v13, 5  ;;  %v4674_v53 = vrot.slane %v4672_v61, 4  ;;  %v5104_v13 = vld [vmem:[%s10657_s7 + $0x60] sm:$0xe] }
 0x2f1   : > { %v6015_v60 = vrot.slane %v6014_v42, 4  ;;  %v4665_v0 = vor.u32 %v4664_v6, %v4661_v40  ;;  %v4678_v26 = vshll.u32 %v4465_v10, 16  ;;  %v4889_v49 = vunpack.c.l.b16 %v4657_v4  ;;  %v9233_v4 = vld [vmem:[%s10657_s7 + $0x70] sm:$0xf] }
 0x2f2   : > { %v11688_v22 = vadd.f32 %v11608_v62, %v4150_v47  ;;  %v5288_v58 = vunpack.c.l.b16 %v5212_v23  ;;  %v5289_v25 = vunpack.c.l.b16 %v5215_v50  ;;  %v4675_v24 = vor.u32 %v4674_v53, %v11695_v35  ;;  %v4466_v47 = vld [vmem:[%s10657_s7 + $0x60] sm:$0xf] }
 0x2f3   : > { %v3058_v56 = vpop.f32.mrf.mxu2  ;;  %9197 = vmatmul.msk.bf16.gmra.mxu0 %vm732_vm1, %v9621_v20  ;;  %9085 = vmatmul.msk.bf16.gmra.mxu3 %vm732_vm1, %v5312_v16  ;;  %v11697_v27 = vpop.f32.mrf.mxu1  ;;  %v4888_v16 = vunpack.c.l.b16 %v4647_v29  ;;  %v6020_v10 = vsel %vm9809_vm4, %v6015_v60, %v6019_v9  ;;  %v11712_v51 = vrot.slane %v4665_v0, 4  ;;  %v11714_v20 = vrot.slane %v4678_v26, 5  ;;  %v9232_v29 = vld [vmem:[%s10657_s7 + $0x6c] sm:$0xf]  ;;  %v9234_v0 = vld [vmem:[%s10657_s7 + $0x74] sm:$0x1] }
 0x2f4   : > { %v3099_v46 = vadd.f32 %v3058_v56, %v10920_v21  ;;  %v5313_v3 = vpack.c.b16 %v5289_v25, %v5288_v58  ;;  %v4676_v40 = vrot.slane %v4675_v24, 4  ;;  %v6230_v56 = vunpack.c.l.b16 %v6020_v10  ;;  %v9622_v58 = vld [vmem:[%s10657_s7 + $0x54] sm:$0xff] }
 0x2f5   : > { %v4914_v48 = vpack.c.b16 %v4889_v49, %v4888_v16  ;;  %v9070_v42 = vrot.slane %v5104_v13, 9  ;;  %v6022_v50 = vshrl.u32 %v9232_v29, 16  ;;  %v4686_v60 = vshll.u32 %v4466_v47, 16 }
 0x2f6   : > { %v3753_v62 = vadd.f32 %v11646_v45, %v3099_v46  ;;  %v11703_v21 = vpop.f32.mrf.mxu3  ;;  %9263 = vmatmul.msk.bf16.gmra.mxu1 %vm732_vm1, %v6253_v15  ;;  %v6010_v45 = vsel %vm9809_vm4, %v6005_v59, %v6009_v32  ;;  %v4468_v15 = vld [vmem:[%s10657_s7 + $0x68] sm:$0x1]  ;;  %v5220_v46 = vrot.slane %v5218_v57, 4  ;;  %v4683_v59 = vshrl.u32 %v4466_v47, 16 }
 0x2f7   : > { %v6229_v6 = vunpack.c.l.b16 %v6010_v45  ;;  %v6031_v9 = vshll.u32 %v9233_v4, 16  ;;  %v6024_v26 = vrot.slane %v6022_v50, 4  ;;  %v6035_v49 = vshrl.u32 %v9233_v4, 16 }
 0x2f8   : > { %v4112_v17 = vpop.f32.mrf.mxu0  ;;  %v4151_v61 = vadd.f32 %v4110_v44, %v3753_v62  ;;  %v6025_v44 = vshll.u32 %v9232_v29, 16  ;;  %v4692_v25 = vshll.u32 %v11701_v28, 16  ;;  %v4696_v24 = vshrl.u32 %v11701_v28, 16 }
 0x2f9   : > { %v6033_v45 = vrot.slane %v6031_v9, 5  ;;  %v6041_v47 = vshll.u32 %v9234_v0, 16  ;;  %v4671_v4 = vsel %vm9809_vm4, %v11712_v51, %v11695_v35  ;;  %v4688_v28 = vrot.slane %v4686_v60, 5  ;;  %v11758_v60 = vld [vmem:[%s10657_s7 + $0x70] sm:$0xf] }
 0x2fa   : > { %v6027_v16 = vrot.slane %v6025_v44, 5  ;;  %v6254_v44 = vpack.c.b16 %v6230_v56, %v6229_v6 }
 0x2fb   : > { %v3060_v36 = vpop.f32.mrf.mxu2  ;;  %v11722_v23 = vpop.f32.mrf.mxu1 }
 0x2fc   : > { %v3100_v32 = vadd.f32 %v3060_v36, %v10935_v12  ;;  %v5221_v12 = vrot.slane %v4468_v15, 5  ;;  %v6028_v13 = vor.u32 %v6027_v16, %v6024_v26  ;;  %v6037_v36 = vrot.slane %v6035_v49, 4 }
 0x2fd   : > { %v5225_v16 = vrot.slane %v11758_v60, 5 }
 0x2fe   : > { %v3754_v53 = vadd.f32 %v11668_v33, %v3100_v32  ;;  %v11725_v62 = vpop.f32.mrf.mxu3  ;;  %v11733_v33 = vadd.f32 %v11640_v52, %v4151_v61  ;;  %v4685_v32 = vrot.slane %v4683_v59, 4  ;;  %v5219_v52 = vsel %vm10025_vm7, %v9070_v42, %v5218_v57 }
 0x2ff   : > { %v6038_v61 = vor.u32 %v6037_v36, %v6033_v45  ;;  %v5222_v51 = vsel %vm10025_vm7, %v5220_v46, %v5221_v12  ;;  %v6029_v57 = vrot.slane %v6028_v13, 4  ;;  %v6043_v42 = vrot.slane %v6041_v47, 5 }
 0x300   : > { %9052 = vmatmul.msk.bf16.gmra.mxu2 %vm732_vm1, %v4914_v48  ;;  %v4115_v10 = vpop.f32.mrf.mxu0  ;;  %v4152_v29 = vadd.f32 %v4112_v17, %v3754_v53  ;;  %v4681_v48 = vsel %vm9809_vm4, %v4676_v40, %v11714_v20  ;;  %v11752_v20 = vrot.slane %v4692_v25, 5  ;;  %v4698_v40 = vrot.slane %v4696_v24, 4  ;;  %v5105_v25 = vld [vmem:[%s10657_s7 + $0x6c] sm:$0xe] }
 0x301   : > { %v6039_v56 = vrot.slane %v6038_v61, 4  ;;  %v4689_v53 = vor.u32 %v4688_v28, %v4685_v32  ;;  %v4702_v59 = vshll.u32 %v4468_v15, 16  ;;  %v4891_v9 = vunpack.c.l.b16 %v4681_v48  ;;  %v9236_v48 = vld [vmem:[%s10657_s7 + $0x7c] sm:$0xf] }
 0x302   : > { %v11745_v17 = vadd.f32 %v11665_v55, %v4152_v29  ;;  %v5290_v46 = vunpack.c.l.b16 %v5219_v52  ;;  %v5291_v12 = vunpack.c.l.b16 %v5222_v51  ;;  %v4699_v0 = vor.u32 %v4698_v40, %v11752_v20  ;;  %v4469_v29 = vld [vmem:[%s10657_s7 + $0x6c] sm:$0xf] }
 0x303   : > { %v3063_v50 = vpop.f32.mrf.mxu2  ;;  %9198 = vmatmul.msk.bf16.gmra.mxu0 %vm732_vm1, %v9622_v58  ;;  %9086 = vmatmul.msk.bf16.gmra.mxu3 %vm732_vm1, %v5313_v3  ;;  %v11754_v6 = vpop.f32.mrf.mxu1  ;;  %v4890_v3 = vunpack.c.l.b16 %v4671_v4  ;;  %v6044_v15 = vsel %vm9809_vm4, %v6039_v56, %v6043_v42  ;;  %v11769_v49 = vrot.slane %v4689_v53, 4  ;;  %v11771_v58 = vrot.slane %v4702_v59, 5  ;;  %v9235_v4 = vld [vmem:[%s10657_s7 + $0x78] sm:$0xf]  ;;  %v9237_v53 = vld [vmem:[%s10657_s7 + $0x80] sm:$0x1] }
 0x304   : > { %v3101_v35 = vadd.f32 %v3063_v50, %v10959_v41  ;;  %v5314_v47 = vpack.c.b16 %v5291_v12, %v5290_v46  ;;  %v4700_v32 = vrot.slane %v4699_v0, 4  ;;  %v6232_v50 = vunpack.c.l.b16 %v6044_v15  ;;  %v9623_v46 = vld [vmem:[%s10657_s7 + $0x60] sm:$0xff] }
 0x305   : > { %v4915_v36 = vpack.c.b16 %v4891_v9, %v4890_v3  ;;  %v9071_v61 = vrot.slane %v5105_v25, 9  ;;  %v6046_v51 = vshrl.u32 %v9235_v4, 16  ;;  %v4710_v56 = vshll.u32 %v4469_v29, 16 }
 0x306   : > { %v3755_v55 = vadd.f32 %v11703_v21, %v3101_v35  ;;  %v11760_v41 = vpop.f32.mrf.mxu3  ;;  %9264 = vmatmul.msk.bf16.gmra.mxu1 %vm732_vm1, %v6254_v44  ;;  %v6034_v21 = vsel %vm9809_vm4, %v6029_v57, %v6033_v45  ;;  %v4471_v44 = vld [vmem:[%s10657_s7 + $0x74] sm:$0x1]  ;;  %v5227_v35 = vrot.slane %v5225_v16, 4  ;;  %v4707_v57 = vshrl.u32 %v4469_v29, 16 }
 0x307   : > { %v6231_v28 = vunpack.c.l.b16 %v6034_v21  ;;  %v6055_v42 = vshll.u32 %v9236_v48, 16  ;;  %v6048_v59 = vrot.slane %v6046_v51, 4  ;;  %v6059_v9 = vshrl.u32 %v9236_v48, 16 }
 0x308   : > { %v4117_v26 = vpop.f32.mrf.mxu0  ;;  %v4153_v24 = vadd.f32 %v4115_v10, %v3755_v55  ;;  %v6049_v10 = vshll.u32 %v9235_v4, 16  ;;  %v4716_v12 = vshll.u32 %v11758_v60, 16  ;;  %v4720_v0 = vshrl.u32 %v11758_v60, 16 }
 0x309   : > { %v6057_v21 = vrot.slane %v6055_v42, 5  ;;  %v6065_v29 = vshll.u32 %v9237_v53, 16  ;;  %v4695_v48 = vsel %vm9809_vm4, %v11769_v49, %v11752_v20  ;;  %v4712_v60 = vrot.slane %v4710_v56, 5  ;;  %v11815_v56 = vld [vmem:[%s10657_s7 + $0x7c] sm:$0xf] }
 0x30a   : > { %v6051_v3 = vrot.slane %v6049_v10, 5  ;;  %v6255_v10 = vpack.c.b16 %v6232_v50, %v6231_v28 }
 0x30b   : > { %v3065_v13 = vpop.f32.mrf.mxu2  ;;  %v11779_v52 = vpop.f32.mrf.mxu1 }
 0x30c   : > { %v3102_v45 = vadd.f32 %v3065_v13, %v10974_v43  ;;  %v5228_v43 = vrot.slane %v4471_v44, 5  ;;  %v6052_v25 = vor.u32 %v6051_v3, %v6048_v59  ;;  %v6061_v13 = vrot.slane %v6059_v9, 4 }
 0x30d   : > { %v5232_v3 = vrot.slane %v11815_v56, 5 }
 0x30e   : > { %v3756_v40 = vadd.f32 %v11725_v62, %v3102_v45  ;;  %v11782_v55 = vpop.f32.mrf.mxu3  ;;  %v11790_v62 = vadd.f32 %v11697_v27, %v4153_v24  ;;  %v4709_v45 = vrot.slane %v4707_v57, 4  ;;  %v5226_v27 = vsel %vm10025_vm7, %v9071_v61, %v5225_v16 }
 0x30f   : > { %v6062_v24 = vor.u32 %v6061_v13, %v6057_v21  ;;  %v5229_v49 = vsel %vm10025_vm7, %v5227_v35, %v5228_v43  ;;  %v6053_v16 = vrot.slane %v6052_v25, 4  ;;  %v6067_v61 = vrot.slane %v6065_v29, 5 }
 0x310   : > { %9053 = vmatmul.msk.bf16.gmra.mxu2 %vm732_vm1, %v4915_v36  ;;  %v4120_v15 = vpop.f32.mrf.mxu0  ;;  %v4154_v4 = vadd.f32 %v4117_v26, %v3756_v40  ;;  %v4705_v36 = vsel %vm9809_vm4, %v4700_v32, %v11771_v58  ;;  %v11809_v58 = vrot.slane %v4716_v12, 5  ;;  %v4722_v32 = vrot.slane %v4720_v0, 4  ;;  %v5106_v12 = vld [vmem:[%s10657_s7 + $0x78] sm:$0xe] }
 0x311   : > { %v6063_v50 = vrot.slane %v6062_v24, 4  ;;  %v4713_v40 = vor.u32 %v4712_v60, %v4709_v45  ;;  %v4726_v57 = vshll.u32 %v4471_v44, 16  ;;  %v4893_v42 = vunpack.c.l.b16 %v4705_v36  ;;  %v9239_v36 = vld [vmem:[%s10657_s7 + $0x88] sm:$0xf] }
 0x312   : > { %v11802_v26 = vadd.f32 %v11722_v23, %v4154_v4  ;;  %v5292_v35 = vunpack.c.l.b16 %v5226_v27  ;;  %v5293_v43 = vunpack.c.l.b16 %v5229_v49  ;;  %v4723_v53 = vor.u32 %v4722_v32, %v11809_v58  ;;  %v4472_v4 = vld [vmem:[%s10657_s7 + $0x78] sm:$0xf] }
 0x313   : > { %v3068_v51 = vpop.f32.mrf.mxu2  ;;  %9199 = vmatmul.msk.bf16.gmra.mxu0 %vm732_vm1, %v9623_v46  ;;  %9087 = vmatmul.msk.bf16.gmra.mxu3 %vm732_vm1, %v5314_v47  ;;  %v11811_v28 = vpop.f32.mrf.mxu1  ;;  %v4892_v47 = vunpack.c.l.b16 %v4695_v48  ;;  %v6068_v44 = vsel %vm9809_vm4, %v6063_v50, %v6067_v61  ;;  %v11826_v9 = vrot.slane %v4713_v40, 4  ;;  %v11828_v46 = vrot.slane %v4726_v57, 5  ;;  %v9238_v48 = vld [vmem:[%s10657_s7 + $0x84] sm:$0xf]  ;;  %v9240_v40 = vld [vmem:[%s10657_s7 + $0x8c] sm:$0x1] }
 0x314   : > { %v3103_v20 = vadd.f32 %v3068_v51, %v10998_v30  ;;  %v5315_v29 = vpack.c.b16 %v5293_v43, %v5292_v35  ;;  %v4724_v45 = vrot.slane %v4723_v53, 4  ;;  %v6234_v51 = vunpack.c.l.b16 %v6068_v44  ;;  %v9624_v35 = vld [vmem:[%s10657_s7 + $0x6c] sm:$0xff] }
 0x315   : > { %v4916_v13 = vpack.c.b16 %v4893_v42, %v4892_v47  ;;  %v9072_v24 = vrot.slane %v5106_v12, 9  ;;  %v6070_v49 = vshrl.u32 %v9238_v48, 16  ;;  %v4734_v50 = vshll.u32 %v4472_v4, 16 }
 0x316   : > { %v3757_v23 = vadd.f32 %v11760_v41, %v3103_v20  ;;  %v11817_v30 = vpop.f32.mrf.mxu3  ;;  %9265 = vmatmul.msk.bf16.gmra.mxu1 %vm732_vm1, %v6255_v10  ;;  %v6058_v41 = vsel %vm9809_vm4, %v6053_v16, %v6057_v21  ;;  %v4474_v10 = vld [vmem:[%s10657_s7 + $0x80] sm:$0x1]  ;;  %v5234_v20 = vrot.slane %v5232_v3, 4  ;;  %v4731_v16 = vshrl.u32 %v4472_v4, 16 }
 0x317   : > { %v6233_v60 = vunpack.c.l.b16 %v6058_v41  ;;  %v6079_v61 = vshll.u32 %v9239_v36, 16  ;;  %v6072_v57 = vrot.slane %v6070_v49, 4  ;;  %v6083_v42 = vshrl.u32 %v9239_v36, 16 }
 0x318   : > { %v4122_v59 = vpop.f32.mrf.mxu0  ;;  %v4155_v0 = vadd.f32 %v4120_v15, %v3757_v23  ;;  %v6073_v15 = vshll.u32 %v9238_v48, 16  ;;  %v4740_v43 = vshll.u32 %v11815_v56, 16  ;;  %v4744_v53 = vshrl.u32 %v11815_v56, 16 }
 0x319   : > { %v6081_v41 = vrot.slane %v6079_v61, 5  ;;  %v6089_v4 = vshll.u32 %v9240_v40, 16  ;;  %v4719_v36 = vsel %vm9809_vm4, %v11826_v9, %v11809_v58  ;;  %v4736_v56 = vrot.slane %v4734_v50, 5  ;;  %v11872_v61 = vld [vmem:[%s10657_s7 + $0x88] sm:$0xf] }
 0x31a   : > { %v6075_v47 = vrot.slane %v6073_v15, 5  ;;  %v6256_v15 = vpack.c.b16 %v6234_v51, %v6233_v60  ;;  %v4750_v50 = vshll.u32 %v4474_v10, 16  ;;  %v4894_v40 = vunpack.c.l.b16 %v4719_v36 }
 0x31b   : > { %v3070_v25 = vpop.f32.mrf.mxu2  ;;  %v11836_v27 = vpop.f32.mrf.mxu1 }
 0x31c   : > { %v3104_v21 = vadd.f32 %v3070_v25, %v11012_v63  ;;  %v5235_v63 = vrot.slane %v4474_v10, 5  ;;  %v6076_v12 = vor.u32 %v6075_v47, %v6072_v57  ;;  %v6085_v25 = vrot.slane %v6083_v42, 4 }
 0x31e   : > { %v3758_v32 = vadd.f32 %v11782_v55, %v3104_v21  ;;  %v11839_v23 = vpop.f32.mrf.mxu3  ;;  %v11847_v55 = vadd.f32 %v11754_v6, %v4155_v0  ;;  %v4733_v21 = vrot.slane %v4731_v16, 4  ;;  %v5233_v6 = vsel %vm10025_vm7, %v9072_v24, %v5232_v3 }
 0x31f   : > { %v6086_v0 = vor.u32 %v6085_v25, %v6081_v41  ;;  %v5236_v9 = vsel %vm10025_vm7, %v5234_v20, %v5235_v63  ;;  %v6077_v3 = vrot.slane %v6076_v12, 4  ;;  %v6091_v24 = vrot.slane %v6089_v4, 5  ;;  %v11888_v12 = vld [vmem:[%s10657_s7 + $0x8c] sm:$0x1]  ;;  %v5107_v25 = vld [vmem:[%s10657_s7 + $0x84] sm:$0xe] }
 0x320   : > { %9054 = vmatmul.msk.bf16.gmra.mxu2 %vm732_vm1, %v4916_v13  ;;  %13001 = vst [vmem:[#allocation14_spill] sm:$0xff] %v11847_v55  ;;  %v5669_v44 = vpop.f32.mrf.mxu0  ;;  %v4156_v48 = vadd.f32 %v4122_v59, %v3758_v32  ;;  %v4729_v13 = vsel %vm9809_vm4, %v4724_v45, %v11828_v46  ;;  %v13003_v32 = vld [vmem:[#allocation2_spill] sm:$0xff]  ;;  %v11866_v46 = vrot.slane %v4740_v43, 5  ;;  %v4746_v45 = vrot.slane %v4744_v53, 4 }
 0x321   : > { %v6087_v51 = vrot.slane %v6086_v0, 4  ;;  %v4737_v16 = vor.u32 %v4736_v56, %v4733_v21  ;;  %v4895_v20 = vunpack.c.l.b16 %v4729_v13  ;;  %v5294_v63 = vunpack.c.l.b16 %v5233_v6  ;;  %v4475_v21 = vld [vmem:[%s10657_s7 + $0x84] sm:$0xf]  ;;  %v9241_v56 = vld [vmem:[%s10657_s7 + $0x90] sm:$0xf] }
 0x322   : > { %v11859_v59 = vadd.f32 %v11779_v52, %v4156_v48  ;;  %v5295_v57 = vunpack.c.l.b16 %v5236_v9  ;;  %v4747_v47 = vor.u32 %v4746_v45, %v11866_v46  ;;  %v6082_v10 = vsel %vm9809_vm4, %v6077_v3, %v6081_v41  ;;  %v13004_v41 = vld [vmem:[#allocation3_spill] sm:$0xff] }
 0x323   : > { %v4984_v49 = vpop.f32.mrf.mxu2  ;;  %9200 = vmatmul.msk.bf16.gmra.mxu0 %vm732_vm1, %v9624_v35  ;;  %9088 = vmatmul.msk.bf16.gmra.mxu3 %vm732_vm1, %v5315_v29  ;;  %v11868_v60 = vpop.f32.mrf.mxu1  ;;  %v6092_v42 = vsel %vm9809_vm4, %v6087_v51, %v6091_v24  ;;  %v5239_v35 = vrot.slane %v11872_v61, 5  ;;  %v11883_v43 = vrot.slane %v4737_v16, 4  ;;  %v11885_v53 = vrot.slane %v4750_v50, 5 }
 0x324   : > { %13002 = vst [vmem:[#allocation15_spill] sm:$0xff] %v11859_v59  ;;  %v5064_v58 = vadd.f32 %v4984_v49, %v13003_v32  ;;  %v4917_v36 = vpack.c.b16 %v4895_v20, %v4894_v40  ;;  %v5316_v13 = vpack.c.b16 %v5295_v57, %v5294_v63  ;;  %v9242_v49 = vld [vmem:[%s10657_s7 + $0x94] sm:$0xf]  ;;  %v4748_v6 = vrot.slane %v4747_v47, 4  ;;  %v9243_v20 = vld [vmem:[%s10657_s7 + $0x98] sm:$0x1] }
 0x325   : > { %v6235_v0 = vunpack.c.l.b16 %v6082_v10  ;;  %v6236_v32 = vunpack.c.l.b16 %v6092_v42  ;;  %v9073_v9 = vrot.slane %v5107_v25, 9  ;;  %v5241_v45 = vrot.slane %v5239_v35, 4  ;;  %v9625_v10 = vld [vmem:[%s10657_s7 + $0x78] sm:$0xff] }
 0x326   : > { %v5462_v52 = vadd.f32 %v11817_v30, %v5064_v58  ;;  %v11874_v29 = vpop.f32.mrf.mxu3  ;;  %9266 = vmatmul.msk.bf16.gmra.mxu1 %vm732_vm1, %v6256_v15  ;;  %v6094_v3 = vshrl.u32 %v9241_v56, 16  ;;  %v6097_v51 = vshll.u32 %v9241_v56, 16  ;;  %v5242_v24 = vrot.slane %v11888_v12, 5 }
 0x327   : > { %v6103_v16 = vshll.u32 %v9242_v49, 16  ;;  %v4758_v40 = vshll.u32 %v4475_v21, 16  ;;  %v6107_v47 = vshrl.u32 %v9242_v49, 16  ;;  %v4764_v42 = vshll.u32 %v11872_v61, 16 }
 0x328   : > { %v5671_v30 = vpop.f32.mrf.mxu0  ;;  %v5749_v4 = vadd.f32 %v5669_v44, %v5462_v52  ;;  %v4755_v52 = vshrl.u32 %v4475_v21, 16  ;;  %v6096_v63 = vrot.slane %v6094_v3, 4  ;;  %v6099_v57 = vrot.slane %v6097_v51, 5 }
 0x329   : > { %v4768_v25 = vshrl.u32 %v11872_v61, 16  ;;  %v4743_v21 = vsel %vm9809_vm4, %v11883_v43, %v11866_v46  ;;  %v6257_v3 = vpack.c.b16 %v6236_v32, %v6235_v0  ;;  %v5240_v61 = vsel %vm10025_vm7, %v9073_v9, %v5239_v35 }
 0x32a   : > { %v6113_v51 = vshll.u32 %v9243_v20, 16 }
 0x32b   : > { %v4986_v48 = vpop.f32.mrf.mxu2  ;;  %v11895_v58 = vpop.f32.mrf.mxu1  ;;  %v4770_v35 = vrot.slane %v4768_v25, 4  ;;  %v5108_v25 = vld [vmem:[%s10657_s7 + $0x90] sm:$0xe] }
 0x32c   : > { %v5065_v15 = vadd.f32 %v4986_v48, %v13004_v41  ;;  %v6105_v48 = vrot.slane %v6103_v16, 5  ;;  %v6100_v41 = vor.u32 %v6099_v57, %v6096_v63  ;;  %v4757_v16 = vrot.slane %v4755_v52, 4 }
 0x32d   : > { %v4896_v52 = vunpack.c.l.b16 %v4743_v21  ;;  %v5296_v63 = vunpack.c.l.b16 %v5240_v61  ;;  %v9245_v61 = vld [vmem:[%s10657_s7 + $0xa0] sm:$0xf] }
 0x32e   : > { %v5463_v44 = vadd.f32 %v11839_v23, %v5065_v15  ;;  %v11899_v50 = vpop.f32.mrf.mxu3  ;;  %v11907_v23 = vadd.f32 %v11811_v28, %v5749_v4  ;;  %v6109_v15 = vrot.slane %v6107_v47, 4  ;;  %v5243_v4 = vsel %vm10025_vm7, %v5241_v45, %v5242_v24 }
 0x32f   : > { %v6101_v32 = vrot.slane %v6100_v41, 4  ;;  %v4774_v45 = vshll.u32 %v11888_v12, 16 }
 0x330   : > { %9055 = vmatmul.msk.bf16.gmra.mxu2 %vm732_vm1, %v4917_v36  ;;  %13005 = vst [vmem:[#allocation2_spill] sm:$0xff] %v11907_v23  ;;  %v5674_v56 = vpop.f32.mrf.mxu0  ;;  %v5750_v49 = vadd.f32 %v5671_v30, %v5463_v44  ;;  %v4753_v36 = vsel %vm9809_vm4, %v4748_v6, %v11885_v53  ;;  %v6110_v23 = vor.u32 %v6109_v15, %v6105_v48  ;;  %v13007_v30 = vld [vmem:[#allocation4_spill] sm:$0xff]  ;;  %v4760_v53 = vrot.slane %v4758_v40, 5 }
 0x331   : > { %v11926_v6 = vrot.slane %v4764_v42, 5  ;;  %v6115_v44 = vrot.slane %v6113_v51, 5  ;;  %v4897_v20 = vunpack.c.l.b16 %v4753_v36  ;;  %v4479_v40 = vld [vmem:[%s10657_s7 + $0x94] sm:$0xf]  ;;  %v6106_v12 = vsel %vm9809_vm4, %v6101_v32, %v6105_v48  ;;  %v4478_v36 = vld [vmem:[%s10657_s7 + $0x90] sm:$0xf] }
 0x332   : > { %v11921_v46 = vadd.f32 %v11836_v27, %v5750_v49  ;;  %v6111_v27 = vrot.slane %v6110_v23, 4  ;;  %v4761_v57 = vor.u32 %v4760_v53, %v4757_v16  ;;  %v5246_v23 = vrot.slane %v4479_v40, 5  ;;  %v13008_v51 = vld [vmem:[#allocation5_spill] sm:$0xff] }
 0x333   : > { %v4989_v28 = vpop.f32.mrf.mxu2  ;;  %9201 = vmatmul.msk.bf16.gmra.mxu0 %vm732_vm1, %v9625_v10  ;;  %9089 = vmatmul.msk.bf16.gmra.mxu3 %vm732_vm1, %v5316_v13  ;;  %v11928_v0 = vpop.f32.mrf.mxu1  ;;  %v5297_v13 = vunpack.c.l.b16 %v5243_v4  ;;  %v4776_v10 = vrot.slane %v4774_v45, 5  ;;  %v4918_v15 = vpack.c.b16 %v4897_v20, %v4896_v52  ;;  %v11949_v53 = vld [vmem:[%s10657_s7 + $0x98] sm:$0x1]  ;;  %v4782_v20 = vshll.u32 %v4478_v36, 16 }
 0x334   : > { %13006 = vst [vmem:[#allocation3_spill] sm:$0xff] %v11921_v46  ;;  %v5066_v43 = vadd.f32 %v4989_v28, %v13007_v30  ;;  %v6116_v42 = vsel %vm9809_vm4, %v6111_v27, %v6115_v44  ;;  %v4762_v4 = vrot.slane %v4761_v57, 4  ;;  %v6237_v30 = vunpack.c.l.b16 %v6106_v12 }
 0x335   : > { %v5317_v49 = vpack.c.b16 %v5297_v13, %v5296_v63  ;;  %v5248_v45 = vrot.slane %v5246_v23, 4  ;;  %v4779_v27 = vshrl.u32 %v4478_v36, 16  ;;  %v6127_v44 = vshll.u32 %v9245_v61, 16 }
 0x336   : > { %v5464_v9 = vadd.f32 %v11874_v29, %v5066_v43  ;;  %v11932_v24 = vpop.f32.mrf.mxu3  ;;  %9267 = vmatmul.msk.bf16.gmra.mxu1 %vm732_vm1, %v6257_v3  ;;  %v4771_v29 = vor.u32 %v4770_v35, %v11926_v6  ;;  %v9244_v3 = vld [vmem:[%s10657_s7 + $0x9c] sm:$0xf]  ;;  %v6238_v43 = vunpack.c.l.b16 %v6116_v42  ;;  %v9074_v35 = vrot.slane %v5108_v25, 9 }
 0x337   : > { %v6118_v32 = vshrl.u32 %v9244_v3, 16  ;;  %v6131_v57 = vshrl.u32 %v9245_v61, 16  ;;  %v5249_v12 = vrot.slane %v11949_v53, 5  ;;  %v4788_v42 = vshll.u32 %v4479_v40, 16 }
 0x338   : > { %v5676_v47 = vpop.f32.mrf.mxu0  ;;  %v5751_v21 = vadd.f32 %v5674_v56, %v5464_v9  ;;  %v4772_v16 = vrot.slane %v4771_v29, 4  ;;  %v6121_v56 = vshll.u32 %v9244_v3, 16  ;;  %v9626_v29 = vld [vmem:[%s10657_s7 + $0x84] sm:$0xff]  ;;  %v4792_v25 = vshrl.u32 %v4479_v40, 16 }
 0x339   : > { %v6120_v63 = vrot.slane %v6118_v32, 4  ;;  %v4767_v36 = vsel %vm9809_vm4, %v4762_v4, %v11926_v6  ;;  %v6258_v61 = vpack.c.b16 %v6238_v43, %v6237_v30  ;;  %v9246_v32 = vld [vmem:[%s10657_s7 + $0xa4] sm:$0x1]  ;;  %v5247_v40 = vsel %vm10025_vm7, %v9074_v35, %v5246_v23 }
 0x33a   : > { %v6123_v13 = vrot.slane %v6121_v56, 5  ;;  %v5250_v6 = vsel %vm10025_vm7, %v5248_v45, %v5249_v12  ;;  %v4794_v4 = vrot.slane %v4792_v25, 4  ;;  %v6137_v43 = vshll.u32 %v9246_v32, 16  ;;  %v4481_v25 = vld [vmem:[%s10657_s7 + $0x9c] sm:$0xf]  ;;  %v13012_v32 = vld [vmem:[#allocation6_spill] sm:$0xff] }
 0x33b   : > { %v4991_v41 = vpop.f32.mrf.mxu2  ;;  %v11946_v48 = vpop.f32.mrf.mxu1  ;;  %v4798_v45 = vshll.u32 %v11949_v53, 16 }
 0x33c   : > { %v5067_v28 = vadd.f32 %v4991_v41, %v13008_v51  ;;  %v11958_v41 = vadd.f32 %v11868_v60, %v5751_v21  ;;  %v6124_v3 = vor.u32 %v6123_v13, %v6120_v63  ;;  %v6129_v51 = vrot.slane %v6127_v44, 5 }
 0x33d   : > { %v4781_v60 = vrot.slane %v4779_v27, 4  ;;  %v4784_v21 = vrot.slane %v4782_v20, 5  ;;  %v5299_v44 = vunpack.c.l.b16 %v5250_v6  ;;  %v6139_v12 = vrot.slane %v6137_v43, 5 }
 0x33e   : > { %v5465_v9 = vadd.f32 %v11899_v50, %v5067_v28  ;;  %v11952_v52 = vpop.f32.mrf.mxu3  ;;  %13009 = vst [vmem:[#allocation4_spill] sm:$0xff] %v11958_v41  ;;  %v6133_v28 = vrot.slane %v6131_v57, 4  ;;  %v6125_v23 = vrot.slane %v6124_v3, 4  ;;  %v4803_v6 = vshrl.u32 %v4481_v25, 16 }
 0x33f   : > { %v4785_v20 = vor.u32 %v4784_v21, %v4781_v60 }
 0x340   : > { %9056 = vmatmul.msk.bf16.gmra.mxu2 %vm732_vm1, %v4918_v15  ;;  %v5679_v50 = vpop.f32.mrf.mxu0  ;;  %v5752_v46 = vadd.f32 %v5676_v47, %v5465_v9  ;;  %v4777_v15 = vsel %vm9809_vm4, %v4772_v16, %v4776_v10  ;;  %v13011_v47 = vld [vmem:[#allocation12_spill] sm:$0xff]  ;;  %v11976_v10 = vrot.slane %v4788_v42, 5  ;;  %v6134_v30 = vor.u32 %v6133_v28, %v6129_v51  ;;  %v4482_v42 = vld [vmem:[%s10657_s7 + $0xa0] sm:$0xf] }
 0x341   : > { %v4899_v35 = vunpack.c.l.b16 %v4777_v15  ;;  %v11990_v53 = vrot.slane %v4785_v20, 4  ;;  %v5253_v21 = vrot.slane %v4482_v42, 5  ;;  %v4816_v20 = vshrl.u32 %v4482_v42, 16 }
 0x342   : > { %v11969_v63 = vadd.f32 %v11895_v58, %v5752_v46  ;;  %v4898_v46 = vunpack.c.l.b16 %v4767_v36  ;;  %v4795_v13 = vor.u32 %v4794_v4, %v11976_v10  ;;  %v9248_v4 = vld [vmem:[%s10657_s7 + $0xac] sm:$0xf] }
 0x343   : > { %v4994_v56 = vpop.f32.mrf.mxu2  ;;  %9202 = vmatmul.msk.bf16.gmra.mxu0 %vm732_vm1, %v9626_v29  ;;  %9090 = vmatmul.msk.bf16.gmra.mxu3 %vm732_vm1, %v5317_v49  ;;  %v11978_v16 = vpop.f32.mrf.mxu1  ;;  %v5298_v49 = vunpack.c.l.b16 %v5247_v40  ;;  %v6130_v29 = vsel %vm9809_vm4, %v6125_v23, %v6129_v51  ;;  %v11996_v51 = vld [vmem:[%s10657_s7 + $0xa4] sm:$0x1] }
 0x344   : > { %13010 = vst [vmem:[#allocation5_spill] sm:$0xff] %v11969_v63  ;;  %v5068_v9 = vadd.f32 %v4994_v56, %v13011_v47  ;;  %v4919_v36 = vpack.c.b16 %v4899_v35, %v4898_v46  ;;  %v4796_v40 = vrot.slane %v4795_v13, 4  ;;  %v6239_v60 = vunpack.c.l.b16 %v6130_v29  ;;  %v9247_v47 = vld [vmem:[%s10657_s7 + $0xa8] sm:$0xf] }
 0x345   : > { %v5318_v15 = vpack.c.b16 %v5299_v44, %v5298_v49  ;;  %v6142_v23 = vshrl.u32 %v9247_v47, 16  ;;  %v4806_v46 = vshll.u32 %v4481_v25, 16  ;;  %v4812_v35 = vshll.u32 %v4482_v42, 16 }
 0x346   : > { %v5466_v58 = vadd.f32 %v11932_v24, %v5068_v9  ;;  %v11981_v27 = vpop.f32.mrf.mxu3  ;;  %9268 = vmatmul.msk.bf16.gmra.mxu1 %vm732_vm1, %v6258_v61  ;;  %v6135_v24 = vrot.slane %v6134_v30, 4  ;;  %v11992_v61 = vrot.slane %v4798_v45, 5  ;;  %v6145_v30 = vshll.u32 %v9247_v47, 16 }
 0x347   : > { %v6151_v49 = vshll.u32 %v9248_v4, 16  ;;  %v6144_v45 = vrot.slane %v6142_v23, 4  ;;  %v6155_v29 = vshrl.u32 %v9248_v4, 16  ;;  %v5255_v63 = vrot.slane %v5253_v21, 4 }
 0x348   : > { %v5681_v57 = vpop.f32.mrf.mxu0  ;;  %v5753_v3 = vadd.f32 %v5679_v50, %v5466_v58  ;;  %v6140_v50 = vsel %vm9809_vm4, %v6135_v24, %v6139_v12  ;;  %v5109_v58 = vld [vmem:[%s10657_s7 + $0x9c] sm:$0xe]  ;;  %v6147_v13 = vrot.slane %v6145_v30, 5  ;;  %v9627_v24 = vld [vmem:[%s10657_s7 + $0x90] sm:$0xff]  ;;  %v5256_v41 = vrot.slane %v11996_v51, 5 }
 0x349   : > { %v6240_v12 = vunpack.c.l.b16 %v6140_v50  ;;  %v9075_v25 = vrot.slane %v5109_v58, 9  ;;  %v6157_v59 = vrot.slane %v6155_v29, 4  ;;  %v4805_v42 = vrot.slane %v4803_v6, 4 }
 0x34a   : > { %v12012_v47 = vadd.f32 %v11928_v0, %v5753_v3  ;;  %v6148_v23 = vor.u32 %v6147_v13, %v6144_v45  ;;  %v4808_v50 = vrot.slane %v4806_v46, 5  ;;  %v12018_v55 = vrot.slane %v4812_v35, 5 }
 0x34b   : > { %v4996_v28 = vpop.f32.mrf.mxu2  ;;  %v11999_v9 = vpop.f32.mrf.mxu1  ;;  %v4791_v6 = vsel %vm9809_vm4, %v11990_v53, %v11976_v10  ;;  %v5257_v46 = vsel %vm10025_vm7, %v5255_v63, %v5256_v41 }
 0x34c   : > { %v5069_v56 = vadd.f32 %v4996_v28, %v13012_v32  ;;  %v9249_v28 = vld [vmem:[%s10657_s7 + $0xb0] sm:$0x1]  ;;  %v6153_v32 = vrot.slane %v6151_v49, 5  ;;  %v4818_v49 = vrot.slane %v4816_v20, 4  ;;  %v6149_v20 = vrot.slane %v6148_v23, 4 }
 0x34d   : > { %v6161_v30 = vshll.u32 %v9249_v28, 16  ;;  %v5110_v23 = vld [vmem:[%s10657_s7 + $0xa8] sm:$0xe] }
 0x34e   : > { %v5467_v43 = vadd.f32 %v11952_v52, %v5069_v56  ;;  %v12006_v44 = vpop.f32.mrf.mxu3  ;;  %v6158_v0 = vor.u32 %v6157_v59, %v6153_v32  ;;  %v5254_v59 = vsel %vm10025_vm7, %v9075_v25, %v5253_v21  ;;  %v4900_v21 = vunpack.c.l.b16 %v4791_v6 }
 0x34f   : > { %v6163_v10 = vrot.slane %v6161_v30, 5  ;;  %v4484_v30 = vld [vmem:[%s10657_s7 + $0xa8] sm:$0xf] }
 0x350   : > { %9057 = vmatmul.msk.bf16.gmra.mxu2 %vm732_vm1, %v4919_v36  ;;  %v5754_v52 = vadd.f32 %v5681_v57, %v5467_v43  ;;  %v5684_v56 = vpop.f32.mrf.mxu0  ;;  %v13013_v57 = vld [vmem:[#allocation7_spill] sm:$0xff]  ;;  %v4801_v43 = vsel %vm9809_vm4, %v4796_v40, %v11992_v61  ;;  %v6159_v45 = vrot.slane %v6158_v0, 4  ;;  %v4819_v61 = vor.u32 %v4818_v49, %v12018_v55 }
 0x351   : > { %v12042_v40 = vld [vmem:[%s10657_s7 + $0xac] sm:$0xf]  ;;  %v4901_v13 = vunpack.c.l.b16 %v4801_v43  ;;  %v9076_v43 = vrot.slane %v5110_v23, 9 }
 0x352   : > { %v12016_v4 = vadd.f32 %v11946_v48, %v5754_v52  ;;  %v6259_v48 = vpack.c.b16 %v6240_v12, %v6239_v60  ;;  %v4809_v60 = vor.u32 %v4808_v50, %v4805_v42  ;;  %v6164_v12 = vsel %vm9809_vm4, %v6159_v45, %v6163_v10  ;;  %v9250_v10 = vld [vmem:[%s10657_s7 + $0xb4] sm:$0xf] }
 0x353   : > { %v4999_v36 = vpop.f32.mrf.mxu2  ;;  %9203 = vmatmul.msk.bf16.gmra.mxu0 %vm732_vm1, %v9627_v24  ;;  %9091 = vmatmul.msk.bf16.gmra.mxu3 %vm732_vm1, %v5318_v15  ;;  %v12030_v58 = vpop.f32.mrf.mxu1  ;;  %v4822_v15 = vshll.u32 %v11996_v51, 16  ;;  %v5300_v51 = vunpack.c.l.b16 %v5254_v59  ;;  %v6154_v24 = vsel %vm9809_vm4, %v6149_v20, %v6153_v32  ;;  %v5260_v28 = vrot.slane %v12042_v40, 5 }
 0x354   : > { %v5070_v3 = vadd.f32 %v4999_v36, %v13013_v57  ;;  %v4810_v25 = vrot.slane %v4809_v60, 4  ;;  %v4820_v42 = vrot.slane %v4819_v61, 4  ;;  %v13014_v36 = vld [vmem:[#allocation8_spill] sm:$0xff]  ;;  %v4920_v49 = vpack.c.b16 %v4901_v13, %v4900_v21  ;;  %v9251_v60 = vld [vmem:[%s10657_s7 + $0xb8] sm:$0xf] }
 0x355   : > { %v4824_v29 = vrot.slane %v4822_v15, 5  ;;  %v6241_v57 = vunpack.c.l.b16 %v6154_v24  ;;  %v5262_v59 = vrot.slane %v5260_v28, 4  ;;  %v4830_v20 = vshll.u32 %v4484_v30, 16 }
 0x356   : > { %v5468_v35 = vadd.f32 %v11981_v27, %v5070_v3  ;;  %v12038_v53 = vpop.f32.mrf.mxu3  ;;  %9269 = vmatmul.msk.bf16.gmra.mxu1 %vm732_vm1, %v6259_v48  ;;  %v5301_v27 = vunpack.c.l.b16 %v5257_v46  ;;  %v6242_v3 = vunpack.c.l.b16 %v6164_v12  ;;  %v12060_v48 = vld [vmem:[%s10657_s7 + $0xb0] sm:$0x1]  ;;  %v4827_v46 = vshrl.u32 %v4484_v30, 16 }
 0x357   : > { %v4815_v15 = vsel %vm9809_vm4, %v4810_v25, %v12018_v55  ;;  %v4836_v45 = vshll.u32 %v12042_v40, 16  ;;  %v4840_v61 = vshrl.u32 %v12042_v40, 16  ;;  %v6166_v21 = vshrl.u32 %v9250_v10, 16 }
 0x358   : > { %v5755_v41 = vadd.f32 %v5684_v56, %v5468_v35  ;;  %v5686_v63 = vpop.f32.mrf.mxu0  ;;  %v5319_v0 = vpack.c.b16 %v5301_v27, %v5300_v51  ;;  %v4825_v35 = vsel %vm9809_vm4, %v4820_v42, %v4824_v29  ;;  %v6169_v13 = vshll.u32 %v9250_v10, 16 }
 0x359   : > { %v6260_v27 = vpack.c.b16 %v6242_v3, %v6241_v57  ;;  %v5263_v55 = vrot.slane %v12060_v48, 5  ;;  %v6179_v24 = vshrl.u32 %v9251_v60, 16  ;;  %v4829_v12 = vrot.slane %v4827_v46, 4  ;;  %v13015_v57 = vld [vmem:[#allocation9_spill] sm:$0xff] }
 0x35a   : > { %v12053_v56 = vadd.f32 %v11978_v16, %v5755_v41  ;;  %v6175_v41 = vshll.u32 %v9251_v60, 16  ;;  %v6171_v25 = vrot.slane %v6169_v13, 5  ;;  %v4832_v30 = vrot.slane %v4830_v20, 5 }
 0x35b   : > { %v5001_v52 = vpop.f32.mrf.mxu2  ;;  %v12056_v32 = vpop.f32.mrf.mxu1  ;;  %v6181_v40 = vrot.slane %v6179_v24, 4 }
 0x35c   : > { %v5071_v50 = vadd.f32 %v5001_v52, %v13014_v36  ;;  %v6168_v52 = vrot.slane %v6166_v21, 4  ;;  %v6177_v42 = vrot.slane %v6175_v41, 5  ;;  %v12076_v36 = vrot.slane %v4836_v45, 5 }
 0x35d   : > { %v4902_v45 = vunpack.c.l.b16 %v4815_v15  ;;  %v4903_v21 = vunpack.c.l.b16 %v4825_v35  ;;  %v4833_v24 = vor.u32 %v4832_v30, %v4829_v12 }
 0x35e   : > { %v5469_v6 = vadd.f32 %v12006_v44, %v5071_v50  ;;  %v12062_v16 = vpop.f32.mrf.mxu3  ;;  %v9628_v44 = vld [vmem:[%s10657_s7 + $0x9c] sm:$0xff]  ;;  %v6182_v60 = vor.u32 %v6181_v40, %v6177_v42 }
 0x35f   : > { %v9252_v50 = vld [vmem:[%s10657_s7 + $0xbc] sm:$0x1] }
 0x360   : > { %9058 = vmatmul.msk.bf16.gmra.mxu2 %vm732_vm1, %v4920_v49  ;;  %v5689_v51 = vpop.f32.mrf.mxu0  ;;  %v5756_v29 = vadd.f32 %v5686_v63, %v5469_v6  ;;  %v4842_v63 = vrot.slane %v4840_v61, 4  ;;  %v6172_v6 = vor.u32 %v6171_v25, %v6168_v52  ;;  %v6185_v46 = vshll.u32 %v9252_v50, 16 }
 0x361   : > { %v6183_v61 = vrot.slane %v6182_v60, 4  ;;  %v4921_v52 = vpack.c.b16 %v4903_v21, %v4902_v45  ;;  %v9629_v60 = vld [vmem:[%s10657_s7 + $0xa8] sm:$0xff]  ;;  %v9253_v45 = vld [vmem:[%s10657_s7 + $0xc0] sm:$0xf] }
 0x362   : > { %v12080_v49 = vadd.f32 %v11999_v9, %v5756_v29  ;;  %v5261_v9 = vsel %vm10025_vm7, %v9076_v43, %v5260_v28  ;;  %v6187_v41 = vrot.slane %v6185_v46, 5  ;;  %v4843_v29 = vor.u32 %v4842_v63, %v12076_v36  ;;  %v12110_v63 = vld [vmem:[%s10657_s7 + $0xbc] sm:$0x1] }
 0x363   : > { %v5004_v23 = vpop.f32.mrf.mxu2  ;;  %9204 = vmatmul.msk.bf16.gmra.mxu0 %vm732_vm1, %v9628_v44  ;;  %9092 = vmatmul.msk.bf16.gmra.mxu3 %vm732_vm1, %v5319_v0  ;;  %v12085_v10 = vpop.f32.mrf.mxu1  ;;  %v5264_v44 = vsel %vm10025_vm7, %v5262_v59, %v5263_v55  ;;  %v6173_v0 = vrot.slane %v6172_v6, 4  ;;  %v5302_v28 = vunpack.c.l.b16 %v5261_v9  ;;  %v4488_v55 = vld [vmem:[%s10657_s7 + $0xb8] sm:$0xf]  ;;  %v5111_v6 = vld [vmem:[%s10657_s7 + $0xb4] sm:$0xe] }
 0x364   : > { %v5072_v3 = vadd.f32 %v5004_v23, %v13015_v57  ;;  %v5303_v25 = vunpack.c.l.b16 %v5264_v44  ;;  %v4834_v23 = vrot.slane %v4833_v24, 4  ;;  %v4844_v30 = vrot.slane %v4843_v29, 4  ;;  %v4487_v9 = vld [vmem:[%s10657_s7 + $0xb4] sm:$0xf]  ;;  %v9254_v44 = vld [vmem:[%s10657_s7 + $0xc4] sm:$0xf] }
 0x365   : > { %v6178_v59 = vsel %vm9809_vm4, %v6173_v0, %v6177_v42  ;;  %v5267_v46 = vrot.slane %v4488_v55, 5  ;;  %v6190_v0 = vshrl.u32 %v9253_v45, 16  ;;  %v9077_v24 = vrot.slane %v5111_v6, 9 }
 0x366   : > { %v5470_v20 = vadd.f32 %v12038_v53, %v5072_v3  ;;  %v12090_v13 = vpop.f32.mrf.mxu3  ;;  %9270 = vmatmul.msk.bf16.gmra.mxu1 %vm732_vm1, %v6260_v27  ;;  %v4846_v53 = vshll.u32 %v12060_v48, 16  ;;  %v6188_v27 = vsel %vm9809_vm4, %v6183_v61, %v6187_v41  ;;  %v13017_v48 = vld [vmem:[#allocation10_spill] sm:$0xff]  ;;  %v6243_v42 = vunpack.c.l.b16 %v6178_v59 }
 0x367   : > { %v6244_v3 = vunpack.c.l.b16 %v6188_v27  ;;  %v4839_v21 = vsel %vm9809_vm4, %v4834_v23, %v12076_v36  ;;  %v6193_v61 = vshll.u32 %v9253_v45, 16  ;;  %v5270_v29 = vrot.slane %v12110_v63, 5  ;;  %v9255_v27 = vld [vmem:[%s10657_s7 + $0xc8] sm:$0x1] }
 0x368   : > { %v5757_v15 = vadd.f32 %v5689_v51, %v5470_v20  ;;  %v5691_v35 = vpop.f32.mrf.mxu0  ;;  %v4848_v50 = vrot.slane %v4846_v53, 5  ;;  %v5320_v20 = vpack.c.b16 %v5303_v25, %v5302_v28  ;;  %v6199_v53 = vshll.u32 %v9254_v44, 16 }
 0x369   : > { %v6261_v28 = vpack.c.b16 %v6244_v3, %v6243_v42  ;;  %v6195_v25 = vrot.slane %v6193_v61, 5  ;;  %v4851_v36 = vshrl.u32 %v4487_v9, 16  ;;  %v4854_v6 = vshll.u32 %v4487_v9, 16 }
 0x36a   : > { %v12103_v12 = vadd.f32 %v12030_v58, %v5757_v15  ;;  %v6203_v15 = vshrl.u32 %v9254_v44, 16  ;;  %v4860_v45 = vshll.u32 %v4488_v55, 16 }
 0x36b   : > { %v5006_v43 = vpop.f32.mrf.mxu2  ;;  %v12106_v40 = vpop.f32.mrf.mxu1  ;;  %v4856_v9 = vrot.slane %v4854_v6, 5 }
 0x36c   : > { %13016 = vst [vmem:[#allocation12_spill] sm:$0xff] %v12103_v12  ;;  %v5073_v51 = vadd.f32 %v5006_v43, %v13017_v48  ;;  %v6192_v43 = vrot.slane %v6190_v0, 4  ;;  %v6201_v48 = vrot.slane %v6199_v53, 5  ;;  %v4864_v12 = vshrl.u32 %v4488_v55, 16 }
 0x36d   : > { %v6209_v0 = vshll.u32 %v9255_v27, 16  ;;  %v4853_v55 = vrot.slane %v4851_v36, 4 }
 0x36e   : > { %v5471_v57 = vadd.f32 %v12062_v16, %v5073_v51  ;;  %v12114_v58 = vpop.f32.mrf.mxu3  ;;  %v4849_v16 = vsel %vm9809_vm4, %v4844_v30, %v4848_v50  ;;  %v6205_v51 = vrot.slane %v6203_v15, 4  ;;  %v13018_v30 = vld [vmem:[#allocation11_spill] sm:$0xff]  ;;  %v6196_v42 = vor.u32 %v6195_v25, %v6192_v43 }
 0x36f   : > { %v5268_v15 = vsel %vm10025_vm7, %v9077_v24, %v5267_v46  ;;  %v4862_v43 = vrot.slane %v4860_v45, 5  ;;  %v13019_v24 = vld [vmem:[#allocation13_spill] sm:$0xff] }
 0x370   : > { %9059 = vmatmul.msk.bf16.gmra.mxu2 %vm732_vm1, %v4921_v52  ;;  %v5694_v41 = vpop.f32.mrf.mxu0  ;;  %v5269_v52 = vrot.slane %v5267_v46, 4  ;;  %v5758_v23 = vadd.f32 %v5691_v35, %v5471_v57  ;;  %v6206_v3 = vor.u32 %v6205_v51, %v6201_v48  ;;  %v4904_v57 = vunpack.c.l.b16 %v4839_v21  ;;  %v9630_v45 = vld [vmem:[%s10657_s7 + $0xb4] sm:$0xff] }
 0x371   : > { %v6197_v27 = vrot.slane %v6196_v42, 4 }
 0x372   : > { %v12133_v61 = vadd.f32 %v12056_v32, %v5758_v23  ;;  %v4866_v32 = vrot.slane %v4864_v12, 4  ;;  %v6207_v51 = vrot.slane %v6206_v3, 4 }
 0x373   : > { %v5009_v59 = vpop.f32.mrf.mxu2  ;;  %9205 = vmatmul.msk.bf16.gmra.mxu0 %vm732_vm1, %v9629_v60  ;;  %9093 = vmatmul.msk.bf16.gmra.mxu3 %vm732_vm1, %v5320_v20  ;;  %v12130_v44 = vpop.f32.mrf.mxu1  ;;  %v4905_v60 = vunpack.c.l.b16 %v4849_v16  ;;  %v5271_v20 = vsel %vm10025_vm7, %v5269_v52, %v5270_v29  ;;  %v5304_v29 = vunpack.c.l.b16 %v5268_v15  ;;  %v6202_v12 = vsel %vm9809_vm4, %v6197_v27, %v6201_v48 }
 0x374   : > { %v5074_v50 = vadd.f32 %v5009_v59, %v13018_v30  ;;  %v5305_v52 = vunpack.c.l.b16 %v5271_v20  ;;  %v4867_v30 = vor.u32 %v4866_v32, %v4862_v43 }
 0x375   : > { %v4922_v46 = vpack.c.b16 %v4905_v60, %v4904_v57 }
 0x376   : > { %v5472_v53 = vadd.f32 %v12090_v13, %v5074_v50  ;;  %v5412_v35 = vpop.f32.mrf.mxu3  ;;  %9271 = vmatmul.msk.bf16.gmra.mxu1 %vm732_vm1, %v6261_v28  ;;  %v6211_v13 = vrot.slane %v6209_v0, 5  ;;  %v4870_v28 = vshll.u32 %v12110_v63, 16  ;;  %v5321_v42 = vpack.c.b16 %v5305_v52, %v5304_v29 }
 0x377   : > { %v6245_v63 = vunpack.c.l.b16 %v6202_v12  ;;  %v4868_v57 = vrot.slane %v4867_v30, 4 }
 0x378   : > { %v5759_v25 = vadd.f32 %v5694_v41, %v5472_v53  ;;  %v5696_v59 = vpop.f32.mrf.mxu0  ;;  %v4857_v41 = vor.u32 %v4856_v9, %v4853_v55  ;;  %v6212_v50 = vsel %vm9809_vm4, %v6207_v51, %v6211_v13  ;;  %v4872_v60 = vrot.slane %v4870_v28, 5  ;;  %v9435_v9 = vld [vmem:[%s10657_s7 + $0x18] sm:$0xf] }
 0x379   : > { %v6246_v3 = vunpack.c.l.b16 %v6212_v50  ;;  %v9500_v51 = vld [vmem:[%s10657_s7 + $0x18] sm:$0xe] }
 0x37a   : > { %v12142_v21 = vadd.f32 %v12085_v10, %v5759_v25  ;;  %v4858_v53 = vrot.slane %v4857_v41, 4  ;;  %v9436_v25 = vld [vmem:[%s10657_s7 + $0x1c] sm:$0xf]  ;;  %v9516_v30 = vrot.slane %v9500_v51, 9 }
 0x37b   : > { %v5011_v16 = vpop.f32.mrf.mxu2  ;;  %v12146_v36 = vpop.f32.mrf.mxu1  ;;  %v6262_v55 = vpack.c.b16 %v6246_v3, %v6245_v63  ;;  %v7840_v13 = vrot.slane %v9436_v25, 5  ;;  %v9632_v51 = vld [vmem:[%s10657_s7 + $0x18] sm:$0xff] }
 0x37c   : > { %v5075_v23 = vadd.f32 %v5011_v16, %v13019_v24  ;;  %v4863_v32 = vsel %vm9809_vm4, %v4858_v53, %v4862_v43  ;;  %v7178_v24 = vshll.u32 %v9436_v25, 16  ;;  %v9437_v43 = vld [vmem:[%s10657_s7 + $0x20] sm:$0x1] }
 0x37d   : > { %v4906_v29 = vunpack.c.l.b16 %v4863_v32  ;;  %v7842_v12 = vrot.slane %v7840_v13, 4  ;;  %v7843_v50 = vrot.slane %v9437_v43, 5 }
 0x37e   : > { %v5473_v10 = vadd.f32 %v12114_v58, %v5075_v23  ;;  %v5414_v6 = vpop.f32.mrf.mxu3  ;;  %v7182_v23 = vshrl.u32 %v9436_v25, 16  ;;  %v7180_v3 = vrot.slane %v7178_v24, 5 }
 0x380   : > { %9060 = vmatmul.msk.bf16.gmra.mxu2 %vm732_vm1, %v4922_v46  ;;  %v5699_v0 = vpop.f32.mrf.mxu0  ;;  %v5760_v48 = vadd.f32 %v5696_v59, %v5473_v10  ;;  %v4873_v59 = vsel %vm9809_vm4, %v4868_v57, %v4872_v60  ;;  %v7172_v46 = vshll.u32 %v9435_v9, 16  ;;  %v7184_v53 = vrot.slane %v7182_v23, 4 }
 0x381   : > { %v4907_v52 = vunpack.c.l.b16 %v4873_v59 }
 0x382   : > { %v12156_v20 = vadd.f32 %v12106_v40, %v5760_v48  ;;  %v7174_v63 = vrot.slane %v7172_v46, 5  ;;  %v7185_v59 = vor.u32 %v7184_v53, %v7180_v3  ;;  %v9677_v46 = vld [vmem:[%s10657_s7 + $0x14] sm:$0x1]  ;;  %v9439_v53 = vld [vmem:[%s10657_s7 + $0x28] sm:$0xf] }
 0x383   : > { %v5014_v15 = vpop.f32.mrf.mxu2  ;;  %9206 = vmatmul.msk.bf16.gmra.mxu0 %vm732_vm1, %v9630_v45  ;;  %9094 = vmatmul.msk.bf16.gmra.mxu3 %vm732_vm1, %v5321_v42  ;;  %v12167_v27 = vpop.f32.mrf.mxu1  ;;  %v9273_v45 = vld [vmem:[%s10657_s7 + $0xc] sm:$0xe]  ;;  %v4923_v60 = vpack.c.b16 %v4907_v52, %v4906_v29  ;;  %v6504_v24 = vrot.slane %v9677_v46, 5 }
 0x384   : > { %v5076_v58 = vadd.f32 %v5014_v15, %v11337_v54  ;;  %v7169_v54 = vshrl.u32 %v9435_v9, 16  ;;  %v9289_v9 = vrot.slane %v9273_v45, 9 }
 0x386   : > { %v5474_v40 = vadd.f32 %v5412_v35, %v5076_v58  ;;  %v5417_v16 = vpop.f32.mrf.mxu3  ;;  %9272 = vmatmul.msk.bf16.gmra.mxu1 %vm732_vm1, %v6262_v55  ;;  %v7171_v42 = vrot.slane %v7169_v54, 4  ;;  %v7844_v58 = vsel %vm10025_vm7, %v7842_v12, %v7843_v50 }
 0x388   : > { %v5761_v28 = vadd.f32 %v5699_v0, %v5474_v40  ;;  %v5701_v41 = vpop.f32.mrf.mxu0  ;;  %v9676_v0 = vld [vmem:[%s10657_s7 + $0x10] sm:$0xf]  ;;  %v7175_v32 = vor.u32 %v7174_v63, %v7171_v42  ;;  %v7188_v40 = vshll.u32 %v9437_v43, 16  ;;  %v7186_v43 = vrot.slane %v7185_v59, 4  ;;  %v9438_v63 = vld [vmem:[%s10657_s7 + $0x24] sm:$0xf] }
 0x389   : > { %v6501_v48 = vrot.slane %v9676_v0, 5  ;;  %v7847_v0 = vrot.slane %v9439_v53, 5  ;;  %v7202_v59 = vshll.u32 %v9439_v53, 16 }
 0x38a   : > { %v12173_v35 = vadd.f32 %v12130_v44, %v5761_v28  ;;  %v7841_v44 = vsel %vm10025_vm7, %v9516_v30, %v7840_v13  ;;  %v7953_v13 = vunpack.c.l.b16 %v7844_v58  ;;  %v7176_v30 = vrot.slane %v7175_v32, 4 }
 0x38b   : > { %v5016_v10 = vpop.f32.mrf.mxu2  ;;  %v12178_v15 = vpop.f32.mrf.mxu1  ;;  %v6503_v54 = vrot.slane %v6501_v48, 4  ;;  %v7952_v23 = vunpack.c.l.b16 %v7841_v44  ;;  %v7190_v12 = vrot.slane %v7188_v40, 5  ;;  %v7196_v32 = vshll.u32 %v9438_v63, 16 }
 0x38c   : > { %v5077_v57 = vadd.f32 %v5016_v10, %v11340_v11  ;;  %v9631_v11 = vld [vmem:[%s10657_s7 + $0xc0] sm:$0xff] }
 0x38d   : > { %v7984_v45 = vpack.c.b16 %v7953_v13, %v7952_v23  ;;  %v7191_v58 = vsel %vm9809_vm4, %v7186_v43, %v7190_v12  ;;  %v7198_v43 = vrot.slane %v7196_v32, 5 }
 0x38e   : > { %v5475_v55 = vadd.f32 %v5414_v6, %v5077_v57  ;;  %v12184_v25 = vpop.f32.mrf.mxu3  ;;  %v6502_v6 = vsel %vm10025_vm7, %v9289_v9, %v6501_v48  ;;  %v7193_v9 = vshrl.u32 %v9438_v63, 16 }
 0x38f   : > { %v6613_v48 = vunpack.c.l.b16 %v6502_v6 }
 0x390   : > { %9061 = vmatmul.msk.bf16.gmra.mxu2 %vm732_vm1, %v4923_v60  ;;  %v5704_v29 = vpop.f32.mrf.mxu0  ;;  %v5762_v52 = vadd.f32 %v5701_v41, %v5475_v55  ;;  %v6505_v41 = vsel %vm10025_vm7, %v6503_v54, %v6504_v24  ;;  %v9501_v60 = vld [vmem:[%s10657_s7 + $0x24] sm:$0xe]  ;;  %v9440_v55 = vld [vmem:[%s10657_s7 + $0x2c] sm:$0x1]  ;;  %v7849_v54 = vrot.slane %v7847_v0, 4 }
 0x391   : > { %v6614_v44 = vunpack.c.l.b16 %v6505_v41  ;;  %v7850_v46 = vrot.slane %v9440_v55, 5  ;;  %v7204_v41 = vrot.slane %v7202_v59, 5 }
 0x392   : > { %v12193_v50 = vadd.f32 %v12146_v36, %v5762_v52  ;;  %v7555_v52 = vunpack.c.l.b16 %v7191_v58 }
 0x393   : > { %v5019_v28 = vpop.f32.mrf.mxu2  ;;  %9207 = vmatmul.msk.bf16.gmra.mxu0 %vm732_vm1, %v9631_v11  ;;  %9419 = vmatmul.msk.bf16.vlgmr.msra.gmra.mxu3 %vm732_vm1, %v9632_v51  ;;  %v12200_v42 = vpop.f32.mrf.mxu1  ;;  %v7206_v11 = vshrl.u32 %v9439_v53, 16  ;;  %v9517_v51 = vrot.slane %v9501_v60, 9  ;;  %v6645_v23 = vpack.c.b16 %v6614_v44, %v6613_v48  ;;  %v7851_v63 = vsel %vm10025_vm7, %v7849_v54, %v7850_v46  ;;  %v9679_v60 = vld [vmem:[%s10657_s7 + $0x20] sm:$0x1]  ;;  %v9633_v44 = vld [vmem:[%s10657_s7 + $0x24] sm:$0xff] }
 0x394   : > { %v5078_v10 = vadd.f32 %v5019_v28, %v11389_v18  ;;  %v7181_v18 = vsel %vm9809_vm4, %v7176_v30, %v7180_v3  ;;  %v9678_v28 = vld [vmem:[%s10657_s7 + $0x1c] sm:$0xf]  ;;  %v6511_v48 = vrot.slane %v9679_v60, 5  ;;  %v7955_v32 = vunpack.c.l.b16 %v7851_v63 }
 0x395   : > { %v7554_v13 = vunpack.c.l.b16 %v7181_v18  ;;  %v6508_v30 = vrot.slane %v9678_v28, 5 }
 0x396   : > { %v5476_v57 = vadd.f32 %v5417_v16, %v5078_v10  ;;  %v5422_v36 = vpop.f32.mrf.mxu3  ;;  %9533 = vmatmul.msk.bf16.vlgmr.msra.gmra.mxu1 %vm732_vm1, %v7984_v45  ;;  %v9274_v10 = vld [vmem:[%s10657_s7 + $0x18] sm:$0xe]  ;;  %v7208_v45 = vrot.slane %v7206_v11, 4  ;;  %v7212_v11 = vshll.u32 %v9440_v55, 16 }
 0x397   : > { %v9290_v18 = vrot.slane %v9274_v10, 9  ;;  %v6510_v59 = vrot.slane %v6508_v30, 4 }
 0x398   : > { %v5763_v40 = vadd.f32 %v5704_v29, %v5476_v57  ;;  %v5706_v16 = vpop.f32.mrf.mxu0  ;;  %v7195_v29 = vrot.slane %v7193_v9, 4  ;;  %v7586_v57 = vpack.c.b16 %v7555_v52, %v7554_v13  ;;  %v9441_v13 = vld [vmem:[%s10657_s7 + $0x30] sm:$0xf]  ;;  %v9442_v52 = vld [vmem:[%s10657_s7 + $0x34] sm:$0xf]  ;;  %v7214_v28 = vrot.slane %v7212_v11, 5 }
 0x399   : > { %v6512_v55 = vsel %vm10025_vm7, %v6510_v59, %v6511_v48  ;;  %v7226_v63 = vshll.u32 %v9442_v52, 16  ;;  %v9443_v48 = vld [vmem:[%s10657_s7 + $0x38] sm:$0x1]  ;;  %v9275_v11 = vld [vmem:[%s10657_s7 + $0x24] sm:$0xe] }
 0x39a   : > { %v12212_v24 = vadd.f32 %v12167_v27, %v5763_v40  ;;  %v7848_v27 = vsel %vm10025_vm7, %v9517_v51, %v7847_v0  ;;  %v7199_v58 = vor.u32 %v7198_v43, %v7195_v29  ;;  %v7209_v40 = vor.u32 %v7208_v45, %v7204_v41  ;;  %v9502_v43 = vld [vmem:[%s10657_s7 + $0x30] sm:$0xe] }
 0x39b   : > { %v5021_v3 = vpop.f32.mrf.mxu2  ;;  %v12216_v12 = vpop.f32.mrf.mxu1  ;;  %v7954_v9 = vunpack.c.l.b16 %v7848_v27  ;;  %v7217_v45 = vshrl.u32 %v9441_v13, 16  ;;  %v7220_v27 = vshll.u32 %v9441_v13, 16  ;;  %v6616_v60 = vunpack.c.l.b16 %v6512_v55 }
 0x39c   : > { %v5079_v6 = vadd.f32 %v5021_v3, %v11409_v5  ;;  %v7200_v3 = vrot.slane %v7199_v58, 4  ;;  %v9518_v58 = vrot.slane %v9502_v43, 9 }
 0x39e   : > { %v5477_v53 = vadd.f32 %v12184_v25, %v5079_v6  ;;  %v12224_v5 = vpop.f32.mrf.mxu3  ;;  %v6509_v6 = vsel %vm10025_vm7, %v9290_v18, %v6508_v30  ;;  %v7205_v30 = vsel %vm9809_vm4, %v7200_v3, %v7204_v41  ;;  %v7228_v41 = vrot.slane %v7226_v63, 5 }
 0x3a0   : > { %9306 = vmatmul.msk.bf16.vlgmr.msra.gmra.mxu2 %vm732_vm1, %v6645_v23  ;;  %v5709_v0 = vpop.f32.mrf.mxu0  ;;  %v5764_v51 = vadd.f32 %v5706_v16, %v5477_v53  ;;  %v7985_v23 = vpack.c.b16 %v7955_v32, %v7954_v9  ;;  %v7230_v53 = vshrl.u32 %v9442_v52, 16  ;;  %v7857_v32 = vrot.slane %v9443_v48, 5 }
 0x3a2   : > { %v12230_v54 = vadd.f32 %v12178_v15, %v5764_v51  ;;  %v7210_v15 = vrot.slane %v7209_v40, 4  ;;  %v7219_v51 = vrot.slane %v7217_v45, 4 }
 0x3a3   : > { %v5024_v25 = vpop.f32.mrf.mxu2  ;;  %9484 = vmatmul.msk.bf16.vlgmr.msra.gmra.mxu0 %vm732_vm1, %v7586_v57  ;;  %9420 = vmatmul.msk.bf16.gmra.mxu3 %vm732_vm1, %v9633_v44  ;;  %v12241_v16 = vpop.f32.mrf.mxu1  ;;  %v6615_v57 = vunpack.c.l.b16 %v6509_v6  ;;  %v9680_v6 = vld [vmem:[%s10657_s7 + $0x28] sm:$0xf] }
 0x3a4   : > { %v5080_v46 = vadd.f32 %v5024_v25, %v11448_v8  ;;  %v7854_v8 = vrot.slane %v9442_v52, 5  ;;  %v7222_v25 = vrot.slane %v7220_v27, 5  ;;  %v6515_v55 = vrot.slane %v9680_v6, 5  ;;  %v9503_v6 = vld [vmem:[%s10657_s7 + $0x3c] sm:$0xe] }
 0x3a5   : > { %v7236_v27 = vshll.u32 %v9443_v48, 16 }
 0x3a6   : > { %v5478_v29 = vadd.f32 %v5422_v36, %v5080_v46  ;;  %v5427_v10 = vpop.f32.mrf.mxu3  ;;  %9534 = vmatmul.msk.bf16.gmra.mxu1 %vm732_vm1, %v7985_v23  ;;  %v7215_v36 = vsel %vm9809_vm4, %v7210_v15, %v7214_v28  ;;  %v7856_v9 = vrot.slane %v7854_v8, 4  ;;  %v7232_v46 = vrot.slane %v7230_v53, 4  ;;  %v9634_v53 = vld [vmem:[%s10657_s7 + $0x30] sm:$0xff] }
 0x3a7   : > { %v7556_v23 = vunpack.c.l.b16 %v7205_v30  ;;  %v7557_v13 = vunpack.c.l.b16 %v7215_v36 }
 0x3a8   : > { %v5765_v44 = vadd.f32 %v5709_v0, %v5478_v29  ;;  %v5711_v18 = vpop.f32.mrf.mxu0  ;;  %v6646_v0 = vpack.c.b16 %v6616_v60, %v6615_v57  ;;  %v7858_v15 = vsel %vm10025_vm7, %v7856_v9, %v7857_v32  ;;  %v9291_v29 = vrot.slane %v9275_v11, 9 }
 0x3a9   : > { %v7233_v45 = vor.u32 %v7232_v46, %v7228_v41  ;;  %v7587_v63 = vpack.c.b16 %v7557_v13, %v7556_v23  ;;  %v7957_v60 = vunpack.c.l.b16 %v7858_v15 }
 0x3aa   : > { %v12251_v59 = vadd.f32 %v12200_v42, %v5765_v44  ;;  %v7855_v42 = vsel %vm10025_vm7, %v9518_v58, %v7854_v8  ;;  %v6517_v8 = vrot.slane %v6515_v55, 4  ;;  %v9681_v44 = vld [vmem:[%s10657_s7 + $0x2c] sm:$0x1] }
 0x3ab   : > { %v5026_v40 = vpop.f32.mrf.mxu2  ;;  %v12255_v52 = vpop.f32.mrf.mxu1  ;;  %v7956_v57 = vunpack.c.l.b16 %v7855_v42  ;;  %v6518_v36 = vrot.slane %v9681_v44, 5  ;;  %v7234_v48 = vrot.slane %v7233_v45, 4 }
 0x3ac   : > { %v5081_v3 = vadd.f32 %v5026_v40, %v11460_v1  ;;  %v7223_v1 = vor.u32 %v7222_v25, %v7219_v51  ;;  %v7238_v40 = vrot.slane %v7236_v27, 5 }
 0x3ad   : > { %v7986_v25 = vpack.c.b16 %v7957_v60, %v7956_v57  ;;  %v6519_v46 = vsel %vm10025_vm7, %v6517_v8, %v6518_v36 }
 0x3ae   : > { %v5479_v28 = vadd.f32 %v12224_v5, %v5081_v3  ;;  %v12263_v43 = vpop.f32.mrf.mxu3  ;;  %v6516_v5 = vsel %vm10025_vm7, %v9291_v29, %v6515_v55  ;;  %v7224_v32 = vrot.slane %v7223_v1, 4  ;;  %v6618_v29 = vunpack.c.l.b16 %v6519_v46  ;;  %v9446_v1 = vld [vmem:[%s10657_s7 + $0x44] sm:$0x1] }
 0x3af   : > { %v6617_v13 = vunpack.c.l.b16 %v6516_v5  ;;  %v7864_v60 = vrot.slane %v9446_v1, 5 }
 0x3b0   : > { %9307 = vmatmul.msk.bf16.gmra.mxu2 %vm732_vm1, %v6646_v0  ;;  %v5714_v30 = vpop.f32.mrf.mxu0  ;;  %v5766_v58 = vadd.f32 %v5711_v18, %v5479_v28  ;;  %v9444_v18 = vld [vmem:[%s10657_s7 + $0x3c] sm:$0xf]  ;;  %v9445_v0 = vld [vmem:[%s10657_s7 + $0x40] sm:$0xf]  ;;  %v7229_v42 = vsel %vm9809_vm4, %v7224_v32, %v7228_v41 }
 0x3b1   : > { %v7241_v15 = vshrl.u32 %v9444_v18, 16  ;;  %v7244_v28 = vshll.u32 %v9444_v18, 16  ;;  %v7250_v45 = vshll.u32 %v9445_v0, 16  ;;  %v7254_v27 = vshrl.u32 %v9445_v0, 16 }
 0x3b2   : > { %v12271_v11 = vadd.f32 %v12216_v12, %v5766_v58  ;;  %v7861_v12 = vrot.slane %v9445_v0, 5  ;;  %v7558_v8 = vunpack.c.l.b16 %v7229_v42  ;;  %v9682_v58 = vld [vmem:[%s10657_s7 + $0x34] sm:$0xf] }
 0x3b3   : > { %v5029_v9 = vpop.f32.mrf.mxu2  ;;  %9485 = vmatmul.msk.bf16.gmra.mxu0 %vm732_vm1, %v7587_v63  ;;  %9421 = vmatmul.msk.bf16.gmra.mxu3 %vm732_vm1, %v9634_v53  ;;  %v12279_v3 = vpop.f32.mrf.mxu1  ;;  %v9519_v53 = vrot.slane %v9503_v6, 9  ;;  %v6522_v5 = vrot.slane %v9682_v58, 5  ;;  %v7246_v32 = vrot.slane %v7244_v28, 5  ;;  %v9635_v28 = vld [vmem:[%s10657_s7 + $0x3c] sm:$0xff] }
 0x3b4   : > { %v5082_v51 = vadd.f32 %v5029_v9, %v11505_v37  ;;  %v7239_v37 = vsel %vm9809_vm4, %v7234_v48, %v7238_v40  ;;  %v7863_v57 = vrot.slane %v7861_v12, 4  ;;  %v7243_v9 = vrot.slane %v7241_v15, 4 }
 0x3b5   : > { %v7559_v41 = vunpack.c.l.b16 %v7239_v37  ;;  %v6647_v40 = vpack.c.b16 %v6618_v29, %v6617_v13  ;;  %v7862_v46 = vsel %vm10025_vm7, %v9519_v53, %v7861_v12  ;;  %v9683_v13 = vld [vmem:[%s10657_s7 + $0x38] sm:$0x1] }
 0x3b6   : > { %v5480_v23 = vadd.f32 %v5427_v10, %v5082_v51  ;;  %v5432_v55 = vpop.f32.mrf.mxu3  ;;  %9535 = vmatmul.msk.bf16.gmra.mxu1 %vm732_vm1, %v7986_v25  ;;  %v7252_v51 = vrot.slane %v7250_v45, 5  ;;  %v7256_v25 = vrot.slane %v7254_v27, 4  ;;  %v6525_v37 = vrot.slane %v9683_v13, 5 }
 0x3b7   : > { %v7247_v15 = vor.u32 %v7246_v32, %v7243_v9  ;;  %v7260_v45 = vshll.u32 %v9446_v1, 16  ;;  %v7958_v12 = vunpack.c.l.b16 %v7862_v46  ;;  %v9447_v9 = vld [vmem:[%s10657_s7 + $0x48] sm:$0xf] }
 0x3b8   : > { %v5767_v10 = vadd.f32 %v5714_v30, %v5480_v23  ;;  %v5716_v63 = vpop.f32.mrf.mxu0  ;;  %v9276_v30 = vld [vmem:[%s10657_s7 + $0x30] sm:$0xe]  ;;  %v7588_v23 = vpack.c.b16 %v7559_v41, %v7558_v8  ;;  %v7257_v29 = vor.u32 %v7256_v25, %v7252_v51 }
 0x3b9   : > { %v9292_v42 = vrot.slane %v9276_v30, 9  ;;  %v7248_v8 = vrot.slane %v7247_v15, 4  ;;  %v9504_v30 = vld [vmem:[%s10657_s7 + $0x48] sm:$0xe] }
 0x3ba   : > { %v12290_v44 = vadd.f32 %v12241_v16, %v5767_v10  ;;  %v7865_v16 = vsel %vm10025_vm7, %v7863_v57, %v7864_v60  ;;  %v9520_v15 = vrot.slane %v9504_v30, 9 }
 0x3bb   : > { %v5031_v36 = vpop.f32.mrf.mxu2  ;;  %v12295_v18 = vpop.f32.mrf.mxu1  ;;  %v7959_v27 = vunpack.c.l.b16 %v7865_v16  ;;  %v6523_v57 = vsel %vm10025_vm7, %v9292_v42, %v6522_v5  ;;  %v7265_v16 = vshrl.u32 %v9447_v9, 16  ;;  %v9449_v42 = vld [vmem:[%s10657_s7 + $0x50] sm:$0x1] }
 0x3bc   : > { %v5083_v48 = vadd.f32 %v5031_v36, %v11517_v34  ;;  %v6524_v34 = vrot.slane %v6522_v5, 4  ;;  %v7258_v36 = vrot.slane %v7257_v29, 4  ;;  %v9448_v5 = vld [vmem:[%s10657_s7 + $0x4c] sm:$0xf]  ;;  %v7871_v29 = vrot.slane %v9449_v42, 5 }
 0x3bd   : > { %v7987_v58 = vpack.c.b16 %v7959_v27, %v7958_v12  ;;  %v7868_v25 = vrot.slane %v9448_v5, 5 }
 0x3be   : > { %v5481_v0 = vadd.f32 %v12263_v43, %v5083_v48  ;;  %v12302_v6 = vpop.f32.mrf.mxu3  ;;  %v6526_v60 = vsel %vm10025_vm7, %v6524_v34, %v6525_v37  ;;  %v7274_v34 = vshll.u32 %v9448_v5, 16 }
 0x3bf   : > { %v6620_v46 = vunpack.c.l.b16 %v6526_v60 }
 0x3c0   : > { %9308 = vmatmul.msk.bf16.gmra.mxu2 %vm732_vm1, %v6647_v40  ;;  %v5719_v10 = vpop.f32.mrf.mxu0  ;;  %v5768_v53 = vadd.f32 %v5716_v63, %v5481_v0  ;;  %v7262_v63 = vrot.slane %v7260_v45, 5  ;;  %v6619_v40 = vunpack.c.l.b16 %v6523_v57  ;;  %v7268_v0 = vshll.u32 %v9447_v9, 16 }
 0x3c2   : > { %v12312_v41 = vadd.f32 %v12255_v52, %v5768_v53  ;;  %v7267_v53 = vrot.slane %v7265_v16, 4  ;;  %v6648_v60 = vpack.c.b16 %v6620_v46, %v6619_v40  ;;  %v9636_v46 = vld [vmem:[%s10657_s7 + $0x48] sm:$0xff]  ;;  %v7284_v16 = vshll.u32 %v9449_v42, 16 }
 0x3c3   : > { %v5034_v43 = vpop.f32.mrf.mxu2  ;;  %9486 = vmatmul.msk.bf16.gmra.mxu0 %vm732_vm1, %v7588_v23  ;;  %9422 = vmatmul.msk.bf16.gmra.mxu3 %vm732_vm1, %v9635_v28  ;;  %v12318_v32 = vpop.f32.mrf.mxu1  ;;  %v7263_v23 = vsel %vm9809_vm4, %v7258_v36, %v7262_v63  ;;  %v7870_v28 = vrot.slane %v7868_v25, 4  ;;  %v9684_v63 = vld [vmem:[%s10657_s7 + $0x40] sm:$0xf] }
 0x3c4   : > { %v5084_v1 = vadd.f32 %v5034_v43, %v11562_v19  ;;  %v7253_v19 = vsel %vm9809_vm4, %v7248_v8, %v7252_v51  ;;  %v7561_v27 = vunpack.c.l.b16 %v7263_v23  ;;  %v7270_v43 = vrot.slane %v7268_v0, 5  ;;  %v9277_v8 = vld [vmem:[%s10657_s7 + $0x3c] sm:$0xe] }
 0x3c5   : > { %v7560_v12 = vunpack.c.l.b16 %v7253_v19  ;;  %v7872_v9 = vsel %vm10025_vm7, %v7870_v28, %v7871_v29  ;;  %v9293_v40 = vrot.slane %v9277_v8, 9 }
 0x3c6   : > { %v5482_v48 = vadd.f32 %v5432_v55, %v5084_v1  ;;  %v12322_v52 = vpop.f32.mrf.mxu3  ;;  %9536 = vmatmul.msk.bf16.gmra.mxu1 %vm732_vm1, %v7987_v58  ;;  %v7278_v55 = vshrl.u32 %v9448_v5, 16  ;;  %v12335_v1 = vrot.slane %v7274_v34, 5  ;;  %v6529_v58 = vrot.slane %v9684_v63, 5 }
 0x3c7   : > { %v7271_v30 = vor.u32 %v7270_v43, %v7267_v53  ;;  %v7286_v43 = vrot.slane %v7284_v16, 5 }
 0x3c8   : > { %v5769_v13 = vadd.f32 %v5719_v10, %v5482_v48  ;;  %v5721_v37 = vpop.f32.mrf.mxu0  ;;  %v7280_v10 = vrot.slane %v7278_v55, 4  ;;  %v6531_v34 = vrot.slane %v6529_v58, 4  ;;  %v9685_v55 = vld [vmem:[%s10657_s7 + $0x44] sm:$0x1]  ;;  %v6530_v29 = vsel %vm10025_vm7, %v9293_v40, %v6529_v58 }
 0x3ca   : > { %v12331_v45 = vadd.f32 %v12279_v3, %v5769_v13  ;;  %v7869_v3 = vsel %vm10025_vm7, %v9520_v15, %v7868_v25  ;;  %v7281_v19 = vor.u32 %v7280_v10, %v12335_v1  ;;  %v7961_v25 = vunpack.c.l.b16 %v7872_v9  ;;  %v9450_v15 = vld [vmem:[%s10657_s7 + $0x54] sm:$0xf] }
 0x3cb   : > { %v5036_v51 = vpop.f32.mrf.mxu2  ;;  %v12337_v36 = vpop.f32.mrf.mxu1  ;;  %v7960_v0 = vunpack.c.l.b16 %v7869_v3  ;;  %v6532_v13 = vrot.slane %v9685_v55, 5  ;;  %v7289_v8 = vshrl.u32 %v9450_v15, 16  ;;  %v7292_v10 = vshll.u32 %v9450_v15, 16  ;;  %v9505_v3 = vld [vmem:[%s10657_s7 + $0x54] sm:$0xe] }
 0x3cc   : > { %v5085_v57 = vadd.f32 %v5036_v51, %v11574_v31  ;;  %v7589_v31 = vpack.c.b16 %v7561_v27, %v7560_v12  ;;  %v7272_v51 = vrot.slane %v7271_v30, 4  ;;  %v9451_v12 = vld [vmem:[%s10657_s7 + $0x58] sm:$0xf]  ;;  %v7282_v53 = vrot.slane %v7281_v19, 4 }
 0x3cd   : > { %v7298_v63 = vshll.u32 %v9451_v12, 16  ;;  %v7302_v58 = vshrl.u32 %v9451_v12, 16  ;;  %v7875_v9 = vrot.slane %v9451_v12, 5  ;;  %v7291_v16 = vrot.slane %v7289_v8, 4 }
 0x3ce   : > { %v5483_v5 = vadd.f32 %v12302_v6, %v5085_v57  ;;  %v12345_v48 = vpop.f32.mrf.mxu3  ;;  %v6533_v57 = vsel %vm10025_vm7, %v6531_v34, %v6532_v13  ;;  %v7277_v40 = vsel %vm9809_vm4, %v7272_v51, %v12335_v1  ;;  %v7287_v30 = vsel %vm9809_vm4, %v7282_v53, %v7286_v43 }
 0x3cf   : > { %v7294_v55 = vrot.slane %v7292_v10, 5  ;;  %v12374_v13 = vrot.slane %v7298_v63, 5  ;;  %v7563_v51 = vunpack.c.l.b16 %v7287_v30  ;;  %v9687_v30 = vld [vmem:[%s10657_s7 + $0x50] sm:$0x1] }
 0x3d0   : > { %9309 = vmatmul.msk.bf16.gmra.mxu2 %vm732_vm1, %v6648_v60  ;;  %v5724_v23 = vpop.f32.mrf.mxu0  ;;  %v5770_v6 = vadd.f32 %v5721_v37, %v5483_v5  ;;  %v7988_v37 = vpack.c.b16 %v7961_v25, %v7960_v0  ;;  %v6621_v5 = vunpack.c.l.b16 %v6530_v29  ;;  %v9521_v0 = vrot.slane %v9505_v3, 9 }
 0x3d1   : > { %v7877_v25 = vrot.slane %v7875_v9, 4  ;;  %v7295_v8 = vor.u32 %v7294_v55, %v7291_v16 }
 0x3d2   : > { %v12356_v27 = vadd.f32 %v12295_v18, %v5770_v6  ;;  %v7304_v6 = vrot.slane %v7302_v58, 4  ;;  %v7876_v43 = vsel %vm10025_vm7, %v9521_v0, %v7875_v9  ;;  %v9637_v58 = vld [vmem:[%s10657_s7 + $0x54] sm:$0xff] }
 0x3d3   : > { %v5039_v28 = vpop.f32.mrf.mxu2  ;;  %9487 = vmatmul.msk.bf16.gmra.mxu0 %vm732_vm1, %v7589_v31  ;;  %9423 = vmatmul.msk.bf16.gmra.mxu3 %vm732_vm1, %v9636_v46  ;;  %v12363_v60 = vpop.f32.mrf.mxu1  ;;  %v6622_v31 = vunpack.c.l.b16 %v6533_v57  ;;  %v9452_v46 = vld [vmem:[%s10657_s7 + $0x5c] sm:$0x1]  ;;  %v9278_v57 = vld [vmem:[%s10657_s7 + $0x48] sm:$0xe]  ;;  %v7962_v3 = vunpack.c.l.b16 %v7876_v43  ;;  %v7296_v0 = vrot.slane %v7295_v8, 4 }
 0x3d4   : > { %v5086_v42 = vadd.f32 %v5039_v28, %v11619_v7  ;;  %v7878_v34 = vrot.slane %v9452_v46, 5  ;;  %v7308_v10 = vshll.u32 %v9452_v46, 16 }
 0x3d5   : > { %v6649_v29 = vpack.c.b16 %v6622_v31, %v6621_v5  ;;  %v9294_v31 = vrot.slane %v9278_v57, 9 }
 0x3d6   : > { %v5484_v18 = vadd.f32 %v12322_v52, %v5086_v42  ;;  %v5442_v7 = vpop.f32.mrf.mxu3  ;;  %9537 = vmatmul.msk.bf16.gmra.mxu1 %vm732_vm1, %v7988_v37  ;;  %v9686_v42 = vld [vmem:[%s10657_s7 + $0x4c] sm:$0xf]  ;;  %v7879_v37 = vsel %vm10025_vm7, %v7877_v25, %v7878_v34  ;;  %v7310_v25 = vrot.slane %v7308_v10, 5 }
 0x3d7   : > { %v6536_v53 = vrot.slane %v9686_v42, 5  ;;  %v7963_v5 = vunpack.c.l.b16 %v7879_v37  ;;  %v9506_v42 = vld [vmem:[%s10657_s7 + $0x60] sm:$0xe] }
 0x3d8   : > { %v5771_v19 = vadd.f32 %v5724_v23, %v5484_v18  ;;  %v5726_v52 = vpop.f32.mrf.mxu0  ;;  %v7562_v23 = vunpack.c.l.b16 %v7277_v40 }
 0x3d9   : > { %v6538_v40 = vrot.slane %v6536_v53, 4 }
 0x3da   : > { %v12377_v1 = vadd.f32 %v12318_v32, %v5771_v19  ;;  %v7590_v63 = vpack.c.b16 %v7563_v51, %v7562_v23  ;;  %v6539_v19 = vrot.slane %v9687_v30, 5  ;;  %v7301_v51 = vsel %vm9809_vm4, %v7296_v0, %v12374_v13 }
 0x3db   : > { %v5041_v15 = vpop.f32.mrf.mxu2  ;;  %v12380_v12 = vpop.f32.mrf.mxu1 }
 0x3dc   : > { %v5087_v28 = vadd.f32 %v5041_v15, %v11631_v2  ;;  %v7305_v2 = vor.u32 %v7304_v6, %v12374_v13  ;;  %v7989_v6 = vpack.c.b16 %v7963_v5, %v7962_v3  ;;  %v9453_v15 = vld [vmem:[%s10657_s7 + $0x60] sm:$0xf]  ;;  %v9522_v13 = vrot.slane %v9506_v42, 9 }
 0x3dd   : > { %v7316_v57 = vshll.u32 %v9453_v15, 16 }
 0x3de   : > { %v5485_v32 = vadd.f32 %v12345_v48, %v5087_v28  ;;  %v5444_v18 = vpop.f32.mrf.mxu3  ;;  %v7306_v16 = vrot.slane %v7305_v2, 4  ;;  %v9454_v28 = vld [vmem:[%s10657_s7 + $0x64] sm:$0xf] }
 0x3df   : > { %v7882_v43 = vrot.slane %v9454_v28, 5  ;;  %v7326_v8 = vshrl.u32 %v9454_v28, 16 }
 0x3e0   : > { %9310 = vmatmul.msk.bf16.gmra.mxu2 %vm732_vm1, %v6649_v29  ;;  %v5729_v9 = vpop.f32.mrf.mxu0  ;;  %v5772_v48 = vadd.f32 %v5726_v52, %v5485_v32  ;;  %v6537_v52 = vsel %vm10025_vm7, %v9294_v31, %v6536_v53  ;;  %v6540_v29 = vsel %vm10025_vm7, %v6538_v40, %v6539_v19  ;;  %v7313_v32 = vshrl.u32 %v9453_v15, 16 }
 0x3e1   : > { %v7322_v53 = vshll.u32 %v9454_v28, 16  ;;  %v6623_v2 = vunpack.c.l.b16 %v6537_v52  ;;  %v6624_v10 = vunpack.c.l.b16 %v6540_v29  ;;  %v7884_v3 = vrot.slane %v7882_v43, 4 }
 0x3e2   : > { %v12394_v34 = vadd.f32 %v12337_v36, %v5772_v48  ;;  %v7564_v31 = vunpack.c.l.b16 %v7301_v51  ;;  %v9279_v48 = vld [vmem:[%s10657_s7 + $0x54] sm:$0xe]  ;;  %v7315_v0 = vrot.slane %v7313_v32, 4  ;;  %v7883_v52 = vsel %vm10025_vm7, %v9522_v13, %v7882_v43 }
 0x3e3   : > { %v5044_v46 = vpop.f32.mrf.mxu2  ;;  %9488 = vmatmul.msk.bf16.gmra.mxu0 %vm732_vm1, %v7590_v63  ;;  %9424 = vmatmul.msk.bf16.gmra.mxu3 %vm732_vm1, %v9637_v58  ;;  %v12405_v23 = vpop.f32.mrf.mxu1 }
 0x3e4   : > { %v5088_v55 = vadd.f32 %v5044_v46, %v11676_v38  ;;  %v7311_v38 = vsel %vm9809_vm4, %v7306_v16, %v7310_v25  ;;  %v7318_v16 = vrot.slane %v7316_v57, 5  ;;  %v7324_v25 = vrot.slane %v7322_v53, 5  ;;  %v9638_v57 = vld [vmem:[%s10657_s7 + $0x60] sm:$0xff] }
 0x3e5   : > { %v7565_v40 = vunpack.c.l.b16 %v7311_v38  ;;  %v7328_v46 = vrot.slane %v7326_v8, 4  ;;  %v9689_v8 = vld [vmem:[%s10657_s7 + $0x5c] sm:$0x1] }
 0x3e6   : > { %v5486_v36 = vadd.f32 %v5442_v7, %v5088_v55  ;;  %v5447_v37 = vpop.f32.mrf.mxu3  ;;  %9538 = vmatmul.msk.bf16.gmra.mxu1 %vm732_vm1, %v7989_v6  ;;  %v9455_v7 = vld [vmem:[%s10657_s7 + $0x68] sm:$0x1]  ;;  %v9688_v6 = vld [vmem:[%s10657_s7 + $0x58] sm:$0xf]  ;;  %v7319_v42 = vor.u32 %v7318_v16, %v7315_v0  ;;  %v9456_v16 = vld [vmem:[%s10657_s7 + $0x6c] sm:$0xf] }
 0x3e7   : > { %v7885_v5 = vrot.slane %v9455_v7, 5  ;;  %v6543_v15 = vrot.slane %v9688_v6, 5  ;;  %v7591_v51 = vpack.c.b16 %v7565_v40, %v7564_v31  ;;  %v7329_v32 = vor.u32 %v7328_v46, %v7324_v25  ;;  %v9457_v46 = vld [vmem:[%s10657_s7 + $0x70] sm:$0xf] }
 0x3e8   : > { %v5773_v63 = vadd.f32 %v5729_v9, %v5486_v36  ;;  %v5731_v58 = vpop.f32.mrf.mxu0  ;;  %v6650_v9 = vpack.c.b16 %v6624_v10, %v6623_v2  ;;  %v9295_v36 = vrot.slane %v9279_v48, 9  ;;  %v6546_v2 = vrot.slane %v9689_v8, 5 }
 0x3e9   : > { %v6545_v53 = vrot.slane %v6543_v15, 4  ;;  %v7964_v10 = vunpack.c.l.b16 %v7883_v52  ;;  %v7330_v31 = vrot.slane %v7329_v32, 4  ;;  %v7889_v6 = vrot.slane %v9457_v46, 5 }
 0x3ea   : > { %v12416_v30 = vadd.f32 %v12363_v60, %v5773_v63  ;;  %v7886_v60 = vsel %vm10025_vm7, %v7884_v3, %v7885_v5  ;;  %v7320_v5 = vrot.slane %v7319_v42, 4  ;;  %v7346_v42 = vshll.u32 %v9457_v46, 16 }
 0x3eb   : > { %v5046_v19 = vpop.f32.mrf.mxu2  ;;  %v12421_v28 = vpop.f32.mrf.mxu1  ;;  %v7965_v43 = vunpack.c.l.b16 %v7886_v60 }
 0x3ec   : > { %v5089_v55 = vadd.f32 %v5046_v19, %v11688_v22  ;;  %v7332_v22 = vshll.u32 %v9455_v7, 16 }
 0x3ed   : > { %v7990_v48 = vpack.c.b16 %v7965_v43, %v7964_v10 }
 0x3ee   : > { %v5487_v29 = vadd.f32 %v5444_v18, %v5089_v55  ;;  %v12427_v38 = vpop.f32.mrf.mxu3  ;;  %v6544_v18 = vsel %vm10025_vm7, %v9295_v36, %v6543_v15  ;;  %v7334_v7 = vrot.slane %v7332_v22, 5  ;;  %v7337_v36 = vshrl.u32 %v9456_v16, 16 }
 0x3ef   : > { %v6625_v15 = vunpack.c.l.b16 %v6544_v18  ;;  %v7350_v22 = vshrl.u32 %v9457_v46, 16 }
 0x3f0   : > { %9311 = vmatmul.msk.bf16.gmra.mxu2 %vm732_vm1, %v6650_v9  ;;  %v5734_v63 = vpop.f32.mrf.mxu0  ;;  %v5774_v13 = vadd.f32 %v5731_v58, %v5487_v29  ;;  %v6547_v58 = vsel %vm10025_vm7, %v6545_v53, %v6546_v2  ;;  %v9507_v9 = vld [vmem:[%s10657_s7 + $0x6c] sm:$0xe]  ;;  %v7335_v60 = vsel %vm9809_vm4, %v7330_v31, %v7334_v7  ;;  %v9458_v29 = vld [vmem:[%s10657_s7 + $0x74] sm:$0x1]  ;;  %v7891_v53 = vrot.slane %v7889_v6, 4 }
 0x3f1   : > { %v6626_v52 = vunpack.c.l.b16 %v6547_v58  ;;  %v7892_v8 = vrot.slane %v9458_v29, 5  ;;  %v12461_v58 = vrot.slane %v7346_v42, 5 }
 0x3f2   : > { %v12435_v40 = vadd.f32 %v12380_v12, %v5774_v13  ;;  %v7567_v13 = vunpack.c.l.b16 %v7335_v60 }
 0x3f3   : > { %v5049_v3 = vpop.f32.mrf.mxu2  ;;  %9489 = vmatmul.msk.bf16.gmra.mxu0 %vm732_vm1, %v7591_v51  ;;  %9425 = vmatmul.msk.bf16.gmra.mxu3 %vm732_vm1, %v9638_v57  ;;  %v12442_v0 = vpop.f32.mrf.mxu1  ;;  %v7340_v51 = vshll.u32 %v9456_v16, 16  ;;  %v9523_v57 = vrot.slane %v9507_v9, 9  ;;  %v6651_v10 = vpack.c.b16 %v6626_v52, %v6625_v15  ;;  %v7893_v16 = vsel %vm10025_vm7, %v7891_v53, %v7892_v8  ;;  %v9691_v9 = vld [vmem:[%s10657_s7 + $0x68] sm:$0x1]  ;;  %v9639_v52 = vld [vmem:[%s10657_s7 + $0x6c] sm:$0xff] }
 0x3f4   : > { %v5090_v19 = vadd.f32 %v5049_v3, %v11733_v33  ;;  %v7325_v33 = vsel %vm9809_vm4, %v7320_v5, %v7324_v25  ;;  %v9690_v3 = vld [vmem:[%s10657_s7 + $0x64] sm:$0xf]  ;;  %v6553_v15 = vrot.slane %v9691_v9, 5 }
 0x3f5   : > { %v7566_v43 = vunpack.c.l.b16 %v7325_v33  ;;  %v6550_v5 = vrot.slane %v9690_v3, 5  ;;  %v7342_v31 = vrot.slane %v7340_v51, 5  ;;  %v7967_v51 = vunpack.c.l.b16 %v7893_v16 }
 0x3f6   : > { %v5488_v55 = vadd.f32 %v5447_v37, %v5090_v19  ;;  %v5452_v12 = vpop.f32.mrf.mxu3  ;;  %9539 = vmatmul.msk.bf16.gmra.mxu1 %vm732_vm1, %v7990_v48  ;;  %v9280_v19 = vld [vmem:[%s10657_s7 + $0x60] sm:$0xe]  ;;  %v7352_v48 = vrot.slane %v7350_v22, 4  ;;  %v7356_v22 = vshll.u32 %v9458_v29, 16 }
 0x3f7   : > { %v9296_v33 = vrot.slane %v9280_v19, 9  ;;  %v6552_v42 = vrot.slane %v6550_v5, 4 }
 0x3f8   : > { %v5775_v32 = vadd.f32 %v5734_v63, %v5488_v55  ;;  %v5736_v37 = vpop.f32.mrf.mxu0  ;;  %v7339_v63 = vrot.slane %v7337_v36, 4  ;;  %v7358_v3 = vrot.slane %v7356_v22, 5 }
 0x3f9   : > { %v6554_v29 = vsel %vm10025_vm7, %v6552_v42, %v6553_v15  ;;  %v9461_v15 = vld [vmem:[%s10657_s7 + $0x80] sm:$0x1]  ;;  %v9692_v42 = vld [vmem:[%s10657_s7 + $0x70] sm:$0xf] }
 0x3fa   : > { %v12454_v2 = vadd.f32 %v12405_v23, %v5775_v32  ;;  %v7890_v23 = vsel %vm10025_vm7, %v9523_v57, %v7889_v6  ;;  %v7343_v60 = vor.u32 %v7342_v31, %v7339_v63  ;;  %v7353_v32 = vor.u32 %v7352_v48, %v12461_v58  ;;  %v9508_v31 = vld [vmem:[%s10657_s7 + $0x78] sm:$0xe] }
 0x3fb   : > { %v5051_v25 = vpop.f32.mrf.mxu2  ;;  %v12458_v7 = vpop.f32.mrf.mxu1  ;;  %v7966_v36 = vunpack.c.l.b16 %v7890_v23 }
 0x3fc   : > { %v5091_v18 = vadd.f32 %v5051_v25, %v11745_v17  ;;  %v7592_v17 = vpack.c.b16 %v7567_v13, %v7566_v43  ;;  %v7344_v25 = vrot.slane %v7343_v60, 4  ;;  %v9459_v43 = vld [vmem:[%s10657_s7 + $0x78] sm:$0xf]  ;;  %v9460_v13 = vld [vmem:[%s10657_s7 + $0x7c] sm:$0xf]  ;;  %v9524_v60 = vrot.slane %v9508_v31, 9 }
 0x3fd   : > { %v7361_v48 = vshrl.u32 %v9459_v43, 16  ;;  %v7364_v23 = vshll.u32 %v9459_v43, 16  ;;  %v7370_v16 = vshll.u32 %v9460_v13, 16 }
 0x3fe   : > { %v5489_v46 = vadd.f32 %v12427_v38, %v5091_v18  ;;  %v12468_v55 = vpop.f32.mrf.mxu3  ;;  %v6551_v18 = vsel %vm10025_vm7, %v9296_v33, %v6550_v5  ;;  %v7349_v9 = vsel %vm9809_vm4, %v7344_v25, %v12461_v58 }
 0x3ff   : > { %v6627_v5 = vunpack.c.l.b16 %v6551_v18  ;;  %v7363_v58 = vrot.slane %v7361_v48, 4  ;;  %v12503_v25 = vrot.slane %v7370_v16, 5 }
 0x400   : > { %9312 = vmatmul.msk.bf16.gmra.mxu2 %vm732_vm1, %v6651_v10  ;;  %v5739_v6 = vpop.f32.mrf.mxu0  ;;  %v5776_v38 = vadd.f32 %v5736_v37, %v5489_v46  ;;  %v7991_v10 = vpack.c.b16 %v7967_v51, %v7966_v36  ;;  %v7374_v46 = vshrl.u32 %v9460_v13, 16  ;;  %v7899_v51 = vrot.slane %v9461_v15, 5 }
 0x402   : > { %v12475_v53 = vadd.f32 %v12421_v28, %v5776_v38  ;;  %v7354_v28 = vrot.slane %v7353_v32, 4  ;;  %v6557_v32 = vrot.slane %v9692_v42, 5 }
 0x403   : > { %v5054_v57 = vpop.f32.mrf.mxu2  ;;  %9490 = vmatmul.msk.bf16.gmra.mxu0 %vm732_vm1, %v7592_v17  ;;  %9426 = vmatmul.msk.bf16.gmra.mxu3 %vm732_vm1, %v9639_v52  ;;  %v12486_v37 = vpop.f32.mrf.mxu1  ;;  %v6628_v17 = vunpack.c.l.b16 %v6554_v29 }
 0x404   : > { %v5092_v8 = vadd.f32 %v5054_v57, %v11790_v62  ;;  %v7896_v62 = vrot.slane %v9460_v13, 5  ;;  %v7359_v33 = vsel %vm9809_vm4, %v7354_v28, %v7358_v3  ;;  %v9281_v57 = vld [vmem:[%s10657_s7 + $0x6c] sm:$0xe]  ;;  %v7568_v13 = vunpack.c.l.b16 %v7349_v9 }
 0x405   : > { %v6652_v43 = vpack.c.b16 %v6628_v17, %v6627_v5  ;;  %v7569_v18 = vunpack.c.l.b16 %v7359_v33  ;;  %v6559_v48 = vrot.slane %v6557_v32, 4  ;;  %v7380_v17 = vshll.u32 %v9461_v15, 16  ;;  %v13020_v15 = vld [vmem:[#allocation14_spill] sm:$0xff] }
 0x406   : > { %v5490_v63 = vadd.f32 %v5452_v12, %v5092_v8  ;;  %v12489_v19 = vpop.f32.mrf.mxu3  ;;  %9540 = vmatmul.msk.bf16.gmra.mxu1 %vm732_vm1, %v7991_v10  ;;  %v7898_v36 = vrot.slane %v7896_v62, 4  ;;  %v7366_v8 = vrot.slane %v7364_v23, 5 }
 0x407   : > { %v7593_v5 = vpack.c.b16 %v7569_v18, %v7568_v13 }
 0x408   : > { %v5777_v12 = vadd.f32 %v5739_v6, %v5490_v63  ;;  %v5741_v52 = vpop.f32.mrf.mxu0  ;;  %v7376_v6 = vrot.slane %v7374_v46, 4  ;;  %v7900_v28 = vsel %vm10025_vm7, %v7898_v36, %v7899_v51  ;;  %v9297_v63 = vrot.slane %v9281_v57, 9 }
 0x409   : > { %v7367_v16 = vor.u32 %v7366_v8, %v7363_v58  ;;  %v9463_v58 = vld [vmem:[%s10657_s7 + $0x88] sm:$0xf] }
 0x40a   : > { %v12500_v22 = vadd.f32 %v12442_v0, %v5777_v12  ;;  %v7897_v0 = vsel %vm10025_vm7, %v9524_v60, %v7896_v62  ;;  %v7377_v46 = vor.u32 %v7376_v6, %v12503_v25  ;;  %v9640_v62 = vld [vmem:[%s10657_s7 + $0x78] sm:$0xff]  ;;  %v7969_v12 = vunpack.c.l.b16 %v7900_v28  ;;  %v9462_v60 = vld [vmem:[%s10657_s7 + $0x84] sm:$0xf] }
 0x40b   : > { %v5056_v38 = vpop.f32.mrf.mxu2  ;;  %v12506_v29 = vpop.f32.mrf.mxu1  ;;  %v7968_v9 = vunpack.c.l.b16 %v7897_v0  ;;  %v6558_v36 = vsel %vm10025_vm7, %v9297_v63, %v6557_v32  ;;  %v7388_v13 = vshll.u32 %v9462_v60, 16  ;;  %v7394_v0 = vshll.u32 %v9463_v58, 16 }
 0x40c   : > { %v5093_v10 = vadd.f32 %v5056_v38, %v11802_v26  ;;  %v9693_v26 = vld [vmem:[%s10657_s7 + $0x74] sm:$0x1]  ;;  %v7368_v38 = vrot.slane %v7367_v16, 4  ;;  %v7378_v57 = vrot.slane %v7377_v46, 4  ;;  %v7398_v28 = vshrl.u32 %v9463_v58, 16 }
 0x40d   : > { %v6560_v23 = vrot.slane %v9693_v26, 5  ;;  %v7992_v32 = vpack.c.b16 %v7969_v12, %v7968_v9  ;;  %v9464_v46 = vld [vmem:[%s10657_s7 + $0x8c] sm:$0x1] }
 0x40e   : > { %v5491_v3 = vadd.f32 %v12468_v55, %v5093_v10  ;;  %v12513_v31 = vpop.f32.mrf.mxu3  ;;  %v7385_v10 = vshrl.u32 %v9462_v60, 16  ;;  %v7906_v60 = vrot.slane %v9464_v46, 5 }
 0x40f   : > { %v6561_v42 = vsel %vm10025_vm7, %v6559_v48, %v6560_v23  ;;  %v6629_v48 = vunpack.c.l.b16 %v6558_v36  ;;  %v7373_v23 = vsel %vm9809_vm4, %v7368_v38, %v12503_v25  ;;  %v7400_v36 = vrot.slane %v7398_v28, 4 }
 0x410   : > { %9313 = vmatmul.msk.bf16.gmra.mxu2 %vm732_vm1, %v6652_v43  ;;  %v5744_v33 = vpop.f32.mrf.mxu0  ;;  %v5778_v55 = vadd.f32 %v5741_v52, %v5491_v3  ;;  %v7382_v52 = vrot.slane %v7380_v17, 5  ;;  %v9509_v3 = vld [vmem:[%s10657_s7 + $0x84] sm:$0xe]  ;;  %v6630_v26 = vunpack.c.l.b16 %v6561_v42  ;;  %v7390_v17 = vrot.slane %v7388_v13, 5  ;;  %v13021_v42 = vld [vmem:[#allocation15_spill] sm:$0xff] }
 0x411   : > { %v9525_v9 = vrot.slane %v9509_v3, 9  ;;  %v7404_v28 = vshll.u32 %v9464_v46, 16 }
 0x412   : > { %v12526_v8 = vadd.f32 %v12458_v7, %v5778_v55  ;;  %v7903_v7 = vrot.slane %v9463_v58, 5  ;;  %v7383_v16 = vsel %vm9809_vm4, %v7378_v57, %v7382_v52  ;;  %v7396_v55 = vrot.slane %v7394_v0, 5  ;;  %v9694_v52 = vld [vmem:[%s10657_s7 + $0x7c] sm:$0xf] }
 0x413   : > { %v5059_v51 = vpop.f32.mrf.mxu2  ;;  %9491 = vmatmul.msk.bf16.gmra.mxu0 %vm732_vm1, %v7593_v5  ;;  %9427 = vmatmul.msk.bf16.gmra.mxu3 %vm732_vm1, %v9640_v62  ;;  %v12531_v43 = vpop.f32.mrf.mxu1  ;;  %v7387_v5 = vrot.slane %v7385_v10, 4  ;;  %v6653_v57 = vpack.c.b16 %v6630_v26, %v6629_v48  ;;  %v7570_v58 = vunpack.c.l.b16 %v7373_v23  ;;  %v9641_v26 = vld [vmem:[%s10657_s7 + $0x84] sm:$0xff]  ;;  %v7406_v46 = vrot.slane %v7404_v28, 5 }
 0x414   : > { %v5094_v6 = vadd.f32 %v5059_v51, %v13020_v15  ;;  %v7905_v12 = vrot.slane %v7903_v7, 4  ;;  %v7571_v15 = vunpack.c.l.b16 %v7383_v16  ;;  %v7904_v13 = vsel %vm10025_vm7, %v9525_v9, %v7903_v7 }
 0x415   : > { %v7391_v10 = vor.u32 %v7390_v17, %v7387_v5  ;;  %v7401_v0 = vor.u32 %v7400_v36, %v7396_v55  ;;  %v7970_v16 = vunpack.c.l.b16 %v7904_v13  ;;  %v9695_v17 = vld [vmem:[%s10657_s7 + $0x80] sm:$0x1] }
 0x416   : > { %v5492_v18 = vadd.f32 %v12489_v19, %v5094_v6  ;;  %v7008_v63 = vpop.f32.mrf.mxu3  ;;  %9541 = vmatmul.msk.bf16.gmra.mxu1 %vm732_vm1, %v7992_v32  ;;  %v6564_v32 = vrot.slane %v9694_v52, 5  ;;  %v7594_v48 = vpack.c.b16 %v7571_v15, %v7570_v58  ;;  %v6567_v9 = vrot.slane %v9695_v17, 5  ;;  %v9465_v58 = vld [vmem:[%s10657_s7 + $0x90] sm:$0xf]  ;;  %v9466_v15 = vld [vmem:[%s10657_s7 + $0x94] sm:$0xf] }
 0x417   : > { %v7409_v28 = vshrl.u32 %v9465_v58, 16 }
 0x418   : > { %v5779_v19 = vadd.f32 %v5744_v33, %v5492_v18  ;;  %v5746_v62 = vpop.f32.mrf.mxu0  ;;  %v9282_v33 = vld [vmem:[%s10657_s7 + $0x78] sm:$0xe]  ;;  %v6566_v7 = vrot.slane %v6564_v32, 4 }
 0x419   : > { %v9298_v23 = vrot.slane %v9282_v33, 9 }
 0x41a   : > { %v12543_v51 = vadd.f32 %v12486_v37, %v5779_v19  ;;  %v7907_v37 = vsel %vm10025_vm7, %v7905_v12, %v7906_v60  ;;  %v7392_v12 = vrot.slane %v7391_v10, 4 }
 0x41b   : > { %v5061_v25 = vpop.f32.mrf.mxu2  ;;  %v12546_v6 = vpop.f32.mrf.mxu1  ;;  %v7971_v5 = vunpack.c.l.b16 %v7907_v37  ;;  %v6565_v33 = vsel %vm10025_vm7, %v9298_v23, %v6564_v32  ;;  %v9510_v37 = vld [vmem:[%s10657_s7 + $0x90] sm:$0xe]  ;;  %v7418_v32 = vshll.u32 %v9466_v15, 16 }
 0x41c   : > { %v5095_v38 = vadd.f32 %v5061_v25, %v13021_v42  ;;  %v13023_v42 = vld [vmem:[#allocation2_spill] sm:$0xff] }
 0x41e   : > { %v5493_v18 = vadd.f32 %v12513_v31, %v5095_v38  ;;  %v12555_v3 = vpop.f32.mrf.mxu3  ;;  %v7402_v31 = vrot.slane %v7401_v0, 4 }
 0x420   : > { %9314 = vmatmul.msk.bf16.gmra.mxu2 %vm732_vm1, %v6653_v57  ;;  %v7662_v19 = vpop.f32.mrf.mxu0  ;;  %v5780_v60 = vadd.f32 %v5746_v62, %v5493_v18  ;;  %v7993_v57 = vpack.c.b16 %v7971_v5, %v7970_v16  ;;  %v6568_v62 = vsel %vm10025_vm7, %v6566_v7, %v6567_v9  ;;  %v7407_v13 = vsel %vm9809_vm4, %v7402_v31, %v7406_v46  ;;  %v9467_v7 = vld [vmem:[%s10657_s7 + $0x98] sm:$0x1]  ;;  %v9696_v46 = vld [vmem:[%s10657_s7 + $0x88] sm:$0xf] }
 0x421   : > { %v7910_v18 = vrot.slane %v9466_v15, 5  ;;  %v6632_v16 = vunpack.c.l.b16 %v6568_v62  ;;  %v7573_v9 = vunpack.c.l.b16 %v7407_v13  ;;  %v7913_v31 = vrot.slane %v9467_v7, 5 }
 0x422   : > { %v12561_v25 = vadd.f32 %v12506_v29, %v5780_v60  ;;  %v7397_v29 = vsel %vm9809_vm4, %v7392_v12, %v7396_v55  ;;  %v12584_v55 = vld [vmem:[%s12963_s4] ss:$0 sm:$0xff]  ;;  %v9526_v12 = vrot.slane %v9510_v37, 9 }
 0x423   : > { %v6721_v36 = vpop.f32.mrf.mxu2  ;;  %9492 = vmatmul.msk.bf16.gmra.mxu0 %vm732_vm1, %v7594_v48  ;;  %9428 = vmatmul.msk.bf16.gmra.mxu3 %vm732_vm1, %v9641_v26  ;;  %v12572_v52 = vpop.f32.mrf.mxu1  ;;  %v7412_v48 = vshll.u32 %v9465_v58, 16  ;;  %v7422_v26 = vshrl.u32 %v9466_v15, 16  ;;  %v7572_v5 = vunpack.c.l.b16 %v7397_v29  ;;  %v7912_v60 = vrot.slane %v7910_v18, 4  ;;  %v13024_v29 = vld [vmem:[#allocation3_spill] sm:$0xff] }
 0x424   : > { %13022 = vst [vmem:[#allocation6_spill] sm:$0xff] %v12561_v25  ;;  %v6801_v38 = vadd.f32 %v6721_v36, %v13023_v42  ;;  %v6571_v36 = vrot.slane %v9696_v46, 5  ;;  %v7411_v58 = vrot.slane %v7409_v28, 4 }
 0x425   : > { %v7414_v15 = vrot.slane %v7412_v48, 5  ;;  %v7424_v62 = vrot.slane %v7422_v26, 4  ;;  %v7595_v37 = vpack.c.b16 %v7573_v9, %v7572_v5  ;;  %v7914_v28 = vsel %vm10025_vm7, %v7912_v60, %v7913_v31  ;;  %v9642_v31 = vld [vmem:[%s10657_s7 + $0x90] sm:$0xff] }
 0x426   : > { %v7088_v10 = vadd.f32 %v7008_v63, %v6801_v38  ;;  %v12579_v0 = vpop.f32.mrf.mxu3  ;;  %v6631_v63 = vunpack.c.l.b16 %v6565_v33  ;;  %9542 = vmatmul.msk.bf16.gmra.mxu1 %vm732_vm1, %v7993_v57  ;;  %v9283_v38 = vld [vmem:[%s10657_s7 + $0x84] sm:$0xe]  ;;  %v12591_v33 = vrot.slane %v7418_v32, 5  ;;  %v7973_v46 = vunpack.c.l.b16 %v7914_v28 }
 0x427   : > { %v9299_v26 = vrot.slane %v9283_v38, 9  ;;  %v7415_v5 = vor.u32 %v7414_v15, %v7411_v58  ;;  %v9468_v38 = vld [vmem:[%s10657_s7 + $0x9c] sm:$0xf] }
 0x428   : > { %v7742_v23 = vadd.f32 %v7662_v19, %v7088_v10  ;;  %v7664_v17 = vpop.f32.mrf.mxu0  ;;  %v6654_v13 = vpack.c.b16 %v6632_v16, %v6631_v63  ;;  %v9697_v16 = vld [vmem:[%s10657_s7 + $0x8c] sm:$0x1]  ;;  %v7425_v9 = vor.u32 %v7424_v62, %v12591_v33 }
 0x429   : > { %v6572_v58 = vsel %vm10025_vm7, %v9299_v26, %v6571_v36  ;;  %v7416_v62 = vrot.slane %v7415_v5, 4 }
 0x42a   : > { %v8140_v19 = vadd.f32 %v12531_v43, %v7742_v23  ;;  %v7911_v43 = vsel %vm10025_vm7, %v9526_v12, %v7910_v18  ;;  %v6573_v23 = vrot.slane %v6571_v36, 4  ;;  %v6574_v18 = vrot.slane %v9697_v16, 5 }
 0x42b   : > { %v6723_v42 = vpop.f32.mrf.mxu2  ;;  %v12596_v25 = vpop.f32.mrf.mxu1  ;;  %v7428_v12 = vshll.u32 %v9467_v7, 16 }
 0x42c   : > { %v8176_v57 = vadd.f32 %v12584_v55, %v8140_v19  ;;  %v6802_v10 = vadd.f32 %v6723_v42, %v13024_v29  ;;  %v7972_v19 = vunpack.c.l.b16 %v7911_v43  ;;  %v6575_v7 = vsel %vm10025_vm7, %v6573_v23, %v6574_v18  ;;  %v13025_v43 = vld [vmem:[#allocation4_spill] sm:$0xff] }
 0x42d   : > { %v7430_v29 = vrot.slane %v7428_v12, 5 }
 0x42e   : > { %v8208_v48 = vmax.f32 %v8176_v57, 0.0  ;;  %v7089_v32 = vadd.f32 %v12555_v3, %v6802_v10  ;;  %v12608_v63 = vpop.f32.mrf.mxu3  ;;  %v9469_v10 = vld [vmem:[%s10657_s7 + $0xa0] sm:$0xf] }
 0x42f   : > { %v7917_v26 = vrot.slane %v9469_v10, 5  ;;  %v7442_v18 = vshll.u32 %v9469_v10, 16  ;;  %v7446_v5 = vshrl.u32 %v9469_v10, 16 }
 0x430   : > { %v8240_v60 = vpack.c.bf16 %v8208_v48, %v8208_v48  ;;  %v7743_v3 = vadd.f32 %v7664_v17, %v7089_v32  ;;  %9315 = vmatmul.msk.bf16.gmra.mxu2 %vm732_vm1, %v6654_v13  ;;  %v7667_v42 = vpop.f32.mrf.mxu0  ;;  %v7426_v17 = vrot.slane %v7425_v9, 4  ;;  %v7433_v48 = vshrl.u32 %v9468_v38, 16  ;;  %v9511_v9 = vld [vmem:[%s10657_s7 + $0x9c] sm:$0xe] }
 0x431   : > { %v7436_v32 = vshll.u32 %v9468_v38, 16  ;;  %v9527_v10 = vrot.slane %v9511_v9, 9 }
 0x432   : > { %8273 = vst.msk [vmem:[%s12606_s21] sm:$0xf] %vm8272_vm8, %v8240_v60  ;;  %v8141_v57 = vadd.f32 %v12546_v6, %v7743_v3  ;;  %v7994_v6 = vpack.c.b16 %v7973_v46, %v7972_v19  ;;  %v6634_v60 = vunpack.c.l.b16 %v6575_v7  ;;  %v7421_v3 = vsel %vm9809_vm4, %v7416_v62, %v12591_v33 }
 0x433   : > { %v6726_v15 = vpop.f32.mrf.mxu2  ;;  %9493 = vmatmul.msk.bf16.gmra.mxu0 %vm732_vm1, %v7595_v37  ;;  %9429 = vmatmul.msk.bf16.gmra.mxu3 %vm732_vm1, %v9642_v31  ;;  %v12627_v36 = vpop.f32.mrf.mxu1  ;;  %v6633_v37 = vunpack.c.l.b16 %v6572_v58  ;;  %v7431_v46 = vsel %vm9809_vm4, %v7426_v17, %v7430_v29  ;;  %v7435_v38 = vrot.slane %v7433_v48, 4  ;;  %v7919_v58 = vrot.slane %v7917_v26, 4 }
 0x434   : > { %v8177_v13 = vadd.f32 %v12584_v55, %v8141_v57  ;;  %v6803_v28 = vadd.f32 %v6726_v15, %v13025_v43  ;;  %v7438_v15 = vrot.slane %v7436_v32, 5  ;;  %v12643_v62 = vrot.slane %v7442_v18, 5  ;;  %v9284_v32 = vld [vmem:[%s10657_s7 + $0x90] sm:$0xe] }
 0x435   : > { %v7574_v17 = vunpack.c.l.b16 %v7421_v3  ;;  %v7575_v29 = vunpack.c.l.b16 %v7431_v46  ;;  %v6655_v48 = vpack.c.b16 %v6634_v60, %v6633_v37 }
 0x436   : > { %v8209_v23 = vmax.f32 %v8177_v13, 0.0  ;;  %v7090_v16 = vadd.f32 %v12579_v0, %v6803_v28  ;;  %v12631_v12 = vpop.f32.mrf.mxu3  ;;  %9543 = vmatmul.msk.bf16.gmra.mxu1 %vm732_vm1, %v7994_v6  ;;  %v9470_v0 = vld [vmem:[%s10657_s7 + $0xa4] sm:$0x1]  ;;  %v13026_v28 = vld [vmem:[#allocation5_spill] sm:$0xff] }
 0x437   : > { %v7920_v7 = vrot.slane %v9470_v0, 5  ;;  %v7452_v37 = vshll.u32 %v9470_v0, 16  ;;  %v7596_v60 = vpack.c.b16 %v7575_v29, %v7574_v17 }
 0x438   : > { %v8241_v31 = vpack.c.bf16 %v8209_v23, %v8209_v23  ;;  %v7744_v19 = vadd.f32 %v7667_v42, %v7090_v16  ;;  %v7669_v57 = vpop.f32.mrf.mxu0  ;;  %v7448_v42 = vrot.slane %v7446_v5, 4  ;;  %v9698_v16 = vld [vmem:[%s10657_s7 + $0x94] sm:$0xf] }
 0x439   : > { %v6578_v9 = vrot.slane %v9698_v16, 5  ;;  %v7921_v18 = vsel %vm10025_vm7, %v7919_v58, %v7920_v7  ;;  %v7454_v29 = vrot.slane %v7452_v37, 5  ;;  %v9471_v16 = vld [vmem:[%s10657_s7 + $0xa8] sm:$0xf] }
 0x43a   : > { %8274 = vst.msk [vmem:[%s12606_s21 + $0x4] sm:$0xf] %vm8272_vm8, %v8241_v31  ;;  %v8142_v33 = vadd.f32 %v12572_v52, %v7744_v19  ;;  %v7439_v31 = vor.u32 %v7438_v15, %v7435_v38  ;;  %v7918_v52 = vsel %vm10025_vm7, %v9527_v10, %v7917_v26  ;;  %v7449_v19 = vor.u32 %v7448_v42, %v12643_v62  ;;  %v9643_v26 = vld [vmem:[%s10657_s7 + $0x9c] sm:$0xff]  ;;  %v9512_v37 = vld [vmem:[%s10657_s7 + $0xa8] sm:$0xe] }
 0x43b   : > { %v6728_v13 = vpop.f32.mrf.mxu2  ;;  %v12648_v23 = vpop.f32.mrf.mxu1  ;;  %v7974_v15 = vunpack.c.l.b16 %v7918_v52  ;;  %v7975_v10 = vunpack.c.l.b16 %v7921_v18  ;;  %v6580_v7 = vrot.slane %v6578_v9, 4 }
 0x43c   : > { %v8178_v43 = vadd.f32 %v12584_v55, %v8142_v33  ;;  %v6804_v6 = vadd.f32 %v6728_v13, %v13026_v28  ;;  %v9300_v33 = vrot.slane %v9284_v32, 9  ;;  %v7440_v42 = vrot.slane %v7439_v31, 4  ;;  %v9472_v31 = vld [vmem:[%s10657_s7 + $0xac] sm:$0xf] }
 0x43d   : > { %v7450_v17 = vrot.slane %v7449_v19, 4  ;;  %v7995_v32 = vpack.c.b16 %v7975_v10, %v7974_v15  ;;  %v7924_v18 = vrot.slane %v9472_v31, 5 }
 0x43e   : > { %v8210_v5 = vmax.f32 %v8178_v43, 0.0  ;;  %v7091_v3 = vadd.f32 %v12608_v63, %v6804_v6  ;;  %v12657_v46 = vpop.f32.mrf.mxu3  ;;  %v9699_v63 = vld [vmem:[%s10657_s7 + $0x98] sm:$0x1] }
 0x43f   : > { %v6581_v43 = vrot.slane %v9699_v63, 5  ;;  %v7455_v19 = vsel %vm9809_vm4, %v7450_v17, %v7454_v29 }
 0x440   : > { %v8242_v13 = vpack.c.bf16 %v8210_v5, %v8210_v5  ;;  %v7745_v38 = vadd.f32 %v7669_v57, %v7091_v3  ;;  %9316 = vmatmul.msk.bf16.gmra.mxu2 %vm732_vm1, %v6655_v48  ;;  %v7672_v58 = vpop.f32.mrf.mxu0  ;;  %v6579_v57 = vsel %vm10025_vm7, %v9300_v33, %v6578_v9  ;;  %v7445_v9 = vsel %vm9809_vm4, %v7440_v42, %v12643_v62 }
 0x441   : > { %v7457_v33 = vshrl.u32 %v9471_v16, 16  ;;  %v9528_v42 = vrot.slane %v9512_v37, 9 }
 0x442   : > { %8275 = vst.msk [vmem:[%s12606_s21 + $0x8] sm:$0xf] %vm8272_vm8, %v8242_v13  ;;  %v8143_v0 = vadd.f32 %v12596_v25, %v7745_v38  ;;  %v6582_v25 = vsel %vm10025_vm7, %v6580_v7, %v6581_v43  ;;  %v7460_v13 = vshll.u32 %v9471_v16, 16  ;;  %v7466_v38 = vshll.u32 %v9472_v31, 16 }
 0x443   : > { %v6731_v28 = vpop.f32.mrf.mxu2  ;;  %9494 = vmatmul.msk.bf16.gmra.mxu0 %vm732_vm1, %v7596_v60  ;;  %9430 = vmatmul.msk.bf16.gmra.mxu3 %vm732_vm1, %v9643_v26  ;;  %v12675_v52 = vpop.f32.mrf.mxu1  ;;  %v7470_v26 = vshrl.u32 %v9472_v31, 16  ;;  %v6636_v10 = vunpack.c.l.b16 %v6582_v25  ;;  %v7576_v7 = vunpack.c.l.b16 %v7445_v9  ;;  %v7577_v43 = vunpack.c.l.b16 %v7455_v19 }
 0x444   : > { %v8179_v6 = vadd.f32 %v12584_v55, %v8143_v0  ;;  %v6805_v48 = vadd.f32 %v6731_v28, %v12012_v47  ;;  %v6635_v47 = vunpack.c.l.b16 %v6579_v57  ;;  %v7926_v0 = vrot.slane %v7924_v18, 4  ;;  %v9700_v28 = vld [vmem:[%s10657_s7 + $0xa0] sm:$0xf] }
 0x445   : > { %v6585_v57 = vrot.slane %v9700_v28, 5  ;;  %v7459_v16 = vrot.slane %v7457_v33, 4  ;;  %v12693_v31 = vrot.slane %v7466_v38, 5 }
 0x446   : > { %v8211_v5 = vmax.f32 %v8179_v6, 0.0  ;;  %v7092_v3 = vadd.f32 %v12631_v12, %v6805_v48  ;;  %v12684_v60 = vpop.f32.mrf.mxu3  ;;  %9544 = vmatmul.msk.bf16.gmra.mxu1 %vm732_vm1, %v7995_v32  ;;  %v9473_v12 = vld [vmem:[%s10657_s7 + $0xb0] sm:$0x1]  ;;  %v9285_v48 = vld [vmem:[%s10657_s7 + $0x9c] sm:$0xe]  ;;  %v7472_v32 = vrot.slane %v7470_v26, 4 }
 0x447   : > { %v7927_v17 = vrot.slane %v9473_v12, 5  ;;  %v9301_v38 = vrot.slane %v9285_v48, 9  ;;  %v6587_v26 = vrot.slane %v6585_v57, 4 }
 0x448   : > { %v8243_v15 = vpack.c.bf16 %v8211_v5, %v8211_v5  ;;  %v7746_v62 = vadd.f32 %v7672_v58, %v7092_v3  ;;  %v7674_v63 = vpop.f32.mrf.mxu0  ;;  %v7462_v58 = vrot.slane %v7460_v13, 5  ;;  %v6656_v5 = vpack.c.b16 %v6636_v10, %v6635_v47 }
 0x449   : > { %v7597_v3 = vpack.c.b16 %v7577_v43, %v7576_v7  ;;  %v7928_v37 = vsel %vm10025_vm7, %v7926_v0, %v7927_v17  ;;  %v7473_v10 = vor.u32 %v7472_v32, %v12693_v31  ;;  %v7476_v7 = vshll.u32 %v9473_v12, 16  ;;  %v9475_v32 = vld [vmem:[%s10657_s7 + $0xb8] sm:$0xf] }
 0x44a   : > { %8276 = vst.msk [vmem:[%s12606_s21 + $0xc] sm:$0xf] %vm8272_vm8, %v8243_v15  ;;  %v8144_v29 = vadd.f32 %v12627_v36, %v7746_v62  ;;  %v7925_v36 = vsel %vm10025_vm7, %v9528_v42, %v7924_v18  ;;  %v7463_v62 = vor.u32 %v7462_v58, %v7459_v16  ;;  %v9644_v42 = vld [vmem:[%s10657_s7 + $0xa8] sm:$0xff] }
 0x44b   : > { %v6733_v6 = vpop.f32.mrf.mxu2  ;;  %v12697_v19 = vpop.f32.mrf.mxu1  ;;  %v7976_v0 = vunpack.c.l.b16 %v7925_v36  ;;  %v7478_v58 = vrot.slane %v7476_v7, 5 }
 0x44c   : > { %v8180_v25 = vadd.f32 %v12584_v55, %v8144_v29  ;;  %v6806_v9 = vadd.f32 %v6733_v6, %v12016_v4  ;;  %v9701_v4 = vld [vmem:[%s10657_s7 + $0xa4] sm:$0x1]  ;;  %v9474_v29 = vld [vmem:[%s10657_s7 + $0xb4] sm:$0xf]  ;;  %v6586_v6 = vsel %vm10025_vm7, %v9301_v38, %v6585_v57  ;;  %v7464_v16 = vrot.slane %v7463_v62, 4 }
 0x44d   : > { %v6588_v47 = vrot.slane %v9701_v4, 5  ;;  %v7484_v36 = vshll.u32 %v9474_v29, 16  ;;  %v7490_v38 = vshll.u32 %v9475_v32, 16  ;;  %v9513_v4 = vld [vmem:[%s10657_s7 + $0xb4] sm:$0xe] }
 0x44e   : > { %v8212_v33 = vmax.f32 %v8180_v25, 0.0  ;;  %v7093_v13 = vadd.f32 %v12657_v46, %v6806_v9  ;;  %v12704_v15 = vpop.f32.mrf.mxu3  ;;  %v7977_v46 = vunpack.c.l.b16 %v7928_v37  ;;  %v7931_v37 = vrot.slane %v9475_v32, 5 }
 0x44f   : > { %v6589_v12 = vsel %vm10025_vm7, %v6587_v26, %v6588_v47  ;;  %v7494_v26 = vshrl.u32 %v9475_v32, 16  ;;  %v7469_v62 = vsel %vm9809_vm4, %v7464_v16, %v12693_v31 }
 0x450   : > { %v8244_v43 = vpack.c.bf16 %v8212_v33, %v8212_v33  ;;  %v7747_v18 = vadd.f32 %v7674_v63, %v7093_v13  ;;  %9317 = vmatmul.msk.bf16.gmra.mxu2 %vm732_vm1, %v6656_v5  ;;  %v7677_v17 = vpop.f32.mrf.mxu0  ;;  %v7474_v63 = vrot.slane %v7473_v10, 4  ;;  %v7481_v5 = vshrl.u32 %v9474_v29, 16 }
 0x451   : > { %v7933_v29 = vrot.slane %v7931_v37, 4 }
 0x452   : > { %8277 = vst.msk [vmem:[%s12606_s21 + $0x10] sm:$0xf] %vm8272_vm8, %v8244_v43  ;;  %v8145_v28 = vadd.f32 %v12648_v23, %v7747_v18  ;;  %v7996_v23 = vpack.c.b16 %v7977_v46, %v7976_v0  ;;  %v7479_v43 = vsel %vm9809_vm4, %v7474_v63, %v7478_v58  ;;  %v7483_v18 = vrot.slane %v7481_v5, 4 }
 0x453   : > { %v6736_v48 = vpop.f32.mrf.mxu2  ;;  %9495 = vmatmul.msk.bf16.gmra.mxu0 %vm732_vm1, %v7597_v3  ;;  %9431 = vmatmul.msk.bf16.gmra.mxu3 %vm732_vm1, %v9644_v42  ;;  %v12723_v57 = vpop.f32.mrf.mxu1  ;;  %v6637_v3 = vunpack.c.l.b16 %v6586_v6  ;;  %v7486_v0 = vrot.slane %v7484_v36, 5  ;;  %v9529_v46 = vrot.slane %v9513_v4, 9  ;;  %v12739_v6 = vrot.slane %v7490_v38, 5 }
 0x454   : > { %v8181_v25 = vadd.f32 %v12584_v55, %v8145_v28  ;;  %v6807_v9 = vadd.f32 %v6736_v48, %v12053_v56  ;;  %v6638_v56 = vunpack.c.l.b16 %v6589_v12  ;;  %v7578_v12 = vunpack.c.l.b16 %v7469_v62 }
 0x455   : > { %v7579_v16 = vunpack.c.l.b16 %v7479_v43  ;;  %v7487_v36 = vor.u32 %v7486_v0, %v7483_v18 }
 0x456   : > { %v8213_v33 = vmax.f32 %v8181_v25, 0.0  ;;  %v7094_v13 = vadd.f32 %v12684_v60, %v6807_v9  ;;  %v12727_v47 = vpop.f32.mrf.mxu3  ;;  %9545 = vmatmul.msk.bf16.gmra.mxu1 %vm732_vm1, %v7996_v23  ;;  %v9476_v60 = vld [vmem:[%s10657_s7 + $0xbc] sm:$0x1]  ;;  %v6657_v32 = vpack.c.b16 %v6638_v56, %v6637_v3  ;;  %v9286_v25 = vld [vmem:[%s10657_s7 + $0xa8] sm:$0xe] }
 0x457   : > { %v7934_v28 = vrot.slane %v9476_v60, 5  ;;  %v9702_v23 = vld [vmem:[%s10657_s7 + $0xac] sm:$0xf]  ;;  %v7598_v4 = vpack.c.b16 %v7579_v16, %v7578_v12  ;;  %v9302_v56 = vrot.slane %v9286_v25, 9  ;;  %v13027_v12 = vld [vmem:[#allocation12_spill] sm:$0xff] }
 0x458   : > { %v8245_v10 = vpack.c.bf16 %v8213_v33, %v8213_v33  ;;  %v7748_v7 = vadd.f32 %v7677_v17, %v7094_v13  ;;  %v7679_v42 = vpop.f32.mrf.mxu0  ;;  %v7496_v17 = vrot.slane %v7494_v26, 4  ;;  %v6592_v5 = vrot.slane %v9702_v23, 5 }
 0x459   : > { %v7935_v33 = vsel %vm10025_vm7, %v7933_v29, %v7934_v28  ;;  %v7500_v26 = vshll.u32 %v9476_v60, 16  ;;  %v7488_v29 = vrot.slane %v7487_v36, 4 }
 0x45a   : > { %8278 = vst.msk [vmem:[%s12606_s21 + $0x14] sm:$0xf] %vm8272_vm8, %v8245_v10  ;;  %v8146_v31 = vadd.f32 %v12675_v52, %v7748_v7  ;;  %v7932_v52 = vsel %vm10025_vm7, %v9529_v46, %v7931_v37  ;;  %v9645_v37 = vld [vmem:[%s10657_s7 + $0xb4] sm:$0xff]  ;;  %v7979_v43 = vunpack.c.l.b16 %v7935_v33  ;;  %v6594_v0 = vrot.slane %v6592_v5, 4 }
 0x45b   : > { %v6738_v48 = vpop.f32.mrf.mxu2  ;;  %v12744_v9 = vpop.f32.mrf.mxu1  ;;  %v7978_v7 = vunpack.c.l.b16 %v7932_v52  ;;  %v7493_v23 = vsel %vm9809_vm4, %v7488_v29, %v12739_v6 }
 0x45c   : > { %v8182_v63 = vadd.f32 %v12584_v55, %v8146_v31  ;;  %v6808_v58 = vadd.f32 %v6738_v48, %v12080_v49  ;;  %v7497_v49 = vor.u32 %v7496_v17, %v12739_v6  ;;  %v7502_v31 = vrot.slane %v7500_v26, 5 }
 0x45e   : > { %v8214_v13 = vmax.f32 %v8182_v63, 0.0  ;;  %v7095_v38 = vadd.f32 %v12704_v15, %v6808_v58  ;;  %v12753_v3 = vpop.f32.mrf.mxu3  ;;  %v9703_v15 = vld [vmem:[%s10657_s7 + $0xb0] sm:$0x1]  ;;  %v7498_v28 = vrot.slane %v7497_v49, 4  ;;  %v7997_v63 = vpack.c.b16 %v7979_v43, %v7978_v7  ;;  %v9477_v58 = vld [vmem:[%s10657_s7 + $0xc0] sm:$0xf] }
 0x45f   : > { %v6595_v46 = vrot.slane %v9703_v15, 5  ;;  %v7505_v26 = vshrl.u32 %v9477_v58, 16  ;;  %v7580_v7 = vunpack.c.l.b16 %v7493_v23 }
 0x460   : > { %v8246_v62 = vpack.c.bf16 %v8214_v13, %v8214_v13  ;;  %v7749_v10 = vadd.f32 %v7679_v42, %v7095_v38  ;;  %9318 = vmatmul.msk.bf16.gmra.mxu2 %vm732_vm1, %v6657_v32  ;;  %v7682_v18 = vpop.f32.mrf.mxu0  ;;  %v6593_v42 = vsel %vm10025_vm7, %v9302_v56, %v6592_v5  ;;  %v9478_v32 = vld [vmem:[%s10657_s7 + $0xc4] sm:$0xf]  ;;  %v7503_v13 = vsel %vm9809_vm4, %v7498_v28, %v7502_v31  ;;  %v9514_v38 = vld [vmem:[%s10657_s7 + $0xc0] sm:$0xe]  ;;  %v9704_v28 = vld [vmem:[%s10657_s7 + $0xb8] sm:$0xf] }
 0x461   : > { %v7938_v5 = vrot.slane %v9478_v32, 5  ;;  %v6639_v33 = vunpack.c.l.b16 %v6593_v42  ;;  %v7514_v56 = vshll.u32 %v9478_v32, 16  ;;  %v9530_v15 = vrot.slane %v9514_v38, 9  ;;  %v9287_v42 = vld [vmem:[%s10657_s7 + $0xb4] sm:$0xe] }
 0x462   : > { %8279 = vst.msk [vmem:[%s12606_s21 + $0x18] sm:$0xf] %vm8272_vm8, %v8246_v62  ;;  %v8147_v60 = vadd.f32 %v12697_v19, %v7749_v10  ;;  %v6596_v19 = vsel %vm10025_vm7, %v6594_v0, %v6595_v46  ;;  %v7518_v62 = vshrl.u32 %v9478_v32, 16  ;;  %v7581_v0 = vunpack.c.l.b16 %v7503_v13 }
 0x463   : > { %v6741_v17 = vpop.f32.mrf.mxu2  ;;  %9496 = vmatmul.msk.bf16.gmra.mxu0 %vm732_vm1, %v7598_v4  ;;  %9432 = vmatmul.msk.bf16.gmra.mxu3 %vm732_vm1, %v9645_v37  ;;  %v12771_v25 = vpop.f32.mrf.mxu1  ;;  %v7508_v4 = vshll.u32 %v9477_v58, 16  ;;  %v6640_v37 = vunpack.c.l.b16 %v6596_v19  ;;  %v7940_v46 = vrot.slane %v7938_v5, 4  ;;  %v6599_v31 = vrot.slane %v9704_v28, 5 }
 0x464   : > { %v8183_v48 = vadd.f32 %v12584_v55, %v8147_v60  ;;  %v6809_v16 = vadd.f32 %v6741_v17, %v13027_v12  ;;  %v12789_v12 = vrot.slane %v7514_v56, 5  ;;  %v7599_v19 = vpack.c.b16 %v7581_v0, %v7580_v7 }
 0x465   : > { %v6658_v32 = vpack.c.b16 %v6640_v37, %v6639_v33  ;;  %v9303_v38 = vrot.slane %v9287_v42, 9 }
 0x466   : > { %v8215_v36 = vmax.f32 %v8183_v48, 0.0  ;;  %v7096_v52 = vadd.f32 %v12727_v47, %v6809_v16  ;;  %v12780_v49 = vpop.f32.mrf.mxu3  ;;  %9546 = vmatmul.msk.bf16.gmra.mxu1 %vm732_vm1, %v7997_v63  ;;  %v9479_v47 = vld [vmem:[%s10657_s7 + $0xc8] sm:$0x1]  ;;  %v7507_v48 = vrot.slane %v7505_v26, 4  ;;  %v7520_v16 = vrot.slane %v7518_v62, 4 }
 0x467   : > { %v7941_v29 = vrot.slane %v9479_v47, 5  ;;  %v6601_v26 = vrot.slane %v6599_v31, 4 }
 0x468   : > { %v8247_v10 = vpack.c.bf16 %v8215_v36, %v8215_v36  ;;  %v7750_v6 = vadd.f32 %v7682_v18, %v7096_v52  ;;  %v7684_v43 = vpop.f32.mrf.mxu0  ;;  %v7510_v18 = vrot.slane %v7508_v4, 5  ;;  %v7521_v62 = vor.u32 %v7520_v16, %v12789_v12 }
 0x469   : > { %v7942_v36 = vsel %vm10025_vm7, %v7940_v46, %v7941_v29  ;;  %v6600_v46 = vsel %vm10025_vm7, %v9303_v38, %v6599_v31  ;;  %v9481_v31 = vld [vmem:[%s10657_s7 + $0xd0] sm:$0xf] }
 0x46a   : > { %8280 = vst.msk [vmem:[%s12606_s21 + $0x1c] sm:$0xf] %vm8272_vm8, %v8247_v10  ;;  %v8148_v60 = vadd.f32 %v12723_v57, %v7750_v6  ;;  %v7939_v57 = vsel %vm10025_vm7, %v9530_v15, %v7938_v5  ;;  %v7511_v56 = vor.u32 %v7510_v18, %v7507_v48  ;;  %v7524_v10 = vshll.u32 %v9479_v47, 16  ;;  %v9646_v5 = vld [vmem:[%s10657_s7 + $0xc0] sm:$0xff]  ;;  %v9480_v48 = vld [vmem:[%s10657_s7 + $0xcc] sm:$0xf] }
 0x46b   : > { %v6743_v17 = vpop.f32.mrf.mxu2  ;;  %v12793_v23 = vpop.f32.mrf.mxu1  ;;  %v7980_v7 = vunpack.c.l.b16 %v7939_v57  ;;  %v7981_v0 = vunpack.c.l.b16 %v7942_v36  ;;  %v7945_v16 = vrot.slane %v9481_v31, 5  ;;  %v9515_v57 = vld [vmem:[%s10657_s7 + $0xcc] sm:$0xe] }
 0x46c   : > { %v8184_v63 = vadd.f32 %v12584_v55, %v8148_v60  ;;  %v6810_v58 = vadd.f32 %v6743_v17, %v12133_v61  ;;  %v9705_v61 = vld [vmem:[%s10657_s7 + $0xbc] sm:$0x1]  ;;  %v7522_v60 = vrot.slane %v7521_v62, 4  ;;  %v7526_v28 = vrot.slane %v7524_v10, 5 }
 0x46d   : > { %v6602_v33 = vrot.slane %v9705_v61, 5  ;;  %v7532_v61 = vshll.u32 %v9480_v48, 16  ;;  %v7542_v62 = vshrl.u32 %v9481_v31, 16  ;;  %v9531_v10 = vrot.slane %v9515_v57, 9 }
 0x46e   : > { %v8216_v52 = vmax.f32 %v8184_v63, 0.0  ;;  %v7097_v13 = vadd.f32 %v12753_v3, %v6810_v58  ;;  %v12800_v4 = vpop.f32.mrf.mxu3 }
 0x46f   : > { %v6603_v47 = vsel %vm10025_vm7, %v6601_v26, %v6602_v33  ;;  %v7538_v33 = vshll.u32 %v9481_v31, 16 }
 0x470   : > { %v8248_v6 = vpack.c.bf16 %v8216_v52, %v8216_v52  ;;  %v7751_v37 = vadd.f32 %v7684_v43, %v7097_v13  ;;  %9319 = vmatmul.msk.bf16.gmra.mxu2 %vm732_vm1, %v6658_v32  ;;  %v7687_v3 = vpop.f32.mrf.mxu0  ;;  %v7512_v43 = vrot.slane %v7511_v56, 4  ;;  %v6641_v32 = vunpack.c.l.b16 %v6600_v46 }
 0x471   : > { %v7527_v52 = vsel %vm9809_vm4, %v7522_v60, %v7526_v28  ;;  %v7529_v13 = vshrl.u32 %v9480_v48, 16  ;;  %v7534_v28 = vrot.slane %v7532_v61, 5 }
 0x472   : > { %8281 = vst.msk [vmem:[%s12606_s21 + $0x20] sm:$0xf] %vm8272_vm8, %v8248_v6  ;;  %v8149_v15 = vadd.f32 %v12744_v9, %v7751_v37  ;;  %v7998_v9 = vpack.c.b16 %v7981_v0, %v7980_v7  ;;  %v7947_v6 = vrot.slane %v7945_v16, 4 }
 0x473   : > { %v6746_v29 = vpop.f32.mrf.mxu2  ;;  %9497 = vmatmul.msk.bf16.gmra.mxu0 %vm732_vm1, %v7599_v19  ;;  %9433 = vmatmul.msk.bf16.gmra.mxu3 %vm732_vm1, %v9646_v5  ;;  %v12819_v18 = vpop.f32.mrf.mxu1  ;;  %v6642_v19 = vunpack.c.l.b16 %v6603_v47  ;;  %v7531_v60 = vrot.slane %v7529_v13, 4 }
 0x474   : > { %v8185_v17 = vadd.f32 %v12584_v55, %v8149_v15  ;;  %v6811_v42 = vadd.f32 %v6746_v29, %v12142_v21  ;;  %v7517_v21 = vsel %vm9809_vm4, %v7512_v43, %v12789_v12  ;;  %v9706_v15 = vld [vmem:[%s10657_s7 + $0xc4] sm:$0xf]  ;;  %v9288_v43 = vld [vmem:[%s10657_s7 + $0xc0] sm:$0xe] }
 0x475   : > { %v6659_v7 = vpack.c.b16 %v6642_v19, %v6641_v32  ;;  %v7582_v0 = vunpack.c.l.b16 %v7517_v21  ;;  %v6606_v46 = vrot.slane %v9706_v15, 5  ;;  %v9304_v32 = vrot.slane %v9288_v43, 9  ;;  %v9707_v19 = vld [vmem:[%s10657_s7 + $0xc8] sm:$0x1] }
 0x476   : > { %v8217_v63 = vmax.f32 %v8185_v17, 0.0  ;;  %v7098_v58 = vadd.f32 %v12780_v49, %v6811_v42  ;;  %v12823_v36 = vpop.f32.mrf.mxu3  ;;  %9547 = vmatmul.msk.bf16.gmra.mxu1 %vm732_vm1, %v7998_v9  ;;  %v9482_v49 = vld [vmem:[%s10657_s7 + $0xd4] sm:$0x1]  ;;  %v7540_v42 = vrot.slane %v7538_v33, 5  ;;  %v7544_v9 = vrot.slane %v7542_v62, 4 }
 0x477   : > { %v7948_v37 = vrot.slane %v9482_v49, 5  ;;  %v6608_v57 = vrot.slane %v6606_v46, 4  ;;  %v6609_v21 = vrot.slane %v9707_v19, 5  ;;  %v7535_v33 = vor.u32 %v7534_v28, %v7531_v60 }
 0x478   : > { %v8249_v38 = vpack.c.bf16 %v8217_v63, %v8217_v63  ;;  %v7752_v26 = vadd.f32 %v7687_v3, %v7098_v58  ;;  %v7689_v56 = vpop.f32.mrf.mxu0  ;;  %v7583_v3 = vunpack.c.l.b16 %v7527_v52  ;;  %v7545_v62 = vor.u32 %v7544_v9, %v7540_v42 }
 0x479   : > { %v7949_v48 = vsel %vm10025_vm7, %v7947_v6, %v7948_v37  ;;  %v6607_v37 = vsel %vm10025_vm7, %v9304_v32, %v6606_v46 }
 0x47a   : > { %8282 = vst.msk [vmem:[%s12606_s21 + $0x24] sm:$0xf] %vm8272_vm8, %v8249_v38  ;;  %v8150_v12 = vadd.f32 %v12771_v25, %v7752_v26  ;;  %v7946_v25 = vsel %vm10025_vm7, %v9531_v10, %v7945_v16  ;;  %v7600_v58 = vpack.c.b16 %v7583_v3, %v7582_v0  ;;  %v9647_v38 = vld [vmem:[%s10657_s7 + $0xcc] sm:$0xff]  ;;  %v7983_v16 = vunpack.c.l.b16 %v7949_v48 }
 0x47b   : > { %v6748_v5 = vpop.f32.mrf.mxu2  ;;  %v12839_v17 = vpop.f32.mrf.mxu1  ;;  %v7982_v26 = vunpack.c.l.b16 %v7946_v25  ;;  %v7548_v10 = vshll.u32 %v9482_v49, 16  ;;  %v7536_v0 = vrot.slane %v7535_v33, 4  ;;  %v6643_v14 = vunpack.c.l.b16 %v6607_v37 }
 0x47c   : > { %v8186_v29 = vadd.f32 %v12584_v55, %v8150_v12  ;;  %v6812_v47 = vadd.f32 %v6748_v5, %v12156_v20 }
 0x47d   : > { %v7999_v49 = vpack.c.b16 %v7983_v16, %v7982_v26  ;;  %v7550_v3 = vrot.slane %v7548_v10, 5 }
 0x47e   : > { %v8218_v31 = vmax.f32 %v8186_v29, 0.0  ;;  %v7099_v63 = vadd.f32 %v12800_v4, %v6812_v47  ;;  %v7040_v20 = vpop.f32.mrf.mxu3 }
 0x480   : > { %v8250_v52 = vpack.c.bf16 %v8218_v31, %v8218_v31  ;;  %v7753_v13 = vadd.f32 %v7689_v56, %v7099_v63  ;;  %9320 = vmatmul.msk.bf16.gmra.mxu2 %vm732_vm1, %v6659_v7  ;;  %v7692_v61 = vpop.f32.mrf.mxu0  ;;  %v6610_v56 = vsel %vm10025_vm7, %v6608_v57, %v6609_v21 }
 0x481   : > { %v6644_v47 = vunpack.c.l.b16 %v6610_v56 }
 0x482   : > { %8283 = vst.msk [vmem:[%s12606_s21 + $0x28] sm:$0xf] %vm8272_vm8, %v8250_v52  ;;  %v8151_v4 = vadd.f32 %v12793_v23, %v7753_v13  ;;  %v7546_v23 = vrot.slane %v7545_v62, 4 }
 0x483   : > { %v6751_v6 = vpop.f32.mrf.mxu2  ;;  %9498 = vmatmul.msk.bf16.gmra.mxu0 %vm732_vm1, %v7600_v58  ;;  %9434 = vmatmul.msk.bf16.gmra.mxu3 %vm732_vm1, %v9647_v38  ;;  %v8095_v7 = vpop.f32.mrf.mxu1  ;;  %v6660_v48 = vpack.c.b16 %v6644_v47, %v6643_v14 }
 0x484   : > { %v8187_v12 = vadd.f32 %v12584_v55, %v8151_v4  ;;  %v6813_v5 = vadd.f32 %v6751_v6, %v12173_v35  ;;  %v7541_v35 = vsel %vm9809_vm4, %v7536_v0, %v7540_v42  ;;  %v7551_v9 = vsel %vm9809_vm4, %v7546_v23, %v7550_v3 }
 0x485   : > { %v7584_v58 = vunpack.c.l.b16 %v7541_v35  ;;  %v7585_v32 = vunpack.c.l.b16 %v7551_v9 }
 0x486   : > { %v8219_v15 = vmax.f32 %v8187_v12, 0.0  ;;  %v7100_v46 = vadd.f32 %v12823_v36, %v6813_v5  ;;  %v7043_v29 = vpop.f32.mrf.mxu3  ;;  %9548 = vmatmul.msk.bf16.gmra.mxu1 %vm732_vm1, %v7999_v49 }
 0x487   : > { %v7601_v13 = vpack.c.b16 %v7585_v32, %v7584_v58 }
 0x488   : > { %v8251_v43 = vpack.c.bf16 %v8219_v15, %v8219_v15  ;;  %v7754_v60 = vadd.f32 %v7692_v61, %v7100_v46  ;;  %v7694_v28 = vpop.f32.mrf.mxu0 }
 0x48a   : > { %8284 = vst.msk [vmem:[%s12606_s21 + $0x2c] sm:$0xf] %vm8272_vm8, %v8251_v43  ;;  %v8152_v25 = vadd.f32 %v12819_v18, %v7754_v60 }
 0x48b   : > { %v6753_v36 = vpop.f32.mrf.mxu2  ;;  %v8097_v57 = vpop.f32.mrf.mxu1 }
 0x48c   : > { %v8188_v31 = vadd.f32 %v12584_v55, %v8152_v25  ;;  %v6814_v63 = vadd.f32 %v6753_v36, %v12193_v50 }
 0x48e   : > { %v8220_v19 = vmax.f32 %v8188_v31, 0.0  ;;  %v7101_v21 = vadd.f32 %v7040_v20, %v6814_v63  ;;  %v7045_v42 = vpop.f32.mrf.mxu3 }
 0x490   : > { %v8252_v52 = vpack.c.bf16 %v8220_v19, %v8220_v19  ;;  %v7755_v39 = vadd.f32 %v7694_v28, %v7101_v21  ;;  %9321 = vmatmul.msk.bf16.gmra.mxu2 %vm732_vm1, %v6660_v48  ;;  %v7697_v18 = vpop.f32.mrf.mxu0 }
 0x492   : > { %8285 = vst.msk [vmem:[%s12606_s21 + $0x30] sm:$0xf] %vm8272_vm8, %v8252_v52  ;;  %v8153_v38 = vadd.f32 %v12839_v17, %v7755_v39 }
 0x493   : > { %v6756_v26 = vpop.f32.mrf.mxu2  ;;  %9499 = vmatmul.msk.bf16.gmra.mxu0 %vm732_vm1, %v7601_v13  ;;  %v8100_v20 = vpop.f32.mrf.mxu1 }
 0x494   : > { %v8189_v50 = vadd.f32 %v12584_v55, %v8153_v38  ;;  %v6815_v16 = vadd.f32 %v6756_v26, %v12212_v24 }
 0x496   : > { %v8221_v61 = vmax.f32 %v8189_v50, 0.0  ;;  %v7102_v33 = vadd.f32 %v7043_v29, %v6815_v16  ;;  %v7048_v62 = vpop.f32.mrf.mxu3 }
 0x498   : > { %v8253_v10 = vpack.c.bf16 %v8221_v61, %v8221_v61  ;;  %v7756_v4 = vadd.f32 %v7697_v18, %v7102_v33  ;;  %v7699_v6 = vpop.f32.mrf.mxu0 }
 0x49a   : > { %8286 = vst.msk [vmem:[%s12606_s21 + $0x34] sm:$0xf] %vm8272_vm8, %v8253_v10  ;;  %v8154_v37 = vadd.f32 %v8095_v7, %v7756_v4 }
 0x49b   : > { %v6758_v56 = vpop.f32.mrf.mxu2  ;;  %v8102_v5 = vpop.f32.mrf.mxu1 }
 0x49c   : > { %v8190_v17 = vadd.f32 %v12584_v55, %v8154_v37  ;;  %v6816_v12 = vadd.f32 %v6758_v56, %v12230_v54 }
 0x49e   : > { %v8222_v49 = vmax.f32 %v8190_v17, 0.0  ;;  %v7103_v0 = vadd.f32 %v7045_v42, %v6816_v12  ;;  %v7050_v24 = vpop.f32.mrf.mxu3 }
 0x4a0   : > { %v8254_v23 = vpack.c.bf16 %v8222_v49, %v8222_v49  ;;  %v7757_v3 = vadd.f32 %v7699_v6, %v7103_v0  ;;  %v7702_v15 = vpop.f32.mrf.mxu0  ;;  %v12903_v0 = vld [vmem:[%s12963_s4] ss:$0 sm:$0xff] }
 0x4a2   : > { %8287 = vst.msk [vmem:[%s12606_s21 + $0x38] sm:$0xf] %vm8272_vm8, %v8254_v23  ;;  %v8155_v46 = vadd.f32 %v8097_v57, %v7757_v3 }
 0x4a3   : > { %v6761_v29 = vpop.f32.mrf.mxu2  ;;  %v8105_v47 = vpop.f32.mrf.mxu1 }
 0x4a4   : > { %v8191_v14 = vadd.f32 %v12584_v55, %v8155_v46  ;;  %v6817_v7 = vadd.f32 %v6761_v29, %v12251_v59 }
 0x4a6   : > { %v8223_v43 = vmax.f32 %v8191_v14, 0.0  ;;  %v7104_v60 = vadd.f32 %v7048_v62, %v6817_v7  ;;  %v7053_v54 = vpop.f32.mrf.mxu3 }
 0x4a8   : > { %v8255_v28 = vpack.c.bf16 %v8223_v43, %v8223_v43  ;;  %v7758_v35 = vadd.f32 %v7702_v15, %v7104_v60  ;;  %v7704_v9 = vpop.f32.mrf.mxu0 }
 0x4aa   : > { %8288 = vst.msk [vmem:[%s12606_s21 + $0x3c] sm:$0xf] %vm8272_vm8, %v8255_v28  ;;  %v8156_v25 = vadd.f32 %v8100_v20, %v7758_v35 }
 0x4ab   : > { %v6763_v36 = vpop.f32.mrf.mxu2  ;;  %v8107_v63 = vpop.f32.mrf.mxu1 }
 0x4ac   : > { %v8192_v48 = vadd.f32 %v12584_v55, %v8156_v25  ;;  %v6818_v31 = vadd.f32 %v6763_v36, %v12271_v11 }
 0x4ae   : > { %v8224_v58 = vmax.f32 %v8192_v48, 0.0  ;;  %v7105_v32 = vadd.f32 %v7050_v24, %v6818_v31  ;;  %v7055_v59 = vpop.f32.mrf.mxu3 }
 0x4b0   : > { %v8256_v57 = vpack.c.bf16 %v8224_v58, %v8224_v58  ;;  %v7759_v19 = vadd.f32 %v7704_v9, %v7105_v32  ;;  %v7707_v21 = vpop.f32.mrf.mxu0 }
 0x4b2   : > { %8289 = vst.msk [vmem:[%s12606_s21 + $0x40] sm:$0xf] %vm8272_vm8, %v8256_v57  ;;  %v8157_v42 = vadd.f32 %v8102_v5, %v7759_v19 }
 0x4b3   : > { %v6766_v52 = vpop.f32.mrf.mxu2  ;;  %v8110_v18 = vpop.f32.mrf.mxu1 }
 0x4b4   : > { %v8193_v39 = vadd.f32 %v12584_v55, %v8157_v42  ;;  %v6819_v13 = vadd.f32 %v6766_v52, %v12290_v44 }
 0x4b6   : > { %v8225_v38 = vmax.f32 %v8193_v39, 0.0  ;;  %v7106_v26 = vadd.f32 %v7053_v54, %v6819_v13  ;;  %v7058_v11 = vpop.f32.mrf.mxu3 }
 0x4b8   : > { %v8257_v50 = vpack.c.bf16 %v8225_v38, %v8225_v38  ;;  %v7760_v16 = vadd.f32 %v7707_v21, %v7106_v26  ;;  %v7709_v20 = vpop.f32.mrf.mxu0 }
 0x4ba   : > { %8290 = vst.msk [vmem:[%s12606_s21 + $0x44] sm:$0xf] %vm8272_vm8, %v8257_v50  ;;  %v8158_v61 = vadd.f32 %v8105_v47, %v7760_v16 }
 0x4bb   : > { %v6768_v33 = vpop.f32.mrf.mxu2  ;;  %v8112_v4 = vpop.f32.mrf.mxu1 }
 0x4bc   : > { %v8194_v62 = vadd.f32 %v12584_v55, %v8158_v61  ;;  %v6820_v10 = vadd.f32 %v6768_v33, %v12312_v41 }
 0x4be   : > { %v8226_v6 = vmax.f32 %v8194_v62, 0.0  ;;  %v7107_v37 = vadd.f32 %v7055_v59, %v6820_v10  ;;  %v7060_v44 = vpop.f32.mrf.mxu3 }
 0x4c0   : > { %v8258_v56 = vpack.c.bf16 %v8226_v6, %v8226_v6  ;;  %v7761_v17 = vadd.f32 %v7709_v20, %v7107_v37  ;;  %v7712_v12 = vpop.f32.mrf.mxu0 }
 0x4c2   : > { %8291 = vst.msk [vmem:[%s12606_s21 + $0x48] sm:$0xf] %vm8272_vm8, %v8258_v56  ;;  %v8159_v5 = vadd.f32 %v8107_v63, %v7761_v17 }
 0x4c3   : > { %v6771_v49 = vpop.f32.mrf.mxu2  ;;  %v8115_v15 = vpop.f32.mrf.mxu1 }
 0x4c4   : > { %v8195_v55 = vadd.f32 %v12903_v0, %v8159_v5  ;;  %v6821_v41 = vadd.f32 %v6771_v49, %v12331_v45 }
 0x4c6   : > { %v8227_v24 = vmax.f32 %v8195_v55, 0.0  ;;  %v7108_v23 = vadd.f32 %v7058_v11, %v6821_v41  ;;  %v7063_v3 = vpop.f32.mrf.mxu3 }
 0x4c8   : > { %v8259_v46 = vpack.c.bf16 %v8227_v24, %v8227_v24  ;;  %v7762_v29 = vadd.f32 %v7712_v12, %v7108_v23  ;;  %v7714_v14 = vpop.f32.mrf.mxu0 }
 0x4ca   : > { %8292 = vst.msk [vmem:[%s12606_s21 + $0x4c] sm:$0xf] %vm8272_vm8, %v8259_v46  ;;  %v8160_v7 = vadd.f32 %v8110_v18, %v7762_v29 }
 0x4cb   : > { %v6773_v47 = vpop.f32.mrf.mxu2  ;;  %v8117_v36 = vpop.f32.mrf.mxu1 }
 0x4cc   : > { %v8196_v43 = vadd.f32 %v12903_v0, %v8160_v7  ;;  %v6822_v60 = vadd.f32 %v6773_v47, %v12356_v27 }
 0x4ce   : > { %v8228_v54 = vmax.f32 %v8196_v43, 0.0  ;;  %v7109_v28 = vadd.f32 %v7060_v44, %v6822_v60  ;;  %v7065_v35 = vpop.f32.mrf.mxu3 }
 0x4d0   : > { %v8260_v45 = vpack.c.bf16 %v8228_v54, %v8228_v54  ;;  %v7763_v9 = vadd.f32 %v7714_v14, %v7109_v28  ;;  %v7717_v25 = vpop.f32.mrf.mxu0 }
 0x4d2   : > { %8293 = vst.msk [vmem:[%s12606_s21 + $0x50] sm:$0xf] %vm8272_vm8, %v8260_v45  ;;  %v8161_v48 = vadd.f32 %v8112_v4, %v7763_v9 }
 0x4d3   : > { %v6776_v31 = vpop.f32.mrf.mxu2  ;;  %v8120_v39 = vpop.f32.mrf.mxu1 }
 0x4d4   : > { %v8197_v63 = vadd.f32 %v12903_v0, %v8161_v48  ;;  %v6823_v58 = vadd.f32 %v6776_v31, %v12377_v1 }
 0x4d6   : > { %v8229_v32 = vmax.f32 %v8197_v63, 0.0  ;;  %v7110_v59 = vadd.f32 %v7063_v3, %v6823_v58  ;;  %v7068_v57 = vpop.f32.mrf.mxu3 }
 0x4d8   : > { %v8261_v27 = vpack.c.bf16 %v8229_v32, %v8229_v32  ;;  %v7764_v19 = vadd.f32 %v7717_v25, %v7110_v59  ;;  %v7719_v21 = vpop.f32.mrf.mxu0 }
 0x4da   : > { %8294 = vst.msk [vmem:[%s12606_s21 + $0x54] sm:$0xf] %vm8272_vm8, %v8261_v27  ;;  %v8162_v42 = vadd.f32 %v8115_v15, %v7764_v19 }
 0x4db   : > { %v6778_v52 = vpop.f32.mrf.mxu2  ;;  %v8122_v10 = vpop.f32.mrf.mxu1 }
 0x4dc   : > { %v8198_v13 = vadd.f32 %v12903_v0, %v8162_v42  ;;  %v6824_v18 = vadd.f32 %v6778_v52, %v12394_v34 }
 0x4de   : > { %v8230_v38 = vmax.f32 %v8198_v13, 0.0  ;;  %v7111_v26 = vadd.f32 %v7065_v35, %v6824_v18  ;;  %v7070_v16 = vpop.f32.mrf.mxu3 }
 0x4e0   : > { %v8262_v1 = vpack.c.bf16 %v8230_v38, %v8230_v38  ;;  %v7765_v11 = vadd.f32 %v7719_v21, %v7111_v26  ;;  %v7722_v50 = vpop.f32.mrf.mxu0 }
 0x4e2   : > { %8295 = vst.msk [vmem:[%s12606_s21 + $0x58] sm:$0xf] %vm8272_vm8, %v8262_v1  ;;  %v8163_v20 = vadd.f32 %v8117_v36, %v7765_v11 }
 0x4e3   : > { %v6781_v61 = vpop.f32.mrf.mxu2  ;;  %v8125_v24 = vpop.f32.mrf.mxu1 }
 0x4e4   : > { %v8199_v33 = vadd.f32 %v12903_v0, %v8163_v20  ;;  %v6825_v62 = vadd.f32 %v6781_v61, %v12416_v30 }
 0x4e6   : > { %v8231_v4 = vmax.f32 %v8199_v33, 0.0  ;;  %v7112_v6 = vadd.f32 %v7068_v57, %v6825_v62  ;;  %v7073_v12 = vpop.f32.mrf.mxu3 }
 0x4e8   : > { %v8263_v34 = vpack.c.bf16 %v8231_v4, %v8231_v4  ;;  %v7766_v37 = vadd.f32 %v7722_v50, %v7112_v6  ;;  %v7724_v44 = vpop.f32.mrf.mxu0 }
 0x4ea   : > { %8296 = vst.msk [vmem:[%s12606_s21 + $0x5c] sm:$0xf] %vm8272_vm8, %v8263_v34  ;;  %v8164_v56 = vadd.f32 %v8120_v39, %v7766_v37 }
 0x4eb   : > { %v6783_v17 = vpop.f32.mrf.mxu2  ;;  %v8127_v28 = vpop.f32.mrf.mxu1 }
 0x4ec   : > { %v8200_v5 = vadd.f32 %v12903_v0, %v8164_v56  ;;  %v6826_v49 = vadd.f32 %v6783_v17, %v12435_v40 }
 0x4ee   : > { %v8232_v55 = vmax.f32 %v8200_v5, 0.0  ;;  %v7113_v41 = vadd.f32 %v7070_v16, %v6826_v49  ;;  %v7075_v7 = vpop.f32.mrf.mxu3  ;;  %v13028_v49 = vld [vmem:[#allocation6_spill] sm:$0xff] }
 0x4f0   : > { %v8264_v30 = vpack.c.bf16 %v8232_v55, %v8232_v55  ;;  %v7767_v23 = vadd.f32 %v7724_v44, %v7113_v41  ;;  %v7727_v3 = vpop.f32.mrf.mxu0 }
 0x4f2   : > { %8297 = vst.msk [vmem:[%s12606_s21 + $0x60] sm:$0xf] %vm8272_vm8, %v8264_v30  ;;  %v8165_v15 = vadd.f32 %v8122_v10, %v7767_v23 }
 0x4f3   : > { %v6786_v46 = vpop.f32.mrf.mxu2  ;;  %v8130_v59 = vpop.f32.mrf.mxu1 }
 0x4f4   : > { %v8201_v29 = vadd.f32 %v12903_v0, %v8165_v15  ;;  %v6827_v14 = vadd.f32 %v6786_v46, %v12454_v2 }
 0x4f6   : > { %v8233_v47 = vmax.f32 %v8201_v29, 0.0  ;;  %v7114_v43 = vadd.f32 %v7073_v12, %v6827_v14  ;;  %v7078_v2 = vpop.f32.mrf.mxu3 }
 0x4f8   : > { %v8265_v40 = vpack.c.bf16 %v8233_v47, %v8233_v47  ;;  %v7768_v60 = vadd.f32 %v7727_v3, %v7114_v43  ;;  %v7729_v54 = vpop.f32.mrf.mxu0 }
 0x4fa   : > { %8298 = vst.msk [vmem:[%s12606_s21 + $0x64] sm:$0xf] %vm8272_vm8, %v8265_v40  ;;  %v8166_v35 = vadd.f32 %v8125_v24, %v7768_v60 }
 0x4fb   : > { %v6788_v45 = vpop.f32.mrf.mxu2  ;;  %v8132_v11 = vpop.f32.mrf.mxu1 }
 0x4fc   : > { %v8202_v9 = vadd.f32 %v12903_v0, %v8166_v35  ;;  %v6828_v25 = vadd.f32 %v6788_v45, %v12475_v53 }
 0x4fe   : > { %v8234_v36 = vmax.f32 %v8202_v9, 0.0  ;;  %v7115_v48 = vadd.f32 %v7075_v7, %v6828_v25  ;;  %v7080_v39 = vpop.f32.mrf.mxu3 }
 0x500   : > { %v8266_v31 = vpack.c.bf16 %v8234_v36, %v8234_v36  ;;  %v7769_v63 = vadd.f32 %v7729_v54, %v7115_v48  ;;  %v7732_v58 = vpop.f32.mrf.mxu0 }
 0x502   : > { %8299 = vst.msk [vmem:[%s12606_s21 + $0x68] sm:$0xf] %vm8272_vm8, %v8266_v31  ;;  %v8167_v32 = vadd.f32 %v8127_v28, %v7769_v63 }
 0x503   : > { %v6791_v57 = vpop.f32.mrf.mxu2 }
 0x504   : > { %v8203_v27 = vadd.f32 %v12903_v0, %v8167_v32  ;;  %v6829_v19 = vadd.f32 %v6791_v57, %v12500_v22 }
 0x506   : > { %v8235_v21 = vmax.f32 %v8203_v27, 0.0  ;;  %v7116_v42 = vadd.f32 %v7078_v2, %v6829_v19  ;;  %v7083_v33 = vpop.f32.mrf.mxu3 }
 0x508   : > { %v8267_v53 = vpack.c.bf16 %v8235_v21, %v8235_v21  ;;  %v7770_v52 = vadd.f32 %v7732_v58, %v7116_v42  ;;  %v7734_v18 = vpop.f32.mrf.mxu0 }
 0x50a   : > { %8300 = vst.msk [vmem:[%s12606_s21 + $0x6c] sm:$0xf] %vm8272_vm8, %v8267_v53  ;;  %v8168_v13 = vadd.f32 %v8130_v59, %v7770_v52 }
 0x50b   : > { %v6793_v38 = vpop.f32.mrf.mxu2 }
 0x50c   : > { %v8204_v26 = vadd.f32 %v12903_v0, %v8168_v13  ;;  %v6830_v1 = vadd.f32 %v6793_v38, %v12526_v8  ;;  %v8135_v8 = vpop.f32.mrf.mxu1 }
 0x50e   : > { %v8236_v50 = vmax.f32 %v8204_v26, 0.0  ;;  %v7117_v16 = vadd.f32 %v7080_v39, %v6830_v1  ;;  %v7085_v41 = vpop.f32.mrf.mxu3 }
 0x510   : > { %v8268_v22 = vpack.c.bf16 %v8236_v50, %v8236_v50  ;;  %v7771_v20 = vadd.f32 %v7734_v18, %v7117_v16  ;;  %v7737_v6 = vpop.f32.mrf.mxu0 }
 0x512   : > { %8301 = vst.msk [vmem:[%s12606_s21 + $0x70] sm:$0xf] %vm8272_vm8, %v8268_v22  ;;  %v8169_v61 = vadd.f32 %v8132_v11, %v7771_v20 }
 0x513   : > { %v6796_v62 = vpop.f32.mrf.mxu2 }
 0x514   : > { %v8205_v10 = vadd.f32 %v12903_v0, %v8169_v61  ;;  %v6831_v4 = vadd.f32 %v6796_v62, %v12543_v51  ;;  %v8137_v15 = vpop.f32.mrf.mxu1 }
 0x516   : > { %v8237_v34 = vmax.f32 %v8205_v10, 0.0  ;;  %v7118_v37 = vadd.f32 %v7083_v33, %v6831_v4 }
 0x518   : > { %v8269_v44 = vpack.c.bf16 %v8237_v34, %v8237_v34  ;;  %v7772_v56 = vadd.f32 %v7737_v6, %v7118_v37  ;;  %v7739_v51 = vpop.f32.mrf.mxu0 }
 0x51a   : > { %8302 = vst.msk [vmem:[%s12606_s21 + $0x74] sm:$0xf] %vm8272_vm8, %v8269_v44  ;;  %v8170_v17 = vadd.f32 %v8135_v8, %v7772_v56 }
 0x51b   : > { %v6798_v12 = vpop.f32.mrf.mxu2 }
 0x51c   : > { %v8206_v5 = vadd.f32 %v12903_v0, %v8170_v17  ;;  %v6832_v55 = vadd.f32 %v6798_v12, %v13028_v49 }
 0x51e   : > { %v8238_v24 = vmax.f32 %v8206_v5, 0.0  ;;  %v7119_v30 = vadd.f32 %v7085_v41, %v6832_v55 }
 0x520   : > { %v8270_v23 = vpack.c.bf16 %v8238_v24, %v8238_v24  ;;  %v7773_v3 = vadd.f32 %v7739_v51, %v7119_v30 }
 0x522   : > { %8303 = vst.msk [vmem:[%s12606_s21 + $0x78] sm:$0xf] %vm8272_vm8, %v8270_v23  ;;  %v8171_v46 = vadd.f32 %v8137_v15, %v7773_v3 }
 0x524   : > { %v8207_v29 = vadd.f32 %v12903_v0, %v8171_v46 }
 0x526   : > { %v8239_v14 = vmax.f32 %v8207_v29, 0.0 }
 0x528   : > { %v8271_v7 = vpack.c.bf16 %v8239_v14, %v8239_v14 }
 0x52a   : > { %8304 = vst.msk [vmem:[%s12606_s21 + $0x7c] sm:$0xf] %vm8272_vm8, %v8271_v7 }
 0x52b PF: > { %s15_s18 = sadd.s32 1, %s9715_s18  }
 0x52c   : > { %p12_p4 = scmp.ge.s32.totalorder %s15_s18, 4  }
 0x52e   :  { %14 = sbr.rel (!%p12_p4) target bundleno = 1 (0x1), region = 93 }

</bundles_post_ra>
